<compile_context>
chip_gen: v6e
topology: v6e:2x2x1
jax: 0.10.0
libtpu: 0.0.40
codegen_flags: <defaults>
</compile_context>

<pallas_src>
import jax
import jax.numpy as jnp
from jax.experimental import pallas as pl
from jax.experimental.pallas import tpu as pltpu

NETWORK_CHANNELS = 64   # `network_channels` in the module
T = 32                  # time frames (hard-coded "32" in x.view(-1, 64, 32, P))
CH = 64                 # band channels (hard-coded "64" in x.view(-1, 64, 32, P))
PERIOD_FEATS = 8        # BandEncoder period projection width (64 * 8 = 512)
N = NETWORK_CHANNELS


def encoder_branch_kernel(x_ref, w_ref, btab_ref, o_ref, xt_ref):
    """One row-block (bpb batch elements x T frames) per grid step.

    x_ref    : (bpb, CH, T, P) f32  native-layout input block (auto-pipelined)
    w_ref    : (CH*P, 3*N)     bf16 fused BandEncoder+Linear(512,64)+factor
                                    weight, post-multiplied by each conv tap
    btab_ref : (3, N)          f32  [bias_mid ; bias_first_delta ; bias_last_delta]
    o_ref    : (bpb*T, N)      f32  output rows (row = b*T + t)
    xt_ref   : (bpb*T, CH*P)   bf16 scratch holding the relayouted rows
    """
    bpb = x_ref.shape[0]
    P = x_ref.shape[3]
    R = bpb * T

    # ---- on-chip relayout: (b, c, t, p) -> rows (b, t), cols (c, p), bf16 ----
    for c in range(CH):
        slab = x_ref[:, c, :, :].reshape(R, P).astype(jnp.bfloat16)   # (R, P)
        xt_ref[:, c * P:(c + 1) * P] = slab

    # ---- fused matmul: BandEncoder + Linear(512,64) + factor + conv taps ----
    # Columns: [u0 | u1 | u2] with u_k = (x @ Wcomb) @ wc[k]  (bias-free).
    U = jnp.dot(xt_ref[...], w_ref[...], preferred_element_type=jnp.float32)  # (R, 3N)
    u0 = U[:, 0:N]
    u1 = U[:, N:2 * N]
    u2 = U[:, 2 * N:3 * N]

    # Conv1d(64, 64, 3, 1, 1) along time via shifts; zero padding at segment
    # edges is enforced by the `row % T` masks (blocks are batch-aligned and
    # R is a multiple of T, so roll wrap-around rows are exactly the masked ones).
    rows = jax.lax.broadcasted_iota(jnp.int32, (R, N), 0)
    t_in_seg = rows % T
    first = t_in_seg == 0
    last = t_in_seg == T - 1

    u0s = jnp.where(first, 0.0, pltpu.roll(u0, shift=1, axis=0))       # tap0 @ y[t-1]
    u2s = jnp.where(last, 0.0, pltpu.roll(u2, shift=R - 1, axis=0))    # tap2 @ y[t+1]

    z = u0s + u1 + u2s + btab_ref[0:1, :]                # interior bias
    z = z + jnp.where(first, btab_ref[1:2, :], 0.0)      # drop tap-0 bias at t=0
    z = z + jnp.where(last, btab_ref[2:3, :], 0.0)       # drop tap-2 bias at t=T-1

    # F.leaky_relu(z, 0.2)
    o_ref[...] = jnp.where(z >= 0, z, 0.2 * z)


def _pick_batches_per_block(B, P, vmem_budget_bytes):
    """Batch elements per grid step, sized from a VMEM budget.

    Accounts for: double-buffered f32 input block (whose minor dim P is lane
    padded to a multiple of 128 in VMEM), the bf16 relayout scratch, the
    double-buffered output block and the resident fused weight."""
    padded_p = ((P + 127) // 128) * 128
    per_b = (2 * CH * T * padded_p * 4      # input block, double buffered, lane padded
             + T * CH * P * 2               # bf16 relayout scratch
             + 2 * T * N * 4)               # output block, double buffered
    fixed = CH * P * 3 * N * 2 + 3 * N * 4  # fused weight (bf16) + bias table
    bpb = max(1, (vmem_budget_bytes - fixed) // per_b)
    bpb = int(min(bpb, 64, B))              # cap rows/block at 2048, and at B
    # Balance block sizes across the cdiv grid (avoids a tiny ragged tail and,
    # when B is large, gives both v7x TensorCores comparable work).
    nblocks = -(-B // bpb)
    bpb = -(-B // nblocks)
    return bpb


def encoder_branch_forward(x, params, *, vmem_budget_bytes=32 * 1024 * 1024):
    """x: (B, 64, 32, P) float32 (i.e. already matching x.view(-1, 64, 32, P))."""
    B, ch, tt, P = x.shape
    assert ch == CH and tt == T, "EncoderBranch hard-codes x.view(-1, 64, 32, P)"
    d_in = CH * P

    # ---- parameter fusion (tiny, plain JAX; no per-element passes over x) ----
    f = jnp.clip(params["factor"], 0.0, 1.0)[0]
    wp, bp = params["wp"], params["bp"]                    # (P, 8), (8,)
    wl, bl = params["wl"], params["bl"]                    # (512, 64), (64,)
    wc, bc = params["wc"], params["bc"]                    # (3, 64, 64), (64,)

    # Wcomb[c*P + p, n] = sum_f wp[p, f] * wl[c*8 + f, n], scaled by clamp(factor)
    wl3 = wl.reshape(CH, PERIOD_FEATS, N)
    wcomb = jnp.einsum("pf,cfn->cpn", wp, wl3).reshape(d_in, N) * f
    bcomb = jnp.tile(bp, CH) @ wl + bl                     # (64,)

    # Fold the conv taps: one (d_in, 3N) weight -> [u0 | u1 | u2]
    wcat = jnp.concatenate([wcomb @ wc[0], wcomb @ wc[1], wcomb @ wc[2]], axis=1)
    wcat = wcat.astype(jnp.bfloat16)                       # (d_in, 192)

    bias_mid = bc + bcomb @ (wc[0] + wc[1] + wc[2])        # interior frames
    bias_first_delta = -(bcomb @ wc[0])                    # t == 0   (no y[t-1])
    bias_last_delta = -(bcomb @ wc[2])                     # t == T-1 (no y[t+1])
    btab = jnp.stack([bias_mid, bias_first_delta, bias_last_delta]).astype(jnp.float32)

    bpb = _pick_batches_per_block(B, P, vmem_budget_bytes)
    rows_per_block = bpb * T
    grid = (pl.cdiv(B, bpb),)

    out = pl.pallas_call(
        encoder_branch_kernel,
        out_shape=jax.ShapeDtypeStruct((B * T, N), jnp.float32),
        grid=grid,
        in_specs=[
            pl.BlockSpec((bpb, CH, T, P), lambda i: (i, 0, 0, 0)),   # native x block
            pl.BlockSpec((d_in, 3 * N), lambda i: (0, 0)),           # fused weight
            pl.BlockSpec((3, N), lambda i: (0, 0)),                  # bias table
        ],
        out_specs=pl.BlockSpec((rows_per_block, N), lambda i: (i, 0)),
        scratch_shapes=[pltpu.VMEM((rows_per_block, d_in), jnp.bfloat16)],
        compiler_params=pltpu.CompilerParams(
            dimension_semantics=("parallel",),
            vmem_limit_bytes=48 * 1024 * 1024,
        ),
    )(x, wcat, btab)

    return out.reshape(B, T, N)


def ref_forward(x, params):
    """Pure-JAX f32 reference mirroring the PyTorch forward (sanity check)."""
    B = x.shape[0]
    f = jnp.clip(params["factor"], 0.0, 1.0)
    xx = x * f                                                            # (B, 64, 32, P)
    # BandEncoder (reconstructed): Linear(P -> 8) per (channel, frame)
    h = jnp.einsum("bctp,pf->bctf", xx, params["wp"]) + params["bp"]      # (B, 64, 32, 8)
    # -> (B, 512, 32) with channel = c*8 + f, then EncoderBranch's permute(0, 2, 1)
    h = jnp.transpose(h, (0, 2, 1, 3)).reshape(B, T, CH * PERIOD_FEATS)   # (B, 32, 512)
    y = h @ params["wl"] + params["bl"]                                   # (B, 32, 64)
    # Conv1d(64, 64, 3, 1, 1) over time
    ym1 = jnp.pad(y, ((0, 0), (1, 0), (0, 0)))[:, :T, :]
    yp1 = jnp.pad(y, ((0, 0), (0, 1), (0, 0)))[:, 1:, :]
    z = (jnp.einsum("btc,cd->btd", ym1, params["wc"][0])
         + jnp.einsum("btc,cd->btd", y, params["wc"][1])
         + jnp.einsum("btc,cd->btd", yp1, params["wc"][2])
         + params["bc"])
    return jnp.where(z >= 0, z, 0.2 * z)                                  # (B, 32, 64)


if __name__ == "__main__":
    B = 2
    P = 32  # periodicity_feature_size (small, synthetic)

    key = jax.random.PRNGKey(0)
    ks = jax.random.split(key, 7)
    x = jax.random.normal(ks[0], (B, CH, T, P), dtype=jnp.float32)

    params = {
        "factor": jnp.full((1,), 0.5, dtype=jnp.float32),  # nn.Parameter(...).fill_(0.5)
        "wp": 0.10 * jax.random.normal(ks[1], (P, PERIOD_FEATS), dtype=jnp.float32),
        "bp": 0.10 * jax.random.normal(ks[2], (PERIOD_FEATS,), dtype=jnp.float32),
        "wl": 0.05 * jax.random.normal(ks[3], (CH * PERIOD_FEATS, NETWORK_CHANNELS),
                                       dtype=jnp.float32),
        "bl": 0.05 * jax.random.normal(ks[4], (NETWORK_CHANNELS,), dtype=jnp.float32),
        "wc": 0.05 * jax.random.normal(ks[5], (3, NETWORK_CHANNELS, NETWORK_CHANNELS),
                                       dtype=jnp.float32),
        "bc": 0.05 * jax.random.normal(ks[6], (NETWORK_CHANNELS,), dtype=jnp.float32),
    }

    out = jax.block_until_ready(encoder_branch_forward(x, params))
    assert out.shape == (B, T, NETWORK_CHANNELS)

    ref = jax.block_until_ready(ref_forward(x, params))
    max_err = float(jnp.max(jnp.abs(out - ref)))
    # Tolerance accounts for bf16 MXU operands (f32 accumulation) vs f32 reference.
    if not (max_err < 2e-2):
        raise AssertionError(f"kernel/reference mismatch: max abs err = {max_err}")

    print("KERNEL_OK")
</pallas_src>

<mosaic_0001>
module attributes {stable_mosaic.version = 11 : i64} {
  func.func @encoder_branch_kernel(%arg0: i32, %arg1: memref<2x64x32x32xf32, #tpu.memory_space<vmem>>, %arg2: memref<2048x192xbf16, #tpu.memory_space<vmem>>, %arg3: memref<3x64xf32, #tpu.memory_space<vmem>>, %arg4: memref<64x64xf32, #tpu.memory_space<vmem>>, %arg5: memref<64x2048xbf16, #tpu.memory_space<vmem>>) attributes {dimension_semantics = [#tpu.dimension_semantics<parallel>], iteration_bounds = array<i64: 1>, scalar_prefetch = 0 : i64, scratch_operands = 1 : i64, tpu.core_type = #tpu.core_type<tc>, window_params = [{transform_indices = @transform_0, window_bounds = array<i64: 2, 64, 32, 32>}, {pipeline_mode = #tpu.pipeline_mode<synchronous>, transform_indices = @transform_1, window_bounds = array<i64: 2048, 192>}, {pipeline_mode = #tpu.pipeline_mode<synchronous>, transform_indices = @transform_2, window_bounds = array<i64: 3, 64>}, {transform_indices = @transform_3, window_bounds = array<i64: 64, 64>}]} {
    %c0 = arith.constant 0 : index
    %c0_0 = arith.constant 0 : index
    %c0_1 = arith.constant 0 : index
    %c0_2 = arith.constant 0 : index
    %0 = vector.load %arg1[%c0, %c0_0, %c0_1, %c0_2] : memref<2x64x32x32xf32, #tpu.memory_space<vmem>>, vector<2x1x32x32xf32>
    %1 = vector.shape_cast %0 : vector<2x1x32x32xf32> to vector<2x32x32xf32>
    %2 = vector.shape_cast %1 : vector<2x32x32xf32> to vector<64x32xf32>
    %3 = arith.truncf %2 : vector<64x32xf32> to vector<64x32xbf16>
    %c0_3 = arith.constant 0 : index
    %c0_4 = arith.constant 0 : index
    %4 = vector.load %arg5[%c0_3, %c0_4] : memref<64x2048xbf16, #tpu.memory_space<vmem>>, vector<64x32xbf16>
    tpu.vector_store %arg5[%c0_3, %c0_4], %3 {strides = array<i32>} : memref<64x2048xbf16, #tpu.memory_space<vmem>>, vector<64x32xbf16>,
    %c0_5 = arith.constant 0 : index
    %c1 = arith.constant 1 : index
    %c0_6 = arith.constant 0 : index
    %c0_7 = arith.constant 0 : index
    %5 = vector.load %arg1[%c0_5, %c1, %c0_6, %c0_7] : memref<2x64x32x32xf32, #tpu.memory_space<vmem>>, vector<2x1x32x32xf32>
    %6 = vector.shape_cast %5 : vector<2x1x32x32xf32> to vector<2x32x32xf32>
    %7 = vector.shape_cast %6 : vector<2x32x32xf32> to vector<64x32xf32>
    %8 = arith.truncf %7 : vector<64x32xf32> to vector<64x32xbf16>
    %c0_8 = arith.constant 0 : index
    %c32 = arith.constant 32 : index
    %9 = vector.load %arg5[%c0_8, %c32] : memref<64x2048xbf16, #tpu.memory_space<vmem>>, vector<64x32xbf16>
    tpu.vector_store %arg5[%c0_8, %c32], %8 {strides = array<i32>} : memref<64x2048xbf16, #tpu.memory_space<vmem>>, vector<64x32xbf16>,
    %c0_9 = arith.constant 0 : index
    %c2 = arith.constant 2 : index
    %c0_10 = arith.constant 0 : index
    %c0_11 = arith.constant 0 : index
    %10 = vector.load %arg1[%c0_9, %c2, %c0_10, %c0_11] : memref<2x64x32x32xf32, #tpu.memory_space<vmem>>, vector<2x1x32x32xf32>
    %11 = vector.shape_cast %10 : vector<2x1x32x32xf32> to vector<2x32x32xf32>
    %12 = vector.shape_cast %11 : vector<2x32x32xf32> to vector<64x32xf32>
    %13 = arith.truncf %12 : vector<64x32xf32> to vector<64x32xbf16>
    %c0_12 = arith.constant 0 : index
    %c64 = arith.constant 64 : index
    %14 = vector.load %arg5[%c0_12, %c64] : memref<64x2048xbf16, #tpu.memory_space<vmem>>, vector<64x32xbf16>
    tpu.vector_store %arg5[%c0_12, %c64], %13 {strides = array<i32>} : memref<64x2048xbf16, #tpu.memory_space<vmem>>, vector<64x32xbf16>,
    %c0_13 = arith.constant 0 : index
    %c3 = arith.constant 3 : index
    %c0_14 = arith.constant 0 : index
    %c0_15 = arith.constant 0 : index
    %15 = vector.load %arg1[%c0_13, %c3, %c0_14, %c0_15] : memref<2x64x32x32xf32, #tpu.memory_space<vmem>>, vector<2x1x32x32xf32>
    %16 = vector.shape_cast %15 : vector<2x1x32x32xf32> to vector<2x32x32xf32>
    %17 = vector.shape_cast %16 : vector<2x32x32xf32> to vector<64x32xf32>
    %18 = arith.truncf %17 : vector<64x32xf32> to vector<64x32xbf16>
    %c0_16 = arith.constant 0 : index
    %c96 = arith.constant 96 : index
    %19 = vector.load %arg5[%c0_16, %c96] : memref<64x2048xbf16, #tpu.memory_space<vmem>>, vector<64x32xbf16>
    tpu.vector_store %arg5[%c0_16, %c96], %18 {strides = array<i32>} : memref<64x2048xbf16, #tpu.memory_space<vmem>>, vector<64x32xbf16>,
    %c0_17 = arith.constant 0 : index
    %c4 = arith.constant 4 : index
    %c0_18 = arith.constant 0 : index
    %c0_19 = arith.constant 0 : index
    %20 = vector.load %arg1[%c0_17, %c4, %c0_18, %c0_19] : memref<2x64x32x32xf32, #tpu.memory_space<vmem>>, vector<2x1x32x32xf32>
    %21 = vector.shape_cast %20 : vector<2x1x32x32xf32> to vector<2x32x32xf32>
    %22 = vector.shape_cast %21 : vector<2x32x32xf32> to vector<64x32xf32>
    %23 = arith.truncf %22 : vector<64x32xf32> to vector<64x32xbf16>
    %c0_20 = arith.constant 0 : index
    %c128 = arith.constant 128 : index
    %24 = vector.load %arg5[%c0_20, %c128] : memref<64x2048xbf16, #tpu.memory_space<vmem>>, vector<64x32xbf16>
    tpu.vector_store %arg5[%c0_20, %c128], %23 {strides = array<i32>} : memref<64x2048xbf16, #tpu.memory_space<vmem>>, vector<64x32xbf16>,
    %c0_21 = arith.constant 0 : index
    %c5 = arith.constant 5 : index
    %c0_22 = arith.constant 0 : index
    %c0_23 = arith.constant 0 : index
    %25 = vector.load %arg1[%c0_21, %c5, %c0_22, %c0_23] : memref<2x64x32x32xf32, #tpu.memory_space<vmem>>, vector<2x1x32x32xf32>
    %26 = vector.shape_cast %25 : vector<2x1x32x32xf32> to vector<2x32x32xf32>
    %27 = vector.shape_cast %26 : vector<2x32x32xf32> to vector<64x32xf32>
    %28 = arith.truncf %27 : vector<64x32xf32> to vector<64x32xbf16>
    %c0_24 = arith.constant 0 : index
    %c160 = arith.constant 160 : index
    %29 = vector.load %arg5[%c0_24, %c160] : memref<64x2048xbf16, #tpu.memory_space<vmem>>, vector<64x32xbf16>
    tpu.vector_store %arg5[%c0_24, %c160], %28 {strides = array<i32>} : memref<64x2048xbf16, #tpu.memory_space<vmem>>, vector<64x32xbf16>,
    %c0_25 = arith.constant 0 : index
    %c6 = arith.constant 6 : index
    %c0_26 = arith.constant 0 : index
    %c0_27 = arith.constant 0 : index
    %30 = vector.load %arg1[%c0_25, %c6, %c0_26, %c0_27] : memref<2x64x32x32xf32, #tpu.memory_space<vmem>>, vector<2x1x32x32xf32>
    %31 = vector.shape_cast %30 : vector<2x1x32x32xf32> to vector<2x32x32xf32>
    %32 = vector.shape_cast %31 : vector<2x32x32xf32> to vector<64x32xf32>
    %33 = arith.truncf %32 : vector<64x32xf32> to vector<64x32xbf16>
    %c0_28 = arith.constant 0 : index
    %c192 = arith.constant 192 : index
    %34 = vector.load %arg5[%c0_28, %c192] : memref<64x2048xbf16, #tpu.memory_space<vmem>>, vector<64x32xbf16>
    tpu.vector_store %arg5[%c0_28, %c192], %33 {strides = array<i32>} : memref<64x2048xbf16, #tpu.memory_space<vmem>>, vector<64x32xbf16>,
    %c0_29 = arith.constant 0 : index
    %c7 = arith.constant 7 : index
    %c0_30 = arith.constant 0 : index
    %c0_31 = arith.constant 0 : index
    %35 = vector.load %arg1[%c0_29, %c7, %c0_30, %c0_31] : memref<2x64x32x32xf32, #tpu.memory_space<vmem>>, vector<2x1x32x32xf32>
    %36 = vector.shape_cast %35 : vector<2x1x32x32xf32> to vector<2x32x32xf32>
    %37 = vector.shape_cast %36 : vector<2x32x32xf32> to vector<64x32xf32>
    %38 = arith.truncf %37 : vector<64x32xf32> to vector<64x32xbf16>
    %c0_32 = arith.constant 0 : index
    %c224 = arith.constant 224 : index
    %39 = vector.load %arg5[%c0_32, %c224] : memref<64x2048xbf16, #tpu.memory_space<vmem>>, vector<64x32xbf16>
    tpu.vector_store %arg5[%c0_32, %c224], %38 {strides = array<i32>} : memref<64x2048xbf16, #tpu.memory_space<vmem>>, vector<64x32xbf16>,
    %c0_33 = arith.constant 0 : index
    %c8 = arith.constant 8 : index
    %c0_34 = arith.constant 0 : index
    %c0_35 = arith.constant 0 : index
    %40 = vector.load %arg1[%c0_33, %c8, %c0_34, %c0_35] : memref<2x64x32x32xf32, #tpu.memory_space<vmem>>, vector<2x1x32x32xf32>
    %41 = vector.shape_cast %40 : vector<2x1x32x32xf32> to vector<2x32x32xf32>
    %42 = vector.shape_cast %41 : vector<2x32x32xf32> to vector<64x32xf32>
    %43 = arith.truncf %42 : vector<64x32xf32> to vector<64x32xbf16>
    %c0_36 = arith.constant 0 : index
    %c256 = arith.constant 256 : index
    %44 = vector.load %arg5[%c0_36, %c256] : memref<64x2048xbf16, #tpu.memory_space<vmem>>, vector<64x32xbf16>
    tpu.vector_store %arg5[%c0_36, %c256], %43 {strides = array<i32>} : memref<64x2048xbf16, #tpu.memory_space<vmem>>, vector<64x32xbf16>,
    %c0_37 = arith.constant 0 : index
    %c9 = arith.constant 9 : index
    %c0_38 = arith.constant 0 : index
    %c0_39 = arith.constant 0 : index
    %45 = vector.load %arg1[%c0_37, %c9, %c0_38, %c0_39] : memref<2x64x32x32xf32, #tpu.memory_space<vmem>>, vector<2x1x32x32xf32>
    %46 = vector.shape_cast %45 : vector<2x1x32x32xf32> to vector<2x32x32xf32>
    %47 = vector.shape_cast %46 : vector<2x32x32xf32> to vector<64x32xf32>
    %48 = arith.truncf %47 : vector<64x32xf32> to vector<64x32xbf16>
    %c0_40 = arith.constant 0 : index
    %c288 = arith.constant 288 : index
    %49 = vector.load %arg5[%c0_40, %c288] : memref<64x2048xbf16, #tpu.memory_space<vmem>>, vector<64x32xbf16>
    tpu.vector_store %arg5[%c0_40, %c288], %48 {strides = array<i32>} : memref<64x2048xbf16, #tpu.memory_space<vmem>>, vector<64x32xbf16>,
    %c0_41 = arith.constant 0 : index
    %c10 = arith.constant 10 : index
    %c0_42 = arith.constant 0 : index
    %c0_43 = arith.constant 0 : index
    %50 = vector.load %arg1[%c0_41, %c10, %c0_42, %c0_43] : memref<2x64x32x32xf32, #tpu.memory_space<vmem>>, vector<2x1x32x32xf32>
    %51 = vector.shape_cast %50 : vector<2x1x32x32xf32> to vector<2x32x32xf32>
    %52 = vector.shape_cast %51 : vector<2x32x32xf32> to vector<64x32xf32>
    %53 = arith.truncf %52 : vector<64x32xf32> to vector<64x32xbf16>
    %c0_44 = arith.constant 0 : index
    %c320 = arith.constant 320 : index
    %54 = vector.load %arg5[%c0_44, %c320] : memref<64x2048xbf16, #tpu.memory_space<vmem>>, vector<64x32xbf16>
    tpu.vector_store %arg5[%c0_44, %c320], %53 {strides = array<i32>} : memref<64x2048xbf16, #tpu.memory_space<vmem>>, vector<64x32xbf16>,
    %c0_45 = arith.constant 0 : index
    %c11 = arith.constant 11 : index
    %c0_46 = arith.constant 0 : index
    %c0_47 = arith.constant 0 : index
    %55 = vector.load %arg1[%c0_45, %c11, %c0_46, %c0_47] : memref<2x64x32x32xf32, #tpu.memory_space<vmem>>, vector<2x1x32x32xf32>
    %56 = vector.shape_cast %55 : vector<2x1x32x32xf32> to vector<2x32x32xf32>
    %57 = vector.shape_cast %56 : vector<2x32x32xf32> to vector<64x32xf32>
    %58 = arith.truncf %57 : vector<64x32xf32> to vector<64x32xbf16>
    %c0_48 = arith.constant 0 : index
    %c352 = arith.constant 352 : index
    %59 = vector.load %arg5[%c0_48, %c352] : memref<64x2048xbf16, #tpu.memory_space<vmem>>, vector<64x32xbf16>
    tpu.vector_store %arg5[%c0_48, %c352], %58 {strides = array<i32>} : memref<64x2048xbf16, #tpu.memory_space<vmem>>, vector<64x32xbf16>,
    %c0_49 = arith.constant 0 : index
    %c12 = arith.constant 12 : index
    %c0_50 = arith.constant 0 : index
    %c0_51 = arith.constant 0 : index
    %60 = vector.load %arg1[%c0_49, %c12, %c0_50, %c0_51] : memref<2x64x32x32xf32, #tpu.memory_space<vmem>>, vector<2x1x32x32xf32>
    %61 = vector.shape_cast %60 : vector<2x1x32x32xf32> to vector<2x32x32xf32>
    %62 = vector.shape_cast %61 : vector<2x32x32xf32> to vector<64x32xf32>
    %63 = arith.truncf %62 : vector<64x32xf32> to vector<64x32xbf16>
    %c0_52 = arith.constant 0 : index
    %c384 = arith.constant 384 : index
    %64 = vector.load %arg5[%c0_52, %c384] : memref<64x2048xbf16, #tpu.memory_space<vmem>>, vector<64x32xbf16>
    tpu.vector_store %arg5[%c0_52, %c384], %63 {strides = array<i32>} : memref<64x2048xbf16, #tpu.memory_space<vmem>>, vector<64x32xbf16>,
    %c0_53 = arith.constant 0 : index
    %c13 = arith.constant 13 : index
    %c0_54 = arith.constant 0 : index
    %c0_55 = arith.constant 0 : index
    %65 = vector.load %arg1[%c0_53, %c13, %c0_54, %c0_55] : memref<2x64x32x32xf32, #tpu.memory_space<vmem>>, vector<2x1x32x32xf32>
    %66 = vector.shape_cast %65 : vector<2x1x32x32xf32> to vector<2x32x32xf32>
    %67 = vector.shape_cast %66 : vector<2x32x32xf32> to vector<64x32xf32>
    %68 = arith.truncf %67 : vector<64x32xf32> to vector<64x32xbf16>
    %c0_56 = arith.constant 0 : index
    %c416 = arith.constant 416 : index
    %69 = vector.load %arg5[%c0_56, %c416] : memref<64x2048xbf16, #tpu.memory_space<vmem>>, vector<64x32xbf16>
    tpu.vector_store %arg5[%c0_56, %c416], %68 {strides = array<i32>} : memref<64x2048xbf16, #tpu.memory_space<vmem>>, vector<64x32xbf16>,
    %c0_57 = arith.constant 0 : index
    %c14 = arith.constant 14 : index
    %c0_58 = arith.constant 0 : index
    %c0_59 = arith.constant 0 : index
    %70 = vector.load %arg1[%c0_57, %c14, %c0_58, %c0_59] : memref<2x64x32x32xf32, #tpu.memory_space<vmem>>, vector<2x1x32x32xf32>
    %71 = vector.shape_cast %70 : vector<2x1x32x32xf32> to vector<2x32x32xf32>
    %72 = vector.shape_cast %71 : vector<2x32x32xf32> to vector<64x32xf32>
    %73 = arith.truncf %72 : vector<64x32xf32> to vector<64x32xbf16>
    %c0_60 = arith.constant 0 : index
    %c448 = arith.constant 448 : index
    %74 = vector.load %arg5[%c0_60, %c448] : memref<64x2048xbf16, #tpu.memory_space<vmem>>, vector<64x32xbf16>
    tpu.vector_store %arg5[%c0_60, %c448], %73 {strides = array<i32>} : memref<64x2048xbf16, #tpu.memory_space<vmem>>, vector<64x32xbf16>,
    %c0_61 = arith.constant 0 : index
    %c15 = arith.constant 15 : index
    %c0_62 = arith.constant 0 : index
    %c0_63 = arith.constant 0 : index
    %75 = vector.load %arg1[%c0_61, %c15, %c0_62, %c0_63] : memref<2x64x32x32xf32, #tpu.memory_space<vmem>>, vector<2x1x32x32xf32>
    %76 = vector.shape_cast %75 : vector<2x1x32x32xf32> to vector<2x32x32xf32>
    %77 = vector.shape_cast %76 : vector<2x32x32xf32> to vector<64x32xf32>
    %78 = arith.truncf %77 : vector<64x32xf32> to vector<64x32xbf16>
    %c0_64 = arith.constant 0 : index
    %c480 = arith.constant 480 : index
    %79 = vector.load %arg5[%c0_64, %c480] : memref<64x2048xbf16, #tpu.memory_space<vmem>>, vector<64x32xbf16>
    tpu.vector_store %arg5[%c0_64, %c480], %78 {strides = array<i32>} : memref<64x2048xbf16, #tpu.memory_space<vmem>>, vector<64x32xbf16>,
    %c0_65 = arith.constant 0 : index
    %c16 = arith.constant 16 : index
    %c0_66 = arith.constant 0 : index
    %c0_67 = arith.constant 0 : index
    %80 = vector.load %arg1[%c0_65, %c16, %c0_66, %c0_67] : memref<2x64x32x32xf32, #tpu.memory_space<vmem>>, vector<2x1x32x32xf32>
    %81 = vector.shape_cast %80 : vector<2x1x32x32xf32> to vector<2x32x32xf32>
    %82 = vector.shape_cast %81 : vector<2x32x32xf32> to vector<64x32xf32>
    %83 = arith.truncf %82 : vector<64x32xf32> to vector<64x32xbf16>
    %c0_68 = arith.constant 0 : index
    %c512 = arith.constant 512 : index
    %84 = vector.load %arg5[%c0_68, %c512] : memref<64x2048xbf16, #tpu.memory_space<vmem>>, vector<64x32xbf16>
    tpu.vector_store %arg5[%c0_68, %c512], %83 {strides = array<i32>} : memref<64x2048xbf16, #tpu.memory_space<vmem>>, vector<64x32xbf16>,
    %c0_69 = arith.constant 0 : index
    %c17 = arith.constant 17 : index
    %c0_70 = arith.constant 0 : index
    %c0_71 = arith.constant 0 : index
    %85 = vector.load %arg1[%c0_69, %c17, %c0_70, %c0_71] : memref<2x64x32x32xf32, #tpu.memory_space<vmem>>, vector<2x1x32x32xf32>
    %86 = vector.shape_cast %85 : vector<2x1x32x32xf32> to vector<2x32x32xf32>
    %87 = vector.shape_cast %86 : vector<2x32x32xf32> to vector<64x32xf32>
    %88 = arith.truncf %87 : vector<64x32xf32> to vector<64x32xbf16>
    %c0_72 = arith.constant 0 : index
    %c544 = arith.constant 544 : index
    %89 = vector.load %arg5[%c0_72, %c544] : memref<64x2048xbf16, #tpu.memory_space<vmem>>, vector<64x32xbf16>
    tpu.vector_store %arg5[%c0_72, %c544], %88 {strides = array<i32>} : memref<64x2048xbf16, #tpu.memory_space<vmem>>, vector<64x32xbf16>,
    %c0_73 = arith.constant 0 : index
    %c18 = arith.constant 18 : index
    %c0_74 = arith.constant 0 : index
    %c0_75 = arith.constant 0 : index
    %90 = vector.load %arg1[%c0_73, %c18, %c0_74, %c0_75] : memref<2x64x32x32xf32, #tpu.memory_space<vmem>>, vector<2x1x32x32xf32>
    %91 = vector.shape_cast %90 : vector<2x1x32x32xf32> to vector<2x32x32xf32>
    %92 = vector.shape_cast %91 : vector<2x32x32xf32> to vector<64x32xf32>
    %93 = arith.truncf %92 : vector<64x32xf32> to vector<64x32xbf16>
    %c0_76 = arith.constant 0 : index
    %c576 = arith.constant 576 : index
    %94 = vector.load %arg5[%c0_76, %c576] : memref<64x2048xbf16, #tpu.memory_space<vmem>>, vector<64x32xbf16>
    tpu.vector_store %arg5[%c0_76, %c576], %93 {strides = array<i32>} : memref<64x2048xbf16, #tpu.memory_space<vmem>>, vector<64x32xbf16>,
    %c0_77 = arith.constant 0 : index
    %c19 = arith.constant 19 : index
    %c0_78 = arith.constant 0 : index
    %c0_79 = arith.constant 0 : index
    %95 = vector.load %arg1[%c0_77, %c19, %c0_78, %c0_79] : memref<2x64x32x32xf32, #tpu.memory_space<vmem>>, vector<2x1x32x32xf32>
    %96 = vector.shape_cast %95 : vector<2x1x32x32xf32> to vector<2x32x32xf32>
    %97 = vector.shape_cast %96 : vector<2x32x32xf32> to vector<64x32xf32>
    %98 = arith.truncf %97 : vector<64x32xf32> to vector<64x32xbf16>
    %c0_80 = arith.constant 0 : index
    %c608 = arith.constant 608 : index
    %99 = vector.load %arg5[%c0_80, %c608] : memref<64x2048xbf16, #tpu.memory_space<vmem>>, vector<64x32xbf16>
    tpu.vector_store %arg5[%c0_80, %c608], %98 {strides = array<i32>} : memref<64x2048xbf16, #tpu.memory_space<vmem>>, vector<64x32xbf16>,
    %c0_81 = arith.constant 0 : index
    %c20 = arith.constant 20 : index
    %c0_82 = arith.constant 0 : index
    %c0_83 = arith.constant 0 : index
    %100 = vector.load %arg1[%c0_81, %c20, %c0_82, %c0_83] : memref<2x64x32x32xf32, #tpu.memory_space<vmem>>, vector<2x1x32x32xf32>
    %101 = vector.shape_cast %100 : vector<2x1x32x32xf32> to vector<2x32x32xf32>
    %102 = vector.shape_cast %101 : vector<2x32x32xf32> to vector<64x32xf32>
    %103 = arith.truncf %102 : vector<64x32xf32> to vector<64x32xbf16>
    %c0_84 = arith.constant 0 : index
    %c640 = arith.constant 640 : index
    %104 = vector.load %arg5[%c0_84, %c640] : memref<64x2048xbf16, #tpu.memory_space<vmem>>, vector<64x32xbf16>
    tpu.vector_store %arg5[%c0_84, %c640], %103 {strides = array<i32>} : memref<64x2048xbf16, #tpu.memory_space<vmem>>, vector<64x32xbf16>,
    %c0_85 = arith.constant 0 : index
    %c21 = arith.constant 21 : index
    %c0_86 = arith.constant 0 : index
    %c0_87 = arith.constant 0 : index
    %105 = vector.load %arg1[%c0_85, %c21, %c0_86, %c0_87] : memref<2x64x32x32xf32, #tpu.memory_space<vmem>>, vector<2x1x32x32xf32>
    %106 = vector.shape_cast %105 : vector<2x1x32x32xf32> to vector<2x32x32xf32>
    %107 = vector.shape_cast %106 : vector<2x32x32xf32> to vector<64x32xf32>
    %108 = arith.truncf %107 : vector<64x32xf32> to vector<64x32xbf16>
    %c0_88 = arith.constant 0 : index
    %c672 = arith.constant 672 : index
    %109 = vector.load %arg5[%c0_88, %c672] : memref<64x2048xbf16, #tpu.memory_space<vmem>>, vector<64x32xbf16>
    tpu.vector_store %arg5[%c0_88, %c672], %108 {strides = array<i32>} : memref<64x2048xbf16, #tpu.memory_space<vmem>>, vector<64x32xbf16>,
    %c0_89 = arith.constant 0 : index
    %c22 = arith.constant 22 : index
    %c0_90 = arith.constant 0 : index
    %c0_91 = arith.constant 0 : index
    %110 = vector.load %arg1[%c0_89, %c22, %c0_90, %c0_91] : memref<2x64x32x32xf32, #tpu.memory_space<vmem>>, vector<2x1x32x32xf32>
    %111 = vector.shape_cast %110 : vector<2x1x32x32xf32> to vector<2x32x32xf32>
    %112 = vector.shape_cast %111 : vector<2x32x32xf32> to vector<64x32xf32>
    %113 = arith.truncf %112 : vector<64x32xf32> to vector<64x32xbf16>
    %c0_92 = arith.constant 0 : index
    %c704 = arith.constant 704 : index
    %114 = vector.load %arg5[%c0_92, %c704] : memref<64x2048xbf16, #tpu.memory_space<vmem>>, vector<64x32xbf16>
    tpu.vector_store %arg5[%c0_92, %c704], %113 {strides = array<i32>} : memref<64x2048xbf16, #tpu.memory_space<vmem>>, vector<64x32xbf16>,
    %c0_93 = arith.constant 0 : index
    %c23 = arith.constant 23 : index
    %c0_94 = arith.constant 0 : index
    %c0_95 = arith.constant 0 : index
    %115 = vector.load %arg1[%c0_93, %c23, %c0_94, %c0_95] : memref<2x64x32x32xf32, #tpu.memory_space<vmem>>, vector<2x1x32x32xf32>
    %116 = vector.shape_cast %115 : vector<2x1x32x32xf32> to vector<2x32x32xf32>
    %117 = vector.shape_cast %116 : vector<2x32x32xf32> to vector<64x32xf32>
    %118 = arith.truncf %117 : vector<64x32xf32> to vector<64x32xbf16>
    %c0_96 = arith.constant 0 : index
    %c736 = arith.constant 736 : index
    %119 = vector.load %arg5[%c0_96, %c736] : memref<64x2048xbf16, #tpu.memory_space<vmem>>, vector<64x32xbf16>
    tpu.vector_store %arg5[%c0_96, %c736], %118 {strides = array<i32>} : memref<64x2048xbf16, #tpu.memory_space<vmem>>, vector<64x32xbf16>,
    %c0_97 = arith.constant 0 : index
    %c24 = arith.constant 24 : index
    %c0_98 = arith.constant 0 : index
    %c0_99 = arith.constant 0 : index
    %120 = vector.load %arg1[%c0_97, %c24, %c0_98, %c0_99] : memref<2x64x32x32xf32, #tpu.memory_space<vmem>>, vector<2x1x32x32xf32>
    %121 = vector.shape_cast %120 : vector<2x1x32x32xf32> to vector<2x32x32xf32>
    %122 = vector.shape_cast %121 : vector<2x32x32xf32> to vector<64x32xf32>
    %123 = arith.truncf %122 : vector<64x32xf32> to vector<64x32xbf16>
    %c0_100 = arith.constant 0 : index
    %c768 = arith.constant 768 : index
    %124 = vector.load %arg5[%c0_100, %c768] : memref<64x2048xbf16, #tpu.memory_space<vmem>>, vector<64x32xbf16>
    tpu.vector_store %arg5[%c0_100, %c768], %123 {strides = array<i32>} : memref<64x2048xbf16, #tpu.memory_space<vmem>>, vector<64x32xbf16>,
    %c0_101 = arith.constant 0 : index
    %c25 = arith.constant 25 : index
    %c0_102 = arith.constant 0 : index
    %c0_103 = arith.constant 0 : index
    %125 = vector.load %arg1[%c0_101, %c25, %c0_102, %c0_103] : memref<2x64x32x32xf32, #tpu.memory_space<vmem>>, vector<2x1x32x32xf32>
    %126 = vector.shape_cast %125 : vector<2x1x32x32xf32> to vector<2x32x32xf32>
    %127 = vector.shape_cast %126 : vector<2x32x32xf32> to vector<64x32xf32>
    %128 = arith.truncf %127 : vector<64x32xf32> to vector<64x32xbf16>
    %c0_104 = arith.constant 0 : index
    %c800 = arith.constant 800 : index
    %129 = vector.load %arg5[%c0_104, %c800] : memref<64x2048xbf16, #tpu.memory_space<vmem>>, vector<64x32xbf16>
    tpu.vector_store %arg5[%c0_104, %c800], %128 {strides = array<i32>} : memref<64x2048xbf16, #tpu.memory_space<vmem>>, vector<64x32xbf16>,
    %c0_105 = arith.constant 0 : index
    %c26 = arith.constant 26 : index
    %c0_106 = arith.constant 0 : index
    %c0_107 = arith.constant 0 : index
    %130 = vector.load %arg1[%c0_105, %c26, %c0_106, %c0_107] : memref<2x64x32x32xf32, #tpu.memory_space<vmem>>, vector<2x1x32x32xf32>
    %131 = vector.shape_cast %130 : vector<2x1x32x32xf32> to vector<2x32x32xf32>
    %132 = vector.shape_cast %131 : vector<2x32x32xf32> to vector<64x32xf32>
    %133 = arith.truncf %132 : vector<64x32xf32> to vector<64x32xbf16>
    %c0_108 = arith.constant 0 : index
    %c832 = arith.constant 832 : index
    %134 = vector.load %arg5[%c0_108, %c832] : memref<64x2048xbf16, #tpu.memory_space<vmem>>, vector<64x32xbf16>
    tpu.vector_store %arg5[%c0_108, %c832], %133 {strides = array<i32>} : memref<64x2048xbf16, #tpu.memory_space<vmem>>, vector<64x32xbf16>,
    %c0_109 = arith.constant 0 : index
    %c27 = arith.constant 27 : index
    %c0_110 = arith.constant 0 : index
    %c0_111 = arith.constant 0 : index
    %135 = vector.load %arg1[%c0_109, %c27, %c0_110, %c0_111] : memref<2x64x32x32xf32, #tpu.memory_space<vmem>>, vector<2x1x32x32xf32>
    %136 = vector.shape_cast %135 : vector<2x1x32x32xf32> to vector<2x32x32xf32>
    %137 = vector.shape_cast %136 : vector<2x32x32xf32> to vector<64x32xf32>
    %138 = arith.truncf %137 : vector<64x32xf32> to vector<64x32xbf16>
    %c0_112 = arith.constant 0 : index
    %c864 = arith.constant 864 : index
    %139 = vector.load %arg5[%c0_112, %c864] : memref<64x2048xbf16, #tpu.memory_space<vmem>>, vector<64x32xbf16>
    tpu.vector_store %arg5[%c0_112, %c864], %138 {strides = array<i32>} : memref<64x2048xbf16, #tpu.memory_space<vmem>>, vector<64x32xbf16>,
    %c0_113 = arith.constant 0 : index
    %c28 = arith.constant 28 : index
    %c0_114 = arith.constant 0 : index
    %c0_115 = arith.constant 0 : index
    %140 = vector.load %arg1[%c0_113, %c28, %c0_114, %c0_115] : memref<2x64x32x32xf32, #tpu.memory_space<vmem>>, vector<2x1x32x32xf32>
    %141 = vector.shape_cast %140 : vector<2x1x32x32xf32> to vector<2x32x32xf32>
    %142 = vector.shape_cast %141 : vector<2x32x32xf32> to vector<64x32xf32>
    %143 = arith.truncf %142 : vector<64x32xf32> to vector<64x32xbf16>
    %c0_116 = arith.constant 0 : index
    %c896 = arith.constant 896 : index
    %144 = vector.load %arg5[%c0_116, %c896] : memref<64x2048xbf16, #tpu.memory_space<vmem>>, vector<64x32xbf16>
    tpu.vector_store %arg5[%c0_116, %c896], %143 {strides = array<i32>} : memref<64x2048xbf16, #tpu.memory_space<vmem>>, vector<64x32xbf16>,
    %c0_117 = arith.constant 0 : index
    %c29 = arith.constant 29 : index
    %c0_118 = arith.constant 0 : index
    %c0_119 = arith.constant 0 : index
    %145 = vector.load %arg1[%c0_117, %c29, %c0_118, %c0_119] : memref<2x64x32x32xf32, #tpu.memory_space<vmem>>, vector<2x1x32x32xf32>
    %146 = vector.shape_cast %145 : vector<2x1x32x32xf32> to vector<2x32x32xf32>
    %147 = vector.shape_cast %146 : vector<2x32x32xf32> to vector<64x32xf32>
    %148 = arith.truncf %147 : vector<64x32xf32> to vector<64x32xbf16>
    %c0_120 = arith.constant 0 : index
    %c928 = arith.constant 928 : index
    %149 = vector.load %arg5[%c0_120, %c928] : memref<64x2048xbf16, #tpu.memory_space<vmem>>, vector<64x32xbf16>
    tpu.vector_store %arg5[%c0_120, %c928], %148 {strides = array<i32>} : memref<64x2048xbf16, #tpu.memory_space<vmem>>, vector<64x32xbf16>,
    %c0_121 = arith.constant 0 : index
    %c30 = arith.constant 30 : index
    %c0_122 = arith.constant 0 : index
    %c0_123 = arith.constant 0 : index
    %150 = vector.load %arg1[%c0_121, %c30, %c0_122, %c0_123] : memref<2x64x32x32xf32, #tpu.memory_space<vmem>>, vector<2x1x32x32xf32>
    %151 = vector.shape_cast %150 : vector<2x1x32x32xf32> to vector<2x32x32xf32>
    %152 = vector.shape_cast %151 : vector<2x32x32xf32> to vector<64x32xf32>
    %153 = arith.truncf %152 : vector<64x32xf32> to vector<64x32xbf16>
    %c0_124 = arith.constant 0 : index
    %c960 = arith.constant 960 : index
    %154 = vector.load %arg5[%c0_124, %c960] : memref<64x2048xbf16, #tpu.memory_space<vmem>>, vector<64x32xbf16>
    tpu.vector_store %arg5[%c0_124, %c960], %153 {strides = array<i32>} : memref<64x2048xbf16, #tpu.memory_space<vmem>>, vector<64x32xbf16>,
    %c0_125 = arith.constant 0 : index
    %c31 = arith.constant 31 : index
    %c0_126 = arith.constant 0 : index
    %c0_127 = arith.constant 0 : index
    %155 = vector.load %arg1[%c0_125, %c31, %c0_126, %c0_127] : memref<2x64x32x32xf32, #tpu.memory_space<vmem>>, vector<2x1x32x32xf32>
    %156 = vector.shape_cast %155 : vector<2x1x32x32xf32> to vector<2x32x32xf32>
    %157 = vector.shape_cast %156 : vector<2x32x32xf32> to vector<64x32xf32>
    %158 = arith.truncf %157 : vector<64x32xf32> to vector<64x32xbf16>
    %c0_128 = arith.constant 0 : index
    %c992 = arith.constant 992 : index
    %159 = vector.load %arg5[%c0_128, %c992] : memref<64x2048xbf16, #tpu.memory_space<vmem>>, vector<64x32xbf16>
    tpu.vector_store %arg5[%c0_128, %c992], %158 {strides = array<i32>} : memref<64x2048xbf16, #tpu.memory_space<vmem>>, vector<64x32xbf16>,
    %c0_129 = arith.constant 0 : index
    %c32_130 = arith.constant 32 : index
    %c0_131 = arith.constant 0 : index
    %c0_132 = arith.constant 0 : index
    %160 = vector.load %arg1[%c0_129, %c32_130, %c0_131, %c0_132] : memref<2x64x32x32xf32, #tpu.memory_space<vmem>>, vector<2x1x32x32xf32>
    %161 = vector.shape_cast %160 : vector<2x1x32x32xf32> to vector<2x32x32xf32>
    %162 = vector.shape_cast %161 : vector<2x32x32xf32> to vector<64x32xf32>
    %163 = arith.truncf %162 : vector<64x32xf32> to vector<64x32xbf16>
    %c0_133 = arith.constant 0 : index
    %c1024 = arith.constant 1024 : index
    %164 = vector.load %arg5[%c0_133, %c1024] : memref<64x2048xbf16, #tpu.memory_space<vmem>>, vector<64x32xbf16>
    tpu.vector_store %arg5[%c0_133, %c1024], %163 {strides = array<i32>} : memref<64x2048xbf16, #tpu.memory_space<vmem>>, vector<64x32xbf16>,
    %c0_134 = arith.constant 0 : index
    %c33 = arith.constant 33 : index
    %c0_135 = arith.constant 0 : index
    %c0_136 = arith.constant 0 : index
    %165 = vector.load %arg1[%c0_134, %c33, %c0_135, %c0_136] : memref<2x64x32x32xf32, #tpu.memory_space<vmem>>, vector<2x1x32x32xf32>
    %166 = vector.shape_cast %165 : vector<2x1x32x32xf32> to vector<2x32x32xf32>
    %167 = vector.shape_cast %166 : vector<2x32x32xf32> to vector<64x32xf32>
    %168 = arith.truncf %167 : vector<64x32xf32> to vector<64x32xbf16>
    %c0_137 = arith.constant 0 : index
    %c1056 = arith.constant 1056 : index
    %169 = vector.load %arg5[%c0_137, %c1056] : memref<64x2048xbf16, #tpu.memory_space<vmem>>, vector<64x32xbf16>
    tpu.vector_store %arg5[%c0_137, %c1056], %168 {strides = array<i32>} : memref<64x2048xbf16, #tpu.memory_space<vmem>>, vector<64x32xbf16>,
    %c0_138 = arith.constant 0 : index
    %c34 = arith.constant 34 : index
    %c0_139 = arith.constant 0 : index
    %c0_140 = arith.constant 0 : index
    %170 = vector.load %arg1[%c0_138, %c34, %c0_139, %c0_140] : memref<2x64x32x32xf32, #tpu.memory_space<vmem>>, vector<2x1x32x32xf32>
    %171 = vector.shape_cast %170 : vector<2x1x32x32xf32> to vector<2x32x32xf32>
    %172 = vector.shape_cast %171 : vector<2x32x32xf32> to vector<64x32xf32>
    %173 = arith.truncf %172 : vector<64x32xf32> to vector<64x32xbf16>
    %c0_141 = arith.constant 0 : index
    %c1088 = arith.constant 1088 : index
    %174 = vector.load %arg5[%c0_141, %c1088] : memref<64x2048xbf16, #tpu.memory_space<vmem>>, vector<64x32xbf16>
    tpu.vector_store %arg5[%c0_141, %c1088], %173 {strides = array<i32>} : memref<64x2048xbf16, #tpu.memory_space<vmem>>, vector<64x32xbf16>,
    %c0_142 = arith.constant 0 : index
    %c35 = arith.constant 35 : index
    %c0_143 = arith.constant 0 : index
    %c0_144 = arith.constant 0 : index
    %175 = vector.load %arg1[%c0_142, %c35, %c0_143, %c0_144] : memref<2x64x32x32xf32, #tpu.memory_space<vmem>>, vector<2x1x32x32xf32>
    %176 = vector.shape_cast %175 : vector<2x1x32x32xf32> to vector<2x32x32xf32>
    %177 = vector.shape_cast %176 : vector<2x32x32xf32> to vector<64x32xf32>
    %178 = arith.truncf %177 : vector<64x32xf32> to vector<64x32xbf16>
    %c0_145 = arith.constant 0 : index
    %c1120 = arith.constant 1120 : index
    %179 = vector.load %arg5[%c0_145, %c1120] : memref<64x2048xbf16, #tpu.memory_space<vmem>>, vector<64x32xbf16>
    tpu.vector_store %arg5[%c0_145, %c1120], %178 {strides = array<i32>} : memref<64x2048xbf16, #tpu.memory_space<vmem>>, vector<64x32xbf16>,
    %c0_146 = arith.constant 0 : index
    %c36 = arith.constant 36 : index
    %c0_147 = arith.constant 0 : index
    %c0_148 = arith.constant 0 : index
    %180 = vector.load %arg1[%c0_146, %c36, %c0_147, %c0_148] : memref<2x64x32x32xf32, #tpu.memory_space<vmem>>, vector<2x1x32x32xf32>
    %181 = vector.shape_cast %180 : vector<2x1x32x32xf32> to vector<2x32x32xf32>
    %182 = vector.shape_cast %181 : vector<2x32x32xf32> to vector<64x32xf32>
    %183 = arith.truncf %182 : vector<64x32xf32> to vector<64x32xbf16>
    %c0_149 = arith.constant 0 : index
    %c1152 = arith.constant 1152 : index
    %184 = vector.load %arg5[%c0_149, %c1152] : memref<64x2048xbf16, #tpu.memory_space<vmem>>, vector<64x32xbf16>
    tpu.vector_store %arg5[%c0_149, %c1152], %183 {strides = array<i32>} : memref<64x2048xbf16, #tpu.memory_space<vmem>>, vector<64x32xbf16>,
    %c0_150 = arith.constant 0 : index
    %c37 = arith.constant 37 : index
    %c0_151 = arith.constant 0 : index
    %c0_152 = arith.constant 0 : index
    %185 = vector.load %arg1[%c0_150, %c37, %c0_151, %c0_152] : memref<2x64x32x32xf32, #tpu.memory_space<vmem>>, vector<2x1x32x32xf32>
    %186 = vector.shape_cast %185 : vector<2x1x32x32xf32> to vector<2x32x32xf32>
    %187 = vector.shape_cast %186 : vector<2x32x32xf32> to vector<64x32xf32>
    %188 = arith.truncf %187 : vector<64x32xf32> to vector<64x32xbf16>
    %c0_153 = arith.constant 0 : index
    %c1184 = arith.constant 1184 : index
    %189 = vector.load %arg5[%c0_153, %c1184] : memref<64x2048xbf16, #tpu.memory_space<vmem>>, vector<64x32xbf16>
    tpu.vector_store %arg5[%c0_153, %c1184], %188 {strides = array<i32>} : memref<64x2048xbf16, #tpu.memory_space<vmem>>, vector<64x32xbf16>,
    %c0_154 = arith.constant 0 : index
    %c38 = arith.constant 38 : index
    %c0_155 = arith.constant 0 : index
    %c0_156 = arith.constant 0 : index
    %190 = vector.load %arg1[%c0_154, %c38, %c0_155, %c0_156] : memref<2x64x32x32xf32, #tpu.memory_space<vmem>>, vector<2x1x32x32xf32>
    %191 = vector.shape_cast %190 : vector<2x1x32x32xf32> to vector<2x32x32xf32>
    %192 = vector.shape_cast %191 : vector<2x32x32xf32> to vector<64x32xf32>
    %193 = arith.truncf %192 : vector<64x32xf32> to vector<64x32xbf16>
    %c0_157 = arith.constant 0 : index
    %c1216 = arith.constant 1216 : index
    %194 = vector.load %arg5[%c0_157, %c1216] : memref<64x2048xbf16, #tpu.memory_space<vmem>>, vector<64x32xbf16>
    tpu.vector_store %arg5[%c0_157, %c1216], %193 {strides = array<i32>} : memref<64x2048xbf16, #tpu.memory_space<vmem>>, vector<64x32xbf16>,
    %c0_158 = arith.constant 0 : index
    %c39 = arith.constant 39 : index
    %c0_159 = arith.constant 0 : index
    %c0_160 = arith.constant 0 : index
    %195 = vector.load %arg1[%c0_158, %c39, %c0_159, %c0_160] : memref<2x64x32x32xf32, #tpu.memory_space<vmem>>, vector<2x1x32x32xf32>
    %196 = vector.shape_cast %195 : vector<2x1x32x32xf32> to vector<2x32x32xf32>
    %197 = vector.shape_cast %196 : vector<2x32x32xf32> to vector<64x32xf32>
    %198 = arith.truncf %197 : vector<64x32xf32> to vector<64x32xbf16>
    %c0_161 = arith.constant 0 : index
    %c1248 = arith.constant 1248 : index
    %199 = vector.load %arg5[%c0_161, %c1248] : memref<64x2048xbf16, #tpu.memory_space<vmem>>, vector<64x32xbf16>
    tpu.vector_store %arg5[%c0_161, %c1248], %198 {strides = array<i32>} : memref<64x2048xbf16, #tpu.memory_space<vmem>>, vector<64x32xbf16>,
    %c0_162 = arith.constant 0 : index
    %c40 = arith.constant 40 : index
    %c0_163 = arith.constant 0 : index
    %c0_164 = arith.constant 0 : index
    %200 = vector.load %arg1[%c0_162, %c40, %c0_163, %c0_164] : memref<2x64x32x32xf32, #tpu.memory_space<vmem>>, vector<2x1x32x32xf32>
    %201 = vector.shape_cast %200 : vector<2x1x32x32xf32> to vector<2x32x32xf32>
    %202 = vector.shape_cast %201 : vector<2x32x32xf32> to vector<64x32xf32>
    %203 = arith.truncf %202 : vector<64x32xf32> to vector<64x32xbf16>
    %c0_165 = arith.constant 0 : index
    %c1280 = arith.constant 1280 : index
    %204 = vector.load %arg5[%c0_165, %c1280] : memref<64x2048xbf16, #tpu.memory_space<vmem>>, vector<64x32xbf16>
    tpu.vector_store %arg5[%c0_165, %c1280], %203 {strides = array<i32>} : memref<64x2048xbf16, #tpu.memory_space<vmem>>, vector<64x32xbf16>,
    %c0_166 = arith.constant 0 : index
    %c41 = arith.constant 41 : index
    %c0_167 = arith.constant 0 : index
    %c0_168 = arith.constant 0 : index
    %205 = vector.load %arg1[%c0_166, %c41, %c0_167, %c0_168] : memref<2x64x32x32xf32, #tpu.memory_space<vmem>>, vector<2x1x32x32xf32>
    %206 = vector.shape_cast %205 : vector<2x1x32x32xf32> to vector<2x32x32xf32>
    %207 = vector.shape_cast %206 : vector<2x32x32xf32> to vector<64x32xf32>
    %208 = arith.truncf %207 : vector<64x32xf32> to vector<64x32xbf16>
    %c0_169 = arith.constant 0 : index
    %c1312 = arith.constant 1312 : index
    %209 = vector.load %arg5[%c0_169, %c1312] : memref<64x2048xbf16, #tpu.memory_space<vmem>>, vector<64x32xbf16>
    tpu.vector_store %arg5[%c0_169, %c1312], %208 {strides = array<i32>} : memref<64x2048xbf16, #tpu.memory_space<vmem>>, vector<64x32xbf16>,
    %c0_170 = arith.constant 0 : index
    %c42 = arith.constant 42 : index
    %c0_171 = arith.constant 0 : index
    %c0_172 = arith.constant 0 : index
    %210 = vector.load %arg1[%c0_170, %c42, %c0_171, %c0_172] : memref<2x64x32x32xf32, #tpu.memory_space<vmem>>, vector<2x1x32x32xf32>
    %211 = vector.shape_cast %210 : vector<2x1x32x32xf32> to vector<2x32x32xf32>
    %212 = vector.shape_cast %211 : vector<2x32x32xf32> to vector<64x32xf32>
    %213 = arith.truncf %212 : vector<64x32xf32> to vector<64x32xbf16>
    %c0_173 = arith.constant 0 : index
    %c1344 = arith.constant 1344 : index
    %214 = vector.load %arg5[%c0_173, %c1344] : memref<64x2048xbf16, #tpu.memory_space<vmem>>, vector<64x32xbf16>
    tpu.vector_store %arg5[%c0_173, %c1344], %213 {strides = array<i32>} : memref<64x2048xbf16, #tpu.memory_space<vmem>>, vector<64x32xbf16>,
    %c0_174 = arith.constant 0 : index
    %c43 = arith.constant 43 : index
    %c0_175 = arith.constant 0 : index
    %c0_176 = arith.constant 0 : index
    %215 = vector.load %arg1[%c0_174, %c43, %c0_175, %c0_176] : memref<2x64x32x32xf32, #tpu.memory_space<vmem>>, vector<2x1x32x32xf32>
    %216 = vector.shape_cast %215 : vector<2x1x32x32xf32> to vector<2x32x32xf32>
    %217 = vector.shape_cast %216 : vector<2x32x32xf32> to vector<64x32xf32>
    %218 = arith.truncf %217 : vector<64x32xf32> to vector<64x32xbf16>
    %c0_177 = arith.constant 0 : index
    %c1376 = arith.constant 1376 : index
    %219 = vector.load %arg5[%c0_177, %c1376] : memref<64x2048xbf16, #tpu.memory_space<vmem>>, vector<64x32xbf16>
    tpu.vector_store %arg5[%c0_177, %c1376], %218 {strides = array<i32>} : memref<64x2048xbf16, #tpu.memory_space<vmem>>, vector<64x32xbf16>,
    %c0_178 = arith.constant 0 : index
    %c44 = arith.constant 44 : index
    %c0_179 = arith.constant 0 : index
    %c0_180 = arith.constant 0 : index
    %220 = vector.load %arg1[%c0_178, %c44, %c0_179, %c0_180] : memref<2x64x32x32xf32, #tpu.memory_space<vmem>>, vector<2x1x32x32xf32>
    %221 = vector.shape_cast %220 : vector<2x1x32x32xf32> to vector<2x32x32xf32>
    %222 = vector.shape_cast %221 : vector<2x32x32xf32> to vector<64x32xf32>
    %223 = arith.truncf %222 : vector<64x32xf32> to vector<64x32xbf16>
    %c0_181 = arith.constant 0 : index
    %c1408 = arith.constant 1408 : index
    %224 = vector.load %arg5[%c0_181, %c1408] : memref<64x2048xbf16, #tpu.memory_space<vmem>>, vector<64x32xbf16>
    tpu.vector_store %arg5[%c0_181, %c1408], %223 {strides = array<i32>} : memref<64x2048xbf16, #tpu.memory_space<vmem>>, vector<64x32xbf16>,
    %c0_182 = arith.constant 0 : index
    %c45 = arith.constant 45 : index
    %c0_183 = arith.constant 0 : index
    %c0_184 = arith.constant 0 : index
    %225 = vector.load %arg1[%c0_182, %c45, %c0_183, %c0_184] : memref<2x64x32x32xf32, #tpu.memory_space<vmem>>, vector<2x1x32x32xf32>
    %226 = vector.shape_cast %225 : vector<2x1x32x32xf32> to vector<2x32x32xf32>
    %227 = vector.shape_cast %226 : vector<2x32x32xf32> to vector<64x32xf32>
    %228 = arith.truncf %227 : vector<64x32xf32> to vector<64x32xbf16>
    %c0_185 = arith.constant 0 : index
    %c1440 = arith.constant 1440 : index
    %229 = vector.load %arg5[%c0_185, %c1440] : memref<64x2048xbf16, #tpu.memory_space<vmem>>, vector<64x32xbf16>
    tpu.vector_store %arg5[%c0_185, %c1440], %228 {strides = array<i32>} : memref<64x2048xbf16, #tpu.memory_space<vmem>>, vector<64x32xbf16>,
    %c0_186 = arith.constant 0 : index
    %c46 = arith.constant 46 : index
    %c0_187 = arith.constant 0 : index
    %c0_188 = arith.constant 0 : index
    %230 = vector.load %arg1[%c0_186, %c46, %c0_187, %c0_188] : memref<2x64x32x32xf32, #tpu.memory_space<vmem>>, vector<2x1x32x32xf32>
    %231 = vector.shape_cast %230 : vector<2x1x32x32xf32> to vector<2x32x32xf32>
    %232 = vector.shape_cast %231 : vector<2x32x32xf32> to vector<64x32xf32>
    %233 = arith.truncf %232 : vector<64x32xf32> to vector<64x32xbf16>
    %c0_189 = arith.constant 0 : index
    %c1472 = arith.constant 1472 : index
    %234 = vector.load %arg5[%c0_189, %c1472] : memref<64x2048xbf16, #tpu.memory_space<vmem>>, vector<64x32xbf16>
    tpu.vector_store %arg5[%c0_189, %c1472], %233 {strides = array<i32>} : memref<64x2048xbf16, #tpu.memory_space<vmem>>, vector<64x32xbf16>,
    %c0_190 = arith.constant 0 : index
    %c47 = arith.constant 47 : index
    %c0_191 = arith.constant 0 : index
    %c0_192 = arith.constant 0 : index
    %235 = vector.load %arg1[%c0_190, %c47, %c0_191, %c0_192] : memref<2x64x32x32xf32, #tpu.memory_space<vmem>>, vector<2x1x32x32xf32>
    %236 = vector.shape_cast %235 : vector<2x1x32x32xf32> to vector<2x32x32xf32>
    %237 = vector.shape_cast %236 : vector<2x32x32xf32> to vector<64x32xf32>
    %238 = arith.truncf %237 : vector<64x32xf32> to vector<64x32xbf16>
    %c0_193 = arith.constant 0 : index
    %c1504 = arith.constant 1504 : index
    %239 = vector.load %arg5[%c0_193, %c1504] : memref<64x2048xbf16, #tpu.memory_space<vmem>>, vector<64x32xbf16>
    tpu.vector_store %arg5[%c0_193, %c1504], %238 {strides = array<i32>} : memref<64x2048xbf16, #tpu.memory_space<vmem>>, vector<64x32xbf16>,
    %c0_194 = arith.constant 0 : index
    %c48 = arith.constant 48 : index
    %c0_195 = arith.constant 0 : index
    %c0_196 = arith.constant 0 : index
    %240 = vector.load %arg1[%c0_194, %c48, %c0_195, %c0_196] : memref<2x64x32x32xf32, #tpu.memory_space<vmem>>, vector<2x1x32x32xf32>
    %241 = vector.shape_cast %240 : vector<2x1x32x32xf32> to vector<2x32x32xf32>
    %242 = vector.shape_cast %241 : vector<2x32x32xf32> to vector<64x32xf32>
    %243 = arith.truncf %242 : vector<64x32xf32> to vector<64x32xbf16>
    %c0_197 = arith.constant 0 : index
    %c1536 = arith.constant 1536 : index
    %244 = vector.load %arg5[%c0_197, %c1536] : memref<64x2048xbf16, #tpu.memory_space<vmem>>, vector<64x32xbf16>
    tpu.vector_store %arg5[%c0_197, %c1536], %243 {strides = array<i32>} : memref<64x2048xbf16, #tpu.memory_space<vmem>>, vector<64x32xbf16>,
    %c0_198 = arith.constant 0 : index
    %c49 = arith.constant 49 : index
    %c0_199 = arith.constant 0 : index
    %c0_200 = arith.constant 0 : index
    %245 = vector.load %arg1[%c0_198, %c49, %c0_199, %c0_200] : memref<2x64x32x32xf32, #tpu.memory_space<vmem>>, vector<2x1x32x32xf32>
    %246 = vector.shape_cast %245 : vector<2x1x32x32xf32> to vector<2x32x32xf32>
    %247 = vector.shape_cast %246 : vector<2x32x32xf32> to vector<64x32xf32>
    %248 = arith.truncf %247 : vector<64x32xf32> to vector<64x32xbf16>
    %c0_201 = arith.constant 0 : index
    %c1568 = arith.constant 1568 : index
    %249 = vector.load %arg5[%c0_201, %c1568] : memref<64x2048xbf16, #tpu.memory_space<vmem>>, vector<64x32xbf16>
    tpu.vector_store %arg5[%c0_201, %c1568], %248 {strides = array<i32>} : memref<64x2048xbf16, #tpu.memory_space<vmem>>, vector<64x32xbf16>,
    %c0_202 = arith.constant 0 : index
    %c50 = arith.constant 50 : index
    %c0_203 = arith.constant 0 : index
    %c0_204 = arith.constant 0 : index
    %250 = vector.load %arg1[%c0_202, %c50, %c0_203, %c0_204] : memref<2x64x32x32xf32, #tpu.memory_space<vmem>>, vector<2x1x32x32xf32>
    %251 = vector.shape_cast %250 : vector<2x1x32x32xf32> to vector<2x32x32xf32>
    %252 = vector.shape_cast %251 : vector<2x32x32xf32> to vector<64x32xf32>
    %253 = arith.truncf %252 : vector<64x32xf32> to vector<64x32xbf16>
    %c0_205 = arith.constant 0 : index
    %c1600 = arith.constant 1600 : index
    %254 = vector.load %arg5[%c0_205, %c1600] : memref<64x2048xbf16, #tpu.memory_space<vmem>>, vector<64x32xbf16>
    tpu.vector_store %arg5[%c0_205, %c1600], %253 {strides = array<i32>} : memref<64x2048xbf16, #tpu.memory_space<vmem>>, vector<64x32xbf16>,
    %c0_206 = arith.constant 0 : index
    %c51 = arith.constant 51 : index
    %c0_207 = arith.constant 0 : index
    %c0_208 = arith.constant 0 : index
    %255 = vector.load %arg1[%c0_206, %c51, %c0_207, %c0_208] : memref<2x64x32x32xf32, #tpu.memory_space<vmem>>, vector<2x1x32x32xf32>
    %256 = vector.shape_cast %255 : vector<2x1x32x32xf32> to vector<2x32x32xf32>
    %257 = vector.shape_cast %256 : vector<2x32x32xf32> to vector<64x32xf32>
    %258 = arith.truncf %257 : vector<64x32xf32> to vector<64x32xbf16>
    %c0_209 = arith.constant 0 : index
    %c1632 = arith.constant 1632 : index
    %259 = vector.load %arg5[%c0_209, %c1632] : memref<64x2048xbf16, #tpu.memory_space<vmem>>, vector<64x32xbf16>
    tpu.vector_store %arg5[%c0_209, %c1632], %258 {strides = array<i32>} : memref<64x2048xbf16, #tpu.memory_space<vmem>>, vector<64x32xbf16>,
    %c0_210 = arith.constant 0 : index
    %c52 = arith.constant 52 : index
    %c0_211 = arith.constant 0 : index
    %c0_212 = arith.constant 0 : index
    %260 = vector.load %arg1[%c0_210, %c52, %c0_211, %c0_212] : memref<2x64x32x32xf32, #tpu.memory_space<vmem>>, vector<2x1x32x32xf32>
    %261 = vector.shape_cast %260 : vector<2x1x32x32xf32> to vector<2x32x32xf32>
    %262 = vector.shape_cast %261 : vector<2x32x32xf32> to vector<64x32xf32>
    %263 = arith.truncf %262 : vector<64x32xf32> to vector<64x32xbf16>
    %c0_213 = arith.constant 0 : index
    %c1664 = arith.constant 1664 : index
    %264 = vector.load %arg5[%c0_213, %c1664] : memref<64x2048xbf16, #tpu.memory_space<vmem>>, vector<64x32xbf16>
    tpu.vector_store %arg5[%c0_213, %c1664], %263 {strides = array<i32>} : memref<64x2048xbf16, #tpu.memory_space<vmem>>, vector<64x32xbf16>,
    %c0_214 = arith.constant 0 : index
    %c53 = arith.constant 53 : index
    %c0_215 = arith.constant 0 : index
    %c0_216 = arith.constant 0 : index
    %265 = vector.load %arg1[%c0_214, %c53, %c0_215, %c0_216] : memref<2x64x32x32xf32, #tpu.memory_space<vmem>>, vector<2x1x32x32xf32>
    %266 = vector.shape_cast %265 : vector<2x1x32x32xf32> to vector<2x32x32xf32>
    %267 = vector.shape_cast %266 : vector<2x32x32xf32> to vector<64x32xf32>
    %268 = arith.truncf %267 : vector<64x32xf32> to vector<64x32xbf16>
    %c0_217 = arith.constant 0 : index
    %c1696 = arith.constant 1696 : index
    %269 = vector.load %arg5[%c0_217, %c1696] : memref<64x2048xbf16, #tpu.memory_space<vmem>>, vector<64x32xbf16>
    tpu.vector_store %arg5[%c0_217, %c1696], %268 {strides = array<i32>} : memref<64x2048xbf16, #tpu.memory_space<vmem>>, vector<64x32xbf16>,
    %c0_218 = arith.constant 0 : index
    %c54 = arith.constant 54 : index
    %c0_219 = arith.constant 0 : index
    %c0_220 = arith.constant 0 : index
    %270 = vector.load %arg1[%c0_218, %c54, %c0_219, %c0_220] : memref<2x64x32x32xf32, #tpu.memory_space<vmem>>, vector<2x1x32x32xf32>
    %271 = vector.shape_cast %270 : vector<2x1x32x32xf32> to vector<2x32x32xf32>
    %272 = vector.shape_cast %271 : vector<2x32x32xf32> to vector<64x32xf32>
    %273 = arith.truncf %272 : vector<64x32xf32> to vector<64x32xbf16>
    %c0_221 = arith.constant 0 : index
    %c1728 = arith.constant 1728 : index
    %274 = vector.load %arg5[%c0_221, %c1728] : memref<64x2048xbf16, #tpu.memory_space<vmem>>, vector<64x32xbf16>
    tpu.vector_store %arg5[%c0_221, %c1728], %273 {strides = array<i32>} : memref<64x2048xbf16, #tpu.memory_space<vmem>>, vector<64x32xbf16>,
    %c0_222 = arith.constant 0 : index
    %c55 = arith.constant 55 : index
    %c0_223 = arith.constant 0 : index
    %c0_224 = arith.constant 0 : index
    %275 = vector.load %arg1[%c0_222, %c55, %c0_223, %c0_224] : memref<2x64x32x32xf32, #tpu.memory_space<vmem>>, vector<2x1x32x32xf32>
    %276 = vector.shape_cast %275 : vector<2x1x32x32xf32> to vector<2x32x32xf32>
    %277 = vector.shape_cast %276 : vector<2x32x32xf32> to vector<64x32xf32>
    %278 = arith.truncf %277 : vector<64x32xf32> to vector<64x32xbf16>
    %c0_225 = arith.constant 0 : index
    %c1760 = arith.constant 1760 : index
    %279 = vector.load %arg5[%c0_225, %c1760] : memref<64x2048xbf16, #tpu.memory_space<vmem>>, vector<64x32xbf16>
    tpu.vector_store %arg5[%c0_225, %c1760], %278 {strides = array<i32>} : memref<64x2048xbf16, #tpu.memory_space<vmem>>, vector<64x32xbf16>,
    %c0_226 = arith.constant 0 : index
    %c56 = arith.constant 56 : index
    %c0_227 = arith.constant 0 : index
    %c0_228 = arith.constant 0 : index
    %280 = vector.load %arg1[%c0_226, %c56, %c0_227, %c0_228] : memref<2x64x32x32xf32, #tpu.memory_space<vmem>>, vector<2x1x32x32xf32>
    %281 = vector.shape_cast %280 : vector<2x1x32x32xf32> to vector<2x32x32xf32>
    %282 = vector.shape_cast %281 : vector<2x32x32xf32> to vector<64x32xf32>
    %283 = arith.truncf %282 : vector<64x32xf32> to vector<64x32xbf16>
    %c0_229 = arith.constant 0 : index
    %c1792 = arith.constant 1792 : index
    %284 = vector.load %arg5[%c0_229, %c1792] : memref<64x2048xbf16, #tpu.memory_space<vmem>>, vector<64x32xbf16>
    tpu.vector_store %arg5[%c0_229, %c1792], %283 {strides = array<i32>} : memref<64x2048xbf16, #tpu.memory_space<vmem>>, vector<64x32xbf16>,
    %c0_230 = arith.constant 0 : index
    %c57 = arith.constant 57 : index
    %c0_231 = arith.constant 0 : index
    %c0_232 = arith.constant 0 : index
    %285 = vector.load %arg1[%c0_230, %c57, %c0_231, %c0_232] : memref<2x64x32x32xf32, #tpu.memory_space<vmem>>, vector<2x1x32x32xf32>
    %286 = vector.shape_cast %285 : vector<2x1x32x32xf32> to vector<2x32x32xf32>
    %287 = vector.shape_cast %286 : vector<2x32x32xf32> to vector<64x32xf32>
    %288 = arith.truncf %287 : vector<64x32xf32> to vector<64x32xbf16>
    %c0_233 = arith.constant 0 : index
    %c1824 = arith.constant 1824 : index
    %289 = vector.load %arg5[%c0_233, %c1824] : memref<64x2048xbf16, #tpu.memory_space<vmem>>, vector<64x32xbf16>
    tpu.vector_store %arg5[%c0_233, %c1824], %288 {strides = array<i32>} : memref<64x2048xbf16, #tpu.memory_space<vmem>>, vector<64x32xbf16>,
    %c0_234 = arith.constant 0 : index
    %c58 = arith.constant 58 : index
    %c0_235 = arith.constant 0 : index
    %c0_236 = arith.constant 0 : index
    %290 = vector.load %arg1[%c0_234, %c58, %c0_235, %c0_236] : memref<2x64x32x32xf32, #tpu.memory_space<vmem>>, vector<2x1x32x32xf32>
    %291 = vector.shape_cast %290 : vector<2x1x32x32xf32> to vector<2x32x32xf32>
    %292 = vector.shape_cast %291 : vector<2x32x32xf32> to vector<64x32xf32>
    %293 = arith.truncf %292 : vector<64x32xf32> to vector<64x32xbf16>
    %c0_237 = arith.constant 0 : index
    %c1856 = arith.constant 1856 : index
    %294 = vector.load %arg5[%c0_237, %c1856] : memref<64x2048xbf16, #tpu.memory_space<vmem>>, vector<64x32xbf16>
    tpu.vector_store %arg5[%c0_237, %c1856], %293 {strides = array<i32>} : memref<64x2048xbf16, #tpu.memory_space<vmem>>, vector<64x32xbf16>,
    %c0_238 = arith.constant 0 : index
    %c59 = arith.constant 59 : index
    %c0_239 = arith.constant 0 : index
    %c0_240 = arith.constant 0 : index
    %295 = vector.load %arg1[%c0_238, %c59, %c0_239, %c0_240] : memref<2x64x32x32xf32, #tpu.memory_space<vmem>>, vector<2x1x32x32xf32>
    %296 = vector.shape_cast %295 : vector<2x1x32x32xf32> to vector<2x32x32xf32>
    %297 = vector.shape_cast %296 : vector<2x32x32xf32> to vector<64x32xf32>
    %298 = arith.truncf %297 : vector<64x32xf32> to vector<64x32xbf16>
    %c0_241 = arith.constant 0 : index
    %c1888 = arith.constant 1888 : index
    %299 = vector.load %arg5[%c0_241, %c1888] : memref<64x2048xbf16, #tpu.memory_space<vmem>>, vector<64x32xbf16>
    tpu.vector_store %arg5[%c0_241, %c1888], %298 {strides = array<i32>} : memref<64x2048xbf16, #tpu.memory_space<vmem>>, vector<64x32xbf16>,
    %c0_242 = arith.constant 0 : index
    %c60 = arith.constant 60 : index
    %c0_243 = arith.constant 0 : index
    %c0_244 = arith.constant 0 : index
    %300 = vector.load %arg1[%c0_242, %c60, %c0_243, %c0_244] : memref<2x64x32x32xf32, #tpu.memory_space<vmem>>, vector<2x1x32x32xf32>
    %301 = vector.shape_cast %300 : vector<2x1x32x32xf32> to vector<2x32x32xf32>
    %302 = vector.shape_cast %301 : vector<2x32x32xf32> to vector<64x32xf32>
    %303 = arith.truncf %302 : vector<64x32xf32> to vector<64x32xbf16>
    %c0_245 = arith.constant 0 : index
    %c1920 = arith.constant 1920 : index
    %304 = vector.load %arg5[%c0_245, %c1920] : memref<64x2048xbf16, #tpu.memory_space<vmem>>, vector<64x32xbf16>
    tpu.vector_store %arg5[%c0_245, %c1920], %303 {strides = array<i32>} : memref<64x2048xbf16, #tpu.memory_space<vmem>>, vector<64x32xbf16>,
    %c0_246 = arith.constant 0 : index
    %c61 = arith.constant 61 : index
    %c0_247 = arith.constant 0 : index
    %c0_248 = arith.constant 0 : index
    %305 = vector.load %arg1[%c0_246, %c61, %c0_247, %c0_248] : memref<2x64x32x32xf32, #tpu.memory_space<vmem>>, vector<2x1x32x32xf32>
    %306 = vector.shape_cast %305 : vector<2x1x32x32xf32> to vector<2x32x32xf32>
    %307 = vector.shape_cast %306 : vector<2x32x32xf32> to vector<64x32xf32>
    %308 = arith.truncf %307 : vector<64x32xf32> to vector<64x32xbf16>
    %c0_249 = arith.constant 0 : index
    %c1952 = arith.constant 1952 : index
    %309 = vector.load %arg5[%c0_249, %c1952] : memref<64x2048xbf16, #tpu.memory_space<vmem>>, vector<64x32xbf16>
    tpu.vector_store %arg5[%c0_249, %c1952], %308 {strides = array<i32>} : memref<64x2048xbf16, #tpu.memory_space<vmem>>, vector<64x32xbf16>,
    %c0_250 = arith.constant 0 : index
    %c62 = arith.constant 62 : index
    %c0_251 = arith.constant 0 : index
    %c0_252 = arith.constant 0 : index
    %310 = vector.load %arg1[%c0_250, %c62, %c0_251, %c0_252] : memref<2x64x32x32xf32, #tpu.memory_space<vmem>>, vector<2x1x32x32xf32>
    %311 = vector.shape_cast %310 : vector<2x1x32x32xf32> to vector<2x32x32xf32>
    %312 = vector.shape_cast %311 : vector<2x32x32xf32> to vector<64x32xf32>
    %313 = arith.truncf %312 : vector<64x32xf32> to vector<64x32xbf16>
    %c0_253 = arith.constant 0 : index
    %c1984 = arith.constant 1984 : index
    %314 = vector.load %arg5[%c0_253, %c1984] : memref<64x2048xbf16, #tpu.memory_space<vmem>>, vector<64x32xbf16>
    tpu.vector_store %arg5[%c0_253, %c1984], %313 {strides = array<i32>} : memref<64x2048xbf16, #tpu.memory_space<vmem>>, vector<64x32xbf16>,
    %c0_254 = arith.constant 0 : index
    %c63 = arith.constant 63 : index
    %c0_255 = arith.constant 0 : index
    %c0_256 = arith.constant 0 : index
    %315 = vector.load %arg1[%c0_254, %c63, %c0_255, %c0_256] : memref<2x64x32x32xf32, #tpu.memory_space<vmem>>, vector<2x1x32x32xf32>
    %316 = vector.shape_cast %315 : vector<2x1x32x32xf32> to vector<2x32x32xf32>
    %317 = vector.shape_cast %316 : vector<2x32x32xf32> to vector<64x32xf32>
    %318 = arith.truncf %317 : vector<64x32xf32> to vector<64x32xbf16>
    %c0_257 = arith.constant 0 : index
    %c2016 = arith.constant 2016 : index
    %319 = vector.load %arg5[%c0_257, %c2016] : memref<64x2048xbf16, #tpu.memory_space<vmem>>, vector<64x32xbf16>
    tpu.vector_store %arg5[%c0_257, %c2016], %318 {strides = array<i32>} : memref<64x2048xbf16, #tpu.memory_space<vmem>>, vector<64x32xbf16>,
    %c0_258 = arith.constant 0 : index
    %c0_259 = arith.constant 0 : index
    %320 = vector.load %arg5[%c0_258, %c0_259] : memref<64x2048xbf16, #tpu.memory_space<vmem>>, vector<64x2048xbf16>
    %c0_260 = arith.constant 0 : index
    %c0_261 = arith.constant 0 : index
    %321 = vector.load %arg2[%c0_260, %c0_261] : memref<2048x192xbf16, #tpu.memory_space<vmem>>, vector<2048x192xbf16>
    %cst = arith.constant dense<0.000000e+00> : vector<64x192xf32>
    %322 = tpu.matmul %320, %321, %cst {dimension_numbers = #tpu.dot_dimension_numbers<[1], [0], [0], [1], [0, 0, 1, 1], [], []>} : vector<64x2048xbf16>, vector<2048x192xbf16>, vector<64x192xf32> -> vector<64x192xf32>
    %323 = vector.extract_strided_slice %322 {offsets = [0, 0], sizes = [64, 64], strides = [1, 1]} : vector<64x192xf32> to vector<64x64xf32>
    %324 = vector.extract_strided_slice %322 {offsets = [0, 64], sizes = [64, 64], strides = [1, 1]} : vector<64x192xf32> to vector<64x64xf32>
    %325 = vector.extract_strided_slice %322 {offsets = [0, 128], sizes = [64, 64], strides = [1, 1]} : vector<64x192xf32> to vector<64x64xf32>
    %326 = tpu.iota {dimensions = array<i32: 0>} : vector<64x64xi32>
    %c32_i32 = arith.constant 32 : i32
    %c0_i32 = arith.constant 0 : i32
    %327 = arith.cmpi eq, %c32_i32, %c0_i32 : i32
    %c1_i32 = arith.constant 1 : i32
    %328 = arith.select %327, %c1_i32, %c32_i32 : i32
    %329 = vector.broadcast %328 : i32 to vector<64x64xi32>
    %330 = arith.remsi %326, %329 : vector<64x64xi32>
    %c0_i32_262 = arith.constant 0 : i32
    %331 = vector.broadcast %c0_i32_262 : i32 to vector<64x64xi32>
    %332 = arith.cmpi ne, %330, %331 : vector<64x64xi32>
    %c0_i32_263 = arith.constant 0 : i32
    %333 = vector.broadcast %c0_i32_263 : i32 to vector<64x64xi32>
    %334 = arith.cmpi slt, %330, %333 : vector<64x64xi32>
    %c0_i32_264 = arith.constant 0 : i32
    %335 = arith.cmpi slt, %328, %c0_i32_264 : i32
    %336 = vector.broadcast %335 : i1 to vector<64x64xi1>
    %337 = vector.broadcast %336 : vector<64x64xi1> to vector<64x64xi1>
    %338 = arith.xori %334, %337 : vector<64x64xi1>
    %339 = arith.andi %338, %332 : vector<64x64xi1>
    %340 = vector.broadcast %328 : i32 to vector<64x64xi32>
    %341 = arith.addi %330, %340 : vector<64x64xi32>
    %342 = arith.select %339, %341, %330 : vector<64x64xi1>, vector<64x64xi32>
    %c0_i32_265 = arith.constant 0 : i32
    %343 = vector.broadcast %c0_i32_265 : i32 to vector<64x64xi32>
    %344 = arith.cmpi eq, %342, %343 : vector<64x64xi32>
    %c31_i32 = arith.constant 31 : i32
    %345 = vector.broadcast %c31_i32 : i32 to vector<64x64xi32>
    %346 = arith.cmpi eq, %342, %345 : vector<64x64xi32>
    %c1_i32_266 = arith.constant 1 : i32
    %347 = tpu.dynamic_rotate %323 by %c1_i32_266 dim 0 : vector<64x64xf32>, i32 -> vector<64x64xf32>
    %cst_267 = arith.constant 0.000000e+00 : f32
    %348 = vector.broadcast %cst_267 : f32 to vector<64x64xf32>
    %349 = arith.select %344, %348, %347 : vector<64x64xi1>, vector<64x64xf32>
    %c63_i32 = arith.constant 63 : i32
    %350 = tpu.dynamic_rotate %325 by %c63_i32 dim 0 : vector<64x64xf32>, i32 -> vector<64x64xf32>
    %cst_268 = arith.constant 0.000000e+00 : f32
    %351 = vector.broadcast %cst_268 : f32 to vector<64x64xf32>
    %352 = arith.select %346, %351, %350 : vector<64x64xi1>, vector<64x64xf32>
    %353 = arith.addf %349, %324 : vector<64x64xf32>
    %354 = arith.addf %353, %352 : vector<64x64xf32>
    %c0_269 = arith.constant 0 : index
    %c0_270 = arith.constant 0 : index
    %355 = vector.load %arg3[%c0_269, %c0_270] : memref<3x64xf32, #tpu.memory_space<vmem>>, vector<1x64xf32>
    %356 = vector.broadcast %355 : vector<1x64xf32> to vector<64x64xf32>
    %357 = arith.addf %354, %356 : vector<64x64xf32>
    %c1_271 = arith.constant 1 : index
    %c0_272 = arith.constant 0 : index
    %358 = vector.load %arg3[%c1_271, %c0_272] : memref<3x64xf32, #tpu.memory_space<vmem>>, vector<1x64xf32>
    %cst_273 = arith.constant 0.000000e+00 : f32
    %359 = vector.shape_cast %358 : vector<1x64xf32> to vector<1x64xf32>
    %360 = vector.broadcast %359 : vector<1x64xf32> to vector<64x64xf32>
    %361 = vector.broadcast %cst_273 : f32 to vector<64x64xf32>
    %362 = arith.select %344, %360, %361 : vector<64x64xi1>, vector<64x64xf32>
    %363 = arith.addf %357, %362 : vector<64x64xf32>
    %c2_274 = arith.constant 2 : index
    %c0_275 = arith.constant 0 : index
    %364 = vector.load %arg3[%c2_274, %c0_275] : memref<3x64xf32, #tpu.memory_space<vmem>>, vector<1x64xf32>
    %cst_276 = arith.constant 0.000000e+00 : f32
    %365 = vector.shape_cast %364 : vector<1x64xf32> to vector<1x64xf32>
    %366 = vector.broadcast %365 : vector<1x64xf32> to vector<64x64xf32>
    %367 = vector.broadcast %cst_276 : f32 to vector<64x64xf32>
    %368 = arith.select %346, %366, %367 : vector<64x64xi1>, vector<64x64xf32>
    %369 = arith.addf %363, %368 : vector<64x64xf32>
    %cst_277 = arith.constant 0.000000e+00 : f32
    %370 = vector.broadcast %cst_277 : f32 to vector<64x64xf32>
    %371 = arith.cmpf oge, %369, %370 : vector<64x64xf32>
    %cst_278 = arith.constant 2.000000e-01 : f32
    %372 = vector.broadcast %cst_278 : f32 to vector<64x64xf32>
    %373 = arith.mulf %372, %369 : vector<64x64xf32>
    %374 = arith.select %371, %369, %373 : vector<64x64xi1>, vector<64x64xf32>
    %c0_279 = arith.constant 0 : index
    %c0_280 = arith.constant 0 : index
    %375 = vector.load %arg4[%c0_279, %c0_280] : memref<64x64xf32, #tpu.memory_space<vmem>>, vector<64x64xf32>
    tpu.vector_store %arg4[%c0_279, %c0_280], %374 {strides = array<i32>} : memref<64x64xf32, #tpu.memory_space<vmem>>, vector<64x64xf32>,
    return
  }
  func.func @transform_0(%arg0: i32) -> (i32, i32, i32, i32) {
    %c0_i32 = arith.constant 0 : i32
    %c0_i32_0 = arith.constant 0 : i32
    %c0_i32_1 = arith.constant 0 : i32
    %c0_i32_2 = arith.constant 0 : i32
    return %arg0, %c0_i32, %c0_i32_0, %c0_i32_1 : i32, i32, i32, i32
  }
  func.func @transform_1(%arg0: i32) -> (i32, i32) {
    %c0_i32 = arith.constant 0 : i32
    %c0_i32_0 = arith.constant 0 : i32
    %c0_i32_1 = arith.constant 0 : i32
    return %c0_i32, %c0_i32_0 : i32, i32
  }
  func.func @transform_2(%arg0: i32) -> (i32, i32) {
    %c0_i32 = arith.constant 0 : i32
    %c0_i32_0 = arith.constant 0 : i32
    %c0_i32_1 = arith.constant 0 : i32
    return %c0_i32, %c0_i32_0 : i32, i32
  }
  func.func @transform_3(%arg0: i32) -> (i32, i32) {
    %c0_i32 = arith.constant 0 : i32
    %c0_i32_0 = arith.constant 0 : i32
    return %arg0, %c0_i32 : i32, i32
  }
}

</mosaic_0001>

<bundles_post_ra>
// kernel: tpu_custom_call.1
= control target key start
LH: loop header
LB: loop body
LE: loop exit
PB: predicated region body
PF: predicated region fallthrough
CT: control target
= control target key end

     0   :  { %s8980_s20 = smov 32   ;;  %s8981_s10 = smov 64   ;;  %vm55_vm0 = vcmask 257024   ;;  %vm121_vm1 = vcmask 519424   ;;  %vm187_vm2 = vcmask 781824   ;;  %vm253_vm3 = vcmask 1044224   ;;  %s12692_s0 = inlined_call_operand.vmem [shape: f32[2,64,32,32], index: 0, kind: input, shape index: {}]   ;;  %s12693_s1 = inlined_call_operand.vmem [shape: bf16[2048,192], index: 1, kind: input, shape index: {}]   ;;  %s12694_s2 = inlined_call_operand.vmem [shape: f32[3,64], index: 2, kind: input, shape index: {}]   ;;  %s12695_s3 = inlined_call_operand.hbm [shape: f32[64,64], index: 3, kind: output, shape index: {}]  }
   0x1   :  { %v6759_v0 = vld [vmem:[%s12692_s0 + $0x30] sm:$0xff]  ;;  %v6757_v1 = vld [vmem:[%s12692_s0 + $0x20] sm:$0xff]  ;;  %v6760_v2 = vld [vmem:[%s12692_s0 + $0x38] sm:$0xff]  ;;  %s8982_s11 = smov 96  }
   0x2   :  { %v8098_v3 = vpack.c.bf16 %v6759_v0, %v6759_v0  ;;  %v8096_v4 = vpack.c.bf16 %v6757_v1, %v6757_v1  ;;  %v6758_v5 = vld [vmem:[%s12692_s0 + $0x28] sm:$0xff]  ;;  %v8099_v6 = vpack.c.bf16 %v6760_v2, %v6760_v2  ;;  %v6761_v9 = vld [vmem:[%s12692_s0 + $0x820] sm:$0xff]  ;;  %v6764_v12 = vld [vmem:[%s12692_s0 + $0x838] sm:$0xff] }
   0x3   :  { %v8097_v7 = vpack.c.bf16 %v6758_v5, %v6758_v5  ;;  %v6762_v8 = vld [vmem:[%s12692_s0 + $0x828] sm:$0xff]  ;;  %v8100_v11 = vpack.c.bf16 %v6761_v9, %v6761_v9  ;;  %v6763_v13 = vld [vmem:[%s12692_s0 + $0x830] sm:$0xff]  ;;  %v8103_v14 = vpack.c.bf16 %v6764_v12, %v6764_v12  ;;  %v6773_v17 = vld [vmem:[%s12692_s0 + $0x40] sm:$0xff] }
   0x4   :  { %101 = vrot.lane.b32.xlu1 %v8098_v3, %s8980_s20  ;;  %97 = vrot.lane.b32.xlu0 %v8096_v4, %s8980_s20  ;;  %v8101_v10 = vpack.c.bf16 %v6762_v8, %v6762_v8  ;;  %v8102_v15 = vpack.c.bf16 %v6763_v13, %v6763_v13  ;;  %v6774_v16 = vld [vmem:[%s12692_s0 + $0x48] sm:$0xff]  ;;  %v8104_v19 = vpack.c.bf16 %v6773_v17, %v6773_v17  ;;  %v6776_v20 = vld [vmem:[%s12692_s0 + $0x58] sm:$0xff] }
   0x5   :  { %v8105_v18 = vpack.c.bf16 %v6774_v16, %v6774_v16  ;;  %v6775_v21 = vld [vmem:[%s12692_s0 + $0x50] sm:$0xff]  ;;  %v8107_v22 = vpack.c.bf16 %v6776_v20, %v6776_v20  ;;  %v6778_v24 = vld [vmem:[%s12692_s0 + $0x848] sm:$0xff]  ;;  %v6777_v25 = vld [vmem:[%s12692_s0 + $0x840] sm:$0xff] }
   0x6   :  { %v8106_v23 = vpack.c.bf16 %v6775_v21, %v6775_v21  ;;  %v17_v26 = vld [vmem:[%s12692_s0 + $0x10] sm:$0xff]  ;;  %v15_v27 = vld [vmem:[%s12692_s0] sm:$0xff]  ;;  %v8109_v28 = vpack.c.bf16 %v6778_v24, %v6778_v24  ;;  %v18_v31 = vld [vmem:[%s12692_s0 + $0x18] sm:$0xff]  ;;  %v8108_v33 = vpack.c.bf16 %v6777_v25, %v6777_v25 }
   0x7   :  { %v8090_v29 = vpack.c.bf16 %v17_v26, %v17_v26  ;;  %v8088_v30 = vpack.c.bf16 %v15_v27, %v15_v27  ;;  %v16_v32 = vld [vmem:[%s12692_s0 + $0x8] sm:$0xff]  ;;  %v6780_v34 = vld [vmem:[%s12692_s0 + $0x858] sm:$0xff]  ;;  %v8091_v35 = vpack.c.bf16 %v18_v31, %v18_v31  ;;  %v6779_v37 = vld [vmem:[%s12692_s0 + $0x850] sm:$0xff] }
   0x8   :  { %103 = vrot.lane.b32.xlu1 %v8099_v6, %s8980_s20  ;;  %99 = vrot.lane.b32.xlu0 %v8097_v7, %s8980_s20  ;;  %v8089_v36 = vpack.c.bf16 %v16_v32, %v16_v32  ;;  %v20_v38 = vld [vmem:[%s12692_s0 + $0x808] sm:$0xff]  ;;  %v19_v39 = vld [vmem:[%s12692_s0 + $0x800] sm:$0xff]  ;;  %v8111_v46 = vpack.c.bf16 %v6780_v34, %v6780_v34  ;;  %v8110_v47 = vpack.c.bf16 %v6779_v37, %v6779_v37 }
   0x9   :  { %58 = vst.msk [vmem:[#allocation2 + $0x80] sm:$0xf] %vm55_vm0, %v8090_v29  ;;  %56 = vst.msk [vmem:[#allocation2] sm:$0xf] %vm55_vm0, %v8088_v30  ;;  %v8093_v40 = vpack.c.bf16 %v20_v38, %v20_v38  ;;  %v8092_v41 = vpack.c.bf16 %v19_v39, %v19_v39  ;;  %v22_v42 = vld [vmem:[%s12692_s0 + $0x818] sm:$0xff]  ;;  %v21_v43 = vld [vmem:[%s12692_s0 + $0x810] sm:$0xff] }
   0xa   :  { %59 = vst.msk [vmem:[#allocation2 + $0xc0] sm:$0xf] %vm55_vm0, %v8091_v35  ;;  %57 = vst.msk [vmem:[#allocation2 + $0x40] sm:$0xf] %vm55_vm0, %v8089_v36  ;;  %v8095_v44 = vpack.c.bf16 %v22_v42, %v22_v42  ;;  %v8094_v45 = vpack.c.bf16 %v21_v43, %v21_v43  ;;  %v6790_v48 = vld [vmem:[%s12692_s0 + $0x68] sm:$0xff]  ;;  %v6789_v49 = vld [vmem:[%s12692_s0 + $0x60] sm:$0xff] }
   0xb   :  { %61 = vst.msk [vmem:[#allocation2 + $0x140] sm:$0xf] %vm55_vm0, %v8093_v40  ;;  %60 = vst.msk [vmem:[#allocation2 + $0x100] sm:$0xf] %vm55_vm0, %v8092_v41  ;;  %v4000_v50 = vld [vmem:[%s12693_s1 + $0x70] sm:$0xff]  ;;  %v4001_v51 = vld [vmem:[%s12693_s1 + $0x78] sm:$0xff]  ;;  %v8113_v55 = vpack.c.bf16 %v6790_v48, %v6790_v48  ;;  %v8112_v56 = vpack.c.bf16 %v6789_v49, %v6789_v49 }
   0xc   :  { %107 = vrot.lane.b32.xlu1 %v8101_v10, %s8980_s20  ;;  %105 = vrot.lane.b32.xlu0 %v8100_v11, %s8980_s20  ;;  %63 = vst.msk [vmem:[#allocation2 + $0x1c0] sm:$0xf] %vm55_vm0, %v8095_v44  ;;  %62 = vst.msk [vmem:[#allocation2 + $0x180] sm:$0xf] %vm55_vm0, %v8094_v45  ;;  %v8606_v52 = vld [vmem:[%s12693_s1 + $0x74] ss:$8 sps:$4 sm:$0xff]   ;;  %v7843_v53 = vcombine.low %v4000_v50, %v4001_v51 }
   0xd   :  { %v3998_v54 = vld [vmem:[%s12693_s1 + $0x60] sm:$0xff]  ;;  %v3999_v57 = vld [vmem:[%s12693_s1 + $0x68] sm:$0xff]  ;;  %v6792_v59 = vld [vmem:[%s12692_s0 + $0x78] sm:$0xff]  ;;  %5842 = vmatprep.subr.bf16.mxu0 %v8606_v52 }
   0xe   :  { %v8608_v58 = vld [vmem:[%s12693_s1 + $0x64] ss:$8 sps:$4 sm:$0xff]   ;;  %v6791_v60 = vld [vmem:[%s12692_s0 + $0x70] sm:$0xff]  ;;  %5843 = vmatpush1.bf16.msra.mxu0 %v7843_v53  ;;  %v7841_v61 = vcombine.low %v3998_v54, %v3999_v57  ;;  %v3997_v63 = vld [vmem:[%s12693_s1 + $0x58] sm:$0xff]  ;;  %v8115_v1 = vpack.c.bf16 %v6792_v59, %v6792_v59 }
   0xf   :  { %5844 = vmatprep.subr.bf16.mxu0 %v8608_v58  ;;  %v3996_v62 = vld [vmem:[%s12693_s1 + $0x50] sm:$0xff]  ;;  %v8114_v2 = vpack.c.bf16 %v6791_v60, %v6791_v60  ;;  %v6794_v3 = vld [vmem:[%s12692_s0 + $0x868] sm:$0xff]  ;;  %v6793_v4 = vld [vmem:[%s12692_s0 + $0x860] sm:$0xff] }
  0x10   :  { %111 = vrot.lane.b32.xlu1 %v8103_v14, %s8980_s20  ;;  %109 = vrot.lane.b32.xlu0 %v8102_v15, %s8980_s20  ;;  %v8610_v0 = vld [vmem:[%s12693_s1 + $0x54] ss:$8 sps:$4 sm:$0xff]   ;;  %v7839_v5 = vcombine.low %v3996_v62, %v3997_v63  ;;  %v3994_v6 = vld [vmem:[%s12693_s1 + $0x40] sm:$0xff]  ;;  %v8117_v9 = vpack.c.bf16 %v6794_v3, %v6794_v3  ;;  %v8116_v10 = vpack.c.bf16 %v6793_v4, %v6793_v4 }
  0x11   :  { %v3995_v7 = vld [vmem:[%s12693_s1 + $0x48] sm:$0xff]  ;;  %v6805_v12 = vld [vmem:[%s12692_s0 + $0x80] sm:$0xff]  ;;  %v6796_v13 = vld [vmem:[%s12692_s0 + $0x878] sm:$0xff] }
  0x12   :  { %5845 = vmatpush1.bf16.msra.mxu0 %v7841_v61  ;;  %v8612_v8 = vld [vmem:[%s12693_s1 + $0x44] ss:$8 sps:$4 sm:$0xff]   ;;  %v6795_v14 = vld [vmem:[%s12692_s0 + $0x870] sm:$0xff]  ;;  %v8120_v16 = vpack.c.bf16 %v6805_v12, %v6805_v12  ;;  %v7837_v17 = vcombine.low %v3994_v6, %v3995_v7  ;;  %v3993_v20 = vld [vmem:[%s12693_s1 + $0x38] sm:$0xff]  ;;  %v8119_v24 = vpack.c.bf16 %v6796_v13, %v6796_v13 }
  0x13   :  { %5846 = vmatprep.subr.bf16.mxu0 %v8610_v0  ;;  %v6806_v11 = vld [vmem:[%s12692_s0 + $0x88] sm:$0xff]  ;;  %v8614_v21 = vld [vmem:[%s12693_s1 + $0x34] ss:$8 sps:$4 sm:$0xff]   ;;  %v8118_v25 = vpack.c.bf16 %v6795_v14, %v6795_v14  ;;  %v6821_v27 = vld [vmem:[%s12692_s0 + $0xa0] sm:$0xff] }
  0x14   :  { %165 = vrot.lane.b32.xlu1 %v8105_v18, %s8981_s10  ;;  %163 = vrot.lane.b32.xlu0 %v8104_v19, %s8981_s10  ;;  %v8121_v15 = vpack.c.bf16 %v6806_v11, %v6806_v11  ;;  %v3992_v18 = vld [vmem:[%s12693_s1 + $0x30] sm:$0xff]  ;;  %v6808_v19 = vld [vmem:[%s12692_s0 + $0x98] sm:$0xff]  ;;  %303 = vst.msk [vmem:[#allocation2 + $0x4] sm:$0xf] %vm55_vm0, %v8120_v16  ;;  %v8128_v40 = vpack.c.bf16 %v6821_v27, %v6821_v27 }
  0x15   :  { %v6822_v26 = vld [vmem:[%s12692_s0 + $0xa8] sm:$0xff]  ;;  %v3990_v29 = vld [vmem:[%s12693_s1 + $0x20] sm:$0xff]  ;;  %v7835_v32 = vcombine.low %v3992_v18, %v3993_v20  ;;  %v6812_v38 = vld [vmem:[%s12692_s0 + $0x898] sm:$0xff] }
  0x16   :  { %5847 = vmatpush1.bf16.msra.mxu0 %v7839_v5  ;;  %304 = vst.msk [vmem:[#allocation2 + $0x44] sm:$0xf] %vm55_vm0, %v8121_v15  ;;  %v6810_v30 = vld [vmem:[%s12692_s0 + $0x888] sm:$0xff]  ;;  %v6809_v31 = vld [vmem:[%s12692_s0 + $0x880] sm:$0xff]  ;;  %v8129_v37 = vpack.c.bf16 %v6822_v26, %v6822_v26  ;;  %v6811_v39 = vld [vmem:[%s12692_s0 + $0x890] sm:$0xff]  ;;  %v8127_v43 = vpack.c.bf16 %v6812_v38, %v6812_v38 }
  0x17   :  { %5848 = vmatprep.subr.bf16.mxu0 %v8612_v8  ;;  %v8616_v34 = vld [vmem:[%s12693_s1 + $0x24] ss:$8 sps:$4 sm:$0xff]   ;;  %v8125_v35 = vpack.c.bf16 %v6810_v30, %v6810_v30  ;;  %v8124_v36 = vpack.c.bf16 %v6809_v31, %v6809_v31  ;;  %v6824_v41 = vld [vmem:[%s12692_s0 + $0xb8] sm:$0xff]  ;;  %v6823_v42 = vld [vmem:[%s12692_s0 + $0xb0] sm:$0xff]  ;;  %v8126_v44 = vpack.c.bf16 %v6811_v39, %v6811_v39 }
  0x18   :  { %169 = vrot.lane.b32.xlu1 %v8107_v22, %s8981_s10  ;;  %167 = vrot.lane.b32.xlu0 %v8106_v23, %s8981_s10  ;;  %v8123_v22 = vpack.c.bf16 %v6808_v19, %v6808_v19  ;;  %v6807_v23 = vld [vmem:[%s12692_s0 + $0x90] sm:$0xff]  ;;  %310 = vst.msk [vmem:[#allocation2 + $0x1c4] sm:$0xf] %vm55_vm0, %v8127_v43  ;;  %v8131_v49 = vpack.c.bf16 %v6824_v41, %v6824_v41  ;;  %v6826_v51 = vld [vmem:[%s12692_s0 + $0x8a8] sm:$0xff] }
  0x19   :  { %308 = vst.msk [vmem:[#allocation2 + $0x144] sm:$0xf] %vm55_vm0, %v8125_v35  ;;  %307 = vst.msk [vmem:[#allocation2 + $0x104] sm:$0xf] %vm55_vm0, %v8124_v36  ;;  %v3988_v45 = vld [vmem:[%s12693_s1 + $0x10] sm:$0xff]  ;;  %v8130_v50 = vpack.c.bf16 %v6823_v42, %v6823_v42  ;;  %v6825_v52 = vld [vmem:[%s12692_s0 + $0x8a0] sm:$0xff]  ;;  %v8133_v57 = vpack.c.bf16 %v6826_v51, %v6826_v51 }
  0x1a   :  { %306 = vst.msk [vmem:[#allocation2 + $0xc4] sm:$0xf] %vm55_vm0, %v8123_v22  ;;  %5849 = vmatpush1.bf16.msra.mxu0 %v7837_v17  ;;  %309 = vst.msk [vmem:[#allocation2 + $0x184] sm:$0xf] %vm55_vm0, %v8126_v44  ;;  %v3986_v53 = vld [vmem:[%s12693_s1] sm:$0xff]  ;;  %v3987_v54 = vld [vmem:[%s12693_s1 + $0x8] sm:$0xff]  ;;  %v8132_v58 = vpack.c.bf16 %v6825_v52, %v6825_v52 }
  0x1b   :  { %5850 = vmatprep.subr.bf16.mxu0 %v8614_v21  ;;  %v6828_v59 = vld [vmem:[%s12692_s0 + $0x8b8] sm:$0xff]  ;;  %v6827_v60 = vld [vmem:[%s12692_s0 + $0x8b0] sm:$0xff]  ;;  %v7829_v0 = vcombine.low %v3986_v53, %v3987_v54  ;;  %v6838_v3 = vld [vmem:[%s12692_s0 + $0xc8] sm:$0xff] }
  0x1c   :  { %173 = vrot.lane.b32.xlu1 %v8109_v28, %s8981_s10  ;;  %171 = vrot.lane.b32.xlu0 %v8108_v33, %s8981_s10  ;;  %v8122_v28 = vpack.c.bf16 %v6807_v23, %v6807_v23  ;;  %v3991_v33 = vld [vmem:[%s12693_s1 + $0x28] sm:$0xff]  ;;  %v4016_v61 = vld [vmem:[%s12693_s1 + $0xf0] sm:$0xff] }
  0x1d   :  { %v7833_v48 = vcombine.low %v3990_v29, %v3991_v33  ;;  %v4017_v62 = vld [vmem:[%s12693_s1 + $0xf8] sm:$0xff]  ;;  %v6837_v4 = vld [vmem:[%s12692_s0 + $0xc0] sm:$0xff]  ;;  %v4015_v6 = vld [vmem:[%s12693_s1 + $0xe8] sm:$0xff] }
  0x1e   :  { %305 = vst.msk [vmem:[#allocation2 + $0x84] sm:$0xf] %vm55_vm0, %v8122_v28  ;;  %5851 = vmatpush1.bf16.msra.mxu0 %v7835_v32  ;;  %v8622_v63 = vld [vmem:[%s12693_s1 + $0xf4] ss:$8 sps:$4 sm:$0xff]   ;;  %v4014_v5 = vld [vmem:[%s12693_s1 + $0xe0] sm:$0xff]  ;;  %v7859_v8 = vcombine.low %v4016_v61, %v4017_v62  ;;  %v6842_v19 = vld [vmem:[%s12692_s0 + $0x8c8] sm:$0xff] }
  0x1f   :  { %5852 = vmatprep.subr.bf16.mxu0 %v8616_v34  ;;  %v8624_v7 = vld [vmem:[%s12693_s1 + $0xe4] ss:$8 sps:$4 sm:$0xff]   ;;  %v6840_v11 = vld [vmem:[%s12692_s0 + $0xd8] sm:$0xff]  ;;  %v6839_v12 = vld [vmem:[%s12692_s0 + $0xd0] sm:$0xff]  ;;  %v7857_v16 = vcombine.low %v4014_v5, %v4015_v6 }
  0x20   :  { %177 = vrot.lane.b32.xlu1 %v8111_v46, %s8981_s10  ;;  %175 = vrot.lane.b32.xlu0 %v8110_v47, %s8981_s10  ;;  %v3989_v46 = vld [vmem:[%s12693_s1 + $0x18] sm:$0xff]  ;;  %v4012_v13 = vld [vmem:[%s12693_s1 + $0xd0] sm:$0xff]  ;;  %v8139_v17 = vpack.c.bf16 %v6840_v11, %v6840_v11  ;;  %v8138_v18 = vpack.c.bf16 %v6839_v12, %v6839_v12 }
  0x21   :  { %v8618_v47 = vld [vmem:[%s12693_s1 + $0x14] ss:$8 sps:$4 sm:$0xff]   ;;  %v6841_v20 = vld [vmem:[%s12692_s0 + $0x8c0] sm:$0xff]  ;;  %v4011_v22 = vld [vmem:[%s12693_s1 + $0xc8] sm:$0xff] }
  0x22   :  { %5853 = vmatpush1.bf16.msra.mxu0 %v7833_v48  ;;  %v4013_v14 = vld [vmem:[%s12693_s1 + $0xd8] sm:$0xff]  ;;  %v4010_v21 = vld [vmem:[%s12693_s1 + $0xc0] sm:$0xff]  ;;  %v8140_v26 = vpack.c.bf16 %v6841_v20, %v6841_v20  ;;  %v6843_v28 = vld [vmem:[%s12692_s0 + $0x8d0] sm:$0xff] }
  0x23   :  { %5854 = vmatprep.subr.bf16.mxu0 %v8618_v47  ;;  %v8626_v15 = vld [vmem:[%s12693_s1 + $0xd4] ss:$8 sps:$4 sm:$0xff]   ;;  %v8628_v23 = vld [vmem:[%s12693_s1 + $0xc4] ss:$8 sps:$4 sm:$0xff]   ;;  %v7853_v32 = vcombine.low %v4010_v21, %v4011_v22  ;;  %v8142_v34 = vpack.c.bf16 %v6843_v28, %v6843_v28 }
  0x24   :  { %231 = vrot.lane.b32.xlu1 %v8113_v55, %s8982_s11  ;;  %229 = vrot.lane.b32.xlu0 %v8112_v56, %s8982_s11  ;;  %v8620_v55 = vld [vmem:[%s12693_s1 + $0x4] ss:$8 sps:$4 sm:$0xff]   ;;  %v7831_v56 = vcombine.low %v3988_v45, %v3989_v46  ;;  %v6844_v27 = vld [vmem:[%s12692_s0 + $0x8d8] sm:$0xff] }
  0x25   :  { %v4008_v29 = vld [vmem:[%s12693_s1 + $0xb0] sm:$0xff]  ;;  %v4009_v30 = vld [vmem:[%s12693_s1 + $0xb8] sm:$0xff]  ;;  %v8143_v33 = vpack.c.bf16 %v6844_v27, %v6844_v27  ;;  %v6854_v35 = vld [vmem:[%s12692_s0 + $0xe8] sm:$0xff] }
  0x26   :  { %5855 = vmatpush1.bf16.msra.mxu0 %v7831_v56  ;;  %v8630_v31 = vld [vmem:[%s12693_s1 + $0xb4] ss:$8 sps:$4 sm:$0xff]   ;;  %v6853_v36 = vld [vmem:[%s12692_s0 + $0xe0] sm:$0xff]  ;;  %v4007_v38 = vld [vmem:[%s12693_s1 + $0xa8] sm:$0xff]  ;;  %v7851_v41 = vcombine.low %v4008_v29, %v4009_v30  ;;  %v8145_v43 = vpack.c.bf16 %v6854_v35, %v6854_v35 }
  0x27   :  { %5856 = vmatprep.subr.bf16.mxu0 %v8620_v55  ;;  %v8632_v39 = vld [vmem:[%s12693_s1 + $0xa4] ss:$8 sps:$4 sm:$0xff]   ;;  %v6855_v42 = vld [vmem:[%s12692_s0 + $0xf0] sm:$0xff]  ;;  %v8144_v44 = vpack.c.bf16 %v6853_v36, %v6853_v36  ;;  %v4005_v46 = vld [vmem:[%s12693_s1 + $0x98] sm:$0xff] }
  0x28   :  { %235 = vrot.lane.b32.xlu1 %v8115_v1, %s8982_s11  ;;  %233 = vrot.lane.b32.xlu0 %v8114_v2, %s8982_s11  ;;  %v8135_v1 = vpack.c.bf16 %v6828_v59, %v6828_v59  ;;  %v8134_v2 = vpack.c.bf16 %v6827_v60, %v6827_v60  ;;  %v4004_v45 = vld [vmem:[%s12693_s1 + $0x90] sm:$0xff]  ;;  %v6858_v48 = vld [vmem:[%s12692_s0 + $0x8e8] sm:$0xff]  ;;  %v8146_v54 = vpack.c.bf16 %v6855_v42, %v6855_v42 }
  0x29   :  { %v8634_v47 = vld [vmem:[%s12693_s1 + $0x94] ss:$8 sps:$4 sm:$0xff]   ;;  %v6857_v51 = vld [vmem:[%s12692_s0 + $0x8e0] sm:$0xff]  ;;  %v6870_v52 = vld [vmem:[%s12692_s0 + $0x108] sm:$0xff]  ;;  %v7847_v61 = vcombine.low %v4004_v45, %v4005_v46  ;;  %v8149_v62 = vpack.c.bf16 %v6858_v48, %v6858_v48 }
  0x2a   :  { %5857 = vmatpush1.bf16.msra.mxu0 %v7829_v0  ;;  %v6869_v53 = vld [vmem:[%s12692_s0 + $0x100] sm:$0xff]  ;;  %v8153_v55 = vpack.c.bf16 %v6870_v52, %v6870_v52  ;;  %v6860_v60 = vld [vmem:[%s12692_s0 + $0x8f8] sm:$0xff]  ;;  %v6871_v0 = vld [vmem:[%s12692_s0 + $0x110] sm:$0xff] }
  0x2b   :  { %5858 = vmatprep.subr.bf16.mxu0 %v8622_v63  ;;  %v8152_v56 = vpack.c.bf16 %v6869_v53, %v6869_v53  ;;  %v8636_v59 = vld [vmem:[%s12693_s1 + $0x84] ss:$8 sps:$4 sm:$0xff]   ;;  %v6872_v63 = vld [vmem:[%s12692_s0 + $0x118] sm:$0xff]  ;;  %v6887_v21 = vld [vmem:[%s12692_s0 + $0x130] sm:$0xff] }
  0x2c   :  { %239 = vrot.lane.b32.xlu1 %v8117_v9, %s8982_s11  ;;  %237 = vrot.lane.b32.xlu0 %v8116_v10, %s8982_s11  ;;  %v8137_v9 = vpack.c.bf16 %v6838_v3, %v6838_v3  ;;  %v8136_v10 = vpack.c.bf16 %v6837_v4, %v6837_v4  ;;  %548 = vst.msk [vmem:[#allocation2 + $0x48] sm:$0xf] %vm55_vm0, %v8153_v55  ;;  %v6859_v4 = vld [vmem:[%s12692_s0 + $0x8f0] sm:$0xff]  ;;  %v6886_v5 = vld [vmem:[%s12692_s0 + $0x128] sm:$0xff] }
  0x2d   :  { %547 = vst.msk [vmem:[#allocation2 + $0x8] sm:$0xf] %vm55_vm0, %v8152_v56  ;;  %v8154_v3 = vpack.c.bf16 %v6871_v0, %v6871_v0  ;;  %v6888_v20 = vld [vmem:[%s12692_s0 + $0x138] sm:$0xff]  ;;  %v6891_v29 = vld [vmem:[%s12692_s0 + $0x930] sm:$0xff]  ;;  %v4031_v45 = vld [vmem:[%s12693_s1 + $0x168] sm:$0xff] }
  0x2e   :  { %5859 = vmatpush2.bf16.msra.mxu0 %v7859_v8  ;;  %v6874_v8 = vld [vmem:[%s12692_s0 + $0x908] sm:$0xff]  ;;  %v8163_v22 = vpack.c.bf16 %v6888_v20, %v6888_v20  ;;  %v6892_v28 = vld [vmem:[%s12692_s0 + $0x938] sm:$0xff]  ;;  %v4032_v36 = vld [vmem:[%s12693_s1 + $0x170] sm:$0xff] }
  0x2f   :  { %5860 = vmatprep.subr.bf16.mxu0 %v8624_v7  ;;  %549 = vst.msk [vmem:[#allocation2 + $0x88] sm:$0xf] %vm55_vm0, %v8154_v3  ;;  %v8151_v7 = vpack.c.bf16 %v6860_v60, %v6860_v60  ;;  %v8157_v11 = vpack.c.bf16 %v6874_v8, %v6874_v8  ;;  %v8167_v30 = vpack.c.bf16 %v6892_v28, %v6892_v28  ;;  %v6906_v46 = vld [vmem:[%s12692_s0 + $0x948] sm:$0xff]  ;;  %v4029_v55 = vld [vmem:[%s12693_s1 + $0x158] sm:$0xff]  ;;  %v4026_v0 = vld [vmem:[%s12693_s1 + $0x140] sm:$0xff] }
  0x30   :  { %243 = vrot.lane.b32.xlu1 %v8119_v24, %s8982_s11  ;;  %241 = vrot.lane.b32.xlu0 %v8118_v25, %s8982_s11  ;;  %v7855_v24 = vcombine.low %v4012_v13, %v4013_v14  ;;  %v8141_v25 = vpack.c.bf16 %v6842_v19, %v6842_v19  ;;  %v6885_v13 = vld [vmem:[%s12692_s0 + $0x120] sm:$0xff]  ;;  %v8161_v14 = vpack.c.bf16 %v6886_v5, %v6886_v5  ;;  %v6908_v56 = vld [vmem:[%s12692_s0 + $0x958] sm:$0xff] }
  0x31   :  { %552 = vst.msk [vmem:[#allocation2 + $0x148] sm:$0xf] %vm55_vm0, %v8157_v11  ;;  %v8640_v48 = vld [vmem:[%s12693_s1 + $0x164] ss:$8 sps:$4 sm:$0xff]   ;;  %v8173_v52 = vpack.c.bf16 %v6906_v46, %v6906_v46  ;;  %v6920_v8 = vld [vmem:[%s12692_s0 + $0x178] sm:$0xff]  ;;  %v4024_v11 = vld [vmem:[%s12693_s1 + $0x130] sm:$0xff] }
  0x32   :  { %5861 = vmatpush2.bf16.msra.mxu0 %v7857_v16  ;;  %v6875_v16 = vld [vmem:[%s12692_s0 + $0x910] sm:$0xff]  ;;  %v6917_v3 = vld [vmem:[%s12692_s0 + $0x160] sm:$0xff]  ;;  %v6934_v20 = vld [vmem:[%s12692_s0 + $0x188] sm:$0xff] }
  0x33   :  { %5862 = vmatprep.subr.bf16.mxu0 %v8626_v15  ;;  %v6876_v15 = vld [vmem:[%s12692_s0 + $0x918] sm:$0xff]  ;;  %v8158_v19 = vpack.c.bf16 %v6875_v16, %v6875_v16  ;;  %v8648_v28 = vld [vmem:[%s12693_s1 + $0x124] ss:$8 sps:$4 sm:$0xff]  }
  0x34   :  { %346 = vrot.lane.b32.xlu1 %v8129_v37, %s8980_s20  ;;  %344 = vrot.lane.b32.xlu0 %v8128_v40, %s8980_s20  ;;  %v4006_v37 = vld [vmem:[%s12693_s1 + $0xa0] sm:$0xff]  ;;  %v6856_v40 = vld [vmem:[%s12692_s0 + $0xf8] sm:$0xff] }
  0x35   :  { %553 = vst.msk [vmem:[#allocation2 + $0x188] sm:$0xf] %vm55_vm0, %v8158_v19  ;;  %v8179_v19 = vpack.c.bf16 %v6920_v8, %v6920_v8  ;;  %v6950_v46 = vld [vmem:[%s12692_s0 + $0x1a8] sm:$0xff] }
  0x36   :  { %5863 = vmatpush2.bf16.msra.mxu0 %v7855_v24  ;;  %v6890_v24 = vld [vmem:[%s12692_s0 + $0x928] sm:$0xff] }
  0x37   :  { %5864 = vmatprep.subr.bf16.mxu0 %v8628_v23  ;;  %v8162_v23 = vpack.c.bf16 %v6887_v21, %v6887_v21  ;;  %v6933_v21 = vld [vmem:[%s12692_s0 + $0x180] sm:$0xff] }
  0x38   :  { %350 = vrot.lane.b32.xlu1 %v8131_v49, %s8980_s20  ;;  %348 = vrot.lane.b32.xlu0 %v8130_v50, %s8980_s20  ;;  %v7849_v49 = vcombine.low %v4006_v37, %v4007_v38  ;;  %v8147_v50 = vpack.c.bf16 %v6856_v40, %v6856_v40  ;;  %v4033_v37 = vld [vmem:[%s12693_s1 + $0x178] sm:$0xff] }
  0x39   :  { %v6904_v38 = vld [vmem:[%s12692_s0 + $0x158] sm:$0xff] }
  0x3a   :  { %5865 = vmatpush2.bf16.msra.mxu0 %v7853_v32  ;;  %v6902_v32 = vld [vmem:[%s12692_s0 + $0x148] sm:$0xff]  ;;  %v8638_v40 = vld [vmem:[%s12693_s1 + $0x174] ss:$8 sps:$4 sm:$0xff]   ;;  %v8171_v42 = vpack.c.bf16 %v6904_v38, %v6904_v38 }
  0x3b   :  { %5866 = vmatprep.subr.bf16.mxu0 %v8630_v31  ;;  %v8166_v31 = vpack.c.bf16 %v6891_v29, %v6891_v29  ;;  %5915 = vmatprep.subr.bf16.mxu1 %v8638_v40  ;;  %v4021_v38 = vld [vmem:[%s12693_s1 + $0x118] sm:$0xff] }
  0x3c   :  { %354 = vrot.lane.b32.xlu1 %v8133_v57, %s8980_s20  ;;  %352 = vrot.lane.b32.xlu0 %v8132_v58, %s8980_s20  ;;  %v4002_v57 = vld [vmem:[%s12693_s1 + $0x80] sm:$0xff]  ;;  %v4003_v58 = vld [vmem:[%s12693_s1 + $0x88] sm:$0xff] }
  0x3d   :  { %v7845_v6 = vcombine.low %v4002_v57, %v4003_v58  ;;  %v6907_v57 = vld [vmem:[%s12692_s0 + $0x950] sm:$0xff] }
  0x3e   :  { %5867 = vmatpush2.bf16.msra.mxu0 %v7851_v41  ;;  %v7875_v41 = vcombine.low %v4032_v36, %v4033_v37  ;;  %v8642_v58 = vld [vmem:[%s12693_s1 + $0x154] ss:$8 sps:$4 sm:$0xff]  }
  0x3f   :  { %5868 = vmatprep.subr.bf16.mxu0 %v8632_v39  ;;  %v6903_v39 = vld [vmem:[%s12692_s0 + $0x150] sm:$0xff] }
  0x40   :  { %358 = vrot.lane.b32.xlu1 %v8135_v1, %s8980_s20  ;;  %356 = vrot.lane.b32.xlu0 %v8134_v2, %s8980_s20  ;;  %v8148_v1 = vpack.c.bf16 %v6857_v51, %v6857_v51  ;;  %v8155_v2 = vpack.c.bf16 %v6872_v63, %v6872_v63  ;;  %v8174_v63 = vpack.c.bf16 %v6907_v57, %v6907_v57  ;;  %v4020_v37 = vld [vmem:[%s12693_s1 + $0x110] sm:$0xff] }
  0x41   :  { %5916 = vmatpush1.bf16.msra.mxu1 %v7875_v41  ;;  %v6923_v41 = vld [vmem:[%s12692_s0 + $0x970] sm:$0xff] }
  0x42   :  { %5869 = vmatpush2.bf16.msra.mxu0 %v7849_v49  ;;  %550 = vst.msk [vmem:[#allocation2 + $0xc8] sm:$0xf] %vm55_vm0, %v8155_v2  ;;  %5917 = vmatprep.subr.bf16.mxu1 %v8640_v48  ;;  %v6918_v2 = vld [vmem:[%s12692_s0 + $0x168] sm:$0xff] }
  0x43   :  { %5870 = vmatprep.subr.bf16.mxu0 %v8634_v47  ;;  %v6905_v47 = vld [vmem:[%s12692_s0 + $0x940] sm:$0xff]  ;;  %v6938_v48 = vld [vmem:[%s12692_s0 + $0x988] sm:$0xff] }
  0x44   :  { %411 = vrot.lane.b32.xlu1 %v8137_v9, %s8981_s10  ;;  %409 = vrot.lane.b32.xlu0 %v8136_v10, %s8981_s10  ;;  %v6873_v9 = vld [vmem:[%s12692_s0 + $0x900] sm:$0xff]  ;;  %v8150_v10 = vpack.c.bf16 %v6859_v4, %v6859_v4  ;;  %v8172_v53 = vpack.c.bf16 %v6905_v47, %v6905_v47 }
  0x45   :  { %v8156_v12 = vpack.c.bf16 %v6873_v9, %v6873_v9  ;;  %v8644_v4 = vld [vmem:[%s12693_s1 + $0x144] ss:$8 sps:$4 sm:$0xff]   ;;  %v8177_v9 = vpack.c.bf16 %v6918_v2, %v6918_v2 }
  0x46   :  { %5871 = vmatpush2.bf16.msra.mxu0 %v7847_v61 }
  0x47   :  { %5872 = vmatprep.subr.bf16.mxu0 %v8636_v59  ;;  %551 = vst.msk [vmem:[#allocation2 + $0x108] sm:$0xf] %vm55_vm0, %v8156_v12  ;;  %v4025_v12 = vld [vmem:[%s12693_s1 + $0x138] sm:$0xff] }
  0x48   :  { %415 = vrot.lane.b32.xlu1 %v8139_v17, %s8981_s10  ;;  %413 = vrot.lane.b32.xlu0 %v8138_v18, %s8981_s10  ;;  %v8160_v17 = vpack.c.bf16 %v6885_v13, %v6885_v13  ;;  %v8159_v18 = vpack.c.bf16 %v6876_v15, %v6876_v15  ;;  %v6919_v13 = vld [vmem:[%s12692_s0 + $0x170] sm:$0xff]  ;;  %v7867_v15 = vcombine.low %v4024_v11, %v4025_v12  ;;  %v4046_v12 = vld [vmem:[%s12693_s1 + $0x1e0] sm:$0xff] }
  0x4a   :  { %5873 = vmatpush2.bf16.msra.mxu0 %v7845_v6  ;;  %554 = vst.msk [vmem:[#allocation2 + $0x1c8] sm:$0xf] %vm55_vm0, %v8159_v18  ;;  %v6922_v18 = vld [vmem:[%s12692_s0 + $0x968] sm:$0xff] }
  0x4c   :  { %419 = vrot.lane.b32.xlu1 %v8141_v25, %s8981_s10  ;;  %417 = vrot.lane.b32.xlu0 %v8140_v26, %s8981_s10  ;;  %v6889_v25 = vld [vmem:[%s12692_s0 + $0x920] sm:$0xff]  ;;  %v8165_v26 = vpack.c.bf16 %v6890_v24, %v6890_v24  ;;  %v4023_v24 = vld [vmem:[%s12693_s1 + $0x128] sm:$0xff] }
  0x4d   :  { %v8164_v27 = vpack.c.bf16 %v6889_v25, %v6889_v25  ;;  %v8185_v25 = vpack.c.bf16 %v6934_v20, %v6934_v20 }
  0x4f   :  { %792 = vst.msk [vmem:[#allocation2 + $0x4c] sm:$0xf] %vm55_vm0, %v8185_v25  ;;  %v6955_v25 = vld [vmem:[%s12692_s0 + $0x9b0] sm:$0xff] }
  0x50   :  { %423 = vrot.lane.b32.xlu1 %v8143_v33, %s8981_s10  ;;  %421 = vrot.lane.b32.xlu0 %v8142_v34, %s8981_s10  ;;  %v6901_v33 = vld [vmem:[%s12692_s0 + $0x140] sm:$0xff]  ;;  %v8169_v34 = vpack.c.bf16 %v6902_v32, %v6902_v32  ;;  %v6924_v32 = vld [vmem:[%s12692_s0 + $0x978] sm:$0xff] }
  0x51   :  { %v8168_v35 = vpack.c.bf16 %v6901_v33, %v6901_v33  ;;  %v8181_v33 = vpack.c.bf16 %v6922_v18, %v6922_v18  ;;  %v8183_v47 = vpack.c.bf16 %v6924_v32, %v6924_v32  ;;  %v4042_v32 = vld [vmem:[%s12693_s1 + $0x1c0] sm:$0xff] }
  0x54   :  { %476 = vrot.lane.b32.xlu1 %v8145_v43, %s8982_s11  ;;  %474 = vrot.lane.b32.xlu0 %v8144_v44, %s8982_s11  ;;  %v8170_v43 = vpack.c.bf16 %v6903_v39, %v6903_v39  ;;  %v4030_v44 = vld [vmem:[%s12693_s1 + $0x160] sm:$0xff] }
  0x55   :  { %v7873_v49 = vcombine.low %v4030_v44, %v4031_v45 }
  0x57   :  { %5918 = vmatpush1.bf16.msra.mxu1 %v7873_v49  ;;  %v6937_v49 = vld [vmem:[%s12692_s0 + $0x980] sm:$0xff] }
  0x58   :  { %480 = vrot.lane.b32.xlu1 %v8147_v50, %s8982_s11  ;;  %478 = vrot.lane.b32.xlu0 %v8146_v54, %s8982_s11  ;;  %v4028_v54 = vld [vmem:[%s12693_s1 + $0x150] sm:$0xff] }
  0x59   :  { %v7871_v59 = vcombine.low %v4028_v54, %v4029_v55  ;;  %5919 = vmatprep.subr.bf16.mxu1 %v8642_v58  ;;  %v8188_v54 = vpack.c.bf16 %v6937_v49, %v6937_v49  ;;  %v6949_v55 = vld [vmem:[%s12692_s0 + $0x1a0] sm:$0xff] }
  0x5b   :  { %5920 = vmatpush1.bf16.msra.mxu1 %v7871_v59  ;;  %795 = vst.msk [vmem:[#allocation2 + $0x10c] sm:$0xf] %vm55_vm0, %v8188_v54  ;;  %v6970_v54 = vld [vmem:[%s12692_s0 + $0x9c8] sm:$0xff] }
  0x5c   :  { %484 = vrot.lane.b32.xlu1 %v8149_v62, %s8982_s11  ;;  %482 = vrot.lane.b32.xlu0 %v8148_v1, %s8982_s11  ;;  %v8175_v62 = vpack.c.bf16 %v6908_v56, %v6908_v56  ;;  %v4027_v1 = vld [vmem:[%s12693_s1 + $0x148] sm:$0xff] }
  0x5d   :  { %v7869_v5 = vcombine.low %v4026_v0, %v4027_v1  ;;  %5921 = vmatprep.subr.bf16.mxu1 %v8644_v4  ;;  %v8652_v56 = vld [vmem:[%s12693_s1 + $0x104] ss:$8 sps:$4 sm:$0xff]   ;;  %v4048_v0 = vld [vmem:[%s12693_s1 + $0x1f0] sm:$0xff]  ;;  %v4049_v1 = vld [vmem:[%s12693_s1 + $0x1f8] sm:$0xff] }
  0x5e   :  { %v6952_v4 = vld [vmem:[%s12692_s0 + $0x1b8] sm:$0xff] }
  0x5f   :  { %5922 = vmatpush1.bf16.msra.mxu1 %v7869_v5  ;;  %v6951_v5 = vld [vmem:[%s12692_s0 + $0x1b0] sm:$0xff] }
  0x60   :  { %488 = vrot.lane.b32.xlu1 %v8151_v7, %s8982_s11  ;;  %486 = vrot.lane.b32.xlu0 %v8150_v10, %s8982_s11  ;;  %v8176_v10 = vpack.c.bf16 %v6917_v3, %v6917_v3  ;;  %v8194_v11 = vpack.c.bf16 %v6951_v5, %v6951_v5 }
  0x64   :  { %590 = vrot.lane.b32.xlu1 %v8161_v14, %s8980_s20  ;;  %588 = vrot.lane.b32.xlu0 %v8160_v17, %s8980_s20  ;;  %v8646_v14 = vld [vmem:[%s12693_s1 + $0x134] ss:$8 sps:$4 sm:$0xff]  }
  0x65   :  { %5923 = vmatprep.subr.bf16.mxu1 %v8646_v14  ;;  %v6954_v14 = vld [vmem:[%s12692_s0 + $0x9a8] sm:$0xff] }
  0x66   :  { %5924 = vmatpush1.bf16.msra.mxu1 %v7867_v15  ;;  %v6953_v15 = vld [vmem:[%s12692_s0 + $0x9a0] sm:$0xff]  ;;  %v8197_v20 = vpack.c.bf16 %v6954_v14, %v6954_v14 }
  0x67   :  { %5925 = vmatprep.subr.bf16.mxu1 %v8648_v28 }
  0x68   :  { %594 = vrot.lane.b32.xlu1 %v8163_v22, %s8980_s20  ;;  %592 = vrot.lane.b32.xlu0 %v8162_v23, %s8980_s20  ;;  %v8178_v22 = vpack.c.bf16 %v6919_v13, %v6919_v13  ;;  %v4022_v23 = vld [vmem:[%s12693_s1 + $0x120] sm:$0xff]  ;;  %v4047_v13 = vld [vmem:[%s12693_s1 + $0x1e8] sm:$0xff] }
  0x69   :  { %v7865_v29 = vcombine.low %v4022_v23, %v4023_v24  ;;  %v4045_v23 = vld [vmem:[%s12693_s1 + $0x1d8] sm:$0xff] }
  0x6a   :  { %v6956_v24 = vld [vmem:[%s12692_s0 + $0x9b8] sm:$0xff] }
  0x6b   :  { %5926 = vmatpush1.bf16.msra.mxu1 %v7865_v29 }
  0x6c   :  { %598 = vrot.lane.b32.xlu1 %v8165_v26, %s8980_s20  ;;  %596 = vrot.lane.b32.xlu0 %v8164_v27, %s8980_s20  ;;  %v8184_v26 = vpack.c.bf16 %v6933_v21, %v6933_v21  ;;  %v6921_v27 = vld [vmem:[%s12692_s0 + $0x960] sm:$0xff]  ;;  %v8196_v21 = vpack.c.bf16 %v6953_v15, %v6953_v15 }
  0x6d   :  { %v8180_v36 = vpack.c.bf16 %v6921_v27, %v6921_v27 }
  0x6e   :  { %791 = vst.msk [vmem:[#allocation2 + $0xc] sm:$0xf] %vm55_vm0, %v8184_v26  ;;  %v8658_v26 = vld [vmem:[%s12693_s1 + $0x1d4] ss:$8 sps:$4 sm:$0xff]  }
  0x70   :  { %602 = vrot.lane.b32.xlu1 %v8167_v30, %s8980_s20  ;;  %600 = vrot.lane.b32.xlu0 %v8166_v31, %s8980_s20 }
  0x74   :  { %655 = vrot.lane.b32.xlu1 %v8169_v34, %s8981_s10  ;;  %653 = vrot.lane.b32.xlu0 %v8168_v35, %s8981_s10  ;;  %v6936_v34 = vld [vmem:[%s12692_s0 + $0x198] sm:$0xff]  ;;  %v6935_v35 = vld [vmem:[%s12692_s0 + $0x190] sm:$0xff] }
  0x75   :  { %v8187_v39 = vpack.c.bf16 %v6936_v34, %v6936_v34  ;;  %v8186_v40 = vpack.c.bf16 %v6935_v35, %v6935_v35  ;;  %v6966_v34 = vld [vmem:[%s12692_s0 + $0x1c8] sm:$0xff]  ;;  %v6965_v35 = vld [vmem:[%s12692_s0 + $0x1c0] sm:$0xff] }
  0x76   :  { %v102_v50 = vpop.permute.xlu1 %101  ;;  %v98_v51 = vpop.permute.xlu0 %97 }
  0x77   :  { %124 = vst.msk [vmem:[#allocation2 + $0x80] sm:$0xf] %vm121_vm1, %v102_v50  ;;  %122 = vst.msk [vmem:[#allocation2] sm:$0xf] %vm121_vm1, %v98_v51  ;;  %v8182_v50 = vpack.c.bf16 %v6923_v41, %v6923_v41  ;;  %v4018_v51 = vld [vmem:[%s12693_s1 + $0x100] sm:$0xff]  ;;  %v8200_v41 = vpack.c.bf16 %v6965_v35, %v6965_v35 }
  0x78   :  { %659 = vrot.lane.b32.xlu1 %v8171_v42, %s8981_s10  ;;  %657 = vrot.lane.b32.xlu0 %v8170_v43, %s8981_s10  ;;  %v8650_v42 = vld [vmem:[%s12693_s1 + $0x114] ss:$8 sps:$4 sm:$0xff]   ;;  %v7863_v43 = vcombine.low %v4020_v37, %v4021_v38  ;;  %794 = vst.msk [vmem:[#allocation2 + $0xcc] sm:$0xf] %vm55_vm0, %v8187_v39  ;;  %793 = vst.msk [vmem:[#allocation2 + $0x8c] sm:$0xf] %vm55_vm0, %v8186_v40  ;;  %v8201_v40 = vpack.c.bf16 %v6966_v34, %v6966_v34 }
  0x79   :  { %5927 = vmatprep.subr.bf16.mxu1 %v8650_v42  ;;  %v4040_v42 = vld [vmem:[%s12693_s1 + $0x1b0] sm:$0xff] }
  0x7a   :  { %v104_v60 = vpop.permute.xlu1 %103  ;;  %v100_v61 = vpop.permute.xlu0 %99  ;;  %5928 = vmatpush1.bf16.msra.mxu1 %v7863_v43  ;;  %v4041_v43 = vld [vmem:[%s12693_s1 + $0x1b8] sm:$0xff] }
  0x7b   :  { %125 = vst.msk [vmem:[#allocation2 + $0xc0] sm:$0xf] %vm121_vm1, %v104_v60  ;;  %123 = vst.msk [vmem:[#allocation2 + $0x40] sm:$0xf] %vm121_vm1, %v100_v61  ;;  %v8193_v60 = vpack.c.bf16 %v6950_v46, %v6950_v46  ;;  %5929 = vmatprep.subr.bf16.mxu1 %v8652_v56  ;;  %v6940_v61 = vld [vmem:[%s12692_s0 + $0x998] sm:$0xff] }
  0x7c   :  { %663 = vrot.lane.b32.xlu1 %v8173_v52, %s8981_s10  ;;  %661 = vrot.lane.b32.xlu0 %v8172_v53, %s8981_s10  ;;  %v4019_v52 = vld [vmem:[%s12693_s1 + $0x108] sm:$0xff]  ;;  %v8189_v53 = vpack.c.bf16 %v6938_v48, %v6938_v48  ;;  %v8191_v2 = vpack.c.bf16 %v6940_v61, %v6940_v61  ;;  %v8662_v46 = vld [vmem:[%s12693_s1 + $0x1b4] ss:$8 sps:$4 sm:$0xff]  }
  0x7d   :  { %v7861_v57 = vcombine.low %v4018_v51, %v4019_v52  ;;  %v4038_v52 = vld [vmem:[%s12693_s1 + $0x1a0] sm:$0xff] }
  0x7e   :  { %v108_v6 = vpop.permute.xlu1 %107  ;;  %v106_v7 = vpop.permute.xlu0 %105  ;;  %796 = vst.msk [vmem:[#allocation2 + $0x14c] sm:$0xf] %vm55_vm0, %v8189_v53  ;;  %798 = vst.msk [vmem:[#allocation2 + $0x1cc] sm:$0xf] %vm55_vm0, %v8191_v2  ;;  %v4039_v53 = vld [vmem:[%s12693_s1 + $0x1a8] sm:$0xff] }
  0x7f   :  { %127 = vst.msk [vmem:[#allocation2 + $0x140] sm:$0xf] %vm121_vm1, %v108_v6  ;;  %126 = vst.msk [vmem:[#allocation2 + $0x100] sm:$0xf] %vm121_vm1, %v106_v7  ;;  %5930 = vmatpush1.bf16.msra.mxu1 %v7861_v57  ;;  %v8654_v6 = vld [vmem:[%s12693_s1 + $0x1f4] ss:$8 sps:$4 sm:$0xff]   ;;  %v7891_v7 = vcombine.low %v4048_v0, %v4049_v1  ;;  %v7881_v57 = vcombine.low %v4038_v52, %v4039_v53 }
  0x80   :  { %667 = vrot.lane.b32.xlu1 %v8175_v62, %s8981_s10  ;;  %665 = vrot.lane.b32.xlu0 %v8174_v63, %s8981_s10  ;;  %v6939_v62 = vld [vmem:[%s12692_s0 + $0x990] sm:$0xff]  ;;  %v8192_v63 = vpack.c.bf16 %v6949_v55, %v6949_v55  ;;  %v6969_v55 = vld [vmem:[%s12692_s0 + $0x9c0] sm:$0xff] }
  0x81   :  { %v8190_v3 = vpack.c.bf16 %v6939_v62, %v6939_v62  ;;  %5931 = vmatprep.subr.bf16.mxu1 %v8654_v6  ;;  %v8664_v56 = vld [vmem:[%s12693_s1 + $0x1a4] ss:$8 sps:$4 sm:$0xff]   ;;  %v8204_v61 = vpack.c.bf16 %v6969_v55, %v6969_v55  ;;  %v4036_v62 = vld [vmem:[%s12693_s1 + $0x190] sm:$0xff]  ;;  %v6972_v0 = vld [vmem:[%s12692_s0 + $0x9d8] sm:$0xff] }
  0x82   :  { %v112_v16 = vpop.permute.xlu1 %111  ;;  %v110_v17 = vpop.permute.xlu0 %109  ;;  %v6971_v1 = vld [vmem:[%s12692_s0 + $0x9d0] sm:$0xff] }
  0x83   :  { %129 = vst.msk [vmem:[#allocation2 + $0x1c0] sm:$0xf] %vm121_vm1, %v112_v16  ;;  %128 = vst.msk [vmem:[#allocation2 + $0x180] sm:$0xf] %vm121_vm1, %v110_v17  ;;  %5932 = vmatpush2.bf16.msra.mxu1 %v7891_v7  ;;  %v8656_v16 = vld [vmem:[%s12693_s1 + $0x1e4] ss:$8 sps:$4 sm:$0xff]   ;;  %v7889_v17 = vcombine.low %v4046_v12, %v4047_v13 }
  0x84   :  { %720 = vrot.lane.b32.xlu1 %v8177_v9, %s8982_s11  ;;  %718 = vrot.lane.b32.xlu0 %v8176_v10, %s8982_s11  ;;  %797 = vst.msk [vmem:[#allocation2 + $0x18c] sm:$0xf] %vm55_vm0, %v8190_v3  ;;  %v8195_v10 = vpack.c.bf16 %v6952_v4, %v6952_v4  ;;  %v8666_v2 = vld [vmem:[%s12693_s1 + $0x194] ss:$8 sps:$4 sm:$0xff]  }
  0x85   :  { %5933 = vmatprep.subr.bf16.mxu1 %v8656_v16 }
  0x86   :  { %v166_v30 = vpop.permute.xlu1 %165  ;;  %v164_v31 = vpop.permute.xlu0 %163 }
  0x87   :  { %189 = vst.msk [vmem:[#allocation2 + $0x40] sm:$0xf] %vm187_vm2, %v166_v30  ;;  %188 = vst.msk [vmem:[#allocation2] sm:$0xf] %vm187_vm2, %v164_v31  ;;  %5934 = vmatpush2.bf16.msra.mxu1 %v7889_v17  ;;  %v8199_v30 = vpack.c.bf16 %v6956_v24, %v6956_v24  ;;  %v8198_v31 = vpack.c.bf16 %v6955_v25, %v6955_v25 }
  0x88   :  { %724 = vrot.lane.b32.xlu1 %v8179_v19, %s8982_s11  ;;  %722 = vrot.lane.b32.xlu0 %v8178_v22, %s8982_s11  ;;  %v4044_v22 = vld [vmem:[%s12693_s1 + $0x1d0] sm:$0xff] }
  0x89   :  { %v7887_v27 = vcombine.low %v4044_v22, %v4045_v23  ;;  %5935 = vmatprep.subr.bf16.mxu1 %v8658_v26 }
  0x8a   :  { %v170_v44 = vpop.permute.xlu1 %169  ;;  %v168_v45 = vpop.permute.xlu0 %167 }
  0x8b   :  { %191 = vst.msk [vmem:[#allocation2 + $0xc0] sm:$0xf] %vm187_vm2, %v170_v44  ;;  %190 = vst.msk [vmem:[#allocation2 + $0x80] sm:$0xf] %vm187_vm2, %v168_v45  ;;  %5936 = vmatpush2.bf16.msra.mxu1 %v7887_v27  ;;  %v6968_v44 = vld [vmem:[%s12692_s0 + $0x1d8] sm:$0xff]  ;;  %v6967_v45 = vld [vmem:[%s12692_s0 + $0x1d0] sm:$0xff] }
  0x8c   :  { %728 = vrot.lane.b32.xlu1 %v8181_v33, %s8982_s11  ;;  %726 = vrot.lane.b32.xlu0 %v8180_v36, %s8982_s11  ;;  %v4043_v33 = vld [vmem:[%s12693_s1 + $0x1c8] sm:$0xff]  ;;  %v8202_v51 = vpack.c.bf16 %v6967_v45, %v6967_v45 }
  0x8d   :  { %v8660_v36 = vld [vmem:[%s12693_s1 + $0x1c4] ss:$8 sps:$4 sm:$0xff]   ;;  %v7885_v37 = vcombine.low %v4042_v32, %v4043_v33 }
  0x8e   :  { %v174_v58 = vpop.permute.xlu1 %173  ;;  %v172_v59 = vpop.permute.xlu0 %171  ;;  %5937 = vmatprep.subr.bf16.mxu1 %v8660_v36 }
  0x8f   :  { %193 = vst.msk [vmem:[#allocation2 + $0x140] sm:$0xf] %vm187_vm2, %v174_v58  ;;  %192 = vst.msk [vmem:[#allocation2 + $0x100] sm:$0xf] %vm187_vm2, %v172_v59  ;;  %5938 = vmatpush2.bf16.msra.mxu1 %v7885_v37 }
  0x90   :  { %732 = vrot.lane.b32.xlu1 %v8183_v47, %s8982_s11  ;;  %730 = vrot.lane.b32.xlu0 %v8182_v50, %s8982_s11  ;;  %v7883_v47 = vcombine.low %v4040_v42, %v4041_v43  ;;  %v8203_v50 = vpack.c.bf16 %v6968_v44, %v6968_v44 }
  0x91   :  { %5939 = vmatprep.subr.bf16.mxu1 %v8662_v46 }
  0x92   :  { %v178_v8 = vpop.permute.xlu1 %177  ;;  %v176_v9 = vpop.permute.xlu0 %175 }
  0x93   :  { %195 = vst.msk [vmem:[#allocation2 + $0x1c0] sm:$0xf] %vm187_vm2, %v178_v8  ;;  %194 = vst.msk [vmem:[#allocation2 + $0x180] sm:$0xf] %vm187_vm2, %v176_v9  ;;  %5940 = vmatpush2.bf16.msra.mxu1 %v7883_v47 }
  0x94   :  { %834 = vrot.lane.b32.xlu1 %v8193_v60, %s8980_s20  ;;  %832 = vrot.lane.b32.xlu0 %v8192_v63, %s8980_s20  ;;  %v8205_v60 = vpack.c.bf16 %v6970_v54, %v6970_v54  ;;  %v4037_v63 = vld [vmem:[%s12693_s1 + $0x198] sm:$0xff] }
  0x95   :  { %5941 = vmatprep.subr.bf16.mxu1 %v8664_v56  ;;  %v7879_v3 = vcombine.low %v4036_v62, %v4037_v63 }
  0x96   :  { %v232_v18 = vpop.permute.xlu1 %231  ;;  %v230_v19 = vpop.permute.xlu0 %229 }
  0x97   :  { %255 = vst.msk [vmem:[#allocation2 + $0x40] sm:$0xf] %vm253_vm3, %v232_v18  ;;  %254 = vst.msk [vmem:[#allocation2] sm:$0xf] %vm253_vm3, %v230_v19  ;;  %5942 = vmatpush2.bf16.msra.mxu1 %v7881_v57 }
  0x98   :  { %838 = vrot.lane.b32.xlu1 %v8195_v10, %s8980_s20  ;;  %836 = vrot.lane.b32.xlu0 %v8194_v11, %s8980_s20 }
  0x9a   :  { %v236_v28 = vpop.permute.xlu1 %235  ;;  %v234_v29 = vpop.permute.xlu0 %233 }
  0x9b   :  { %257 = vst.msk [vmem:[#allocation2 + $0xc0] sm:$0xf] %vm253_vm3, %v236_v28  ;;  %256 = vst.msk [vmem:[#allocation2 + $0x80] sm:$0xf] %vm253_vm3, %v234_v29 }
  0x9c   :  { %842 = vrot.lane.b32.xlu1 %v8197_v20, %s8980_s20  ;;  %840 = vrot.lane.b32.xlu0 %v8196_v21, %s8980_s20 }
  0x9e   :  { %v240_v38 = vpop.permute.xlu1 %239  ;;  %v238_v39 = vpop.permute.xlu0 %237 }
  0x9f   :  { %259 = vst.msk [vmem:[#allocation2 + $0x140] sm:$0xf] %vm253_vm3, %v240_v38  ;;  %258 = vst.msk [vmem:[#allocation2 + $0x100] sm:$0xf] %vm253_vm3, %v238_v39 }
  0xa0   :  { %846 = vrot.lane.b32.xlu1 %v8199_v30, %s8980_s20  ;;  %844 = vrot.lane.b32.xlu0 %v8198_v31, %s8980_s20 }
  0xa2   :  { %v244_v48 = vpop.permute.xlu1 %243  ;;  %v242_v49 = vpop.permute.xlu0 %241 }
  0xa3   :  { %261 = vst.msk [vmem:[#allocation2 + $0x1c0] sm:$0xf] %vm253_vm3, %v244_v48  ;;  %260 = vst.msk [vmem:[#allocation2 + $0x180] sm:$0xf] %vm253_vm3, %v242_v49 }
  0xa4   :  { %899 = vrot.lane.b32.xlu1 %v8201_v40, %s8981_s10  ;;  %897 = vrot.lane.b32.xlu0 %v8200_v41, %s8981_s10 }
  0xa6   :  { %v347_v58 = vpop.permute.xlu1 %346  ;;  %v345_v59 = vpop.permute.xlu0 %344 }
  0xa7   :  { %369 = vst.msk [vmem:[#allocation2 + $0x44] sm:$0xf] %vm121_vm1, %v347_v58  ;;  %368 = vst.msk [vmem:[#allocation2 + $0x4] sm:$0xf] %vm121_vm1, %v345_v59 }
  0xa8   :  { %903 = vrot.lane.b32.xlu1 %v8203_v50, %s8981_s10  ;;  %901 = vrot.lane.b32.xlu0 %v8202_v51, %s8981_s10 }
  0xaa   :  { %v351_v4 = vpop.permute.xlu1 %350  ;;  %v349_v5 = vpop.permute.xlu0 %348 }
  0xab   :  { %8 = vsyncpa [#allocation4], 0  ;;  %371 = vst.msk [vmem:[#allocation2 + $0xc4] sm:$0xf] %vm121_vm1, %v351_v4  ;;  %5943 = vmatprep.subr.bf16.mxu1 %v8666_v2  ;;  %v8207_v6 = vpack.c.bf16 %v6972_v0, %v6972_v0  ;;  %v8206_v7 = vpack.c.bf16 %v6971_v1, %v6971_v1  ;;  %v4034_v8 = vld [vmem:[%s12693_s1 + $0x180] sm:$0xff]  ;;  %v4035_v9 = vld [vmem:[%s12693_s1 + $0x188] sm:$0xff] }
  0xac   :  { %370 = vst.msk [vmem:[#allocation2 + $0x84] sm:$0xf] %vm121_vm1, %v349_v5  ;;  %907 = vrot.lane.b32.xlu1 %v8205_v60, %s8981_s10  ;;  %905 = vrot.lane.b32.xlu0 %v8204_v61, %s8981_s10  ;;  %v6982_v10 = vld [vmem:[%s12692_s0 + $0x1e8] sm:$0xff]  ;;  %v6981_v11 = vld [vmem:[%s12692_s0 + $0x1e0] sm:$0xff]  ;;  %v7877_v13 = vcombine.low %v4034_v8, %v4035_v9  ;;  %vm6724_vm7 = vcmask 523264  }
  0xad   :  { %5944 = vmatpush2.bf16.msra.mxu1 %v7879_v3  ;;  %v8668_v12 = vld [vmem:[%s12693_s1 + $0x184] ss:$8 sps:$4 sm:$0xff]   ;;  %v8209_v16 = vpack.c.bf16 %v6982_v10, %v6982_v10  ;;  %v8208_v17 = vpack.c.bf16 %v6981_v11, %v6981_v11  ;;  %v6984_v18 = vld [vmem:[%s12692_s0 + $0x1f8] sm:$0xff]  ;;  %v6983_v19 = vld [vmem:[%s12692_s0 + $0x1f0] sm:$0xff] }
  0xae   :  { %v355_v14 = vpop.permute.xlu1 %354  ;;  %v353_v15 = vpop.permute.xlu0 %352  ;;  %5945 = vmatprep.subr.bf16.mxu1 %v8668_v12  ;;  %v8211_v22 = vpack.c.bf16 %v6984_v18, %v6984_v18  ;;  %v6998_v23 = vld [vmem:[%s12692_s0 + $0x208] sm:$0xff]  ;;  %v6997_v24 = vld [vmem:[%s12692_s0 + $0x200] sm:$0xff]  ;;  %v8210_v25 = vpack.c.bf16 %v6983_v19, %v6983_v19  ;;  %v7000_v33 = vld [vmem:[%s12692_s0 + $0x218] sm:$0xff] }
  0xaf   :  { %373 = vst.msk [vmem:[#allocation2 + $0x144] sm:$0xf] %vm121_vm1, %v355_v14  ;;  %372 = vst.msk [vmem:[#allocation2 + $0x104] sm:$0xf] %vm121_vm1, %v353_v15  ;;  %v6986_v26 = vld [vmem:[%s12692_s0 + $0x9e8] sm:$0xff]  ;;  %v8217_v27 = vpack.c.bf16 %v6998_v23, %v6998_v23  ;;  %v8216_v28 = vpack.c.bf16 %v6997_v24, %v6997_v24  ;;  %v6985_v29 = vld [vmem:[%s12692_s0 + $0x9e0] sm:$0xff]  ;;  %v8219_v37 = vpack.c.bf16 %v7000_v33, %v7000_v33 }
  0xb0   :  { %911 = vrot.lane.b32.xlu1 %v8207_v6, %s8981_s10  ;;  %909 = vrot.lane.b32.xlu0 %v8206_v7, %s8981_s10  ;;  %v8213_v32 = vpack.c.bf16 %v6986_v26, %v6986_v26  ;;  %v6999_v34 = vld [vmem:[%s12692_s0 + $0x210] sm:$0xff]  ;;  %v8212_v35 = vpack.c.bf16 %v6985_v29, %v6985_v29  ;;  %v6988_v36 = vld [vmem:[%s12692_s0 + $0x9f8] sm:$0xff] }
  0xb1   :  { %5946 = vmatpush2.bf16.msra.mxu1 %v7877_v13  ;;  %1036 = vst.msk [vmem:[#allocation2 + $0x50] sm:$0xf] %vm55_vm0, %v8217_v27  ;;  %1035 = vst.msk [vmem:[#allocation2 + $0x10] sm:$0xf] %vm55_vm0, %v8216_v28  ;;  %v8218_v38 = vpack.c.bf16 %v6999_v34, %v6999_v34  ;;  %v6987_v39 = vld [vmem:[%s12692_s0 + $0x9f0] sm:$0xff]  ;;  %v8215_v42 = vpack.c.bf16 %v6988_v36, %v6988_v36  ;;  %v7002_v43 = vld [vmem:[%s12692_s0 + $0xa08] sm:$0xff] }
  0xb2   :  { %v359_v20 = vpop.permute.xlu1 %358  ;;  %v357_v21 = vpop.permute.xlu0 %356  ;;  %1038 = vst.msk [vmem:[#allocation2 + $0xd0] sm:$0xf] %vm55_vm0, %v8219_v37  ;;  %v7001_v44 = vld [vmem:[%s12692_s0 + $0xa00] sm:$0xff]  ;;  %v8214_v45 = vpack.c.bf16 %v6987_v39, %v6987_v39  ;;  %v7014_v46 = vld [vmem:[%s12692_s0 + $0x228] sm:$0xff]  ;;  %v8221_v47 = vpack.c.bf16 %v7002_v43, %v7002_v43  ;;  %v7004_v53 = vld [vmem:[%s12692_s0 + $0xa18] sm:$0xff] }
  0xb3   :  { %375 = vst.msk [vmem:[#allocation2 + $0x1c4] sm:$0xf] %vm121_vm1, %v359_v20  ;;  %374 = vst.msk [vmem:[#allocation2 + $0x184] sm:$0xf] %vm121_vm1, %v357_v21  ;;  %v8220_v48 = vpack.c.bf16 %v7001_v44, %v7001_v44  ;;  %v7013_v49 = vld [vmem:[%s12692_s0 + $0x220] sm:$0xff]  ;;  %v8225_v52 = vpack.c.bf16 %v7014_v46, %v7014_v46  ;;  %v7003_v54 = vld [vmem:[%s12692_s0 + $0xa10] sm:$0xff]  ;;  %v8223_v56 = vpack.c.bf16 %v7004_v53, %v7004_v53 }
  0xb4   :  { %964 = vrot.lane.b32.xlu1 %v8209_v16, %s8982_s11  ;;  %962 = vrot.lane.b32.xlu0 %v8208_v17, %s8982_s11  ;;  %1037 = vst.msk [vmem:[#allocation2 + $0x90] sm:$0xf] %vm55_vm0, %v8218_v38  ;;  %1040 = vst.msk [vmem:[#allocation2 + $0x150] sm:$0xf] %vm55_vm0, %v8221_v47  ;;  %v8224_v55 = vpack.c.bf16 %v7013_v49, %v7013_v49  ;;  %v8222_v57 = vpack.c.bf16 %v7003_v54, %v7003_v54  ;;  %v7016_v58 = vld [vmem:[%s12692_s0 + $0x238] sm:$0xff]  ;;  %v7015_v59 = vld [vmem:[%s12692_s0 + $0x230] sm:$0xff] }
  0xb5   :  { %1039 = vst.msk [vmem:[#allocation2 + $0x110] sm:$0xf] %vm55_vm0, %v8220_v48  ;;  %1042 = vst.msk [vmem:[#allocation2 + $0x1d0] sm:$0xf] %vm55_vm0, %v8223_v56  ;;  %v8227_v62 = vpack.c.bf16 %v7016_v58, %v7016_v58  ;;  %v8226_v63 = vpack.c.bf16 %v7015_v59, %v7015_v59  ;;  %v7018_v0 = vld [vmem:[%s12692_s0 + $0xa28] sm:$0xff]  ;;  %v7017_v1 = vld [vmem:[%s12692_s0 + $0xa20] sm:$0xff] }
  0xb6   :  { %v412_v30 = vpop.permute.xlu1 %411  ;;  %v410_v31 = vpop.permute.xlu0 %409  ;;  %1041 = vst.msk [vmem:[#allocation2 + $0x190] sm:$0xf] %vm55_vm0, %v8222_v57  ;;  %v8229_v4 = vpack.c.bf16 %v7018_v0, %v7018_v0  ;;  %v8228_v5 = vpack.c.bf16 %v7017_v1, %v7017_v1  ;;  %v7020_v6 = vld [vmem:[%s12692_s0 + $0xa38] sm:$0xff]  ;;  %v7019_v7 = vld [vmem:[%s12692_s0 + $0xa30] sm:$0xff]  ;;  %v7030_v12 = vld [vmem:[%s12692_s0 + $0x248] sm:$0xff] }
  0xb7   :  { %434 = vst.msk [vmem:[#allocation2 + $0x44] sm:$0xf] %vm187_vm2, %v412_v30  ;;  %433 = vst.msk [vmem:[#allocation2 + $0x4] sm:$0xf] %vm187_vm2, %v410_v31  ;;  %v8231_v10 = vpack.c.bf16 %v7020_v6, %v7020_v6  ;;  %v8230_v11 = vpack.c.bf16 %v7019_v7, %v7019_v7  ;;  %v7029_v13 = vld [vmem:[%s12692_s0 + $0x240] sm:$0xff]  ;;  %v8233_v20 = vpack.c.bf16 %v7030_v12, %v7030_v12  ;;  %v7032_v24 = vld [vmem:[%s12692_s0 + $0x258] sm:$0xff] }
  0xb8   :  { %968 = vrot.lane.b32.xlu1 %v8211_v22, %s8982_s11  ;;  %966 = vrot.lane.b32.xlu0 %v8210_v25, %s8982_s11  ;;  %v8232_v21 = vpack.c.bf16 %v7029_v13, %v7029_v13  ;;  %v8670_v22 = vld [vmem:[%s12693_s1 + $0x270] ss:$8 sps:$4 sm:$0xff]   ;;  %v8672_v23 = vld [vmem:[%s12693_s1 + $0x274] ss:$8 sps:$4 sm:$0xff]   ;;  %v8235_v31 = vpack.c.bf16 %v7032_v24, %v7032_v24 }
  0xb9   :  { %v7031_v25 = vld [vmem:[%s12692_s0 + $0x250] sm:$0xff]  ;;  %5988 = vmatprep.subr.bf16.mxu0 %v8672_v23  ;;  %v8675_v33 = vld [vmem:[%s12693_s1 + $0x264] ss:$8 sps:$4 sm:$0xff]   ;;  %v8673_v36 = vld [vmem:[%s12693_s1 + $0x260] ss:$8 sps:$4 sm:$0xff]  }
  0xba   :  { %v416_v40 = vpop.permute.xlu1 %415  ;;  %v414_v41 = vpop.permute.xlu0 %413  ;;  %v7034_v34 = vld [vmem:[%s12692_s0 + $0xa48] sm:$0xff]  ;;  %v8678_v44 = vld [vmem:[%s12693_s1 + $0x254] ss:$8 sps:$4 sm:$0xff]   ;;  %v8676_v48 = vld [vmem:[%s12693_s1 + $0x250] ss:$8 sps:$4 sm:$0xff]  }
  0xbb   :  { %436 = vst.msk [vmem:[#allocation2 + $0xc4] sm:$0xf] %vm187_vm2, %v416_v40  ;;  %435 = vst.msk [vmem:[#allocation2 + $0x84] sm:$0xf] %vm187_vm2, %v414_v41  ;;  %v7036_v46 = vld [vmem:[%s12692_s0 + $0xa58] sm:$0xff]  ;;  %v7035_v47 = vld [vmem:[%s12692_s0 + $0xa50] sm:$0xff] }
  0xbc   :  { %972 = vrot.lane.b32.xlu1 %v8213_v32, %s8982_s11  ;;  %970 = vrot.lane.b32.xlu0 %v8212_v35, %s8982_s11  ;;  %v8234_v32 = vpack.c.bf16 %v7031_v25, %v7031_v25  ;;  %v7033_v35 = vld [vmem:[%s12692_s0 + $0xa40] sm:$0xff]  ;;  %v7046_v54 = vld [vmem:[%s12692_s0 + $0x268] sm:$0xff] }
  0xbd   :  { %v8236_v43 = vpack.c.bf16 %v7033_v35, %v7033_v35  ;;  %v8681_v53 = vld [vmem:[%s12693_s1 + $0x244] ss:$8 sps:$4 sm:$0xff]   ;;  %v8679_v56 = vld [vmem:[%s12693_s1 + $0x240] ss:$8 sps:$4 sm:$0xff]   ;;  %v7048_v0 = vld [vmem:[%s12692_s0 + $0x278] sm:$0xff] }
  0xbe   :  { %v420_v50 = vpop.permute.xlu1 %419  ;;  %v418_v51 = vpop.permute.xlu0 %417  ;;  %v8684_v1 = vld [vmem:[%s12693_s1 + $0x234] ss:$8 sps:$4 sm:$0xff]   ;;  %v8243_v7 = vpack.c.bf16 %v7048_v0, %v7048_v0  ;;  %v7049_v12 = vld [vmem:[%s12692_s0 + $0xa60] sm:$0xff] }
  0xbf   :  { %438 = vst.msk [vmem:[#allocation2 + $0x144] sm:$0xf] %vm187_vm2, %v420_v50  ;;  %437 = vst.msk [vmem:[#allocation2 + $0x104] sm:$0xf] %vm187_vm2, %v418_v51  ;;  %v8239_v51 = vpack.c.bf16 %v7036_v46, %v7036_v46  ;;  %v7052_v24 = vld [vmem:[%s12692_s0 + $0xa78] sm:$0xff]  ;;  %v7067_v46 = vld [vmem:[%s12692_s0 + $0xa90] sm:$0xff] }
  0xc0   :  { %976 = vrot.lane.b32.xlu1 %v8215_v42, %s8982_s11  ;;  %974 = vrot.lane.b32.xlu0 %v8214_v45, %s8982_s11  ;;  %v8237_v42 = vpack.c.bf16 %v7034_v34, %v7034_v34  ;;  %v7065_v34 = vld [vmem:[%s12692_s0 + $0xa80] sm:$0xff] }
  0xc2   :  { %v424_v60 = vpop.permute.xlu1 %423  ;;  %v422_v61 = vpop.permute.xlu0 %421 }
  0xc3   :  { %440 = vst.msk [vmem:[#allocation2 + $0x1c4] sm:$0xf] %vm187_vm2, %v424_v60  ;;  %439 = vst.msk [vmem:[#allocation2 + $0x184] sm:$0xf] %vm187_vm2, %v422_v61 }
  0xc4   :  { %1078 = vrot.lane.b32.xlu1 %v8225_v52, %s8980_s20  ;;  %1076 = vrot.lane.b32.xlu0 %v8224_v55, %s8980_s20  ;;  %v8238_v52 = vpack.c.bf16 %v7035_v47, %v7035_v47  ;;  %v7045_v55 = vld [vmem:[%s12692_s0 + $0x260] sm:$0xff] }
  0xc6   :  { %v477_v2 = vpop.permute.xlu1 %476  ;;  %v475_v3 = vpop.permute.xlu0 %474 }
  0xc7   :  { %499 = vst.msk [vmem:[#allocation2 + $0x44] sm:$0xf] %vm253_vm3, %v477_v2  ;;  %498 = vst.msk [vmem:[#allocation2 + $0x4] sm:$0xf] %vm253_vm3, %v475_v3  ;;  %v7047_v3 = vld [vmem:[%s12692_s0 + $0x270] sm:$0xff] }
  0xc8   :  { %1082 = vrot.lane.b32.xlu1 %v8227_v62, %s8980_s20  ;;  %1080 = vrot.lane.b32.xlu0 %v8226_v63, %s8980_s20  ;;  %v8241_v62 = vpack.c.bf16 %v7046_v54, %v7046_v54  ;;  %v8240_v63 = vpack.c.bf16 %v7045_v55, %v7045_v55 }
  0xca   :  { %v481_v8 = vpop.permute.xlu1 %480  ;;  %v479_v9 = vpop.permute.xlu0 %478 }
  0xcb   :  { %501 = vst.msk [vmem:[#allocation2 + $0xc4] sm:$0xf] %vm253_vm3, %v481_v8  ;;  %500 = vst.msk [vmem:[#allocation2 + $0x84] sm:$0xf] %vm253_vm3, %v479_v9  ;;  %v7050_v8 = vld [vmem:[%s12692_s0 + $0xa68] sm:$0xff] }
  0xcc   :  { %1086 = vrot.lane.b32.xlu1 %v8229_v4, %s8980_s20  ;;  %1084 = vrot.lane.b32.xlu0 %v8228_v5, %s8980_s20  ;;  %v8682_v4 = vld [vmem:[%s12693_s1 + $0x230] ss:$8 sps:$4 sm:$0xff]   ;;  %v7062_v9 = vld [vmem:[%s12692_s0 + $0x288] sm:$0xff] }
  0xcd   :  { %v8249_v13 = vpack.c.bf16 %v7062_v9, %v7062_v9 }
  0xce   :  { %v485_v14 = vpop.permute.xlu1 %484  ;;  %v483_v15 = vpop.permute.xlu0 %482  ;;  %v3922_v16 = vld [vmem:[#allocation2] sm:$0xff] }
  0xcf   :  { %v3930_v17 = vld [vmem:[#allocation2 + $0x40] sm:$0xff]  ;;  %503 = vst.msk [vmem:[#allocation2 + $0x144] sm:$0xf] %vm253_vm3, %v485_v14  ;;  %502 = vst.msk [vmem:[#allocation2 + $0x104] sm:$0xf] %vm253_vm3, %v483_v15 }
  0xd0   :  { %v7765_v18 = vcombine.low %v3922_v16, %v3930_v17  ;;  %v7766_v19 = vcombine.high %v3922_v16, %v3930_v17  ;;  %1090 = vrot.lane.b32.xlu1 %v8231_v10, %s8980_s20  ;;  %1088 = vrot.lane.b32.xlu0 %v8230_v11, %s8980_s20  ;;  %v7061_v10 = vld [vmem:[%s12692_s0 + $0x280] sm:$0xff]  ;;  %v8242_v11 = vpack.c.bf16 %v7047_v3, %v7047_v3  ;;  %v8702_v3 = vld [vmem:[%s12693_s1 + $0x374] ss:$8 sps:$4 sm:$0xff]  }
  0xd1   :  { %v8248_v14 = vpack.c.bf16 %v7061_v10, %v7061_v10  ;;  %v8687_v15 = vld [vmem:[%s12693_s1 + $0x224] ss:$8 sps:$4 sm:$0xff]   ;;  %v8685_v16 = vld [vmem:[%s12693_s1 + $0x220] ss:$8 sps:$4 sm:$0xff]   ;;  %1280 = vst.msk [vmem:[#allocation2 + $0x54] sm:$0xf] %vm55_vm0, %v8249_v13  ;;  %6061 = vmatprep.subr.bf16.mxu1 %v8702_v3 }
  0xd2   :  { %5874 = vmatprep.mubr.bf16.mxu0 %v7766_v19  ;;  %v489_v26 = vpop.permute.xlu1 %488  ;;  %v487_v27 = vpop.permute.xlu0 %486  ;;  %v3938_v28 = vld [vmem:[#allocation2 + $0x80] sm:$0xff]  ;;  %v8245_v19 = vpack.c.bf16 %v7050_v8, %v7050_v8 }
  0xd3   :  { %5875 = vmatmul.mubr.bf16.vlgmr.msra.gmra.mxu0 %v7765_v18  ;;  %v3946_v29 = vld [vmem:[#allocation2 + $0xc0] sm:$0xff]  ;;  %505 = vst.msk [vmem:[#allocation2 + $0x1c4] sm:$0xf] %vm253_vm3, %v489_v26  ;;  %504 = vst.msk [vmem:[#allocation2 + $0x184] sm:$0xf] %vm253_vm3, %v487_v27 }
  0xd4   :  { %v7782_v30 = vcombine.high %v3938_v28, %v3946_v29  ;;  %5989 = vmatpush1.bf16.msra.mxu0 %v8670_v22  ;;  %1143 = vrot.lane.b32.xlu1 %v8233_v20, %s8981_s10  ;;  %v7781_v41 = vcombine.low %v3938_v28, %v3946_v29  ;;  %1279 = vst.msk [vmem:[#allocation2 + $0x14] sm:$0xf] %vm55_vm0, %v8248_v14  ;;  %v7063_v22 = vld [vmem:[%s12692_s0 + $0x290] sm:$0xff]  ;;  %v7093_v13 = vld [vmem:[%s12692_s0 + $0x2c0] sm:$0xff] }
  0xd5   :  { %1141 = vrot.lane.b32.xlu0 %v8232_v21, %s8981_s10  ;;  %5990 = vmatprep.subr.bf16.mxu0 %v8675_v33  ;;  %v8244_v20 = vpack.c.bf16 %v7049_v12, %v7049_v12  ;;  %v7064_v21 = vld [vmem:[%s12692_s0 + $0x298] sm:$0xff]  ;;  %v8250_v26 = vpack.c.bf16 %v7063_v22, %v7063_v22  ;;  %v7051_v28 = vld [vmem:[%s12692_s0 + $0xa70] sm:$0xff]  ;;  %v7066_v33 = vld [vmem:[%s12692_s0 + $0xa88] sm:$0xff] }
  0xd6   :  { %5884 = vmatprep.mubr.bf16.mxu0 %v7782_v30  ;;  %v591_v37 = vpop.permute.xlu1 %590  ;;  %v589_v38 = vpop.permute.xlu0 %588  ;;  %v3954_v39 = vld [vmem:[#allocation2 + $0x100] sm:$0xff]  ;;  %v8251_v25 = vpack.c.bf16 %v7064_v21, %v7064_v21  ;;  %v8690_v27 = vld [vmem:[%s12693_s1 + $0x214] ss:$8 sps:$4 sm:$0xff]   ;;  %v8688_v29 = vld [vmem:[%s12693_s1 + $0x210] ss:$8 sps:$4 sm:$0xff]   ;;  %v8246_v35 = vpack.c.bf16 %v7051_v28, %v7051_v28 }
  0xd7   :  { %v3962_v40 = vld [vmem:[#allocation2 + $0x140] sm:$0xff]  ;;  %613 = vst.msk [vmem:[#allocation2 + $0x48] sm:$0xf] %vm121_vm1, %v591_v37  ;;  %612 = vst.msk [vmem:[#allocation2 + $0x8] sm:$0xf] %vm121_vm1, %v589_v38  ;;  %v8253_v37 = vpack.c.bf16 %v7066_v33, %v7066_v33  ;;  %v8252_v38 = vpack.c.bf16 %v7065_v34, %v7065_v34  ;;  %v7094_v12 = vld [vmem:[%s12692_s0 + $0x2c8] sm:$0xff] }
  0xd8   :  { %5991 = vmatpush1.bf16.msra.mxu0 %v8673_v36  ;;  %1147 = vrot.lane.b32.xlu1 %v8235_v31, %s8981_s10  ;;  %v7798_v45 = vcombine.high %v3954_v39, %v3962_v40  ;;  %v7797_v61 = vcombine.low %v3954_v39, %v3962_v40  ;;  %1282 = vst.msk [vmem:[#allocation2 + $0xd4] sm:$0xf] %vm55_vm0, %v8251_v25  ;;  %1281 = vst.msk [vmem:[#allocation2 + $0x94] sm:$0xf] %vm55_vm0, %v8250_v26  ;;  %v7078_v36 = vld [vmem:[%s12692_s0 + $0x2a8] sm:$0xff]  ;;  %v7077_v40 = vld [vmem:[%s12692_s0 + $0x2a0] sm:$0xff] }
  0xd9   :  { %1145 = vrot.lane.b32.xlu0 %v8234_v32, %s8981_s10  ;;  %5992 = vmatprep.subr.bf16.mxu0 %v8678_v44  ;;  %v8247_v32 = vpack.c.bf16 %v7052_v24, %v7052_v24  ;;  %v8693_v39 = vld [vmem:[%s12693_s1 + $0x204] ss:$8 sps:$4 sm:$0xff]   ;;  %1284 = vst.msk [vmem:[#allocation2 + $0x154] sm:$0xf] %vm55_vm0, %v8253_v37  ;;  %1283 = vst.msk [vmem:[#allocation2 + $0x114] sm:$0xf] %vm55_vm0, %v8252_v38  ;;  %v8257_v44 = vpack.c.bf16 %v7078_v36, %v7078_v36 }
  0xda   :  { %v595_v49 = vpop.permute.xlu1 %594  ;;  %v593_v50 = vpop.permute.xlu0 %592  ;;  %v3970_v59 = vld [vmem:[#allocation2 + $0x180] sm:$0xff]  ;;  %v8256_v47 = vpack.c.bf16 %v7077_v40, %v7077_v40  ;;  %v7095_v21 = vld [vmem:[%s12692_s0 + $0x2d0] sm:$0xff]  ;;  %v7098_v28 = vld [vmem:[%s12692_s0 + $0xac8] sm:$0xff] }
  0xdb   :  { %5885 = vmatmul.mubr.bf16.gmra.mxu0 %v7781_v41  ;;  %615 = vst.msk [vmem:[#allocation2 + $0xc8] sm:$0xf] %vm121_vm1, %v595_v49  ;;  %614 = vst.msk [vmem:[#allocation2 + $0x88] sm:$0xf] %vm121_vm1, %v593_v50  ;;  %v3978_v60 = vld [vmem:[#allocation2 + $0x1c0] sm:$0xff]  ;;  %v8254_v49 = vpack.c.bf16 %v7067_v46, %v7067_v46  ;;  %v8266_v26 = vpack.c.bf16 %v7095_v21, %v7095_v21  ;;  %v8269_v33 = vpack.c.bf16 %v7098_v28, %v7098_v28  ;;  %v7100_v36 = vld [vmem:[%s12692_s0 + $0xad8] sm:$0xff] }
  0xdc   :  { %5894 = vmatprep.mubr.bf16.mxu0 %v7798_v45  ;;  %5993 = vmatpush1.bf16.msra.mxu0 %v8676_v48  ;;  %v7814_v2 = vcombine.high %v3970_v59, %v3978_v60  ;;  %v7813_v23 = vcombine.low %v3970_v59, %v3978_v60  ;;  %v8691_v41 = vld [vmem:[%s12693_s1 + $0x200] ss:$8 sps:$4 sm:$0xff]   ;;  %v7068_v45 = vld [vmem:[%s12692_s0 + $0xa98] sm:$0xff]  ;;  %v7099_v37 = vld [vmem:[%s12692_s0 + $0xad0] sm:$0xff] }
  0xdd   :  { %1151 = vrot.lane.b32.xlu1 %v8237_v42, %s8981_s10  ;;  %1149 = vrot.lane.b32.xlu0 %v8236_v43, %s8981_s10  ;;  %v8255_v48 = vpack.c.bf16 %v7068_v45, %v7068_v45  ;;  %v8696_v50 = vld [vmem:[%s12693_s1 + $0x2f4] ss:$8 sps:$4 sm:$0xff]   ;;  %1285 = vst.msk [vmem:[#allocation2 + $0x194] sm:$0xf] %vm55_vm0, %v8254_v49  ;;  %v7082_v59 = vld [vmem:[%s12692_s0 + $0xaa8] sm:$0xff] }
  0xde   :  { %v599_v57 = vpop.permute.xlu1 %598  ;;  %v597_v58 = vpop.permute.xlu0 %596  ;;  %5994 = vmatprep.subr.bf16.mxu0 %v8681_v53  ;;  %v8694_v53 = vld [vmem:[%s12693_s1 + $0x2f0] ss:$8 sps:$4 sm:$0xff]   ;;  %v7081_v60 = vld [vmem:[%s12692_s0 + $0xaa0] sm:$0xff]  ;;  %v8261_v0 = vpack.c.bf16 %v7082_v59, %v7082_v59  ;;  %v7114_v59 = vld [vmem:[%s12692_s0 + $0xae8] sm:$0xff] }
  0xdf   :  { %617 = vst.msk [vmem:[#allocation2 + $0x148] sm:$0xf] %vm121_vm1, %v599_v57  ;;  %616 = vst.msk [vmem:[#allocation2 + $0x108] sm:$0xf] %vm121_vm1, %v597_v58  ;;  %v8699_v58 = vld [vmem:[%s12693_s1 + $0x2e4] ss:$8 sps:$4 sm:$0xff]  }
  0xe0   :  { %5995 = vmatpush1.bf16.msra.mxu0 %v8679_v56  ;;  %1286 = vst.msk [vmem:[#allocation2 + $0x1d4] sm:$0xf] %vm55_vm0, %v8255_v48  ;;  %v8706_v14 = vld [vmem:[%s12693_s1 + $0x2c0] ss:$8 sps:$4 sm:$0xff]   ;;  %v8712_v22 = vld [vmem:[%s12693_s1 + $0x2b0] ss:$8 sps:$4 sm:$0xff]  }
  0xe1   :  { %1155 = vrot.lane.b32.xlu1 %v8239_v51, %s8981_s10  ;;  %1153 = vrot.lane.b32.xlu0 %v8238_v52, %s8981_s10  ;;  %v7080_v51 = vld [vmem:[%s12692_s0 + $0x2b8] sm:$0xff]  ;;  %v7079_v52 = vld [vmem:[%s12692_s0 + $0x2b0] sm:$0xff] }
  0xe2   :  { %v603_v5 = vpop.permute.xlu1 %602  ;;  %v601_v6 = vpop.permute.xlu0 %600  ;;  %5996 = vmatprep.subr.bf16.mxu0 %v8684_v1  ;;  %v8259_v56 = vpack.c.bf16 %v7080_v51, %v7080_v51  ;;  %v8258_v57 = vpack.c.bf16 %v7079_v52, %v7079_v52  ;;  %v8260_v1 = vpack.c.bf16 %v7081_v60, %v7081_v60  ;;  %v8724_v38 = vld [vmem:[%s12693_s1 + $0x290] ss:$8 sps:$4 sm:$0xff]   ;;  %v7109_v45 = vld [vmem:[%s12692_s0 + $0x2e0] sm:$0xff]  ;;  %v7206_v28 = vld [vmem:[%s12692_s0 + $0x3a8] sm:$0xff] }
  0xe3   :  { %5895 = vmatmul.mubr.bf16.gmra.mxu0 %v7797_v61  ;;  %619 = vst.msk [vmem:[#allocation2 + $0x1c8] sm:$0xf] %vm121_vm1, %v603_v5  ;;  %618 = vst.msk [vmem:[#allocation2 + $0x188] sm:$0xf] %vm121_vm1, %v601_v6  ;;  %v8697_v61 = vld [vmem:[%s12693_s1 + $0x2e0] ss:$8 sps:$4 sm:$0xff]  }
  0xe4   :  { %5904 = vmatprep.mubr.bf16.mxu0 %v7814_v2  ;;  %5997 = vmatpush1.bf16.msra.mxu0 %v8682_v4  ;;  %v7084_v2 = vld [vmem:[%s12692_s0 + $0xab8] sm:$0xff]  ;;  %v7083_v4 = vld [vmem:[%s12692_s0 + $0xab0] sm:$0xff]  ;;  %v8730_v46 = vld [vmem:[%s12693_s1 + $0x280] ss:$8 sps:$4 sm:$0xff]  }
  0xe5   :  { %1208 = vrot.lane.b32.xlu1 %v8241_v62, %s8982_s11  ;;  %1206 = vrot.lane.b32.xlu0 %v8240_v63, %s8982_s11  ;;  %v8703_v5 = vld [vmem:[%s12693_s1 + $0x2d0] ss:$8 sps:$4 sm:$0xff]   ;;  %v8705_v6 = vld [vmem:[%s12693_s1 + $0x2d4] ss:$8 sps:$4 sm:$0xff]   ;;  %v8263_v9 = vpack.c.bf16 %v7084_v2, %v7084_v2  ;;  %v8262_v10 = vpack.c.bf16 %v7083_v4, %v7083_v4 }
  0xe6   :  { %v656_v17 = vpop.permute.xlu1 %655  ;;  %v654_v18 = vpop.permute.xlu0 %653  ;;  %5998 = vmatprep.subr.bf16.mxu0 %v8687_v15  ;;  %v7112_v51 = vld [vmem:[%s12692_s0 + $0x2f8] sm:$0xff]  ;;  %v7111_v52 = vld [vmem:[%s12692_s0 + $0x2f0] sm:$0xff]  ;;  %v7113_v60 = vld [vmem:[%s12692_s0 + $0xae0] sm:$0xff] }
  0xe7   :  { %678 = vst.msk [vmem:[#allocation2 + $0x48] sm:$0xf] %vm187_vm2, %v656_v17  ;;  %677 = vst.msk [vmem:[#allocation2 + $0x8] sm:$0xf] %vm187_vm2, %v654_v18  ;;  %v8265_v17 = vpack.c.bf16 %v7094_v12, %v7094_v12  ;;  %v8264_v18 = vpack.c.bf16 %v7093_v13, %v7093_v13  ;;  %v8276_v2 = vpack.c.bf16 %v7113_v60, %v7113_v60  ;;  %v7189_v3 = vld [vmem:[%s12692_s0 + $0x380] sm:$0xff]  ;;  %v7127_v4 = vld [vmem:[%s12692_s0 + $0x310] sm:$0xff] }
  0xe8   :  { %5999 = vmatpush1.bf16.msra.mxu0 %v8685_v16  ;;  %v7190_v13 = vld [vmem:[%s12692_s0 + $0x388] sm:$0xff]  ;;  %v7205_v21 = vld [vmem:[%s12692_s0 + $0x3a0] sm:$0xff] }
  0xe9   :  { %1212 = vrot.lane.b32.xlu1 %v8243_v7, %s8982_s11  ;;  %1210 = vrot.lane.b32.xlu0 %v8242_v11, %s8982_s11  ;;  %v8708_v11 = vld [vmem:[%s12693_s1 + $0x2c4] ss:$8 sps:$4 sm:$0xff]  }
  0xea   :  { %v660_v30 = vpop.permute.xlu1 %659  ;;  %v658_v31 = vpop.permute.xlu0 %657  ;;  %6000 = vmatprep.subr.bf16.mxu0 %v8690_v27  ;;  %v8720_v27 = vld [vmem:[%s12693_s1 + $0x2a4] ss:$8 sps:$4 sm:$0xff]  }
  0xeb   :  { %5905 = vmatmul.mubr.bf16.gmra.mxu0 %v7813_v23  ;;  %680 = vst.msk [vmem:[#allocation2 + $0xc8] sm:$0xf] %vm187_vm2, %v660_v30  ;;  %679 = vst.msk [vmem:[#allocation2 + $0x88] sm:$0xf] %vm187_vm2, %v658_v31  ;;  %v8718_v30 = vld [vmem:[%s12693_s1 + $0x2a0] ss:$8 sps:$4 sm:$0xff]  }
  0xec   :  { %6001 = vmatpush1.bf16.msra.mxu0 %v8688_v29  ;;  %v7097_v29 = vld [vmem:[%s12692_s0 + $0xac0] sm:$0xff] }
  0xed   :  { %1216 = vrot.lane.b32.xlu1 %v8245_v19, %s8982_s11  ;;  %1214 = vrot.lane.b32.xlu0 %v8244_v20, %s8982_s11  ;;  %v8714_v19 = vld [vmem:[%s12693_s1 + $0x2b4] ss:$8 sps:$4 sm:$0xff]   ;;  %v8268_v34 = vpack.c.bf16 %v7097_v29, %v7097_v29 }
  0xee   :  { %v664_v42 = vpop.permute.xlu1 %663  ;;  %v662_v43 = vpop.permute.xlu0 %661  ;;  %6002 = vmatprep.subr.bf16.mxu0 %v8693_v39  ;;  %v7096_v20 = vld [vmem:[%s12692_s0 + $0x2d8] sm:$0xff] }
  0xef   :  { %682 = vst.msk [vmem:[#allocation2 + $0x148] sm:$0xf] %vm187_vm2, %v664_v42  ;;  %681 = vst.msk [vmem:[#allocation2 + $0x108] sm:$0xf] %vm187_vm2, %v662_v43  ;;  %v8267_v25 = vpack.c.bf16 %v7096_v20, %v7096_v20  ;;  %v8270_v42 = vpack.c.bf16 %v7099_v37, %v7099_v37  ;;  %v8732_v43 = vld [vmem:[%s12693_s1 + $0x284] ss:$8 sps:$4 sm:$0xff]  }
  0xf0   :  { %6003 = vmatpush1.bf16.msra.mxu0 %v8691_v41  ;;  %v8271_v41 = vpack.c.bf16 %v7100_v36, %v7100_v36 }
  0xf1   :  { %1220 = vrot.lane.b32.xlu1 %v8247_v32, %s8982_s11  ;;  %1218 = vrot.lane.b32.xlu0 %v8246_v35, %s8982_s11  ;;  %v8726_v35 = vld [vmem:[%s12693_s1 + $0x294] ss:$8 sps:$4 sm:$0xff]  }
  0xf2   :  { %v668_v54 = vpop.permute.xlu1 %667  ;;  %v666_v55 = vpop.permute.xlu0 %665  ;;  %6004 = vmatprep.subr.bf16.mxu0 %v8696_v50  ;;  %v8272_v50 = vpack.c.bf16 %v7109_v45, %v7109_v45 }
  0xf3   :  { %684 = vst.msk [vmem:[#allocation2 + $0x1c8] sm:$0xf] %vm187_vm2, %v668_v54  ;;  %683 = vst.msk [vmem:[#allocation2 + $0x188] sm:$0xf] %vm187_vm2, %v666_v55  ;;  %v8275_v55 = vpack.c.bf16 %v7112_v51, %v7112_v51 }
  0xf4   :  { %6005 = vmatpush2.bf16.msra.mxu0 %v8694_v53 }
  0xf5   :  { %1322 = vrot.lane.b32.xlu1 %v8257_v44, %s8980_s20  ;;  %1320 = vrot.lane.b32.xlu0 %v8256_v47, %s8980_s20  ;;  %v7110_v44 = vld [vmem:[%s12692_s0 + $0x2e8] sm:$0xff] }
  0xf6   :  { %v721_v62 = vpop.permute.xlu1 %720  ;;  %v719_v63 = vpop.permute.xlu0 %718  ;;  %6006 = vmatprep.subr.bf16.mxu0 %v8699_v58  ;;  %v8273_v49 = vpack.c.bf16 %v7110_v44, %v7110_v44  ;;  %v7125_v58 = vld [vmem:[%s12692_s0 + $0x300] sm:$0xff] }
  0xf7   :  { %743 = vst.msk [vmem:[#allocation2 + $0x48] sm:$0xf] %vm253_vm3, %v721_v62  ;;  %742 = vst.msk [vmem:[#allocation2 + $0x8] sm:$0xf] %vm253_vm3, %v719_v63  ;;  %v8280_v62 = vpack.c.bf16 %v7125_v58, %v7125_v58 }
  0xf8   :  { %6007 = vmatpush2.bf16.msra.mxu0 %v8697_v61 }
  0xf9   :  { %1326 = vrot.lane.b32.xlu1 %v8259_v56, %s8980_s20  ;;  %1324 = vrot.lane.b32.xlu0 %v8258_v57, %s8980_s20  ;;  %v8274_v56 = vpack.c.bf16 %v7111_v52, %v7111_v52  ;;  %v7126_v57 = vld [vmem:[%s12692_s0 + $0x308] sm:$0xff]  ;;  %1523 = vst.msk [vmem:[#allocation2 + $0x18] sm:$0xf] %vm55_vm0, %v8280_v62 }
  0xfa   :  { %v725_v7 = vpop.permute.xlu1 %724  ;;  %v723_v8 = vpop.permute.xlu0 %722  ;;  %6008 = vmatprep.subr.bf16.mxu0 %v8705_v6  ;;  %v8281_v61 = vpack.c.bf16 %v7126_v57, %v7126_v57  ;;  %v7115_v6 = vld [vmem:[%s12692_s0 + $0xaf0] sm:$0xff]  ;;  %v7130_v52 = vld [vmem:[%s12692_s0 + $0xb08] sm:$0xff] }
  0xfb   :  { %745 = vst.msk [vmem:[#allocation2 + $0xc8] sm:$0xf] %vm253_vm3, %v725_v7  ;;  %744 = vst.msk [vmem:[#allocation2 + $0x88] sm:$0xf] %vm253_vm3, %v723_v8  ;;  %v8312_v7 = vpack.c.bf16 %v7189_v3, %v7189_v3  ;;  %v8282_v8 = vpack.c.bf16 %v7127_v4, %v7127_v4  ;;  %v8278_v12 = vpack.c.bf16 %v7115_v6, %v7115_v6  ;;  %v7132_v3 = vld [vmem:[%s12692_s0 + $0xb18] sm:$0xff]  ;;  %v7131_v4 = vld [vmem:[%s12692_s0 + $0xb10] sm:$0xff] }
  0xfc   :  { %6009 = vmatpush2.bf16.msra.mxu0 %v8703_v5  ;;  %1524 = vst.msk [vmem:[#allocation2 + $0x58] sm:$0xf] %vm55_vm0, %v8281_v61  ;;  %v7116_v5 = vld [vmem:[%s12692_s0 + $0xaf8] sm:$0xff]  ;;  %v8285_v57 = vpack.c.bf16 %v7130_v52, %v7130_v52  ;;  %v7238_v6 = vld [vmem:[%s12692_s0 + $0x3e8] sm:$0xff] }
  0xfd   :  { %1330 = vrot.lane.b32.xlu1 %v8261_v0, %s8980_s20  ;;  %1328 = vrot.lane.b32.xlu0 %v8260_v1, %s8980_s20  ;;  %v8277_v1 = vpack.c.bf16 %v7114_v59, %v7114_v59  ;;  %1767 = vst.msk [vmem:[#allocation2 + $0x1c] sm:$0xf] %vm55_vm0, %v8312_v7  ;;  %1525 = vst.msk [vmem:[#allocation2 + $0x98] sm:$0xf] %vm55_vm0, %v8282_v8  ;;  %v8717_v7 = vld [vmem:[%s12693_s1 + $0x354] ss:$8 sps:$4 sm:$0xff]   ;;  %v8287_v8 = vpack.c.bf16 %v7132_v3, %v7132_v3 }
  0xfe   :  { %v729_v15 = vpop.permute.xlu1 %728  ;;  %v727_v16 = vpop.permute.xlu0 %726  ;;  %6010 = vmatprep.subr.bf16.mxu0 %v8708_v11  ;;  %v8279_v11 = vpack.c.bf16 %v7116_v5, %v7116_v5  ;;  %1528 = vst.msk [vmem:[#allocation2 + $0x158] sm:$0xf] %vm55_vm0, %v8285_v57  ;;  %v7144_v5 = vld [vmem:[%s12692_s0 + $0x338] sm:$0xff] }
  0xff   :  { %747 = vst.msk [vmem:[#allocation2 + $0x148] sm:$0xf] %vm253_vm3, %v729_v15  ;;  %746 = vst.msk [vmem:[#allocation2 + $0x108] sm:$0xf] %vm253_vm3, %v727_v16  ;;  %v7141_v15 = vld [vmem:[%s12692_s0 + $0x320] sm:$0xff]  ;;  %v8313_v16 = vpack.c.bf16 %v7190_v13, %v7190_v13 }
 0x100   :  { %6011 = vmatpush2.bf16.msra.mxu0 %v8706_v14  ;;  %v7142_v14 = vld [vmem:[%s12692_s0 + $0x328] sm:$0xff]  ;;  %v8288_v20 = vpack.c.bf16 %v7141_v15, %v7141_v15  ;;  %1530 = vst.msk [vmem:[#allocation2 + $0x1d8] sm:$0xf] %vm55_vm0, %v8287_v8  ;;  %v8738_v52 = vld [vmem:[%s12693_s1 + $0x314] ss:$8 sps:$4 sm:$0xff]  }
 0x101   :  { %1334 = vrot.lane.b32.xlu1 %v8263_v9, %s8980_s20  ;;  %1332 = vrot.lane.b32.xlu0 %v8262_v10, %s8980_s20  ;;  %1768 = vst.msk [vmem:[#allocation2 + $0x5c] sm:$0xf] %vm55_vm0, %v8313_v16  ;;  %v8291_v16 = vpack.c.bf16 %v7144_v5, %v7144_v5  ;;  %v7208_v5 = vld [vmem:[%s12692_s0 + $0x3b8] sm:$0xff] }
 0x102   :  { %v733_v23 = vpop.permute.xlu1 %732  ;;  %v731_v24 = vpop.permute.xlu0 %730  ;;  %6012 = vmatprep.subr.bf16.mxu0 %v8714_v19  ;;  %v8289_v19 = vpack.c.bf16 %v7142_v14, %v7142_v14  ;;  %v8715_v14 = vld [vmem:[%s12693_s1 + $0x350] ss:$8 sps:$4 sm:$0xff]  }
 0x103   :  { %749 = vst.msk [vmem:[#allocation2 + $0x1c8] sm:$0xf] %vm253_vm3, %v733_v23  ;;  %748 = vst.msk [vmem:[#allocation2 + $0x188] sm:$0xf] %vm253_vm3, %v731_v24 }
 0x104   :  { %6013 = vmatpush2.bf16.msra.mxu0 %v8712_v22  ;;  %v7143_v22 = vld [vmem:[%s12692_s0 + $0x330] sm:$0xff] }
 0x105   :  { %1387 = vrot.lane.b32.xlu1 %v8265_v17, %s8981_s10  ;;  %1385 = vrot.lane.b32.xlu0 %v8264_v18, %s8981_s10 }
 0x106   :  { %v835_v31 = vpop.permute.xlu1 %834  ;;  %v833_v32 = vpop.permute.xlu0 %832  ;;  %6014 = vmatprep.subr.bf16.mxu0 %v8720_v27  ;;  %v7157_v27 = vld [vmem:[%s12692_s0 + $0x340] sm:$0xff] }
 0x107   :  { %857 = vst.msk [vmem:[#allocation2 + $0x4c] sm:$0xf] %vm121_vm1, %v835_v31  ;;  %856 = vst.msk [vmem:[#allocation2 + $0xc] sm:$0xf] %vm121_vm1, %v833_v32  ;;  %v8296_v31 = vpack.c.bf16 %v7157_v27, %v7157_v27  ;;  %v8321_v32 = vpack.c.bf16 %v7206_v28, %v7206_v28  ;;  %v7148_v27 = vld [vmem:[%s12692_s0 + $0xb38] sm:$0xff]  ;;  %v7147_v28 = vld [vmem:[%s12692_s0 + $0xb30] sm:$0xff] }
 0x108   :  { %6015 = vmatpush2.bf16.msra.mxu0 %v8718_v30 }
 0x109   :  { %1391 = vrot.lane.b32.xlu1 %v8267_v25, %s8981_s10  ;;  %1389 = vrot.lane.b32.xlu0 %v8266_v26, %s8981_s10  ;;  %v8320_v25 = vpack.c.bf16 %v7205_v21, %v7205_v21  ;;  %v8290_v26 = vpack.c.bf16 %v7143_v22, %v7143_v22  ;;  %v8723_v21 = vld [vmem:[%s12693_s1 + $0x344] ss:$8 sps:$4 sm:$0xff]  }
 0x10a   :  { %v839_v39 = vpop.permute.xlu1 %838  ;;  %v837_v40 = vpop.permute.xlu0 %836  ;;  %6016 = vmatprep.subr.bf16.mxu0 %v8726_v35 }
 0x10b   :  { %859 = vst.msk [vmem:[#allocation2 + $0xcc] sm:$0xf] %vm121_vm1, %v839_v39  ;;  %858 = vst.msk [vmem:[#allocation2 + $0x8c] sm:$0xf] %vm121_vm1, %v837_v40  ;;  %v7128_v39 = vld [vmem:[%s12692_s0 + $0x318] sm:$0xff]  ;;  %v7173_v40 = vld [vmem:[%s12692_s0 + $0x360] sm:$0xff] }
 0x10c   :  { %6017 = vmatpush2.bf16.msra.mxu0 %v8724_v38 }
 0x10d   :  { %1395 = vrot.lane.b32.xlu1 %v8269_v33, %s8981_s10  ;;  %1393 = vrot.lane.b32.xlu0 %v8268_v34, %s8981_s10  ;;  %v7221_v33 = vld [vmem:[%s12692_s0 + $0x3c0] sm:$0xff]  ;;  %v7158_v34 = vld [vmem:[%s12692_s0 + $0x348] sm:$0xff] }
 0x10e   :  { %v843_v47 = vpop.permute.xlu1 %842  ;;  %v841_v48 = vpop.permute.xlu0 %840  ;;  %6018 = vmatprep.subr.bf16.mxu0 %v8732_v43  ;;  %v8328_v37 = vpack.c.bf16 %v7221_v33, %v7221_v33  ;;  %v8297_v38 = vpack.c.bf16 %v7158_v34, %v7158_v34  ;;  %v8727_v34 = vld [vmem:[%s12693_s1 + $0x330] ss:$8 sps:$4 sm:$0xff]  }
 0x10f   :  { %861 = vst.msk [vmem:[#allocation2 + $0x14c] sm:$0xf] %vm121_vm1, %v843_v47  ;;  %860 = vst.msk [vmem:[#allocation2 + $0x10c] sm:$0xf] %vm121_vm1, %v841_v48 }
 0x110   :  { %6019 = vmatpush2.bf16.msra.mxu0 %v8730_v46 }
 0x111   :  { %1399 = vrot.lane.b32.xlu1 %v8271_v41, %s8981_s10  ;;  %1397 = vrot.lane.b32.xlu0 %v8270_v42, %s8981_s10  ;;  %v7222_v41 = vld [vmem:[%s12692_s0 + $0x3c8] sm:$0xff]  ;;  %v8283_v42 = vpack.c.bf16 %v7128_v39, %v7128_v39 }
 0x112   :  { %v847_v53 = vpop.permute.xlu1 %846  ;;  %v845_v54 = vpop.permute.xlu0 %844  ;;  %v8329_v51 = vpack.c.bf16 %v7222_v41, %v7222_v41  ;;  %v7159_v41 = vld [vmem:[%s12692_s0 + $0x350] sm:$0xff] }
 0x113   :  { %863 = vst.msk [vmem:[#allocation2 + $0x1cc] sm:$0xf] %vm121_vm1, %v847_v53  ;;  %862 = vst.msk [vmem:[#allocation2 + $0x18c] sm:$0xf] %vm121_vm1, %v845_v54  ;;  %v7129_v53 = vld [vmem:[%s12692_s0 + $0xb00] sm:$0xff] }
 0x114   :  { %1526 = vst.msk [vmem:[#allocation2 + $0xd8] sm:$0xf] %vm55_vm0, %v8283_v42  ;;  %v7237_v54 = vld [vmem:[%s12692_s0 + $0x3e0] sm:$0xff]  ;;  %v8284_v58 = vpack.c.bf16 %v7129_v53, %v7129_v53 }
 0x115   :  { %1452 = vrot.lane.b32.xlu1 %v8273_v49, %s8982_s11  ;;  %1450 = vrot.lane.b32.xlu0 %v8272_v50, %s8982_s11  ;;  %v8700_v49 = vld [vmem:[%s12693_s1 + $0x370] ss:$8 sps:$4 sm:$0xff]   ;;  %v8304_v50 = vpack.c.bf16 %v7173_v40, %v7173_v40  ;;  %v8735_v42 = vld [vmem:[%s12693_s1 + $0x324] ss:$8 sps:$4 sm:$0xff]  }
 0x116   :  { %v900_v63 = vpop.permute.xlu1 %899  ;;  %v898_v0 = vpop.permute.xlu0 %897  ;;  %1527 = vst.msk [vmem:[#allocation2 + $0x118] sm:$0xf] %vm55_vm0, %v8284_v58  ;;  %v7160_v40 = vld [vmem:[%s12692_s0 + $0x358] sm:$0xff] }
 0x117   :  { %922 = vst.msk [vmem:[#allocation2 + $0x4c] sm:$0xf] %vm187_vm2, %v900_v63  ;;  %921 = vst.msk [vmem:[#allocation2 + $0xc] sm:$0xf] %vm187_vm2, %v898_v0  ;;  %v8709_v0 = vld [vmem:[%s12693_s1 + $0x360] ss:$8 sps:$4 sm:$0xff]  }
 0x119   :  { %1456 = vrot.lane.b32.xlu1 %v8275_v55, %s8982_s11  ;;  %1454 = vrot.lane.b32.xlu0 %v8274_v56, %s8982_s11  ;;  %v7174_v55 = vld [vmem:[%s12692_s0 + $0x368] sm:$0xff] }
 0x11a   :  { %v904_v9 = vpop.permute.xlu1 %903  ;;  %v902_v10 = vpop.permute.xlu0 %901  ;;  %v8711_v56 = vld [vmem:[%s12693_s1 + $0x364] ss:$8 sps:$4 sm:$0xff]  }
 0x11b   :  { %924 = vst.msk [vmem:[#allocation2 + $0xcc] sm:$0xf] %vm187_vm2, %v904_v9  ;;  %923 = vst.msk [vmem:[#allocation2 + $0x8c] sm:$0xf] %vm187_vm2, %v902_v10  ;;  %v8286_v9 = vpack.c.bf16 %v7131_v4, %v7131_v4  ;;  %v7223_v4 = vld [vmem:[%s12692_s0 + $0x3d0] sm:$0xff] }
 0x11d   :  { %1460 = vrot.lane.b32.xlu1 %v8277_v1, %s8982_s11  ;;  %1458 = vrot.lane.b32.xlu0 %v8276_v2, %s8982_s11  ;;  %v8336_v1 = vpack.c.bf16 %v7237_v54, %v7237_v54  ;;  %v8305_v2 = vpack.c.bf16 %v7174_v55, %v7174_v55  ;;  %1529 = vst.msk [vmem:[#allocation2 + $0x198] sm:$0xf] %vm55_vm0, %v8286_v9  ;;  %v8742_v9 = vld [vmem:[%s12693_s1 + $0x3f0] ss:$8 sps:$4 sm:$0xff]  }
 0x11e   :  { %v908_v17 = vpop.permute.xlu1 %907  ;;  %v906_v18 = vpop.permute.xlu0 %905 }
 0x11f   :  { %926 = vst.msk [vmem:[#allocation2 + $0x14c] sm:$0xf] %vm187_vm2, %v908_v17  ;;  %925 = vst.msk [vmem:[#allocation2 + $0x10c] sm:$0xf] %vm187_vm2, %v906_v18  ;;  %v8337_v17 = vpack.c.bf16 %v7238_v6, %v7238_v6  ;;  %v8744_v6 = vld [vmem:[%s12693_s1 + $0x3f4] ss:$8 sps:$4 sm:$0xff]  }
 0x121   :  { %1464 = vrot.lane.b32.xlu1 %v8279_v11, %s8982_s11  ;;  %1462 = vrot.lane.b32.xlu0 %v8278_v12, %s8982_s11 }
 0x122   :  { %v912_v23 = vpop.permute.xlu1 %911  ;;  %v910_v24 = vpop.permute.xlu0 %909 }
 0x123   :  { %928 = vst.msk [vmem:[#allocation2 + $0x1cc] sm:$0xf] %vm187_vm2, %v912_v23  ;;  %927 = vst.msk [vmem:[#allocation2 + $0x18c] sm:$0xf] %vm187_vm2, %v910_v24  ;;  %v8721_v24 = vld [vmem:[%s12693_s1 + $0x340] ss:$8 sps:$4 sm:$0xff]  }
 0x125   :  { %1566 = vrot.lane.b32.xlu1 %v8289_v19, %s8980_s20  ;;  %1564 = vrot.lane.b32.xlu0 %v8288_v20, %s8980_s20  ;;  %v7146_v19 = vld [vmem:[%s12692_s0 + $0xb28] sm:$0xff]  ;;  %v7145_v20 = vld [vmem:[%s12692_s0 + $0xb20] sm:$0xff] }
 0x126   :  { %v965_v29 = vpop.permute.xlu1 %964  ;;  %v963_v30 = vpop.permute.xlu0 %962 }
 0x127   :  { %987 = vst.msk [vmem:[#allocation2 + $0x4c] sm:$0xf] %vm253_vm3, %v965_v29  ;;  %986 = vst.msk [vmem:[#allocation2 + $0xc] sm:$0xf] %vm253_vm3, %v963_v30  ;;  %v8729_v29 = vld [vmem:[%s12693_s1 + $0x334] ss:$8 sps:$4 sm:$0xff]  }
 0x129   :  { %1808 = vrot.lane.b32.xlu1 %v8320_v25, %s8980_s20  ;;  %1568 = vrot.lane.b32.xlu0 %v8290_v26, %s8980_s20  ;;  %v8293_v25 = vpack.c.bf16 %v7146_v19, %v7146_v19  ;;  %v8292_v26 = vpack.c.bf16 %v7145_v20, %v7145_v20  ;;  %v8745_v19 = vld [vmem:[%s12693_s1 + $0x3e0] ss:$8 sps:$4 sm:$0xff]  }
 0x12a   :  { %v969_v35 = vpop.permute.xlu1 %968  ;;  %v967_v36 = vpop.permute.xlu0 %966 }
 0x12b   :  { %989 = vst.msk [vmem:[#allocation2 + $0xcc] sm:$0xf] %vm253_vm3, %v969_v35  ;;  %988 = vst.msk [vmem:[#allocation2 + $0x8c] sm:$0xf] %vm253_vm3, %v967_v36  ;;  %v8295_v36 = vpack.c.bf16 %v7148_v27, %v7148_v27  ;;  %v8768_v27 = vld [vmem:[%s12693_s1 + $0x474] ss:$8 sps:$4 sm:$0xff]  }
 0x12c   :  { %6134 = vmatprep.subr.bf16.mxu0 %v8768_v27  ;;  %v7253_v27 = vld [vmem:[%s12692_s0 + $0x400] sm:$0xff] }
 0x12d   :  { %1629 = vrot.lane.b32.xlu1 %v8296_v31, %s8981_s10  ;;  %1810 = vrot.lane.b32.xlu0 %v8321_v32, %s8980_s20 }
 0x12e   :  { %v973_v43 = vpop.permute.xlu1 %972  ;;  %v971_v44 = vpop.permute.xlu0 %970  ;;  %v3923_v45 = vld [vmem:[#allocation2 + $0x8] sm:$0xff] }
 0x12f   :  { %v3931_v46 = vld [vmem:[#allocation2 + $0x48] sm:$0xff]  ;;  %991 = vst.msk [vmem:[#allocation2 + $0x14c] sm:$0xf] %vm253_vm3, %v973_v43  ;;  %990 = vst.msk [vmem:[#allocation2 + $0x10c] sm:$0xf] %vm253_vm3, %v971_v44 }
 0x130   :  { %v7767_v47 = vcombine.low %v3923_v45, %v3931_v46  ;;  %v7768_v48 = vcombine.high %v3923_v45, %v3931_v46  ;;  %v8733_v46 = vld [vmem:[%s12693_s1 + $0x320] ss:$8 sps:$4 sm:$0xff]  }
 0x131   :  { %1873 = vrot.lane.b32.xlu1 %v8328_v37, %s8981_s10  ;;  %1631 = vrot.lane.b32.xlu0 %v8297_v38, %s8981_s10  ;;  %v8294_v37 = vpack.c.bf16 %v7147_v28, %v7147_v28  ;;  %v7191_v38 = vld [vmem:[%s12692_s0 + $0x390] sm:$0xff] }
 0x132   :  { %5947 = vmatprep.mubr.bf16.mxu1 %v7768_v48  ;;  %v977_v59 = vpop.permute.xlu1 %976  ;;  %v975_v60 = vpop.permute.xlu0 %974  ;;  %v3939_v61 = vld [vmem:[#allocation2 + $0x88] sm:$0xff]  ;;  %v8314_v43 = vpack.c.bf16 %v7191_v38, %v7191_v38  ;;  %v8298_v48 = vpack.c.bf16 %v7159_v41, %v7159_v41  ;;  %v7225_v41 = vld [vmem:[%s12692_s0 + $0xbc0] sm:$0xff] }
 0x133   :  { %5948 = vmatmul.mubr.bf16.vlgmr.msra.gmra.mxu1 %v7767_v47  ;;  %v3947_v62 = vld [vmem:[#allocation2 + $0xc8] sm:$0xff]  ;;  %993 = vst.msk [vmem:[#allocation2 + $0x1cc] sm:$0xf] %vm253_vm3, %v977_v59  ;;  %992 = vst.msk [vmem:[#allocation2 + $0x18c] sm:$0xf] %vm253_vm3, %v975_v60  ;;  %v8299_v47 = vpack.c.bf16 %v7160_v40, %v7160_v40  ;;  %v7207_v60 = vld [vmem:[%s12692_s0 + $0x3b0] sm:$0xff] }
 0x134   :  { %v7784_v63 = vcombine.high %v3939_v61, %v3947_v62  ;;  %6062 = vmatpush1.bf16.msra.mxu1 %v8700_v49  ;;  %v7783_v15 = vcombine.low %v3939_v61, %v3947_v62  ;;  %1769 = vst.msk [vmem:[#allocation2 + $0x9c] sm:$0xf] %vm55_vm0, %v8314_v43  ;;  %v7192_v49 = vld [vmem:[%s12692_s0 + $0x398] sm:$0xff]  ;;  %v7163_v61 = vld [vmem:[%s12692_s0 + $0xb50] sm:$0xff]  ;;  %v8741_v62 = vld [vmem:[%s12693_s1 + $0x304] ss:$8 sps:$4 sm:$0xff]  }
 0x135   :  { %1694 = vrot.lane.b32.xlu1 %v8304_v50, %s8982_s11  ;;  %1875 = vrot.lane.b32.xlu0 %v8329_v51, %s8981_s10  ;;  %v7162_v50 = vld [vmem:[%s12692_s0 + $0xb48] sm:$0xff]  ;;  %v7161_v51 = vld [vmem:[%s12692_s0 + $0xb40] sm:$0xff]  ;;  %v8315_v53 = vpack.c.bf16 %v7192_v49, %v7192_v49  ;;  %v8302_v3 = vpack.c.bf16 %v7163_v61, %v7163_v61 }
 0x136   :  { %5957 = vmatprep.mubr.bf16.mxu1 %v7784_v63  ;;  %6063 = vmatprep.subr.bf16.mxu1 %v8711_v56  ;;  %v1079_v10 = vpop.permute.xlu1 %1078  ;;  %v1077_v11 = vpop.permute.xlu0 %1076  ;;  %v3955_v12 = vld [vmem:[#allocation2 + $0x108] sm:$0xff]  ;;  %v8736_v56 = vld [vmem:[%s12693_s1 + $0x310] ss:$8 sps:$4 sm:$0xff]   ;;  %v8301_v58 = vpack.c.bf16 %v7162_v50, %v7162_v50  ;;  %v8300_v59 = vpack.c.bf16 %v7161_v51, %v7161_v51  ;;  %v8756_v43 = vld [vmem:[%s12693_s1 + $0x3b4] ss:$8 sps:$4 sm:$0xff]  }
 0x137   :  { %v3963_v13 = vld [vmem:[#allocation2 + $0x148] sm:$0xff]  ;;  %1101 = vst.msk [vmem:[#allocation2 + $0x50] sm:$0xf] %vm121_vm1, %v1079_v10  ;;  %1100 = vst.msk [vmem:[#allocation2 + $0x10] sm:$0xf] %vm121_vm1, %v1077_v11  ;;  %v8330_v10 = vpack.c.bf16 %v7223_v4, %v7223_v4  ;;  %v8323_v11 = vpack.c.bf16 %v7208_v5, %v7208_v5  ;;  %v7195_v49 = vld [vmem:[%s12692_s0 + $0xb90] sm:$0xff] }
 0x138   :  { %6064 = vmatpush1.bf16.msra.mxu1 %v8709_v0  ;;  %v7800_v18 = vcombine.high %v3955_v12, %v3963_v13  ;;  %v7799_v35 = vcombine.low %v3955_v12, %v3963_v13  ;;  %1770 = vst.msk [vmem:[#allocation2 + $0xdc] sm:$0xf] %vm55_vm0, %v8315_v53  ;;  %v7193_v12 = vld [vmem:[%s12692_s0 + $0xb80] sm:$0xff]  ;;  %v7175_v13 = vld [vmem:[%s12692_s0 + $0x370] sm:$0xff]  ;;  %v7226_v51 = vld [vmem:[%s12692_s0 + $0xbc8] sm:$0xff]  ;;  %v8318_v53 = vpack.c.bf16 %v7195_v49, %v7195_v49 }
 0x139   :  { %1938 = vrot.lane.b32.xlu1 %v8336_v1, %s8982_s11  ;;  %1696 = vrot.lane.b32.xlu0 %v8305_v2, %s8982_s11  ;;  %v8739_v1 = vld [vmem:[%s12693_s1 + $0x300] ss:$8 sps:$4 sm:$0xff]   ;;  %v8322_v2 = vpack.c.bf16 %v7207_v60, %v7207_v60  ;;  %v8306_v20 = vpack.c.bf16 %v7175_v13, %v7175_v13  ;;  %v7211_v5 = vld [vmem:[%s12692_s0 + $0xbb0] sm:$0xff] }
 0x13a   :  { %6065 = vmatprep.subr.bf16.mxu1 %v8717_v7  ;;  %v1083_v22 = vpop.permute.xlu1 %1082  ;;  %v1081_v23 = vpop.permute.xlu0 %1080  ;;  %v3971_v32 = vld [vmem:[#allocation2 + $0x188] sm:$0xff]  ;;  %v7177_v50 = vld [vmem:[%s12692_s0 + $0xb60] sm:$0xff]  ;;  %1773 = vst.msk [vmem:[#allocation2 + $0x19c] sm:$0xf] %vm55_vm0, %v8318_v53  ;;  %v7164_v13 = vld [vmem:[%s12692_s0 + $0xb58] sm:$0xff] }
 0x13b   :  { %5958 = vmatmul.mubr.bf16.gmra.mxu1 %v7783_v15  ;;  %1103 = vst.msk [vmem:[#allocation2 + $0xd0] sm:$0xf] %vm121_vm1, %v1083_v22  ;;  %1102 = vst.msk [vmem:[#allocation2 + $0x90] sm:$0xf] %vm121_vm1, %v1081_v23  ;;  %v3979_v33 = vld [vmem:[#allocation2 + $0x1c8] sm:$0xff]  ;;  %v7239_v22 = vld [vmem:[%s12692_s0 + $0x3f0] sm:$0xff] }
 0x13c   :  { %5967 = vmatprep.mubr.bf16.mxu1 %v7800_v18  ;;  %6066 = vmatpush1.bf16.msra.mxu1 %v8715_v14  ;;  %v7816_v39 = vcombine.high %v3971_v32, %v3979_v33  ;;  %v7815_v57 = vcombine.low %v3971_v32, %v3979_v33  ;;  %v7224_v14 = vld [vmem:[%s12692_s0 + $0x3d8] sm:$0xff]  ;;  %v8747_v15 = vld [vmem:[%s12693_s1 + $0x3e4] ss:$8 sps:$4 sm:$0xff]   ;;  %v8751_v38 = vld [vmem:[%s12693_s1 + $0x3c0] ss:$8 sps:$4 sm:$0xff]  }
 0x13d   :  { %1570 = vrot.lane.b32.xlu1 %v8291_v16, %s8980_s20  ;;  %1940 = vrot.lane.b32.xlu0 %v8337_v17, %s8982_s11  ;;  %v8316_v16 = vpack.c.bf16 %v7193_v12, %v7193_v12  ;;  %v7194_v23 = vld [vmem:[%s12692_s0 + $0xb88] sm:$0xff]  ;;  %v7209_v33 = vld [vmem:[%s12692_s0 + $0xba0] sm:$0xff] }
 0x13e   :  { %6067 = vmatprep.subr.bf16.mxu1 %v8723_v21  ;;  %v1087_v30 = vpop.permute.xlu1 %1086  ;;  %v1085_v31 = vpop.permute.xlu0 %1084  ;;  %v8331_v21 = vpack.c.bf16 %v7224_v14, %v7224_v14  ;;  %v7241_v60 = vld [vmem:[%s12692_s0 + $0xbe0] sm:$0xff]  ;;  %v7178_v61 = vld [vmem:[%s12692_s0 + $0xb68] sm:$0xff]  ;;  %v7212_v14 = vld [vmem:[%s12692_s0 + $0xbb8] sm:$0xff] }
 0x13f   :  { %1105 = vst.msk [vmem:[#allocation2 + $0x150] sm:$0xf] %vm121_vm1, %v1087_v30  ;;  %1104 = vst.msk [vmem:[#allocation2 + $0x110] sm:$0xf] %vm121_vm1, %v1085_v31  ;;  %v8748_v30 = vld [vmem:[%s12693_s1 + $0x3d0] ss:$8 sps:$4 sm:$0xff]   ;;  %v8338_v31 = vpack.c.bf16 %v7239_v22, %v7239_v22  ;;  %v8309_v4 = vpack.c.bf16 %v7178_v61, %v7178_v61 }
 0x140   :  { %6068 = vmatpush1.bf16.msra.mxu1 %v8721_v24  ;;  %1771 = vst.msk [vmem:[#allocation2 + $0x11c] sm:$0xf] %vm55_vm0, %v8316_v16  ;;  %v7176_v24 = vld [vmem:[%s12692_s0 + $0x378] sm:$0xff]  ;;  %v7333_v53 = vld [vmem:[%s12692_s0 + $0x4a0] sm:$0xff] }
 0x141   :  { %1574 = vrot.lane.b32.xlu1 %v8293_v25, %s8980_s20  ;;  %1572 = vrot.lane.b32.xlu0 %v8292_v26, %s8980_s20  ;;  %v8750_v25 = vld [vmem:[%s12693_s1 + $0x3d4] ss:$8 sps:$4 sm:$0xff]   ;;  %v8317_v26 = vpack.c.bf16 %v7194_v23, %v7194_v23  ;;  %v8307_v32 = vpack.c.bf16 %v7176_v24, %v7176_v24 }
 0x142   :  { %6069 = vmatprep.subr.bf16.mxu1 %v8729_v29  ;;  %v1091_v44 = vpop.permute.xlu1 %1090  ;;  %v1089_v45 = vpop.permute.xlu0 %1088 }
 0x143   :  { %5968 = vmatmul.mubr.bf16.gmra.mxu1 %v7799_v35  ;;  %1107 = vst.msk [vmem:[#allocation2 + $0x1d0] sm:$0xf] %vm121_vm1, %v1091_v44  ;;  %1106 = vst.msk [vmem:[#allocation2 + $0x190] sm:$0xf] %vm121_vm1, %v1089_v45  ;;  %v8753_v35 = vld [vmem:[%s12693_s1 + $0x3c4] ss:$8 sps:$4 sm:$0xff]  }
 0x144   :  { %5977 = vmatprep.mubr.bf16.mxu1 %v7816_v39  ;;  %6070 = vmatpush1.bf16.msra.mxu1 %v8727_v34  ;;  %1772 = vst.msk [vmem:[#allocation2 + $0x15c] sm:$0xf] %vm55_vm0, %v8317_v26  ;;  %v7240_v34 = vld [vmem:[%s12692_s0 + $0x3f8] sm:$0xff]  ;;  %v8324_v39 = vpack.c.bf16 %v7209_v33, %v7209_v33  ;;  %v7254_v26 = vld [vmem:[%s12692_s0 + $0x408] sm:$0xff] }
 0x145   :  { %1578 = vrot.lane.b32.xlu1 %v8295_v36, %s8980_s20  ;;  %1576 = vrot.lane.b32.xlu0 %v8294_v37, %s8980_s20  ;;  %v8339_v40 = vpack.c.bf16 %v7240_v34, %v7240_v34 }
 0x146   :  { %6071 = vmatprep.subr.bf16.mxu1 %v8735_v42  ;;  %v1144_v54 = vpop.permute.xlu1 %1143  ;;  %v7210_v42 = vld [vmem:[%s12692_s0 + $0xba8] sm:$0xff] }
 0x147   :  { %v1142_v55 = vpop.permute.xlu0 %1141  ;;  %1166 = vst.msk [vmem:[#allocation2 + $0x50] sm:$0xf] %vm187_vm2, %v1144_v54 }
 0x148   :  { %1165 = vst.msk [vmem:[#allocation2 + $0x10] sm:$0xf] %vm187_vm2, %v1142_v55  ;;  %6072 = vmatpush1.bf16.msra.mxu1 %v8733_v46  ;;  %v8754_v46 = vld [vmem:[%s12693_s1 + $0x3b0] ss:$8 sps:$4 sm:$0xff]  }
 0x149   :  { %1635 = vrot.lane.b32.xlu1 %v8299_v47, %s8981_s10  ;;  %1633 = vrot.lane.b32.xlu0 %v8298_v48, %s8981_s10  ;;  %v8332_v47 = vpack.c.bf16 %v7225_v41, %v7225_v41  ;;  %v8325_v48 = vpack.c.bf16 %v7210_v42, %v7210_v42 }
 0x14a   :  { %6073 = vmatprep.subr.bf16.mxu1 %v8738_v52  ;;  %v1148_v63 = vpop.permute.xlu1 %1147  ;;  %v8759_v52 = vld [vmem:[%s12693_s1 + $0x3a4] ss:$8 sps:$4 sm:$0xff]  }
 0x14b   :  { %v1146_v0 = vpop.permute.xlu0 %1145  ;;  %5978 = vmatmul.mubr.bf16.gmra.mxu1 %v7815_v57  ;;  %1168 = vst.msk [vmem:[#allocation2 + $0xd0] sm:$0xf] %vm187_vm2, %v1148_v63  ;;  %v8308_v57 = vpack.c.bf16 %v7177_v50, %v7177_v50 }
 0x14c   :  { %1167 = vst.msk [vmem:[#allocation2 + $0x90] sm:$0xf] %vm187_vm2, %v1146_v0  ;;  %6074 = vmatpush1.bf16.msra.mxu1 %v8736_v56  ;;  %v8757_v56 = vld [vmem:[%s12693_s1 + $0x3a0] ss:$8 sps:$4 sm:$0xff]  }
 0x14d   :  { %1639 = vrot.lane.b32.xlu1 %v8301_v58, %s8981_s10  ;;  %1637 = vrot.lane.b32.xlu0 %v8300_v59, %s8981_s10  ;;  %v8333_v58 = vpack.c.bf16 %v7226_v51, %v7226_v51  ;;  %v7196_v59 = vld [vmem:[%s12692_s0 + $0xb98] sm:$0xff] }
 0x14e   :  { %6075 = vmatprep.subr.bf16.mxu1 %v8741_v62  ;;  %v8762_v62 = vld [vmem:[%s12693_s1 + $0x394] ss:$8 sps:$4 sm:$0xff]   ;;  %v8319_v63 = vpack.c.bf16 %v7196_v59, %v7196_v59  ;;  %v7285_v59 = vld [vmem:[%s12692_s0 + $0x440] sm:$0xff] }
 0x14f   :  { %v1152_v7 = vpop.permute.xlu1 %1151  ;;  %v1150_v8 = vpop.permute.xlu0 %1149 }
 0x150   :  { %1170 = vst.msk [vmem:[#allocation2 + $0x150] sm:$0xf] %vm187_vm2, %v1152_v7  ;;  %1169 = vst.msk [vmem:[#allocation2 + $0x110] sm:$0xf] %vm187_vm2, %v1150_v8  ;;  %6076 = vmatpush1.bf16.msra.mxu1 %v8739_v1  ;;  %v8765_v7 = vld [vmem:[%s12693_s1 + $0x384] ss:$8 sps:$4 sm:$0xff]  }
 0x151   :  { %1812 = vrot.lane.b32.xlu1 %v8322_v2, %s8980_s20  ;;  %1641 = vrot.lane.b32.xlu0 %v8302_v3, %s8981_s10  ;;  %v8760_v2 = vld [vmem:[%s12693_s1 + $0x390] ss:$8 sps:$4 sm:$0xff]   ;;  %1774 = vst.msk [vmem:[#allocation2 + $0x1dc] sm:$0xf] %vm55_vm0, %v8319_v63  ;;  %v8340_v3 = vpack.c.bf16 %v7241_v60, %v7241_v60  ;;  %v8360_v63 = vpack.c.bf16 %v7285_v59, %v7285_v59 }
 0x152   :  { %6077 = vmatprep.subr.bf16.mxu1 %v8744_v6  ;;  %v7242_v6 = vld [vmem:[%s12692_s0 + $0xbe8] sm:$0xff] }
 0x153   :  { %v1156_v17 = vpop.permute.xlu1 %1155  ;;  %v1154_v18 = vpop.permute.xlu0 %1153  ;;  %v8341_v12 = vpack.c.bf16 %v7242_v6, %v7242_v6  ;;  %v7382_v6 = vld [vmem:[%s12692_s0 + $0x508] sm:$0xff] }
 0x154   :  { %1172 = vst.msk [vmem:[#allocation2 + $0x1d0] sm:$0xf] %vm187_vm2, %v1156_v17  ;;  %1171 = vst.msk [vmem:[#allocation2 + $0x190] sm:$0xf] %vm187_vm2, %v1154_v18  ;;  %6078 = vmatpush2.bf16.msra.mxu1 %v8742_v9  ;;  %v8303_v18 = vpack.c.bf16 %v7164_v13, %v7164_v13 }
 0x155   :  { %1877 = vrot.lane.b32.xlu1 %v8330_v10, %s8981_s10  ;;  %1814 = vrot.lane.b32.xlu0 %v8323_v11, %s8980_s20  ;;  %v8763_v10 = vld [vmem:[%s12693_s1 + $0x380] ss:$8 sps:$4 sm:$0xff]   ;;  %v8326_v11 = vpack.c.bf16 %v7211_v5, %v7211_v5 }
 0x156   :  { %6079 = vmatprep.subr.bf16.mxu1 %v8747_v15  ;;  %v8789_v15 = vld [vmem:[%s12693_s1 + $0x574] ss:$8 sps:$4 sm:$0xff]  }
 0x157   :  { %v1209_v28 = vpop.permute.xlu1 %1208  ;;  %v1207_v29 = vpop.permute.xlu0 %1206 }
 0x158   :  { %1231 = vst.msk [vmem:[#allocation2 + $0x50] sm:$0xf] %vm253_vm3, %v1209_v28  ;;  %1230 = vst.msk [vmem:[#allocation2 + $0x10] sm:$0xf] %vm253_vm3, %v1207_v29  ;;  %6080 = vmatpush2.bf16.msra.mxu1 %v8745_v19  ;;  %v8327_v19 = vpack.c.bf16 %v7212_v14, %v7212_v14  ;;  %v7180_v28 = vld [vmem:[%s12692_s0 + $0xb78] sm:$0xff]  ;;  %v7179_v29 = vld [vmem:[%s12692_s0 + $0xb70] sm:$0xff] }
 0x159   :  { %1698 = vrot.lane.b32.xlu1 %v8306_v20, %s8982_s11  ;;  %1879 = vrot.lane.b32.xlu0 %v8331_v21, %s8981_s10  ;;  %v7228_v20 = vld [vmem:[%s12692_s0 + $0xbd8] sm:$0xff]  ;;  %v7227_v21 = vld [vmem:[%s12692_s0 + $0xbd0] sm:$0xff]  ;;  %v8311_v34 = vpack.c.bf16 %v7180_v28, %v7180_v28 }
 0x15a   :  { %6081 = vmatprep.subr.bf16.mxu1 %v8750_v25  ;;  %v8335_v24 = vpack.c.bf16 %v7228_v20, %v7228_v20  ;;  %v8334_v25 = vpack.c.bf16 %v7227_v21, %v7227_v21  ;;  %v7446_v21 = vld [vmem:[%s12692_s0 + $0x588] sm:$0xff] }
 0x15b   :  { %v1213_v36 = vpop.permute.xlu1 %1212  ;;  %v1211_v37 = vpop.permute.xlu0 %1210 }
 0x15c   :  { %1233 = vst.msk [vmem:[#allocation2 + $0xd0] sm:$0xf] %vm253_vm3, %v1213_v36  ;;  %1232 = vst.msk [vmem:[#allocation2 + $0x90] sm:$0xf] %vm253_vm3, %v1211_v37  ;;  %6082 = vmatpush2.bf16.msra.mxu1 %v8748_v30  ;;  %v8345_v30 = vpack.c.bf16 %v7254_v26, %v7254_v26  ;;  %v7318_v36 = vld [vmem:[%s12692_s0 + $0x488] sm:$0xff]  ;;  %v7317_v37 = vld [vmem:[%s12692_s0 + $0x480] sm:$0xff]  ;;  %v8441_v26 = vpack.c.bf16 %v7446_v21, %v7446_v21 }
 0x15d   :  { %1942 = vrot.lane.b32.xlu1 %v8338_v31, %s8982_s11  ;;  %1700 = vrot.lane.b32.xlu0 %v8307_v32, %s8982_s11  ;;  %v8344_v31 = vpack.c.bf16 %v7253_v27, %v7253_v27  ;;  %v8376_v41 = vpack.c.bf16 %v7317_v37, %v7317_v37  ;;  %v7397_v37 = vld [vmem:[%s12692_s0 + $0x520] sm:$0xff]  ;;  %v8784_v21 = vld [vmem:[%s12693_s1 + $0x410] ss:$8 sps:$4 sm:$0xff]  }
 0x15e   :  { %6083 = vmatprep.subr.bf16.mxu1 %v8753_v35  ;;  %2012 = vst.msk [vmem:[#allocation2 + $0x60] sm:$0xf] %vm55_vm0, %v8345_v30  ;;  %v8310_v35 = vpack.c.bf16 %v7179_v29, %v7179_v29  ;;  %2744 = vst.msk [vmem:[#allocation2 + $0x6c] sm:$0xf] %vm55_vm0, %v8441_v26  ;;  %v7319_v26 = vld [vmem:[%s12692_s0 + $0x490] sm:$0xff] }
 0x15f   :  { %v1217_v44 = vpop.permute.xlu1 %1216  ;;  %v1215_v45 = vpop.permute.xlu0 %1214  ;;  %2011 = vst.msk [vmem:[#allocation2 + $0x20] sm:$0xf] %vm55_vm0, %v8344_v31  ;;  %2255 = vst.msk [vmem:[#allocation2 + $0x24] sm:$0xf] %vm55_vm0, %v8376_v41 }
 0x160   :  { %1235 = vst.msk [vmem:[#allocation2 + $0x150] sm:$0xf] %vm253_vm3, %v1217_v44  ;;  %1234 = vst.msk [vmem:[#allocation2 + $0x110] sm:$0xf] %vm253_vm3, %v1215_v45  ;;  %6084 = vmatpush2.bf16.msra.mxu1 %v8751_v38  ;;  %v7244_v38 = vld [vmem:[%s12692_s0 + $0xbf8] sm:$0xff] }
 0x161   :  { %1816 = vrot.lane.b32.xlu1 %v8324_v39, %s8980_s20  ;;  %1944 = vrot.lane.b32.xlu0 %v8339_v40, %s8982_s11  ;;  %v7243_v39 = vld [vmem:[%s12692_s0 + $0xbf0] sm:$0xff]  ;;  %v8377_v40 = vpack.c.bf16 %v7318_v36, %v7318_v36  ;;  %v8343_v44 = vpack.c.bf16 %v7244_v38, %v7244_v38  ;;  %v7398_v36 = vld [vmem:[%s12692_s0 + $0x528] sm:$0xff] }
 0x162   :  { %6085 = vmatprep.subr.bf16.mxu1 %v8756_v43  ;;  %v8342_v45 = vpack.c.bf16 %v7243_v39, %v7243_v39  ;;  %v8774_v38 = vld [vmem:[%s12693_s1 + $0x454] ss:$8 sps:$4 sm:$0xff]  }
 0x163   :  { %v1221_v54 = vpop.permute.xlu1 %1220  ;;  %v1219_v55 = vpop.permute.xlu0 %1218  ;;  %2256 = vst.msk [vmem:[#allocation2 + $0x64] sm:$0xf] %vm55_vm0, %v8377_v40 }
 0x164   :  { %1237 = vst.msk [vmem:[#allocation2 + $0x1d0] sm:$0xf] %vm253_vm3, %v1221_v54  ;;  %1236 = vst.msk [vmem:[#allocation2 + $0x190] sm:$0xf] %vm253_vm3, %v1219_v55  ;;  %6086 = vmatpush2.bf16.msra.mxu1 %v8754_v46  ;;  %v7270_v46 = vld [vmem:[%s12692_s0 + $0x428] sm:$0xff] }
 0x165   :  { %1881 = vrot.lane.b32.xlu1 %v8332_v47, %s8981_s10  ;;  %1818 = vrot.lane.b32.xlu0 %v8325_v48, %s8980_s20  ;;  %v7269_v47 = vld [vmem:[%s12692_s0 + $0x420] sm:$0xff]  ;;  %v8353_v50 = vpack.c.bf16 %v7270_v46, %v7270_v46  ;;  %v8416_v46 = vpack.c.bf16 %v7397_v37, %v7397_v37  ;;  %v7272_v37 = vld [vmem:[%s12692_s0 + $0x438] sm:$0xff] }
 0x166   :  { %6087 = vmatprep.subr.bf16.mxu1 %v8759_v52  ;;  %v8352_v51 = vpack.c.bf16 %v7269_v47, %v7269_v47  ;;  %v7334_v52 = vld [vmem:[%s12692_s0 + $0x4a8] sm:$0xff] }
 0x167   :  { %v1323_v0 = vpop.permute.xlu1 %1322  ;;  %v1321_v1 = vpop.permute.xlu0 %1320 }
 0x168   :  { %1345 = vst.msk [vmem:[#allocation2 + $0x54] sm:$0xf] %vm121_vm1, %v1323_v0  ;;  %1344 = vst.msk [vmem:[#allocation2 + $0x14] sm:$0xf] %vm121_vm1, %v1321_v1  ;;  %6088 = vmatpush2.bf16.msra.mxu1 %v8757_v56  ;;  %v8385_v56 = vpack.c.bf16 %v7334_v52, %v7334_v52  ;;  %v7350_v0 = vld [vmem:[%s12692_s0 + $0x4c8] sm:$0xff]  ;;  %v7349_v1 = vld [vmem:[%s12692_s0 + $0x4c0] sm:$0xff] }
 0x169   :  { %1702 = vrot.lane.b32.xlu1 %v8308_v57, %s8982_s11  ;;  %1883 = vrot.lane.b32.xlu0 %v8333_v58, %s8981_s10  ;;  %v8384_v57 = vpack.c.bf16 %v7333_v53, %v7333_v53  ;;  %v7286_v58 = vld [vmem:[%s12692_s0 + $0x448] sm:$0xff]  ;;  %v8392_v5 = vpack.c.bf16 %v7349_v1, %v7349_v1 }
 0x16a   :  { %6089 = vmatprep.subr.bf16.mxu1 %v8762_v62  ;;  %v8361_v62 = vpack.c.bf16 %v7286_v58, %v7286_v58  ;;  %v8775_v53 = vld [vmem:[%s12693_s1 + $0x440] ss:$8 sps:$4 sm:$0xff]   ;;  %v8780_v58 = vld [vmem:[%s12693_s1 + $0x434] ss:$8 sps:$4 sm:$0xff]  }
 0x16b   :  { %v1327_v8 = vpop.permute.xlu1 %1326  ;;  %v1325_v9 = vpop.permute.xlu0 %1324 }
 0x16c   :  { %1347 = vst.msk [vmem:[#allocation2 + $0xd4] sm:$0xf] %vm121_vm1, %v1327_v8  ;;  %1346 = vst.msk [vmem:[#allocation2 + $0x94] sm:$0xf] %vm121_vm1, %v1325_v9  ;;  %6090 = vmatpush2.bf16.msra.mxu1 %v8760_v2  ;;  %v7302_v8 = vld [vmem:[%s12692_s0 + $0x468] sm:$0xff]  ;;  %v7301_v9 = vld [vmem:[%s12692_s0 + $0x460] sm:$0xff] }
 0x16d   :  { %1946 = vrot.lane.b32.xlu1 %v8340_v3, %s8982_s11  ;;  %1704 = vrot.lane.b32.xlu0 %v8309_v4, %s8982_s11  ;;  %v8393_v4 = vpack.c.bf16 %v7350_v0, %v7350_v0  ;;  %v8368_v20 = vpack.c.bf16 %v7301_v9, %v7301_v9  ;;  %v8781_v9 = vld [vmem:[%s12693_s1 + $0x420] ss:$8 sps:$4 sm:$0xff]  }
 0x16e   :  { %6091 = vmatprep.subr.bf16.mxu1 %v8765_v7  ;;  %v7381_v7 = vld [vmem:[%s12692_s0 + $0x500] sm:$0xff] }
 0x16f   :  { %v1331_v16 = vpop.permute.xlu1 %1330  ;;  %v1329_v17 = vpop.permute.xlu0 %1328 }
 0x170   :  { %1349 = vst.msk [vmem:[#allocation2 + $0x154] sm:$0xf] %vm121_vm1, %v1331_v16  ;;  %1348 = vst.msk [vmem:[#allocation2 + $0x114] sm:$0xf] %vm121_vm1, %v1329_v17  ;;  %6092 = vmatpush2.bf16.msra.mxu1 %v8763_v10  ;;  %v8409_v10 = vpack.c.bf16 %v7382_v6, %v7382_v6  ;;  %v8783_v6 = vld [vmem:[%s12693_s1 + $0x424] ss:$8 sps:$4 sm:$0xff]  }
 0x171   :  { %1820 = vrot.lane.b32.xlu1 %v8326_v11, %s8980_s20  ;;  %1948 = vrot.lane.b32.xlu0 %v8341_v12, %s8982_s11  ;;  %v8408_v11 = vpack.c.bf16 %v7381_v7, %v7381_v7 }
 0x172   :  { %6207 = vmatprep.subr.bf16.mxu1 %v8789_v15  ;;  %2500 = vst.msk [vmem:[#allocation2 + $0x68] sm:$0xf] %vm55_vm0, %v8409_v10 }
 0x173   :  { %v1335_v22 = vpop.permute.xlu1 %1334  ;;  %v1333_v23 = vpop.permute.xlu0 %1332  ;;  %2499 = vst.msk [vmem:[#allocation2 + $0x28] sm:$0xf] %vm55_vm0, %v8408_v11 }
 0x174   :  { %1351 = vst.msk [vmem:[#allocation2 + $0x1d4] sm:$0xf] %vm121_vm1, %v1335_v22  ;;  %1350 = vst.msk [vmem:[#allocation2 + $0x194] sm:$0xf] %vm121_vm1, %v1333_v23  ;;  %v7445_v22 = vld [vmem:[%s12692_s0 + $0x580] sm:$0xff]  ;;  %v7366_v23 = vld [vmem:[%s12692_s0 + $0x4e8] sm:$0xff] }
 0x175   :  { %1643 = vrot.lane.b32.xlu1 %v8303_v18, %s8981_s10  ;;  %1822 = vrot.lane.b32.xlu0 %v8327_v19, %s8980_s20  ;;  %v8766_v18 = vld [vmem:[%s12693_s1 + $0x470] ss:$8 sps:$4 sm:$0xff]   ;;  %v8369_v19 = vpack.c.bf16 %v7302_v8, %v7302_v8  ;;  %v8440_v27 = vpack.c.bf16 %v7445_v22, %v7445_v22 }
 0x177   :  { %v1388_v32 = vpop.permute.xlu1 %1387  ;;  %v1386_v33 = vpop.permute.xlu0 %1385  ;;  %2743 = vst.msk [vmem:[#allocation2 + $0x2c] sm:$0xf] %vm55_vm0, %v8440_v27  ;;  %v7494_v27 = vld [vmem:[%s12692_s0 + $0x5e8] sm:$0xff] }
 0x178   :  { %1410 = vst.msk [vmem:[#allocation2 + $0x54] sm:$0xf] %vm187_vm2, %v1388_v32  ;;  %1409 = vst.msk [vmem:[#allocation2 + $0x14] sm:$0xf] %vm187_vm2, %v1386_v33  ;;  %v8769_v33 = vld [vmem:[%s12693_s1 + $0x460] ss:$8 sps:$4 sm:$0xff]  }
 0x179   :  { %1887 = vrot.lane.b32.xlu1 %v8335_v24, %s8981_s10  ;;  %1885 = vrot.lane.b32.xlu0 %v8334_v25, %s8981_s10  ;;  %v7365_v24 = vld [vmem:[%s12692_s0 + $0x4e0] sm:$0xff] }
 0x17a   :  { %v8771_v25 = vld [vmem:[%s12693_s1 + $0x464] ss:$8 sps:$4 sm:$0xff]  }
 0x17b   :  { %v1392_v42 = vpop.permute.xlu1 %1391  ;;  %v1390_v43 = vpop.permute.xlu0 %1389 }
 0x17c   :  { %1412 = vst.msk [vmem:[#allocation2 + $0xd4] sm:$0xf] %vm187_vm2, %v1392_v42  ;;  %1411 = vst.msk [vmem:[#allocation2 + $0x94] sm:$0xf] %vm187_vm2, %v1390_v43  ;;  %v8772_v43 = vld [vmem:[%s12693_s1 + $0x450] ss:$8 sps:$4 sm:$0xff]  }
 0x17d   :  { %1708 = vrot.lane.b32.xlu1 %v8311_v34, %s8982_s11  ;;  %1706 = vrot.lane.b32.xlu0 %v8310_v35, %s8982_s11  ;;  %v8401_v34 = vpack.c.bf16 %v7366_v23, %v7366_v23  ;;  %v8400_v35 = vpack.c.bf16 %v7365_v24, %v7365_v24 }
 0x17f   :  { %v1396_v48 = vpop.permute.xlu1 %1395  ;;  %v1394_v49 = vpop.permute.xlu0 %1393 }
 0x180   :  { %1414 = vst.msk [vmem:[#allocation2 + $0x154] sm:$0xf] %vm187_vm2, %v1396_v48  ;;  %1413 = vst.msk [vmem:[#allocation2 + $0x114] sm:$0xf] %vm187_vm2, %v1394_v49  ;;  %v7462_v48 = vld [vmem:[%s12692_s0 + $0x5a8] sm:$0xff]  ;;  %v7461_v49 = vld [vmem:[%s12692_s0 + $0x5a0] sm:$0xff] }
 0x181   :  { %1952 = vrot.lane.b32.xlu1 %v8343_v44, %s8982_s11  ;;  %1950 = vrot.lane.b32.xlu0 %v8342_v45, %s8982_s11  ;;  %v8417_v45 = vpack.c.bf16 %v7398_v36, %v7398_v36 }
 0x183   :  { %v1400_v54 = vpop.permute.xlu1 %1399  ;;  %v1398_v55 = vpop.permute.xlu0 %1397 }
 0x184   :  { %1416 = vst.msk [vmem:[#allocation2 + $0x1d4] sm:$0xf] %vm187_vm2, %v1400_v54  ;;  %1415 = vst.msk [vmem:[#allocation2 + $0x194] sm:$0xf] %vm187_vm2, %v1398_v55  ;;  %v8449_v54 = vpack.c.bf16 %v7462_v48, %v7462_v48  ;;  %v8448_v55 = vpack.c.bf16 %v7461_v49, %v7461_v49 }
 0x185   :  { %2054 = vrot.lane.b32.xlu1 %v8353_v50, %s8980_s20  ;;  %2052 = vrot.lane.b32.xlu0 %v8352_v51, %s8980_s20  ;;  %v8777_v50 = vld [vmem:[%s12693_s1 + $0x444] ss:$8 sps:$4 sm:$0xff]  }
 0x187   :  { %v1453_v60 = vpop.permute.xlu1 %1452  ;;  %v1451_v61 = vpop.permute.xlu0 %1450 }
 0x188   :  { %1475 = vst.msk [vmem:[#allocation2 + $0x54] sm:$0xf] %vm253_vm3, %v1453_v60  ;;  %1474 = vst.msk [vmem:[#allocation2 + $0x14] sm:$0xf] %vm253_vm3, %v1451_v61 }
 0x189   :  { %2298 = vrot.lane.b32.xlu1 %v8385_v56, %s8980_s20  ;;  %2296 = vrot.lane.b32.xlu0 %v8384_v57, %s8980_s20  ;;  %v7414_v56 = vld [vmem:[%s12692_s0 + $0x548] sm:$0xff]  ;;  %v7413_v57 = vld [vmem:[%s12692_s0 + $0x540] sm:$0xff] }
 0x18a   :  { %v8425_v1 = vpack.c.bf16 %v7414_v56, %v7414_v56 }
 0x18b   :  { %v1457_v2 = vpop.permute.xlu1 %1456  ;;  %v1455_v3 = vpop.permute.xlu0 %1454 }
 0x18c   :  { %1477 = vst.msk [vmem:[#allocation2 + $0xd4] sm:$0xf] %vm253_vm3, %v1457_v2  ;;  %1476 = vst.msk [vmem:[#allocation2 + $0x94] sm:$0xf] %vm253_vm3, %v1455_v3  ;;  %v8424_v2 = vpack.c.bf16 %v7413_v57, %v7413_v57 }
 0x18d   :  { %2119 = vrot.lane.b32.xlu1 %v8361_v62, %s8981_s10  ;;  %2117 = vrot.lane.b32.xlu0 %v8360_v63, %s8981_s10  ;;  %v8778_v63 = vld [vmem:[%s12693_s1 + $0x430] ss:$8 sps:$4 sm:$0xff]  }
 0x18f   :  { %v1461_v12 = vpop.permute.xlu1 %1460  ;;  %v1459_v13 = vpop.permute.xlu0 %1458  ;;  %v3924_v14 = vld [vmem:[#allocation2 + $0x10] sm:$0xff] }
 0x190   :  { %v3932_v15 = vld [vmem:[#allocation2 + $0x50] sm:$0xff]  ;;  %1479 = vst.msk [vmem:[#allocation2 + $0x154] sm:$0xf] %vm253_vm3, %v1461_v12  ;;  %1478 = vst.msk [vmem:[#allocation2 + $0x114] sm:$0xf] %vm253_vm3, %v1459_v13  ;;  %v7256_v12 = vld [vmem:[%s12692_s0 + $0x418] sm:$0xff] }
 0x191   :  { %v7769_v16 = vcombine.low %v3924_v14, %v3932_v15  ;;  %v7770_v17 = vcombine.high %v3924_v14, %v3932_v15  ;;  %2363 = vrot.lane.b32.xlu1 %v8393_v4, %s8981_s10  ;;  %2361 = vrot.lane.b32.xlu0 %v8392_v5, %s8981_s10  ;;  %v7478_v4 = vld [vmem:[%s12692_s0 + $0x5c8] sm:$0xff]  ;;  %v7477_v5 = vld [vmem:[%s12692_s0 + $0x5c0] sm:$0xff] }
 0x192   :  { %v8457_v10 = vpack.c.bf16 %v7478_v4, %v7478_v4  ;;  %v8456_v11 = vpack.c.bf16 %v7477_v5, %v7477_v5  ;;  %v7255_v13 = vld [vmem:[%s12692_s0 + $0x410] sm:$0xff]  ;;  %v7430_v14 = vld [vmem:[%s12692_s0 + $0x568] sm:$0xff]  ;;  %v7429_v15 = vld [vmem:[%s12692_s0 + $0x560] sm:$0xff] }
 0x193   :  { %6020 = vmatprep.mubr.bf16.mxu0 %v7770_v17  ;;  %v1465_v28 = vpop.permute.xlu1 %1464  ;;  %v1463_v29 = vpop.permute.xlu0 %1462  ;;  %v3940_v30 = vld [vmem:[#allocation2 + $0x90] sm:$0xff]  ;;  %v8347_v17 = vpack.c.bf16 %v7256_v12, %v7256_v12  ;;  %v8433_v23 = vpack.c.bf16 %v7430_v14, %v7430_v14  ;;  %v8432_v24 = vpack.c.bf16 %v7429_v15, %v7429_v15  ;;  %v8795_v4 = vld [vmem:[%s12693_s1 + $0x564] ss:$8 sps:$4 sm:$0xff]  }
 0x194   :  { %6021 = vmatmul.mubr.bf16.vlgmr.msra.gmra.mxu0 %v7769_v16  ;;  %v3948_v31 = vld [vmem:[#allocation2 + $0xd0] sm:$0xff]  ;;  %1481 = vst.msk [vmem:[#allocation2 + $0x1d4] sm:$0xf] %vm253_vm3, %v1465_v28  ;;  %1480 = vst.msk [vmem:[#allocation2 + $0x194] sm:$0xf] %vm253_vm3, %v1463_v29  ;;  %v7493_v28 = vld [vmem:[%s12692_s0 + $0x5e0] sm:$0xff] }
 0x195   :  { %v7786_v32 = vcombine.high %v3940_v30, %v3948_v31  ;;  %6135 = vmatpush1.bf16.msra.mxu0 %v8766_v18  ;;  %2184 = vrot.lane.b32.xlu1 %v8369_v19, %s8982_s11  ;;  %v7785_v44 = vcombine.low %v3940_v30, %v3948_v31  ;;  %v8786_v16 = vld [vmem:[%s12693_s1 + $0x414] ss:$8 sps:$4 sm:$0xff]   ;;  %v8346_v18 = vpack.c.bf16 %v7255_v13, %v7255_v13  ;;  %v8792_v29 = vld [vmem:[%s12693_s1 + $0x404] ss:$8 sps:$4 sm:$0xff]  }
 0x196   :  { %2182 = vrot.lane.b32.xlu0 %v8368_v20, %s8982_s11  ;;  %6136 = vmatprep.subr.bf16.mxu0 %v8771_v25  ;;  %2014 = vst.msk [vmem:[#allocation2 + $0xe0] sm:$0xf] %vm55_vm0, %v8347_v17  ;;  %v7320_v25 = vld [vmem:[%s12692_s0 + $0x498] sm:$0xff]  ;;  %v8378_v31 = vpack.c.bf16 %v7319_v26, %v7319_v26  ;;  %v8464_v36 = vpack.c.bf16 %v7493_v28, %v7493_v28  ;;  %v8816_v5 = vld [vmem:[%s12693_s1 + $0x4c4] ss:$8 sps:$4 sm:$0xff]   ;;  %v7383_v14 = vld [vmem:[%s12692_s0 + $0x510] sm:$0xff] }
 0x197   :  { %6030 = vmatprep.mubr.bf16.mxu0 %v7786_v32  ;;  %v1567_v39 = vpop.permute.xlu1 %1566  ;;  %v1565_v40 = vpop.permute.xlu0 %1564  ;;  %v3956_v41 = vld [vmem:[#allocation2 + $0x110] sm:$0xff]  ;;  %2013 = vst.msk [vmem:[#allocation2 + $0xa0] sm:$0xf] %vm55_vm0, %v8346_v18  ;;  %v8379_v30 = vpack.c.bf16 %v7320_v25, %v7320_v25  ;;  %v7384_v13 = vld [vmem:[%s12692_s0 + $0x518] sm:$0xff] }
 0x198   :  { %v3964_v42 = vld [vmem:[#allocation2 + $0x150] sm:$0xff]  ;;  %1589 = vst.msk [vmem:[#allocation2 + $0x58] sm:$0xf] %vm121_vm1, %v1567_v39  ;;  %1588 = vst.msk [vmem:[#allocation2 + $0x18] sm:$0xf] %vm121_vm1, %v1565_v40  ;;  %v8411_v18 = vpack.c.bf16 %v7384_v13, %v7384_v13  ;;  %v7257_v13 = vld [vmem:[%s12692_s0 + $0xc00] sm:$0xff] }
 0x199   :  { %6137 = vmatpush1.bf16.msra.mxu0 %v8769_v33  ;;  %2428 = vrot.lane.b32.xlu1 %v8401_v34, %s8982_s11  ;;  %v7802_v47 = vcombine.high %v3956_v41, %v3964_v42  ;;  %v7801_v0 = vcombine.low %v3956_v41, %v3964_v42  ;;  %v8790_v34 = vld [vmem:[%s12693_s1 + $0x400] ss:$8 sps:$4 sm:$0xff]   ;;  %2258 = vst.msk [vmem:[#allocation2 + $0xe4] sm:$0xf] %vm55_vm0, %v8379_v30  ;;  %2257 = vst.msk [vmem:[#allocation2 + $0xa4] sm:$0xf] %vm55_vm0, %v8378_v31 }
 0x19a   :  { %2426 = vrot.lane.b32.xlu0 %v8400_v35, %s8982_s11  ;;  %6138 = vmatprep.subr.bf16.mxu0 %v8774_v38  ;;  %v8465_v35 = vpack.c.bf16 %v7494_v27, %v7494_v27  ;;  %v7271_v38 = vld [vmem:[%s12692_s0 + $0x430] sm:$0xff]  ;;  %2502 = vst.msk [vmem:[#allocation2 + $0xe8] sm:$0xf] %vm55_vm0, %v8411_v18  ;;  %v7448_v27 = vld [vmem:[%s12692_s0 + $0x598] sm:$0xff]  ;;  %v8807_v30 = vld [vmem:[%s12693_s1 + $0x544] ss:$8 sps:$4 sm:$0xff]   ;;  %v8348_v18 = vpack.c.bf16 %v7257_v13, %v7257_v13 }
 0x19b   :  { %v1809_v51 = vpop.permute.xlu1 %1808  ;;  %v1569_v52 = vpop.permute.xlu0 %1568  ;;  %v3972_v61 = vld [vmem:[#allocation2 + $0x190] sm:$0xff]  ;;  %v8828_v31 = vld [vmem:[%s12693_s1 + $0x4a4] ss:$8 sps:$4 sm:$0xff]  }
 0x19c   :  { %6031 = vmatmul.mubr.bf16.gmra.mxu0 %v7785_v44  ;;  %1832 = vst.msk [vmem:[#allocation2 + $0x1c] sm:$0xf] %vm121_vm1, %v1809_v51  ;;  %1590 = vst.msk [vmem:[#allocation2 + $0x98] sm:$0xf] %vm121_vm1, %v1569_v52  ;;  %v3980_v62 = vld [vmem:[#allocation2 + $0x1d0] sm:$0xff]  ;;  %v8354_v44 = vpack.c.bf16 %v7271_v38, %v7271_v38  ;;  %v7385_v13 = vld [vmem:[%s12692_s0 + $0xd00] sm:$0xff] }
 0x19d   :  { %6040 = vmatprep.mubr.bf16.mxu0 %v7802_v47  ;;  %6139 = vmatpush1.bf16.msra.mxu0 %v8772_v43  ;;  %v7818_v3 = vcombine.high %v3972_v61, %v3980_v62  ;;  %v7817_v22 = vcombine.low %v3972_v61, %v3980_v62  ;;  %v8798_v39 = vld [vmem:[%s12693_s1 + $0x4f4] ss:$8 sps:$4 sm:$0xff]   ;;  %v8796_v42 = vld [vmem:[%s12693_s1 + $0x4f0] ss:$8 sps:$4 sm:$0xff]   ;;  %v8355_v43 = vpack.c.bf16 %v7272_v37, %v7272_v37  ;;  %v8804_v47 = vld [vmem:[%s12693_s1 + $0x4e4] ss:$8 sps:$4 sm:$0xff]  }
 0x19e   :  { %2542 = vrot.lane.b32.xlu1 %v8417_v45, %s8980_s20  ;;  %2540 = vrot.lane.b32.xlu0 %v8416_v46, %s8980_s20  ;;  %v7336_v45 = vld [vmem:[%s12692_s0 + $0x4b8] sm:$0xff]  ;;  %v7335_v46 = vld [vmem:[%s12692_s0 + $0x4b0] sm:$0xff]  ;;  %2015 = vst.msk [vmem:[#allocation2 + $0x120] sm:$0xf] %vm55_vm0, %v8348_v18  ;;  %v8412_v18 = vpack.c.bf16 %v7385_v13, %v7385_v13 }
 0x19f   :  { %6140 = vmatprep.subr.bf16.mxu0 %v8777_v50  ;;  %v1630_v59 = vpop.permute.xlu1 %1629  ;;  %v1811_v60 = vpop.permute.xlu0 %1810  ;;  %v8802_v50 = vld [vmem:[%s12693_s1 + $0x4e0] ss:$8 sps:$4 sm:$0xff]   ;;  %v8387_v51 = vpack.c.bf16 %v7336_v45, %v7336_v45  ;;  %v8386_v52 = vpack.c.bf16 %v7335_v46, %v7335_v46  ;;  %v8787_v62 = vld [vmem:[%s12693_s1 + $0x570] ss:$8 sps:$4 sm:$0xff]   ;;  %v8822_v17 = vld [vmem:[%s12693_s1 + $0x4b4] ss:$8 sps:$4 sm:$0xff]  }
 0x1a0   :  { %1653 = vst.msk [vmem:[#allocation2 + $0x18] sm:$0xf] %vm187_vm2, %v1630_v59  ;;  %v7303_v15 = vld [vmem:[%s12692_s0 + $0x470] sm:$0xff]  ;;  %v8826_v37 = vld [vmem:[%s12693_s1 + $0x4a0] ss:$8 sps:$4 sm:$0xff]  }
 0x1a1   :  { %1833 = vst.msk [vmem:[#allocation2 + $0x5c] sm:$0xf] %vm121_vm1, %v1811_v60  ;;  %6141 = vmatpush1.bf16.msra.mxu0 %v8775_v53  ;;  %v7288_v53 = vld [vmem:[%s12692_s0 + $0x458] sm:$0xff]  ;;  %v8370_v26 = vpack.c.bf16 %v7303_v15, %v7303_v15  ;;  %v7447_v28 = vld [vmem:[%s12692_s0 + $0x590] sm:$0xff]  ;;  %v7497_v13 = vld [vmem:[%s12692_s0 + $0xde0] sm:$0xff] }
 0x1a2   :  { %2786 = vrot.lane.b32.xlu1 %v8449_v54, %s8980_s20  ;;  %2784 = vrot.lane.b32.xlu0 %v8448_v55, %s8980_s20  ;;  %v7287_v54 = vld [vmem:[%s12692_s0 + $0x450] sm:$0xff]  ;;  %2503 = vst.msk [vmem:[#allocation2 + $0x128] sm:$0xf] %vm55_vm0, %v8412_v18 }
 0x1a3   :  { %6142 = vmatprep.subr.bf16.mxu0 %v8780_v58  ;;  %v1874_v7 = vpop.permute.xlu1 %1873  ;;  %v1632_v8 = vpop.permute.xlu0 %1631  ;;  %v8810_v55 = vld [vmem:[%s12693_s1 + $0x4d4] ss:$8 sps:$4 sm:$0xff]   ;;  %v8811_v46 = vld [vmem:[%s12693_s1 + $0x530] ss:$8 sps:$4 sm:$0xff]  }
 0x1a4   :  { %6041 = vmatmul.mubr.bf16.gmra.mxu0 %v7801_v0  ;;  %1897 = vst.msk [vmem:[#allocation2 + $0x1c] sm:$0xf] %vm187_vm2, %v1874_v7  ;;  %1654 = vst.msk [vmem:[#allocation2 + $0x58] sm:$0xf] %vm187_vm2, %v1632_v8  ;;  %v8363_v0 = vpack.c.bf16 %v7288_v53, %v7288_v53  ;;  %v7304_v8 = vld [vmem:[%s12692_s0 + $0x478] sm:$0xff]  ;;  %v7431_v15 = vld [vmem:[%s12692_s0 + $0x570] sm:$0xff] }
 0x1a5   :  { %6050 = vmatprep.mubr.bf16.mxu0 %v7818_v3  ;;  %6143 = vmatpush1.bf16.msra.mxu0 %v8778_v63  ;;  %v8808_v63 = vld [vmem:[%s12693_s1 + $0x4d0] ss:$8 sps:$4 sm:$0xff]   ;;  %v8371_v25 = vpack.c.bf16 %v7304_v8, %v7304_v8  ;;  %v8840_v53 = vld [vmem:[%s12693_s1 + $0x484] ss:$8 sps:$4 sm:$0xff]  }
 0x1a6   :  { %2607 = vrot.lane.b32.xlu1 %v8425_v1, %s8981_s10  ;;  %2605 = vrot.lane.b32.xlu0 %v8424_v2, %s8981_s10  ;;  %v8362_v1 = vpack.c.bf16 %v7287_v54, %v7287_v54  ;;  %v7352_v2 = vld [vmem:[%s12692_s0 + $0x4d8] sm:$0xff]  ;;  %v7351_v3 = vld [vmem:[%s12692_s0 + $0x4d0] sm:$0xff] }
 0x1a7   :  { %6144 = vmatprep.subr.bf16.mxu0 %v8783_v6  ;;  %v1695_v19 = vpop.permute.xlu1 %1694  ;;  %v1876_v20 = vpop.permute.xlu0 %1875  ;;  %v8394_v12 = vpack.c.bf16 %v7351_v3, %v7351_v3 }
 0x1a8   :  { %1718 = vst.msk [vmem:[#allocation2 + $0x18] sm:$0xf] %vm253_vm3, %v1695_v19  ;;  %v8410_v19 = vpack.c.bf16 %v7383_v14, %v7383_v14  ;;  %v7432_v14 = vld [vmem:[%s12692_s0 + $0x578] sm:$0xff] }
 0x1a9   :  { %1898 = vst.msk [vmem:[#allocation2 + $0x5c] sm:$0xf] %vm187_vm2, %v1876_v20  ;;  %6145 = vmatpush1.bf16.msra.mxu0 %v8781_v9  ;;  %v8793_v9 = vld [vmem:[%s12693_s1 + $0x560] ss:$8 sps:$4 sm:$0xff]  }
 0x1aa   :  { %2851 = vrot.lane.b32.xlu1 %v8457_v10, %s8981_s10  ;;  %2849 = vrot.lane.b32.xlu0 %v8456_v11, %s8981_s10  ;;  %v8814_v10 = vld [vmem:[%s12693_s1 + $0x4c0] ss:$8 sps:$4 sm:$0xff]   ;;  %v8395_v11 = vpack.c.bf16 %v7352_v2, %v7352_v2  ;;  %2501 = vst.msk [vmem:[#allocation2 + $0xa8] sm:$0xf] %vm55_vm0, %v8410_v19 }
 0x1ab   :  { %6146 = vmatprep.subr.bf16.mxu0 %v8786_v16  ;;  %v1939_v32 = vpop.permute.xlu1 %1938  ;;  %v1697_v33 = vpop.permute.xlu0 %1696  ;;  %v8801_v16 = vld [vmem:[%s12693_s1 + $0x554] ss:$8 sps:$4 sm:$0xff]  }
 0x1ac   :  { %6051 = vmatmul.mubr.bf16.gmra.mxu0 %v7817_v22  ;;  %1962 = vst.msk [vmem:[#allocation2 + $0x1c] sm:$0xf] %vm253_vm3, %v1939_v32  ;;  %1719 = vst.msk [vmem:[#allocation2 + $0x58] sm:$0xf] %vm253_vm3, %v1697_v33  ;;  %v7368_v22 = vld [vmem:[%s12692_s0 + $0x4f8] sm:$0xff]  ;;  %v8443_v32 = vpack.c.bf16 %v7448_v27, %v7448_v27  ;;  %v8442_v33 = vpack.c.bf16 %v7447_v28, %v7447_v28  ;;  %v7495_v27 = vld [vmem:[%s12692_s0 + $0x5f0] sm:$0xff] }
 0x1ad   :  { %6147 = vmatpush1.bf16.msra.mxu0 %v8784_v21  ;;  %v8403_v38 = vpack.c.bf16 %v7368_v22, %v7368_v22  ;;  %v8435_v22 = vpack.c.bf16 %v7432_v14, %v7432_v14  ;;  %v8843_v28 = vld [vmem:[%s12693_s1 + $0x5e4] ss:$8 sps:$4 sm:$0xff]  }
 0x1ae   :  { %2672 = vrot.lane.b32.xlu1 %v8433_v23, %s8982_s11  ;;  %2670 = vrot.lane.b32.xlu0 %v8432_v24, %s8982_s11  ;;  %v8799_v23 = vld [vmem:[%s12693_s1 + $0x550] ss:$8 sps:$4 sm:$0xff]   ;;  %2746 = vst.msk [vmem:[#allocation2 + $0xec] sm:$0xf] %vm55_vm0, %v8443_v32  ;;  %2745 = vst.msk [vmem:[#allocation2 + $0xac] sm:$0xf] %vm55_vm0, %v8442_v33 }
 0x1af   :  { %6148 = vmatprep.subr.bf16.mxu0 %v8792_v29  ;;  %v1571_v40 = vpop.permute.xlu1 %1570  ;;  %v1941_v41 = vpop.permute.xlu0 %1940  ;;  %v8820_v24 = vld [vmem:[%s12693_s1 + $0x4b0] ss:$8 sps:$4 sm:$0xff]   ;;  %v7306_v14 = vld [vmem:[%s12692_s0 + $0xc68] sm:$0xff] }
 0x1b0   :  { %1591 = vst.msk [vmem:[#allocation2 + $0xd8] sm:$0xf] %vm121_vm1, %v1571_v40  ;;  %v7367_v29 = vld [vmem:[%s12692_s0 + $0x4f0] sm:$0xff]  ;;  %v7400_v40 = vld [vmem:[%s12692_s0 + $0x538] sm:$0xff] }
 0x1b1   :  { %1963 = vst.msk [vmem:[#allocation2 + $0x5c] sm:$0xf] %vm253_vm3, %v1941_v41  ;;  %6149 = vmatpush1.bf16.msra.mxu0 %v8790_v34  ;;  %v7399_v41 = vld [vmem:[%s12692_s0 + $0x530] sm:$0xff] }
 0x1b2   :  { %2916 = vrot.lane.b32.xlu1 %v8465_v35, %s8982_s11  ;;  %2914 = vrot.lane.b32.xlu0 %v8464_v36, %s8982_s11  ;;  %v8805_v36 = vld [vmem:[%s12693_s1 + $0x540] ss:$8 sps:$4 sm:$0xff]  }
 0x1b3   :  { %6150 = vmatprep.subr.bf16.mxu0 %v8798_v39  ;;  %v1575_v48 = vpop.permute.xlu1 %1574  ;;  %v1573_v49 = vpop.permute.xlu0 %1572  ;;  %v3925_v58 = vld [vmem:[#allocation2 + $0x18] sm:$0xff]  ;;  %v8402_v39 = vpack.c.bf16 %v7367_v29, %v7367_v29 }
 0x1b4   :  { %1593 = vst.msk [vmem:[#allocation2 + $0x158] sm:$0xf] %vm121_vm1, %v1575_v48  ;;  %1592 = vst.msk [vmem:[#allocation2 + $0x118] sm:$0xf] %vm121_vm1, %v1573_v49  ;;  %v8419_v48 = vpack.c.bf16 %v7400_v40, %v7400_v40  ;;  %v8418_v49 = vpack.c.bf16 %v7399_v41, %v7399_v41  ;;  %v7274_v40 = vld [vmem:[%s12692_s0 + $0xc28] sm:$0xff]  ;;  %v7273_v41 = vld [vmem:[%s12692_s0 + $0xc20] sm:$0xff] }
 0x1b5   :  { %6151 = vmatpush2.bf16.msra.mxu0 %v8796_v42  ;;  %v8813_v42 = vld [vmem:[%s12693_s1 + $0x534] ss:$8 sps:$4 sm:$0xff]  }
 0x1b6   :  { %2058 = vrot.lane.b32.xlu1 %v8355_v43, %s8980_s20  ;;  %2056 = vrot.lane.b32.xlu0 %v8354_v44, %s8980_s20  ;;  %v8834_v43 = vld [vmem:[%s12693_s1 + $0x494] ss:$8 sps:$4 sm:$0xff]  }
 0x1b7   :  { %6152 = vmatprep.subr.bf16.mxu0 %v8804_v47  ;;  %v1579_v56 = vpop.permute.xlu1 %1578  ;;  %v1577_v57 = vpop.permute.xlu0 %1576  ;;  %v8832_v47 = vld [vmem:[%s12693_s1 + $0x490] ss:$8 sps:$4 sm:$0xff]  }
 0x1b8   :  { %v3933_v59 = vld [vmem:[#allocation2 + $0x58] sm:$0xff]  ;;  %1595 = vst.msk [vmem:[#allocation2 + $0x1d8] sm:$0xf] %vm121_vm1, %v1579_v56  ;;  %1594 = vst.msk [vmem:[#allocation2 + $0x198] sm:$0xf] %vm121_vm1, %v1577_v57 }
 0x1b9   :  { %v7771_v60 = vcombine.low %v3925_v58, %v3933_v59  ;;  %v7772_v61 = vcombine.high %v3925_v58, %v3933_v59  ;;  %6153 = vmatpush2.bf16.msra.mxu0 %v8802_v50  ;;  %v7464_v50 = vld [vmem:[%s12692_s0 + $0x5b8] sm:$0xff]  ;;  %v8817_v56 = vld [vmem:[%s12693_s1 + $0x520] ss:$8 sps:$4 sm:$0xff]  }
 0x1ba   :  { %2302 = vrot.lane.b32.xlu1 %v8387_v51, %s8980_s20  ;;  %2300 = vrot.lane.b32.xlu0 %v8386_v52, %s8980_s20  ;;  %v7463_v51 = vld [vmem:[%s12692_s0 + $0x5b0] sm:$0xff]  ;;  %v8819_v52 = vld [vmem:[%s12693_s1 + $0x524] ss:$8 sps:$4 sm:$0xff]   ;;  %v8451_v58 = vpack.c.bf16 %v7464_v50, %v7464_v50 }
 0x1bb   :  { %6093 = vmatprep.mubr.bf16.mxu1 %v7772_v61  ;;  %6154 = vmatprep.subr.bf16.mxu0 %v8810_v55  ;;  %v1636_v6 = vpop.permute.xlu1 %1635  ;;  %v1634_v7 = vpop.permute.xlu0 %1633  ;;  %v8838_v57 = vld [vmem:[%s12693_s1 + $0x480] ss:$8 sps:$4 sm:$0xff]   ;;  %v8450_v59 = vpack.c.bf16 %v7463_v51, %v7463_v51  ;;  %v7415_v61 = vld [vmem:[%s12692_s0 + $0x550] sm:$0xff]  ;;  %v8849_v50 = vld [vmem:[%s12693_s1 + $0x5c4] ss:$8 sps:$4 sm:$0xff]  }
 0x1bc   :  { %6094 = vmatmul.mubr.bf16.vlgmr.msra.gmra.mxu1 %v7771_v60  ;;  %1656 = vst.msk [vmem:[#allocation2 + $0xd8] sm:$0xf] %vm187_vm2, %v1636_v6  ;;  %1655 = vst.msk [vmem:[#allocation2 + $0x98] sm:$0xf] %vm187_vm2, %v1634_v7  ;;  %v7416_v60 = vld [vmem:[%s12692_s0 + $0x558] sm:$0xff]  ;;  %v8426_v3 = vpack.c.bf16 %v7415_v61, %v7415_v61 }
 0x1bd   :  { %6208 = vmatpush1.bf16.msra.mxu1 %v8787_v62  ;;  %6155 = vmatpush2.bf16.msra.mxu0 %v8808_v63  ;;  %v8825_v62 = vld [vmem:[%s12693_s1 + $0x514] ss:$8 sps:$4 sm:$0xff]   ;;  %v8427_v2 = vpack.c.bf16 %v7416_v60, %v7416_v60  ;;  %v8831_v6 = vld [vmem:[%s12693_s1 + $0x504] ss:$8 sps:$4 sm:$0xff]   ;;  %v8850_v61 = vld [vmem:[%s12693_s1 + $0x5b0] ss:$8 sps:$4 sm:$0xff]  }
 0x1be   :  { %2123 = vrot.lane.b32.xlu1 %v8363_v0, %s8981_s10  ;;  %2121 = vrot.lane.b32.xlu0 %v8362_v1, %s8981_s10  ;;  %v8823_v1 = vld [vmem:[%s12693_s1 + $0x510] ss:$8 sps:$4 sm:$0xff]  }
 0x1bf   :  { %6209 = vmatprep.subr.bf16.mxu1 %v8795_v4  ;;  %6156 = vmatprep.subr.bf16.mxu0 %v8816_v5  ;;  %v1640_v20 = vpop.permute.xlu1 %1639  ;;  %v1638_v21 = vpop.permute.xlu0 %1637  ;;  %v7480_v4 = vld [vmem:[%s12692_s0 + $0x5d8] sm:$0xff]  ;;  %v7479_v5 = vld [vmem:[%s12692_s0 + $0x5d0] sm:$0xff] }
 0x1c0   :  { %1658 = vst.msk [vmem:[#allocation2 + $0x158] sm:$0xf] %vm187_vm2, %v1640_v20  ;;  %1657 = vst.msk [vmem:[#allocation2 + $0x118] sm:$0xf] %vm187_vm2, %v1638_v21  ;;  %v8835_v21 = vld [vmem:[%s12693_s1 + $0x5f0] ss:$8 sps:$4 sm:$0xff]  }
 0x1c1   :  { %6210 = vmatpush1.bf16.msra.mxu1 %v8793_v9  ;;  %6157 = vmatpush2.bf16.msra.mxu0 %v8814_v10  ;;  %v8829_v9 = vld [vmem:[%s12693_s1 + $0x500] ss:$8 sps:$4 sm:$0xff]   ;;  %v8459_v10 = vpack.c.bf16 %v7480_v4, %v7480_v4 }
 0x1c2   :  { %2367 = vrot.lane.b32.xlu1 %v8395_v11, %s8981_s10  ;;  %2365 = vrot.lane.b32.xlu0 %v8394_v12, %s8981_s10  ;;  %v8458_v11 = vpack.c.bf16 %v7479_v5, %v7479_v5  ;;  %v7258_v12 = vld [vmem:[%s12692_s0 + $0xc08] sm:$0xff] }
 0x1c3   :  { %6211 = vmatprep.subr.bf16.mxu1 %v8801_v16  ;;  %6158 = vmatprep.subr.bf16.mxu0 %v8822_v17  ;;  %v1813_v34 = vpop.permute.xlu1 %1812  ;;  %v1642_v35 = vpop.permute.xlu0 %1641  ;;  %v8837_v16 = vld [vmem:[%s12693_s1 + $0x5f4] ss:$8 sps:$4 sm:$0xff]   ;;  %v8349_v17 = vpack.c.bf16 %v7258_v12, %v7258_v12  ;;  %v7386_v12 = vld [vmem:[%s12692_s0 + $0xd08] sm:$0xff] }
 0x1c4   :  { %1834 = vst.msk [vmem:[#allocation2 + $0x9c] sm:$0xf] %vm121_vm1, %v1813_v34 }
 0x1c5   :  { %1659 = vst.msk [vmem:[#allocation2 + $0x198] sm:$0xf] %vm187_vm2, %v1642_v35  ;;  %6212 = vmatpush1.bf16.msra.mxu1 %v8799_v23  ;;  %6159 = vmatpush2.bf16.msra.mxu0 %v8820_v24  ;;  %v8434_v23 = vpack.c.bf16 %v7431_v15, %v7431_v15  ;;  %v7322_v24 = vld [vmem:[%s12692_s0 + $0xc88] sm:$0xff]  ;;  %v7305_v15 = vld [vmem:[%s12692_s0 + $0xc60] sm:$0xff] }
 0x1c6   :  { %2188 = vrot.lane.b32.xlu1 %v8371_v25, %s8982_s11  ;;  %2186 = vrot.lane.b32.xlu0 %v8370_v26, %s8982_s11  ;;  %2016 = vst.msk [vmem:[#allocation2 + $0x160] sm:$0xf] %vm55_vm0, %v8349_v17  ;;  %v7321_v25 = vld [vmem:[%s12692_s0 + $0xc80] sm:$0xff]  ;;  %v7496_v26 = vld [vmem:[%s12692_s0 + $0x5f8] sm:$0xff]  ;;  %v8381_v29 = vpack.c.bf16 %v7322_v24, %v7322_v24  ;;  %v8413_v17 = vpack.c.bf16 %v7386_v12, %v7386_v12 }
 0x1c7   :  { %6213 = vmatprep.subr.bf16.mxu1 %v8807_v30  ;;  %6160 = vmatprep.subr.bf16.mxu0 %v8828_v31  ;;  %v1878_v44 = vpop.permute.xlu1 %1877  ;;  %v1815_v45 = vpop.permute.xlu0 %1814  ;;  %v8380_v30 = vpack.c.bf16 %v7321_v25, %v7321_v25  ;;  %v7450_v24 = vld [vmem:[%s12692_s0 + $0xd88] sm:$0xff]  ;;  %v7449_v25 = vld [vmem:[%s12692_s0 + $0xd80] sm:$0xff] }
 0x1c8   :  { %1899 = vst.msk [vmem:[#allocation2 + $0x9c] sm:$0xf] %vm187_vm2, %v1878_v44  ;;  %v7498_v12 = vld [vmem:[%s12692_s0 + $0xde8] sm:$0xff] }
 0x1c9   :  { %1835 = vst.msk [vmem:[#allocation2 + $0xdc] sm:$0xf] %vm121_vm1, %v1815_v45  ;;  %6214 = vmatpush1.bf16.msra.mxu1 %v8805_v36  ;;  %6161 = vmatpush2.bf16.msra.mxu0 %v8826_v37  ;;  %v8841_v37 = vld [vmem:[%s12693_s1 + $0x5e0] ss:$8 sps:$4 sm:$0xff]   ;;  %v8844_v45 = vld [vmem:[%s12693_s1 + $0x5d0] ss:$8 sps:$4 sm:$0xff]   ;;  %v8469_v18 = vpack.c.bf16 %v7498_v12, %v7498_v12 }
 0x1ca   :  { %2432 = vrot.lane.b32.xlu1 %v8403_v38, %s8982_s11  ;;  %2430 = vrot.lane.b32.xlu0 %v8402_v39, %s8982_s11  ;;  %2260 = vst.msk [vmem:[#allocation2 + $0x164] sm:$0xf] %vm55_vm0, %v8381_v29  ;;  %2259 = vst.msk [vmem:[#allocation2 + $0x124] sm:$0xf] %vm55_vm0, %v8380_v30  ;;  %v8467_v38 = vpack.c.bf16 %v7496_v26, %v7496_v26  ;;  %v8466_v39 = vpack.c.bf16 %v7495_v27, %v7495_v27  ;;  %v7370_v26 = vld [vmem:[%s12692_s0 + $0xce8] sm:$0xff]  ;;  %v7369_v27 = vld [vmem:[%s12692_s0 + $0xce0] sm:$0xff] }
 0x1cb   :  { %6215 = vmatprep.subr.bf16.mxu1 %v8813_v42  ;;  %6162 = vmatprep.subr.bf16.mxu0 %v8834_v43  ;;  %v1699_v54 = vpop.permute.xlu1 %1698  ;;  %v1880_v55 = vpop.permute.xlu0 %1879  ;;  %v8846_v42 = vld [vmem:[%s12693_s1 + $0x5d4] ss:$8 sps:$4 sm:$0xff]   ;;  %2504 = vst.msk [vmem:[#allocation2 + $0x168] sm:$0xf] %vm55_vm0, %v8413_v17  ;;  %v8445_v29 = vpack.c.bf16 %v7450_v24, %v7450_v24  ;;  %v8444_v30 = vpack.c.bf16 %v7449_v25, %v7449_v25 }
 0x1cc   :  { %1720 = vst.msk [vmem:[#allocation2 + $0x98] sm:$0xf] %vm253_vm3, %v1699_v54 }
 0x1cd   :  { %1900 = vst.msk [vmem:[#allocation2 + $0xdc] sm:$0xf] %vm187_vm2, %v1880_v55  ;;  %6216 = vmatpush1.bf16.msra.mxu1 %v8811_v46  ;;  %6163 = vmatpush2.bf16.msra.mxu0 %v8832_v47  ;;  %v8357_v46 = vpack.c.bf16 %v7274_v40, %v7274_v40  ;;  %v8356_v47 = vpack.c.bf16 %v7273_v41, %v7273_v41 }
 0x1ce   :  { %2546 = vrot.lane.b32.xlu1 %v8419_v48, %s8980_s20  ;;  %2544 = vrot.lane.b32.xlu0 %v8418_v49, %s8980_s20  ;;  %v7338_v48 = vld [vmem:[%s12692_s0 + $0xca8] sm:$0xff]  ;;  %v7337_v49 = vld [vmem:[%s12692_s0 + $0xca0] sm:$0xff]  ;;  %2748 = vst.msk [vmem:[#allocation2 + $0x16c] sm:$0xf] %vm55_vm0, %v8445_v29  ;;  %2747 = vst.msk [vmem:[#allocation2 + $0x12c] sm:$0xf] %vm55_vm0, %v8444_v30 }
 0x1cf   :  { %6217 = vmatprep.subr.bf16.mxu1 %v8819_v52  ;;  %6164 = vmatprep.subr.bf16.mxu0 %v8840_v53  ;;  %v1943_v63 = vpop.permute.xlu1 %1942  ;;  %v1701_v0 = vpop.permute.xlu0 %1700  ;;  %v8847_v53 = vld [vmem:[%s12693_s1 + $0x5c0] ss:$8 sps:$4 sm:$0xff]   ;;  %v8389_v54 = vpack.c.bf16 %v7338_v48, %v7338_v48  ;;  %v8388_v55 = vpack.c.bf16 %v7337_v49, %v7337_v49 }
 0x1d0   :  { %1964 = vst.msk [vmem:[#allocation2 + $0x9c] sm:$0xf] %vm253_vm3, %v1943_v63  ;;  %1721 = vst.msk [vmem:[#allocation2 + $0xd8] sm:$0xf] %vm253_vm3, %v1701_v0  ;;  %v7354_v0 = vld [vmem:[%s12692_s0 + $0xcc8] sm:$0xff] }
 0x1d1   :  { %6218 = vmatpush1.bf16.msra.mxu1 %v8817_v56  ;;  %6165 = vmatpush2.bf16.msra.mxu0 %v8838_v57  ;;  %v7290_v56 = vld [vmem:[%s12692_s0 + $0xc48] sm:$0xff]  ;;  %v7289_v57 = vld [vmem:[%s12692_s0 + $0xc40] sm:$0xff] }
 0x1d2   :  { %2790 = vrot.lane.b32.xlu1 %v8451_v58, %s8980_s20  ;;  %2788 = vrot.lane.b32.xlu0 %v8450_v59, %s8980_s20  ;;  %v8852_v58 = vld [vmem:[%s12693_s1 + $0x5b4] ss:$8 sps:$4 sm:$0xff]   ;;  %v8364_v63 = vpack.c.bf16 %v7289_v57, %v7289_v57 }
 0x1d3   :  { %6219 = vmatprep.subr.bf16.mxu1 %v8825_v62  ;;  %v1817_v7 = vpop.permute.xlu1 %1816  ;;  %v1945_v8 = vpop.permute.xlu0 %1944  ;;  %v8365_v62 = vpack.c.bf16 %v7290_v56, %v7290_v56 }
 0x1d4   :  { %1836 = vst.msk [vmem:[#allocation2 + $0x11c] sm:$0xf] %vm121_vm1, %v1817_v7 }
 0x1d5   :  { %1965 = vst.msk [vmem:[#allocation2 + $0xdc] sm:$0xf] %vm253_vm3, %v1945_v8  ;;  %6220 = vmatpush1.bf16.msra.mxu1 %v8823_v1  ;;  %v7353_v1 = vld [vmem:[%s12692_s0 + $0xcc0] sm:$0xff] }
 0x1d6   :  { %2611 = vrot.lane.b32.xlu1 %v8427_v2, %s8981_s10  ;;  %2609 = vrot.lane.b32.xlu0 %v8426_v3, %s8981_s10  ;;  %v8855_v2 = vld [vmem:[%s12693_s1 + $0x5a4] ss:$8 sps:$4 sm:$0xff]  }
 0x1d7   :  { %6221 = vmatprep.subr.bf16.mxu1 %v8831_v6  ;;  %v1882_v19 = vpop.permute.xlu1 %1881  ;;  %v1819_v20 = vpop.permute.xlu0 %1818  ;;  %v3941_v33 = vld [vmem:[#allocation2 + $0x98] sm:$0xff] }
 0x1d8   :  { %1901 = vst.msk [vmem:[#allocation2 + $0x11c] sm:$0xf] %vm187_vm2, %v1882_v19 }
 0x1d9   :  { %1837 = vst.msk [vmem:[#allocation2 + $0x15c] sm:$0xf] %vm121_vm1, %v1819_v20  ;;  %6222 = vmatpush1.bf16.msra.mxu1 %v8829_v9  ;;  %v8853_v9 = vld [vmem:[%s12693_s1 + $0x5a0] ss:$8 sps:$4 sm:$0xff]  }
 0x1da   :  { %2855 = vrot.lane.b32.xlu1 %v8459_v10, %s8981_s10  ;;  %2853 = vrot.lane.b32.xlu0 %v8458_v11, %s8981_s10  ;;  %v8397_v10 = vpack.c.bf16 %v7354_v0, %v7354_v0  ;;  %v8396_v11 = vpack.c.bf16 %v7353_v1, %v7353_v1  ;;  %v7260_v0 = vld [vmem:[%s12692_s0 + $0xc18] sm:$0xff]  ;;  %v7259_v1 = vld [vmem:[%s12692_s0 + $0xc10] sm:$0xff] }
 0x1db   :  { %6223 = vmatprep.subr.bf16.mxu1 %v8837_v16  ;;  %v1703_v31 = vpop.permute.xlu1 %1702  ;;  %v1884_v32 = vpop.permute.xlu0 %1883  ;;  %v8858_v16 = vld [vmem:[%s12693_s1 + $0x594] ss:$8 sps:$4 sm:$0xff]  }
 0x1dc   :  { %v3949_v34 = vld [vmem:[#allocation2 + $0xd8] sm:$0xff]  ;;  %1722 = vst.msk [vmem:[#allocation2 + $0x118] sm:$0xf] %vm253_vm3, %v1703_v31 }
 0x1dd   :  { %1902 = vst.msk [vmem:[#allocation2 + $0x15c] sm:$0xf] %vm187_vm2, %v1884_v32  ;;  %v7788_v35 = vcombine.high %v3941_v33, %v3949_v34  ;;  %v7787_v36 = vcombine.low %v3941_v33, %v3949_v34  ;;  %6224 = vmatpush2.bf16.msra.mxu1 %v8835_v21  ;;  %v8856_v21 = vld [vmem:[%s12693_s1 + $0x590] ss:$8 sps:$4 sm:$0xff]   ;;  %v8859_v33 = vld [vmem:[%s12693_s1 + $0x580] ss:$8 sps:$4 sm:$0xff]   ;;  %v8405_v34 = vpack.c.bf16 %v7370_v26, %v7370_v26 }
 0x1de   :  { %2676 = vrot.lane.b32.xlu1 %v8435_v22, %s8982_s11  ;;  %2674 = vrot.lane.b32.xlu0 %v8434_v23, %s8982_s11  ;;  %v8373_v22 = vpack.c.bf16 %v7306_v14, %v7306_v14  ;;  %v8372_v23 = vpack.c.bf16 %v7305_v15, %v7305_v15  ;;  %v7340_v26 = vld [vmem:[%s12692_s0 + $0xcb8] sm:$0xff] }
 0x1df   :  { %6103 = vmatprep.mubr.bf16.mxu1 %v7788_v35  ;;  %6225 = vmatprep.subr.bf16.mxu1 %v8843_v28  ;;  %v1947_v43 = vpop.permute.xlu1 %1946  ;;  %v1705_v44 = vpop.permute.xlu0 %1704  ;;  %v8861_v28 = vld [vmem:[%s12693_s1 + $0x584] ss:$8 sps:$4 sm:$0xff]   ;;  %v8404_v35 = vpack.c.bf16 %v7369_v27, %v7369_v27  ;;  %v7339_v27 = vld [vmem:[%s12692_s0 + $0xcb0] sm:$0xff] }
 0x1e0   :  { %6104 = vmatmul.mubr.bf16.gmra.mxu1 %v7787_v36  ;;  %1966 = vst.msk [vmem:[#allocation2 + $0x11c] sm:$0xf] %vm253_vm3, %v1947_v43  ;;  %1723 = vst.msk [vmem:[#allocation2 + $0x158] sm:$0xf] %vm253_vm3, %v1705_v44  ;;  %v7402_v36 = vld [vmem:[%s12692_s0 + $0xd28] sm:$0xff]  ;;  %v7465_v43 = vld [vmem:[%s12692_s0 + $0xda0] sm:$0xff] }
 0x1e1   :  { %6226 = vmatpush2.bf16.msra.mxu1 %v8841_v37  ;;  %v7401_v37 = vld [vmem:[%s12692_s0 + $0xd20] sm:$0xff]  ;;  %v8421_v40 = vpack.c.bf16 %v7402_v36, %v7402_v36  ;;  %v11324_v36 = vpop.f32.mrf.mxu0 }
 0x1e2   :  { %2920 = vrot.lane.b32.xlu1 %v8467_v38, %s8982_s11  ;;  %2918 = vrot.lane.b32.xlu0 %v8466_v39, %s8982_s11  ;;  %v8420_v41 = vpack.c.bf16 %v7401_v37, %v7401_v37  ;;  %v7292_v37 = vld [vmem:[%s12692_s0 + $0xc58] sm:$0xff] }
 0x1e3   :  { %6227 = vmatprep.subr.bf16.mxu1 %v8846_v42  ;;  %v1821_v51 = vpop.permute.xlu1 %1820  ;;  %v1949_v52 = vpop.permute.xlu0 %1948  ;;  %v7466_v42 = vld [vmem:[%s12692_s0 + $0xda8] sm:$0xff] }
 0x1e4   :  { %1838 = vst.msk [vmem:[#allocation2 + $0x19c] sm:$0xf] %vm121_vm1, %v1821_v51  ;;  %v8452_v51 = vpack.c.bf16 %v7465_v43, %v7465_v43  ;;  %v8367_v43 = vpack.c.bf16 %v7292_v37, %v7292_v37 }
 0x1e5   :  { %1967 = vst.msk [vmem:[#allocation2 + $0x15c] sm:$0xf] %vm253_vm3, %v1949_v52  ;;  %6228 = vmatpush2.bf16.msra.mxu1 %v8844_v45  ;;  %v7418_v52 = vld [vmem:[%s12692_s0 + $0xd48] sm:$0xff] }
 0x1e6   :  { %2062 = vrot.lane.b32.xlu1 %v8357_v46, %s8980_s20  ;;  %2060 = vrot.lane.b32.xlu0 %v8356_v47, %s8980_s20  ;;  %v8429_v56 = vpack.c.bf16 %v7418_v52, %v7418_v52 }
 0x1e7   :  { %6229 = vmatprep.subr.bf16.mxu1 %v8849_v50  ;;  %v1644_v59 = vpop.permute.xlu1 %1643  ;;  %v1823_v60 = vpop.permute.xlu0 %1822  ;;  %v3957_v5 = vld [vmem:[#allocation2 + $0x118] sm:$0xff]  ;;  %v8453_v50 = vpack.c.bf16 %v7466_v42, %v7466_v42 }
 0x1e8   :  { %1660 = vst.msk [vmem:[#allocation2 + $0x1d8] sm:$0xf] %vm187_vm2, %v1644_v59  ;;  %v7481_v59 = vld [vmem:[%s12692_s0 + $0xdc0] sm:$0xff]  ;;  %v8862_v42 = vld [vmem:[%s12693_s1 + $0x670] ss:$8 sps:$4 sm:$0xff]  }
 0x1e9   :  { %1839 = vst.msk [vmem:[#allocation2 + $0x1dc] sm:$0xf] %vm121_vm1, %v1823_v60  ;;  %6230 = vmatpush2.bf16.msra.mxu1 %v8847_v53  ;;  %v7417_v53 = vld [vmem:[%s12692_s0 + $0xd40] sm:$0xff] }
 0x1ea   :  { %2306 = vrot.lane.b32.xlu1 %v8389_v54, %s8980_s20  ;;  %2304 = vrot.lane.b32.xlu0 %v8388_v55, %s8980_s20  ;;  %v8428_v57 = vpack.c.bf16 %v7417_v53, %v7417_v53 }
 0x1eb   :  { %6231 = vmatprep.subr.bf16.mxu1 %v8852_v58  ;;  %v1888_v3 = vpop.permute.xlu1 %1887  ;;  %v1886_v4 = vpop.permute.xlu0 %1885  ;;  %v7482_v58 = vld [vmem:[%s12692_s0 + $0xdc8] sm:$0xff] }
 0x1ec   :  { %v3965_v6 = vld [vmem:[#allocation2 + $0x158] sm:$0xff]  ;;  %1904 = vst.msk [vmem:[#allocation2 + $0x1dc] sm:$0xf] %vm187_vm2, %v1888_v3  ;;  %1903 = vst.msk [vmem:[#allocation2 + $0x19c] sm:$0xf] %vm187_vm2, %v1886_v4  ;;  %v7433_v3 = vld [vmem:[%s12692_s0 + $0xd60] sm:$0xff]  ;;  %v8351_v4 = vpack.c.bf16 %v7260_v0, %v7260_v0 }
 0x1ed   :  { %v7804_v7 = vcombine.high %v3957_v5, %v3965_v6  ;;  %v7803_v8 = vcombine.low %v3957_v5, %v3965_v6  ;;  %6232 = vmatpush2.bf16.msra.mxu1 %v8850_v61  ;;  %v8350_v5 = vpack.c.bf16 %v7259_v1, %v7259_v1  ;;  %v8868_v0 = vld [vmem:[%s12693_s1 + $0x650] ss:$8 sps:$4 sm:$0xff]  }
 0x1ee   :  { %2127 = vrot.lane.b32.xlu1 %v8365_v62, %s8981_s10  ;;  %2125 = vrot.lane.b32.xlu0 %v8364_v63, %s8981_s10  ;;  %v8461_v62 = vpack.c.bf16 %v7482_v58, %v7482_v58  ;;  %v8460_v63 = vpack.c.bf16 %v7481_v59, %v7481_v59  ;;  %2018 = vst.msk [vmem:[#allocation2 + $0x1e0] sm:$0xf] %vm55_vm0, %v8351_v4  ;;  %v7307_v58 = vld [vmem:[%s12692_s0 + $0xc70] sm:$0xff] }
 0x1ef   :  { %6113 = vmatprep.mubr.bf16.mxu1 %v7804_v7  ;;  %6233 = vmatprep.subr.bf16.mxu1 %v8855_v2  ;;  %v1709_v19 = vpop.permute.xlu1 %1708  ;;  %v1707_v20 = vpop.permute.xlu0 %1706  ;;  %v7434_v2 = vld [vmem:[%s12692_s0 + $0xd68] sm:$0xff]  ;;  %2017 = vst.msk [vmem:[#allocation2 + $0x1a0] sm:$0xf] %vm55_vm0, %v8350_v5  ;;  %v7451_v4 = vld [vmem:[%s12692_s0 + $0xd90] sm:$0xff] }
 0x1f0   :  { %6114 = vmatmul.mubr.bf16.gmra.mxu1 %v7803_v8  ;;  %1725 = vst.msk [vmem:[#allocation2 + $0x1d8] sm:$0xf] %vm253_vm3, %v1709_v19  ;;  %1724 = vst.msk [vmem:[#allocation2 + $0x198] sm:$0xf] %vm253_vm3, %v1707_v20  ;;  %v8437_v8 = vpack.c.bf16 %v7434_v2, %v7434_v2  ;;  %v8468_v19 = vpack.c.bf16 %v7497_v13, %v7497_v13  ;;  %v7276_v20 = vld [vmem:[%s12692_s0 + $0xc38] sm:$0xff]  ;;  %v8374_v2 = vpack.c.bf16 %v7307_v58, %v7307_v58 }
 0x1f1   :  { %6234 = vmatpush2.bf16.msra.mxu1 %v8853_v9  ;;  %v8436_v9 = vpack.c.bf16 %v7433_v3, %v7433_v3  ;;  %v8359_v24 = vpack.c.bf16 %v7276_v20, %v7276_v20  ;;  %v7452_v3 = vld [vmem:[%s12692_s0 + $0xd98] sm:$0xff]  ;;  %v8871_v13 = vld [vmem:[%s12693_s1 + $0x640] ss:$8 sps:$4 sm:$0xff]  }
 0x1f2   :  { %2371 = vrot.lane.b32.xlu1 %v8397_v10, %s8981_s10  ;;  %2369 = vrot.lane.b32.xlu0 %v8396_v11, %s8981_s10  ;;  %v7324_v10 = vld [vmem:[%s12692_s0 + $0xc98] sm:$0xff]  ;;  %v7323_v11 = vld [vmem:[%s12692_s0 + $0xc90] sm:$0xff] }
 0x1f3   :  { %6235 = vmatprep.subr.bf16.mxu1 %v8858_v16  ;;  %v1953_v31 = vpop.permute.xlu1 %1952  ;;  %v1951_v32 = vpop.permute.xlu0 %1950  ;;  %v8383_v14 = vpack.c.bf16 %v7324_v10, %v7324_v10  ;;  %v8382_v15 = vpack.c.bf16 %v7323_v11, %v7323_v11  ;;  %v8873_v10 = vld [vmem:[%s12693_s1 + $0x644] ss:$8 sps:$4 sm:$0xff]  }
 0x1f4   :  { %1969 = vst.msk [vmem:[#allocation2 + $0x1dc] sm:$0xf] %vm253_vm3, %v1953_v31  ;;  %1968 = vst.msk [vmem:[#allocation2 + $0x19c] sm:$0xf] %vm253_vm3, %v1951_v32 }
 0x1f5   :  { %6236 = vmatpush2.bf16.msra.mxu1 %v8856_v21  ;;  %2262 = vst.msk [vmem:[#allocation2 + $0x1e4] sm:$0xf] %vm55_vm0, %v8383_v14  ;;  %2261 = vst.msk [vmem:[#allocation2 + $0x1a4] sm:$0xf] %vm55_vm0, %v8382_v15  ;;  %v7275_v21 = vld [vmem:[%s12692_s0 + $0xc30] sm:$0xff] }
 0x1f6   :  { %2192 = vrot.lane.b32.xlu1 %v8373_v22, %s8982_s11  ;;  %2190 = vrot.lane.b32.xlu0 %v8372_v23, %s8982_s11  ;;  %v8358_v25 = vpack.c.bf16 %v7275_v21, %v7275_v21 }
 0x1f7   :  { %6237 = vmatprep.subr.bf16.mxu1 %v8861_v28  ;;  %v2055_v38 = vpop.permute.xlu1 %2054  ;;  %v2053_v39 = vpop.permute.xlu0 %2052 }
 0x1f8   :  { %2077 = vst.msk [vmem:[#allocation2 + $0x60] sm:$0xf] %vm121_vm1, %v2055_v38  ;;  %2076 = vst.msk [vmem:[#allocation2 + $0x20] sm:$0xf] %vm121_vm1, %v2053_v39  ;;  %v7291_v38 = vld [vmem:[%s12692_s0 + $0xc50] sm:$0xff] }
 0x1f9   :  { %6238 = vmatpush2.bf16.msra.mxu1 %v8859_v33  ;;  %v8864_v39 = vld [vmem:[%s12693_s1 + $0x674] ss:$8 sps:$4 sm:$0xff]  }
 0x1fa   :  { %2436 = vrot.lane.b32.xlu1 %v8405_v34, %s8982_s11  ;;  %2434 = vrot.lane.b32.xlu0 %v8404_v35, %s8982_s11  ;;  %v8391_v34 = vpack.c.bf16 %v7340_v26, %v7340_v26  ;;  %v8390_v35 = vpack.c.bf16 %v7339_v27, %v7339_v27  ;;  %v7468_v26 = vld [vmem:[%s12692_s0 + $0xdb8] sm:$0xff]  ;;  %v7467_v27 = vld [vmem:[%s12692_s0 + $0xdb0] sm:$0xff] }
 0x1fb   :  { %v2299_v44 = vpop.permute.xlu1 %2298  ;;  %v2297_v45 = vpop.permute.xlu0 %2296  ;;  %v3973_v46 = vld [vmem:[#allocation2 + $0x198] sm:$0xff]  ;;  %6280 = vmatprep.subr.bf16.mxu0 %v8864_v39  ;;  %v8455_v37 = vpack.c.bf16 %v7468_v26, %v7468_v26  ;;  %v8900_v26 = vld [vmem:[%s12693_s1 + $0x6e4] ss:$8 sps:$4 sm:$0xff]  }
 0x1fc   :  { %v3981_v47 = vld [vmem:[#allocation2 + $0x1d8] sm:$0xff]  ;;  %2321 = vst.msk [vmem:[#allocation2 + $0x64] sm:$0xf] %vm121_vm1, %v2299_v44  ;;  %2320 = vst.msk [vmem:[#allocation2 + $0x24] sm:$0xf] %vm121_vm1, %v2297_v45  ;;  %v8366_v44 = vpack.c.bf16 %v7291_v38, %v7291_v38  ;;  %v11342_v45 = vpop.f32.mrf.mxu0  ;;  %v8454_v38 = vpack.c.bf16 %v7467_v27, %v7467_v27 }
 0x1fd   :  { %v7820_v48 = vcombine.high %v3973_v46, %v3981_v47  ;;  %v7819_v49 = vcombine.low %v3973_v46, %v3981_v47  ;;  %v7356_v46 = vld [vmem:[%s12692_s0 + $0xcd8] sm:$0xff]  ;;  %v7355_v47 = vld [vmem:[%s12692_s0 + $0xcd0] sm:$0xff]  ;;  %v8903_v27 = vld [vmem:[%s12693_s1 + $0x744] ss:$8 sps:$4 sm:$0xff]  }
 0x1fe   :  { %2550 = vrot.lane.b32.xlu1 %v8421_v40, %s8980_s20  ;;  %2548 = vrot.lane.b32.xlu0 %v8420_v41, %s8980_s20  ;;  %v8399_v52 = vpack.c.bf16 %v7356_v46, %v7356_v46  ;;  %v8398_v53 = vpack.c.bf16 %v7355_v47, %v7355_v47  ;;  %v7420_v39 = vld [vmem:[%s12692_s0 + $0xd58] sm:$0xff] }
 0x1ff   :  { %6123 = vmatprep.mubr.bf16.mxu1 %v7820_v48  ;;  %v2120_v54 = vpop.permute.xlu1 %2119  ;;  %v2118_v55 = vpop.permute.xlu0 %2117  ;;  %v8867_v48 = vld [vmem:[%s12693_s1 + $0x664] ss:$8 sps:$4 sm:$0xff]   ;;  %v8880_v47 = vld [vmem:[%s12693_s1 + $0x610] ss:$8 sps:$4 sm:$0xff]  }
 0x200   :  { %6124 = vmatmul.mubr.bf16.gmra.mxu1 %v7819_v49  ;;  %2142 = vst.msk [vmem:[#allocation2 + $0x60] sm:$0xf] %vm187_vm2, %v2120_v54  ;;  %2141 = vst.msk [vmem:[#allocation2 + $0x20] sm:$0xf] %vm187_vm2, %v2118_v55  ;;  %v7388_v54 = vld [vmem:[%s12692_s0 + $0xd18] sm:$0xff]  ;;  %v7387_v55 = vld [vmem:[%s12692_s0 + $0xd10] sm:$0xff] }
 0x201   :  { %v8415_v59 = vpack.c.bf16 %v7388_v54, %v7388_v54  ;;  %v8888_v54 = vld [vmem:[%s12693_s1 + $0x604] ss:$8 sps:$4 sm:$0xff]  }
 0x202   :  { %2794 = vrot.lane.b32.xlu1 %v8453_v50, %s8980_s20  ;;  %2792 = vrot.lane.b32.xlu0 %v8452_v51, %s8980_s20  ;;  %v8865_v51 = vld [vmem:[%s12693_s1 + $0x660] ss:$8 sps:$4 sm:$0xff]  }
 0x203   :  { %v2364_v60 = vpop.permute.xlu1 %2363  ;;  %v2362_v61 = vpop.permute.xlu0 %2361  ;;  %2506 = vst.msk [vmem:[#allocation2 + $0x1e8] sm:$0xf] %vm55_vm0, %v8415_v59  ;;  %v8886_v59 = vld [vmem:[%s12693_s1 + $0x600] ss:$8 sps:$4 sm:$0xff]  }
 0x204   :  { %2386 = vst.msk [vmem:[#allocation2 + $0x64] sm:$0xf] %vm187_vm2, %v2364_v60  ;;  %2385 = vst.msk [vmem:[#allocation2 + $0x24] sm:$0xf] %vm187_vm2, %v2362_v61  ;;  %v8414_v60 = vpack.c.bf16 %v7387_v55, %v7387_v55  ;;  %v8870_v61 = vld [vmem:[%s12693_s1 + $0x654] ss:$8 sps:$4 sm:$0xff]  }
 0x205   :  { %v8891_v55 = vld [vmem:[%s12693_s1 + $0x764] ss:$8 sps:$4 sm:$0xff]  }
 0x206   :  { %2615 = vrot.lane.b32.xlu1 %v8429_v56, %s8981_s10  ;;  %2613 = vrot.lane.b32.xlu0 %v8428_v57, %s8981_s10  ;;  %v11366_v56 = vpop.f32.mrf.mxu0  ;;  %v7308_v57 = vld [vmem:[%s12692_s0 + $0xc78] sm:$0xff]  ;;  %2505 = vst.msk [vmem:[#allocation2 + $0x1a8] sm:$0xf] %vm55_vm0, %v8414_v60  ;;  %v8889_v60 = vld [vmem:[%s12693_s1 + $0x760] ss:$8 sps:$4 sm:$0xff]  }
 0x207   :  { %v2185_v6 = vpop.permute.xlu1 %2184  ;;  %v8375_v1 = vpack.c.bf16 %v7308_v57, %v7308_v57 }
 0x208   :  { %v2183_v7 = vpop.permute.xlu0 %2182  ;;  %2207 = vst.msk [vmem:[#allocation2 + $0x60] sm:$0xf] %vm253_vm3, %v2185_v6  ;;  %v11392_v5 = vpop.f32.mrf.mxu0  ;;  %v7372_v6 = vld [vmem:[%s12692_s0 + $0xcf8] sm:$0xff] }
 0x209   :  { %2206 = vst.msk [vmem:[#allocation2 + $0x20] sm:$0xf] %vm253_vm3, %v2183_v7  ;;  %v7371_v7 = vld [vmem:[%s12692_s0 + $0xcf0] sm:$0xff]  ;;  %v8407_v14 = vpack.c.bf16 %v7372_v6, %v7372_v6 }
 0x20a   :  { %2859 = vrot.lane.b32.xlu1 %v8461_v62, %s8981_s10  ;;  %2857 = vrot.lane.b32.xlu0 %v8460_v63, %s8981_s10  ;;  %v8406_v15 = vpack.c.bf16 %v7371_v7, %v7371_v7 }
 0x20b   :  { %v2429_v16 = vpop.permute.xlu1 %2428 }
 0x20c   :  { %v2427_v17 = vpop.permute.xlu0 %2426  ;;  %2451 = vst.msk [vmem:[#allocation2 + $0x64] sm:$0xf] %vm253_vm3, %v2429_v16  ;;  %v11412_v16 = vpop.f32.mrf.mxu0 }
 0x20d   :  { %2450 = vst.msk [vmem:[#allocation2 + $0x24] sm:$0xf] %vm253_vm3, %v2427_v17  ;;  %v7404_v17 = vld [vmem:[%s12692_s0 + $0xd38] sm:$0xff] }
 0x20e   :  { %2680 = vrot.lane.b32.xlu1 %v8437_v8, %s8982_s11  ;;  %2678 = vrot.lane.b32.xlu0 %v8436_v9, %s8982_s11  ;;  %v8447_v8 = vpack.c.bf16 %v7452_v3, %v7452_v3  ;;  %v8446_v9 = vpack.c.bf16 %v7451_v4, %v7451_v4  ;;  %v7435_v4 = vld [vmem:[%s12692_s0 + $0xd70] sm:$0xff] }
 0x210   :  { %v2543_v22 = vpop.permute.xlu1 %2542  ;;  %v2541_v23 = vpop.permute.xlu0 %2540  ;;  %2750 = vst.msk [vmem:[#allocation2 + $0x1ec] sm:$0xf] %vm55_vm0, %v8447_v8  ;;  %2749 = vst.msk [vmem:[#allocation2 + $0x1ac] sm:$0xf] %vm55_vm0, %v8446_v9  ;;  %v8894_v8 = vld [vmem:[%s12693_s1 + $0x6f4] ss:$8 sps:$4 sm:$0xff]  }
 0x211   :  { %2565 = vst.msk [vmem:[#allocation2 + $0x68] sm:$0xf] %vm121_vm1, %v2543_v22  ;;  %2564 = vst.msk [vmem:[#allocation2 + $0x28] sm:$0xf] %vm121_vm1, %v2541_v23  ;;  %v8874_v22 = vld [vmem:[%s12693_s1 + $0x630] ss:$8 sps:$4 sm:$0xff]   ;;  %v8423_v23 = vpack.c.bf16 %v7404_v17, %v7404_v17 }
 0x212   :  { %2924 = vrot.lane.b32.xlu1 %v8469_v18, %s8982_s11  ;;  %2922 = vrot.lane.b32.xlu0 %v8468_v19, %s8982_s11  ;;  %v7403_v18 = vld [vmem:[%s12692_s0 + $0xd30] sm:$0xff] }
 0x213   :  { %v3934_v31 = vld [vmem:[#allocation2 + $0x60] sm:$0xff]  ;;  %v8876_v19 = vld [vmem:[%s12693_s1 + $0x634] ss:$8 sps:$4 sm:$0xff]  }
 0x214   :  { %v2787_v28 = vpop.permute.xlu1 %2786  ;;  %v2785_v29 = vpop.permute.xlu0 %2784  ;;  %v3926_v30 = vld [vmem:[#allocation2 + $0x20] sm:$0xff]  ;;  %v8897_v9 = vld [vmem:[%s12693_s1 + $0x754] ss:$8 sps:$4 sm:$0xff]  }
 0x215   :  { %2809 = vst.msk [vmem:[#allocation2 + $0x6c] sm:$0xf] %vm121_vm1, %v2787_v28  ;;  %2808 = vst.msk [vmem:[#allocation2 + $0x2c] sm:$0xf] %vm121_vm1, %v2785_v29  ;;  %v7773_v32 = vcombine.low %v3926_v30, %v3934_v31  ;;  %v7774_v33 = vcombine.high %v3926_v30, %v3934_v31  ;;  %v8879_v28 = vld [vmem:[%s12693_s1 + $0x624] ss:$8 sps:$4 sm:$0xff]  }
 0x216   :  { %2066 = vrot.lane.b32.xlu1 %v8359_v24, %s8980_s20  ;;  %2064 = vrot.lane.b32.xlu0 %v8358_v25, %s8980_s20  ;;  %v8422_v24 = vpack.c.bf16 %v7403_v18, %v7403_v18  ;;  %v11430_v25 = vpop.f32.mrf.mxu0  ;;  %v8438_v18 = vpack.c.bf16 %v7435_v4, %v7435_v4 }
 0x217   :  { %6166 = vmatprep.mubr.bf16.mxu0 %v7774_v33  ;;  %v8877_v33 = vld [vmem:[%s12693_s1 + $0x620] ss:$8 sps:$4 sm:$0xff]  }
 0x218   :  { %v2608_v40 = vpop.permute.xlu1 %2607  ;;  %v2606_v41 = vpop.permute.xlu0 %2605  ;;  %6167 = vmatmul.mubr.bf16.vlgmr.msra.gmra.mxu0 %v7773_v32 }
 0x219   :  { %2630 = vst.msk [vmem:[#allocation2 + $0x68] sm:$0xf] %vm187_vm2, %v2608_v40  ;;  %2629 = vst.msk [vmem:[#allocation2 + $0x28] sm:$0xf] %vm187_vm2, %v2606_v41  ;;  %6281 = vmatpush1.bf16.msra.mxu0 %v8862_v42  ;;  %v11451_v40 = vpop.f32.mrf.mxu0  ;;  %v7419_v41 = vld [vmem:[%s12692_s0 + $0xd50] sm:$0xff] }
 0x21a   :  { %2310 = vrot.lane.b32.xlu1 %v8391_v34, %s8980_s20  ;;  %2308 = vrot.lane.b32.xlu0 %v8390_v35, %s8980_s20  ;;  %v8882_v42 = vld [vmem:[%s12693_s1 + $0x614] ss:$8 sps:$4 sm:$0xff]  }
 0x21b   :  { %6282 = vmatprep.subr.bf16.mxu0 %v8867_v48  ;;  %v8883_v48 = vld [vmem:[%s12693_s1 + $0x770] ss:$8 sps:$4 sm:$0xff]  }
 0x21c   :  { %v2852_v49 = vpop.permute.xlu1 %2851  ;;  %v2850_v50 = vpop.permute.xlu0 %2849 }
 0x21d   :  { %2874 = vst.msk [vmem:[#allocation2 + $0x6c] sm:$0xf] %vm187_vm2, %v2852_v49  ;;  %2873 = vst.msk [vmem:[#allocation2 + $0x2c] sm:$0xf] %vm187_vm2, %v2850_v50  ;;  %6283 = vmatpush1.bf16.msra.mxu0 %v8865_v51  ;;  %v8431_v49 = vpack.c.bf16 %v7420_v39, %v7420_v39  ;;  %v8430_v50 = vpack.c.bf16 %v7419_v41, %v7419_v41  ;;  %v7484_v51 = vld [vmem:[%s12692_s0 + $0xdd8] sm:$0xff] }
 0x21e   :  { %2131 = vrot.lane.b32.xlu1 %v8367_v43, %s8981_s10  ;;  %2129 = vrot.lane.b32.xlu0 %v8366_v44, %s8981_s10  ;;  %v8885_v43 = vld [vmem:[%s12693_s1 + $0x774] ss:$8 sps:$4 sm:$0xff]  }
 0x21f   :  { %6284 = vmatprep.subr.bf16.mxu0 %v8870_v61  ;;  %6353 = vmatprep.subr.bf16.mxu1 %v8885_v43  ;;  %v11492_v61 = vpop.f32.mrf.mxu1  ;;  %v8906_v39 = vld [vmem:[%s12693_s1 + $0x6d4] ss:$8 sps:$4 sm:$0xff]  }
 0x220   :  { %v2673_v62 = vpop.permute.xlu1 %2672  ;;  %v2671_v63 = vpop.permute.xlu0 %2670  ;;  %v8909_v41 = vld [vmem:[%s12693_s1 + $0x734] ss:$8 sps:$4 sm:$0xff]  }
 0x221   :  { %2695 = vst.msk [vmem:[#allocation2 + $0x68] sm:$0xf] %vm253_vm3, %v2673_v62  ;;  %2694 = vst.msk [vmem:[#allocation2 + $0x28] sm:$0xf] %vm253_vm3, %v2671_v63  ;;  %6285 = vmatpush1.bf16.msra.mxu0 %v8868_v0  ;;  %v7436_v62 = vld [vmem:[%s12692_s0 + $0xd78] sm:$0xff]  ;;  %v8463_v63 = vpack.c.bf16 %v7484_v51, %v7484_v51 }
 0x222   :  { %2375 = vrot.lane.b32.xlu1 %v8399_v52, %s8981_s10  ;;  %2373 = vrot.lane.b32.xlu0 %v8398_v53, %s8981_s10  ;;  %v11475_v52 = vpop.f32.mrf.mxu0  ;;  %v7483_v53 = vld [vmem:[%s12692_s0 + $0xdd0] sm:$0xff]  ;;  %v8439_v17 = vpack.c.bf16 %v7436_v62, %v7436_v62  ;;  %v8910_v62 = vld [vmem:[%s12693_s1 + $0x6c0] ss:$8 sps:$4 sm:$0xff]  }
 0x223   :  { %6286 = vmatprep.subr.bf16.mxu0 %v8873_v10  ;;  %v8462_v0 = vpack.c.bf16 %v7483_v53, %v7483_v53  ;;  %v7589_v53 = vld [vmem:[%s12692_s0 + $0x6a0] sm:$0xff] }
 0x224   :  { %v2917_v11 = vpop.permute.xlu1 %2916  ;;  %v2915_v12 = vpop.permute.xlu0 %2914 }
 0x225   :  { %2939 = vst.msk [vmem:[#allocation2 + $0x6c] sm:$0xf] %vm253_vm3, %v2917_v11  ;;  %2938 = vst.msk [vmem:[#allocation2 + $0x2c] sm:$0xf] %vm253_vm3, %v2915_v12  ;;  %6287 = vmatpush1.bf16.msra.mxu0 %v8871_v13  ;;  %v11507_v3 = vpop.f32.mrf.mxu0  ;;  %v8892_v12 = vld [vmem:[%s12693_s1 + $0x6f0] ss:$8 sps:$4 sm:$0xff]  }
 0x226   :  { %2196 = vrot.lane.b32.xlu1 %v8375_v1, %s8982_s11  ;;  %2194 = vrot.lane.b32.xlu0 %v8374_v2, %s8982_s11  ;;  %v7510_v1 = vld [vmem:[%s12692_s0 + $0x608] sm:$0xff]  ;;  %v7509_v2 = vld [vmem:[%s12692_s0 + $0x600] sm:$0xff] }
 0x227   :  { %6288 = vmatprep.subr.bf16.mxu0 %v8876_v19  ;;  %v8473_v6 = vpack.c.bf16 %v7510_v1, %v7510_v1  ;;  %v8472_v7 = vpack.c.bf16 %v7509_v2, %v7509_v2  ;;  %v8895_v13 = vld [vmem:[%s12693_s1 + $0x750] ss:$8 sps:$4 sm:$0xff]   ;;  %v7574_v19 = vld [vmem:[%s12692_s0 + $0x688] sm:$0xff] }
 0x228   :  { %v2059_v20 = vpop.permute.xlu1 %2058  ;;  %v2057_v21 = vpop.permute.xlu0 %2056  ;;  %v8913_v2 = vld [vmem:[%s12693_s1 + $0x720] ss:$8 sps:$4 sm:$0xff]  }
 0x229   :  { %2079 = vst.msk [vmem:[#allocation2 + $0xe0] sm:$0xf] %vm121_vm1, %v2059_v20  ;;  %2078 = vst.msk [vmem:[#allocation2 + $0xa0] sm:$0xf] %vm121_vm1, %v2057_v21  ;;  %6289 = vmatpush1.bf16.msra.mxu0 %v8874_v22  ;;  %v7573_v20 = vld [vmem:[%s12692_s0 + $0x680] sm:$0xff]  ;;  %v11541_v21 = vpop.f32.mrf.mxu0  ;;  %v7499_v22 = vld [vmem:[%s12692_s0 + $0xdf0] sm:$0xff] }
 0x22a   :  { %2440 = vrot.lane.b32.xlu1 %v8407_v14, %s8982_s11  ;;  %2438 = vrot.lane.b32.xlu0 %v8406_v15, %s8982_s11  ;;  %v11524_v14 = vpop.f32.mrf.mxu1  ;;  %v7500_v15 = vld [vmem:[%s12692_s0 + $0xdf8] sm:$0xff]  ;;  %2988 = vst.msk [vmem:[#allocation2 + $0x70] sm:$0xf] %vm55_vm0, %v8473_v6  ;;  %2987 = vst.msk [vmem:[#allocation2 + $0x30] sm:$0xf] %vm55_vm0, %v8472_v7  ;;  %v8512_v6 = vpack.c.bf16 %v7589_v53, %v7589_v53  ;;  %v7542_v7 = vld [vmem:[%s12692_s0 + $0x648] sm:$0xff] }
 0x22b   :  { %6290 = vmatprep.subr.bf16.mxu0 %v8879_v28 }
 0x22c   :  { %v2303_v29 = vpop.permute.xlu1 %2302  ;;  %v2301_v30 = vpop.permute.xlu0 %2300  ;;  %v3927_v31 = vld [vmem:[#allocation2 + $0x28] sm:$0xff] }
 0x22d   :  { %v3935_v32 = vld [vmem:[#allocation2 + $0x68] sm:$0xff]  ;;  %2323 = vst.msk [vmem:[#allocation2 + $0xe4] sm:$0xf] %vm121_vm1, %v2303_v29  ;;  %2322 = vst.msk [vmem:[#allocation2 + $0xa4] sm:$0xf] %vm121_vm1, %v2301_v30  ;;  %6291 = vmatpush1.bf16.msra.mxu0 %v8877_v33  ;;  %v8471_v33 = vpack.c.bf16 %v7500_v15, %v7500_v15 }
 0x22e   :  { %v7775_v34 = vcombine.low %v3927_v31, %v3935_v32  ;;  %v7776_v35 = vcombine.high %v3927_v31, %v3935_v32  ;;  %2554 = vrot.lane.b32.xlu1 %v8423_v23, %s8980_s20  ;;  %2552 = vrot.lane.b32.xlu0 %v8422_v24, %s8980_s20  ;;  %v8505_v23 = vpack.c.bf16 %v7574_v19, %v7574_v19  ;;  %v8898_v30 = vld [vmem:[%s12693_s1 + $0x6e0] ss:$8 sps:$4 sm:$0xff]   ;;  %v11558_v32 = vpop.f32.mrf.mxu1  ;;  %v8916_v15 = vld [vmem:[%s12693_s1 + $0x6b0] ss:$8 sps:$4 sm:$0xff]  }
 0x22f   :  { %6292 = vmatprep.subr.bf16.mxu0 %v8882_v42  ;;  %v8504_v24 = vpack.c.bf16 %v7573_v20, %v7573_v20  ;;  %v8901_v31 = vld [vmem:[%s12693_s1 + $0x740] ss:$8 sps:$4 sm:$0xff]   ;;  %v8489_v19 = vpack.c.bf16 %v7542_v7, %v7542_v7  ;;  %v8936_v7 = vld [vmem:[%s12693_s1 + $0x684] ss:$8 sps:$4 sm:$0xff]  }
 0x230   :  { %6239 = vmatprep.mubr.bf16.mxu1 %v7776_v35  ;;  %v2124_v44 = vpop.permute.xlu1 %2123  ;;  %v2122_v46 = vpop.permute.xlu0 %2121  ;;  %3232 = vst.msk [vmem:[#allocation2 + $0x74] sm:$0xf] %vm55_vm0, %v8505_v23  ;;  %v7526_v35 = vld [vmem:[%s12692_s0 + $0x628] sm:$0xff] }
 0x231   :  { %6240 = vmatmul.mubr.bf16.vlgmr.msra.gmra.mxu1 %v7775_v34  ;;  %2144 = vst.msk [vmem:[#allocation2 + $0xe0] sm:$0xf] %vm187_vm2, %v2124_v44  ;;  %2143 = vst.msk [vmem:[#allocation2 + $0xa0] sm:$0xf] %vm187_vm2, %v2122_v46  ;;  %6293 = vmatpush1.bf16.msra.mxu0 %v8880_v47  ;;  %v8470_v34 = vpack.c.bf16 %v7499_v22, %v7499_v22  ;;  %v8904_v44 = vld [vmem:[%s12693_s1 + $0x6d0] ss:$8 sps:$4 sm:$0xff]   ;;  %v11586_v47 = vpop.f32.mrf.mxu1 }
 0x232   :  { %2798 = vrot.lane.b32.xlu1 %v8455_v37, %s8980_s20  ;;  %2796 = vrot.lane.b32.xlu0 %v8454_v38, %s8980_s20  ;;  %3231 = vst.msk [vmem:[#allocation2 + $0x34] sm:$0xf] %vm55_vm0, %v8504_v24  ;;  %v11569_v37 = vpop.f32.mrf.mxu0  ;;  %v7525_v38 = vld [vmem:[%s12692_s0 + $0x620] sm:$0xff]  ;;  %v8907_v46 = vld [vmem:[%s12693_s1 + $0x730] ss:$8 sps:$4 sm:$0xff]  }
 0x233   :  { %6354 = vmatpush1.bf16.msra.mxu1 %v8883_v48  ;;  %6294 = vmatprep.subr.bf16.mxu0 %v8888_v54  ;;  %v8481_v48 = vpack.c.bf16 %v7526_v35, %v7526_v35  ;;  %v8912_v54 = vld [vmem:[%s12693_s1 + $0x6c4] ss:$8 sps:$4 sm:$0xff]  }
 0x234   :  { %v2368_v57 = vpop.permute.xlu1 %2367  ;;  %v2366_v58 = vpop.permute.xlu0 %2365  ;;  %6355 = vmatprep.subr.bf16.mxu1 %v8891_v55  ;;  %v8915_v55 = vld [vmem:[%s12693_s1 + $0x724] ss:$8 sps:$4 sm:$0xff]  }
 0x235   :  { %2388 = vst.msk [vmem:[#allocation2 + $0xe4] sm:$0xf] %vm187_vm2, %v2368_v57  ;;  %2387 = vst.msk [vmem:[#allocation2 + $0xa4] sm:$0xf] %vm187_vm2, %v2366_v58  ;;  %6295 = vmatpush1.bf16.msra.mxu0 %v8886_v59  ;;  %v11595_v51 = vpop.f32.mrf.mxu0  ;;  %v7606_v22 = vld [vmem:[%s12692_s0 + $0x6c8] sm:$0xff]  ;;  %v7605_v24 = vld [vmem:[%s12692_s0 + $0x6c0] sm:$0xff] }
 0x236   :  { %2619 = vrot.lane.b32.xlu1 %v8431_v49, %s8981_s10  ;;  %2617 = vrot.lane.b32.xlu0 %v8430_v50, %s8981_s10  ;;  %v8480_v49 = vpack.c.bf16 %v7525_v38, %v7525_v38  ;;  %v7590_v50 = vld [vmem:[%s12692_s0 + $0x6a8] sm:$0xff]  ;;  %v8521_v35 = vpack.c.bf16 %v7606_v22, %v7606_v22  ;;  %v8520_v38 = vpack.c.bf16 %v7605_v24, %v7605_v24 }
 0x237   :  { %6356 = vmatpush1.bf16.msra.mxu1 %v8889_v60  ;;  %6296 = vmatprep.subr.bf16.mxu0 %v8894_v8  ;;  %v8513_v4 = vpack.c.bf16 %v7590_v50, %v7590_v50  ;;  %v11621_v8 = vpop.f32.mrf.mxu0  ;;  %v7654_v24 = vld [vmem:[%s12692_s0 + $0x728] sm:$0xff] }
 0x238   :  { %v2189_v10 = vpop.permute.xlu1 %2188  ;;  %v2187_v11 = vpop.permute.xlu0 %2186  ;;  %6357 = vmatprep.subr.bf16.mxu1 %v8897_v9  ;;  %v7541_v9 = vld [vmem:[%s12692_s0 + $0x640] sm:$0xff] }
 0x239   :  { %2209 = vst.msk [vmem:[#allocation2 + $0xe0] sm:$0xf] %vm253_vm3, %v2189_v10  ;;  %2208 = vst.msk [vmem:[#allocation2 + $0xa0] sm:$0xf] %vm253_vm3, %v2187_v11  ;;  %6297 = vmatpush2.bf16.msra.mxu0 %v8892_v12  ;;  %v8918_v10 = vld [vmem:[%s12693_s1 + $0x6b4] ss:$8 sps:$4 sm:$0xff]   ;;  %v8488_v20 = vpack.c.bf16 %v7541_v9, %v7541_v9  ;;  %v11647_v23 = vpop.f32.mrf.mxu0 }
 0x23a   :  { %2863 = vrot.lane.b32.xlu1 %v8463_v63, %s8981_s10  ;;  %2861 = vrot.lane.b32.xlu0 %v8462_v0, %s8981_s10  ;;  %v11609_v63 = vpop.f32.mrf.mxu1  ;;  %v8921_v11 = vld [vmem:[%s12693_s1 + $0x714] ss:$8 sps:$4 sm:$0xff]   ;;  %v8939_v9 = vld [vmem:[%s12693_s1 + $0x7e4] ss:$8 sps:$4 sm:$0xff]  }
 0x23b   :  { %6358 = vmatpush1.bf16.msra.mxu1 %v8895_v13  ;;  %6298 = vmatprep.subr.bf16.mxu0 %v8900_v26  ;;  %v8924_v26 = vld [vmem:[%s12693_s1 + $0x6a4] ss:$8 sps:$4 sm:$0xff]  }
 0x23c   :  { %v2433_v28 = vpop.permute.xlu1 %2432  ;;  %v2431_v29 = vpop.permute.xlu0 %2430  ;;  %6359 = vmatprep.subr.bf16.mxu1 %v8903_v27  ;;  %v8927_v27 = vld [vmem:[%s12693_s1 + $0x704] ss:$8 sps:$4 sm:$0xff]  }
 0x23d   :  { %2453 = vst.msk [vmem:[#allocation2 + $0xe4] sm:$0xf] %vm253_vm3, %v2433_v28  ;;  %2452 = vst.msk [vmem:[#allocation2 + $0xa4] sm:$0xf] %vm253_vm3, %v2431_v29  ;;  %6299 = vmatpush2.bf16.msra.mxu0 %v8898_v30  ;;  %v8922_v30 = vld [vmem:[%s12693_s1 + $0x6a0] ss:$8 sps:$4 sm:$0xff]  }
 0x23e   :  { %2684 = vrot.lane.b32.xlu1 %v8439_v17, %s8982_s11  ;;  %2682 = vrot.lane.b32.xlu0 %v8438_v18, %s8982_s11  ;;  %v8919_v17 = vld [vmem:[%s12693_s1 + $0x710] ss:$8 sps:$4 sm:$0xff]   ;;  %v11638_v18 = vpop.f32.mrf.mxu1 }
 0x23f   :  { %6360 = vmatpush1.bf16.msra.mxu1 %v8901_v31  ;;  %6300 = vmatprep.subr.bf16.mxu0 %v8906_v39  ;;  %v8925_v31 = vld [vmem:[%s12693_s1 + $0x700] ss:$8 sps:$4 sm:$0xff]  }
 0x240   :  { %v2547_v42 = vpop.permute.xlu1 %2546  ;;  %v2545_v43 = vpop.permute.xlu0 %2544  ;;  %6361 = vmatprep.subr.bf16.mxu1 %v8909_v41  ;;  %v7638_v39 = vld [vmem:[%s12692_s0 + $0x708] sm:$0xff]  ;;  %v7637_v41 = vld [vmem:[%s12692_s0 + $0x700] sm:$0xff] }
 0x241   :  { %2567 = vst.msk [vmem:[#allocation2 + $0xe8] sm:$0xf] %vm121_vm1, %v2547_v42  ;;  %2566 = vst.msk [vmem:[#allocation2 + $0xa8] sm:$0xf] %vm121_vm1, %v2545_v43  ;;  %6301 = vmatpush2.bf16.msra.mxu0 %v8904_v44  ;;  %v11679_v42 = vpop.f32.mrf.mxu0  ;;  %v7557_v43 = vld [vmem:[%s12692_s0 + $0x660] sm:$0xff]  ;;  %v8537_v44 = vpack.c.bf16 %v7638_v39, %v7638_v39 }
 0x242   :  { %2928 = vrot.lane.b32.xlu1 %v8471_v33, %s8982_s11  ;;  %2926 = vrot.lane.b32.xlu0 %v8470_v34, %s8982_s11  ;;  %v11664_v33 = vpop.f32.mrf.mxu1  ;;  %v7558_v34 = vld [vmem:[%s12692_s0 + $0x668] sm:$0xff] }
 0x243   :  { %6362 = vmatpush1.bf16.msra.mxu1 %v8907_v46  ;;  %6302 = vmatprep.subr.bf16.mxu0 %v8912_v54  ;;  %v8536_v46 = vpack.c.bf16 %v7637_v41, %v7637_v41  ;;  %v8928_v54 = vld [vmem:[%s12693_s1 + $0x690] ss:$8 sps:$4 sm:$0xff]   ;;  %3476 = vst.msk [vmem:[#allocation2 + $0x78] sm:$0xf] %vm55_vm0, %v8537_v44  ;;  %v7718_v41 = vld [vmem:[%s12692_s0 + $0x7a8] sm:$0xff]  ;;  %v7717_v44 = vld [vmem:[%s12692_s0 + $0x7a0] sm:$0xff] }
 0x244   :  { %v2791_v57 = vpop.permute.xlu1 %2790  ;;  %v2789_v58 = vpop.permute.xlu0 %2788  ;;  %v3942_v59 = vld [vmem:[#allocation2 + $0xa0] sm:$0xff]  ;;  %6363 = vmatprep.subr.bf16.mxu1 %v8915_v55  ;;  %v8931_v55 = vld [vmem:[%s12693_s1 + $0x7f0] ss:$8 sps:$4 sm:$0xff]  }
 0x245   :  { %v3950_v60 = vld [vmem:[#allocation2 + $0xe0] sm:$0xff]  ;;  %2811 = vst.msk [vmem:[#allocation2 + $0xec] sm:$0xf] %vm121_vm1, %v2791_v57  ;;  %2810 = vst.msk [vmem:[#allocation2 + $0xac] sm:$0xf] %vm121_vm1, %v2789_v58  ;;  %6303 = vmatpush2.bf16.msra.mxu0 %v8910_v62  ;;  %v11696_v57 = vpop.f32.mrf.mxu1  ;;  %v7622_v58 = vld [vmem:[%s12692_s0 + $0x6e8] sm:$0xff] }
 0x246   :  { %v7790_v0 = vcombine.high %v3942_v59, %v3950_v60  ;;  %v7789_v1 = vcombine.low %v3942_v59, %v3950_v60  ;;  %3030 = vrot.lane.b32.xlu1 %v8481_v48, %s8980_s20  ;;  %3028 = vrot.lane.b32.xlu0 %v8480_v49, %s8980_s20  ;;  %v8930_v48 = vld [vmem:[%s12693_s1 + $0x694] ss:$8 sps:$4 sm:$0xff]   ;;  %3475 = vst.msk [vmem:[#allocation2 + $0x38] sm:$0xf] %vm55_vm0, %v8536_v46  ;;  %v7702_v62 = vld [vmem:[%s12692_s0 + $0x788] sm:$0xff] }
 0x247   :  { %6364 = vmatpush1.bf16.msra.mxu1 %v8913_v2  ;;  %6304 = vmatprep.subr.bf16.mxu0 %v8918_v10  ;;  %v8933_v49 = vld [vmem:[%s12693_s1 + $0x7f4] ss:$8 sps:$4 sm:$0xff]   ;;  %v8497_v59 = vpack.c.bf16 %v7558_v34, %v7558_v34  ;;  %v8496_v60 = vpack.c.bf16 %v7557_v43, %v7557_v43  ;;  %v7621_v2 = vld [vmem:[%s12692_s0 + $0x6e0] sm:$0xff] }
 0x248   :  { %6176 = vmatprep.mubr.bf16.mxu0 %v7790_v0  ;;  %v2612_v12 = vpop.permute.xlu1 %2611  ;;  %v2610_v13 = vpop.permute.xlu0 %2609  ;;  %6365 = vmatprep.subr.bf16.mxu1 %v8921_v11  ;;  %v7701_v0 = vld [vmem:[%s12692_s0 + $0x780] sm:$0xff]  ;;  %v8528_v22 = vpack.c.bf16 %v7621_v2, %v7621_v2  ;;  %v7670_v2 = vld [vmem:[%s12692_s0 + $0x748] sm:$0xff] }
 0x249   :  { %6177 = vmatmul.mubr.bf16.gmra.mxu0 %v7789_v1  ;;  %2632 = vst.msk [vmem:[#allocation2 + $0xe8] sm:$0xf] %vm187_vm2, %v2612_v12  ;;  %2631 = vst.msk [vmem:[#allocation2 + $0xa8] sm:$0xf] %vm187_vm2, %v2610_v13  ;;  %v11713_v1 = vpop.f32.mrf.mxu0  ;;  %v8934_v12 = vld [vmem:[%s12693_s1 + $0x680] ss:$8 sps:$4 sm:$0xff]  }
 0x24a   :  { %3274 = vrot.lane.b32.xlu1 %v8513_v4, %s8980_s20  ;;  %3272 = vrot.lane.b32.xlu0 %v8512_v6, %s8980_s20  ;;  %v8569_v4 = vpack.c.bf16 %v7702_v62, %v7702_v62  ;;  %v8568_v6 = vpack.c.bf16 %v7701_v0, %v7701_v0  ;;  %v8937_v13 = vld [vmem:[%s12693_s1 + $0x7e0] ss:$8 sps:$4 sm:$0xff]   ;;  %v8576_v0 = vpack.c.bf16 %v7717_v44, %v7717_v44 }
 0x24b   :  { %6305 = vmatpush2.bf16.msra.mxu0 %v8916_v15  ;;  %6366 = vmatpush1.bf16.msra.mxu1 %v8919_v17  ;;  %v11730_v15 = vpop.f32.mrf.mxu1 }
 0x24c   :  { %v2856_v28 = vpop.permute.xlu1 %2855  ;;  %v2854_v29 = vpop.permute.xlu0 %2853  ;;  %6306 = vmatprep.subr.bf16.mxu0 %v8924_v26  ;;  %6367 = vmatprep.subr.bf16.mxu1 %v8927_v27  ;;  %3720 = vst.msk [vmem:[#allocation2 + $0x7c] sm:$0xf] %vm55_vm0, %v8569_v4  ;;  %3719 = vst.msk [vmem:[#allocation2 + $0x3c] sm:$0xf] %vm55_vm0, %v8568_v6  ;;  %v7653_v27 = vld [vmem:[%s12692_s0 + $0x720] sm:$0xff] }
 0x24d   :  { %2876 = vst.msk [vmem:[#allocation2 + $0xec] sm:$0xf] %vm187_vm2, %v2856_v28  ;;  %2875 = vst.msk [vmem:[#allocation2 + $0xac] sm:$0xf] %vm187_vm2, %v2854_v29  ;;  %v11758_v34 = vpop.f32.mrf.mxu1  ;;  %v8544_v39 = vpack.c.bf16 %v7653_v27, %v7653_v27  ;;  %v7669_v6 = vld [vmem:[%s12692_s0 + $0x740] sm:$0xff] }
 0x24e   :  { %3095 = vrot.lane.b32.xlu1 %v8489_v19, %s8981_s10  ;;  %3093 = vrot.lane.b32.xlu0 %v8488_v20, %s8981_s10  ;;  %v5952_v19 = vadd.f32 %v11524_v14, %v11342_v45  ;;  %v8529_v20 = vpack.c.bf16 %v7622_v58, %v7622_v58  ;;  %v8942_v45 = vld [vmem:[%s12693_s1 + $0x7d4] ss:$8 sps:$4 sm:$0xff]   ;;  %v5954_v14 = vadd.f32 %v11558_v32, %v11366_v56 }
 0x24f   :  { %6307 = vmatpush2.bf16.msra.mxu0 %v8922_v30  ;;  %6368 = vmatpush1.bf16.msra.mxu1 %v8925_v31  ;;  %v8940_v31 = vld [vmem:[%s12693_s1 + $0x7d0] ss:$8 sps:$4 sm:$0xff]   ;;  %v5956_v56 = vadd.f32 %v11586_v47, %v11392_v5  ;;  %v8945_v5 = vld [vmem:[%s12693_s1 + $0x7c4] ss:$8 sps:$4 sm:$0xff]   ;;  %v5960_v47 = vadd.f32 %v11609_v63, %v11412_v16  ;;  %v8943_v16 = vld [vmem:[%s12693_s1 + $0x7c0] ss:$8 sps:$4 sm:$0xff]   ;;  %v5962_v63 = vadd.f32 %v11638_v18, %v11430_v25 }
 0x250   :  { %v2677_v50 = vpop.permute.xlu1 %2676  ;;  %v2675_v53 = vpop.permute.xlu0 %2674  ;;  %6308 = vmatprep.subr.bf16.mxu0 %v8930_v48  ;;  %6369 = vmatprep.subr.bf16.mxu1 %v8933_v49  ;;  %v8948_v25 = vld [vmem:[%s12693_s1 + $0x7b4] ss:$8 sps:$4 sm:$0xff]   ;;  %v5964_v18 = vadd.f32 %v11664_v33, %v11451_v40  ;;  %v5966_v40 = vadd.f32 %v11696_v57, %v11475_v52  ;;  %v8951_v52 = vld [vmem:[%s12693_s1 + $0x7a4] ss:$8 sps:$4 sm:$0xff]   ;;  %v5970_v57 = vadd.f32 %v11730_v15, %v11507_v3  ;;  %v8949_v3 = vld [vmem:[%s12693_s1 + $0x7a0] ss:$8 sps:$4 sm:$0xff]  }
 0x251   :  { %2697 = vst.msk [vmem:[#allocation2 + $0xe8] sm:$0xf] %vm253_vm3, %v2677_v50  ;;  %2696 = vst.msk [vmem:[#allocation2 + $0xa8] sm:$0xf] %vm253_vm3, %v2675_v53  ;;  %v5972_v15 = vadd.f32 %v11758_v34, %v11541_v21  ;;  %v7685_v21 = vld [vmem:[%s12692_s0 + $0x760] sm:$0xff] }
 0x252   :  { %3339 = vrot.lane.b32.xlu1 %v8521_v35, %s8981_s10  ;;  %3337 = vrot.lane.b32.xlu0 %v8520_v38, %s8981_s10  ;;  %v8545_v38 = vpack.c.bf16 %v7654_v24, %v7654_v24 }
 0x253   :  { %6309 = vmatpush2.bf16.msra.mxu0 %v8928_v54  ;;  %6370 = vmatpush2.bf16.msra.mxu1 %v8931_v55  ;;  %v11781_v54 = vpop.f32.mrf.mxu1 }
 0x254   :  { %v2921_v10 = vpop.permute.xlu1 %2920  ;;  %v2919_v11 = vpop.permute.xlu0 %2918  ;;  %6310 = vmatprep.subr.bf16.mxu0 %v8936_v7  ;;  %6371 = vmatprep.subr.bf16.mxu1 %v8939_v9 }
 0x255   :  { %2941 = vst.msk [vmem:[#allocation2 + $0xec] sm:$0xf] %vm253_vm3, %v2921_v10  ;;  %2940 = vst.msk [vmem:[#allocation2 + $0xac] sm:$0xf] %vm253_vm3, %v2919_v11  ;;  %v11734_v17 = vpop.f32.mrf.mxu0  ;;  %v5975_v11 = vpop.f32.mrf.mxu1 }
 0x256   :  { %3160 = vrot.lane.b32.xlu1 %v8497_v59, %s8982_s11  ;;  %3158 = vrot.lane.b32.xlu0 %v8496_v60, %s8982_s11  ;;  %v8577_v60 = vpack.c.bf16 %v7718_v41, %v7718_v41  ;;  %v7511_v41 = vld [vmem:[%s12692_s0 + $0x610] sm:$0xff] }
 0x257   :  { %v6024_v26 = vpop.f32.mrf.mxu0  ;;  %6311 = vmatpush2.bf16.msra.mxu0 %v8934_v12  ;;  %6372 = vmatpush2.bf16.msra.mxu1 %v8937_v13  ;;  %v8553_v13 = vpack.c.bf16 %v7670_v2, %v7670_v2  ;;  %v8474_v44 = vpack.c.bf16 %v7511_v41, %v7511_v41 }
 0x258   :  { %v11753_v28 = vadd.f32 %v6024_v26, %v5952_v19  ;;  %v2063_v29 = vpop.permute.xlu1 %2062  ;;  %v2061_v30 = vpop.permute.xlu0 %2060  ;;  %6373 = vmatprep.subr.bf16.mxu1 %v8942_v45  ;;  %v8946_v19 = vld [vmem:[%s12693_s1 + $0x7b0] ss:$8 sps:$4 sm:$0xff]   ;;  %v7733_v26 = vld [vmem:[%s12692_s0 + $0x7c0] sm:$0xff] }
 0x259   :  { %2081 = vst.msk [vmem:[#allocation2 + $0x160] sm:$0xf] %vm121_vm1, %v2063_v29  ;;  %2080 = vst.msk [vmem:[#allocation2 + $0x120] sm:$0xf] %vm121_vm1, %v2061_v30  ;;  %v6026_v35 = vpop.f32.mrf.mxu0  ;;  %v5979_v29 = vpop.f32.mrf.mxu1 }
 0x25a   :  { %v11764_v32 = vadd.f32 %v6026_v35, %v5954_v14  ;;  %3404 = vrot.lane.b32.xlu1 %v8529_v20, %s8982_s11  ;;  %3402 = vrot.lane.b32.xlu0 %v8528_v22, %s8982_s11  ;;  %v8552_v20 = vpack.c.bf16 %v7669_v6, %v7669_v6  ;;  %v7734_v22 = vld [vmem:[%s12692_s0 + $0x7c8] sm:$0xff]  ;;  %2989 = vst.msk [vmem:[#allocation2 + $0xb0] sm:$0xf] %vm55_vm0, %v8474_v44 }
 0x25b   :  { %v6028_v43 = vpop.f32.mrf.mxu0  ;;  %6374 = vmatpush2.bf16.msra.mxu1 %v8940_v31  ;;  %v8585_v31 = vpack.c.bf16 %v7734_v22, %v7734_v22  ;;  %v7686_v35 = vld [vmem:[%s12692_s0 + $0x768] sm:$0xff] }
 0x25c   :  { %v11779_v46 = vadd.f32 %v6028_v43, %v5956_v56  ;;  %v2307_v48 = vpop.permute.xlu1 %2306  ;;  %v2305_v49 = vpop.permute.xlu0 %2304  ;;  %v3943_v50 = vld [vmem:[#allocation2 + $0xa8] sm:$0xff]  ;;  %6375 = vmatprep.subr.bf16.mxu1 %v8945_v5  ;;  %v8584_v56 = vpack.c.bf16 %v7733_v26, %v7733_v26  ;;  %v8954_v5 = vld [vmem:[%s12693_s1 + $0x794] ss:$8 sps:$4 sm:$0xff]  }
 0x25d   :  { %v3951_v53 = vld [vmem:[#allocation2 + $0xe8] sm:$0xff]  ;;  %2325 = vst.msk [vmem:[#allocation2 + $0x164] sm:$0xf] %vm121_vm1, %v2307_v48  ;;  %2324 = vst.msk [vmem:[#allocation2 + $0x124] sm:$0xf] %vm121_vm1, %v2305_v49  ;;  %v6032_v55 = vpop.f32.mrf.mxu0  ;;  %v7528_v26 = vld [vmem:[%s12692_s0 + $0x638] sm:$0xff] }
 0x25e   :  { %v7792_v58 = vcombine.high %v3943_v50, %v3951_v53  ;;  %v7791_v59 = vcombine.low %v3943_v50, %v3951_v53  ;;  %v11790_v62 = vadd.f32 %v6032_v55, %v5960_v47  ;;  %3518 = vrot.lane.b32.xlu1 %v8545_v38, %s8980_s20  ;;  %3516 = vrot.lane.b32.xlu0 %v8544_v39, %s8980_s20  ;;  %v7512_v39 = vld [vmem:[%s12692_s0 + $0x618] sm:$0xff]  ;;  %v5981_v53 = vpop.f32.mrf.mxu1 }
 0x25f   :  { %v6034_v4 = vpop.f32.mrf.mxu0  ;;  %6376 = vmatpush2.bf16.msra.mxu1 %v8943_v16  ;;  %v8475_v34 = vpack.c.bf16 %v7512_v39, %v7512_v39  ;;  %v5974_v47 = vadd.f32 %v11781_v54, %v11569_v37  ;;  %v8952_v37 = vld [vmem:[%s12693_s1 + $0x790] ss:$8 sps:$4 sm:$0xff]   ;;  %v5976_v54 = vadd.f32 %v5975_v11, %v11595_v51  ;;  %v8560_v16 = vpack.c.bf16 %v7685_v21, %v7685_v21  ;;  %v7749_v51 = vld [vmem:[%s12692_s0 + $0x7e0] sm:$0xff] }
 0x260   :  { %6249 = vmatprep.mubr.bf16.mxu1 %v7792_v58  ;;  %v11805_v7 = vadd.f32 %v6034_v4, %v5962_v63  ;;  %v2128_v9 = vpop.permute.xlu1 %2127  ;;  %v2126_v10 = vpop.permute.xlu0 %2125  ;;  %6377 = vmatprep.subr.bf16.mxu1 %v8948_v25  ;;  %v8561_v58 = vpack.c.bf16 %v7686_v35, %v7686_v35  ;;  %v7576_v63 = vld [vmem:[%s12692_s0 + $0x698] sm:$0xff]  ;;  %v8957_v25 = vld [vmem:[%s12693_s1 + $0x784] ss:$8 sps:$4 sm:$0xff]   ;;  %v8592_v22 = vpack.c.bf16 %v7749_v51, %v7749_v51 }
 0x261   :  { %6250 = vmatmul.mubr.bf16.gmra.mxu1 %v7791_v59  ;;  %2146 = vst.msk [vmem:[#allocation2 + $0x160] sm:$0xf] %vm187_vm2, %v2128_v9  ;;  %2145 = vst.msk [vmem:[#allocation2 + $0x120] sm:$0xf] %vm187_vm2, %v2126_v10  ;;  %v6036_v12 = vpop.f32.mrf.mxu0  ;;  %v7750_v59 = vld [vmem:[%s12692_s0 + $0x7e8] sm:$0xff]  ;;  %v8507_v4 = vpack.c.bf16 %v7576_v63, %v7576_v63  ;;  %v7640_v51 = vld [vmem:[%s12692_s0 + $0x718] sm:$0xff] }
 0x262   :  { %v11814_v33 = vadd.f32 %v6036_v12, %v5964_v18  ;;  %3762 = vrot.lane.b32.xlu1 %v8577_v60, %s8980_s20  ;;  %3760 = vrot.lane.b32.xlu0 %v8576_v0, %s8980_s20  ;;  %2990 = vst.msk [vmem:[#allocation2 + $0xf0] sm:$0xf] %vm55_vm0, %v8475_v34  ;;  %v7575_v0 = vld [vmem:[%s12692_s0 + $0x690] sm:$0xff]  ;;  %v5980_v18 = vadd.f32 %v5979_v29, %v11621_v8  ;;  %v5983_v12 = vpop.f32.mrf.mxu1  ;;  %v8955_v8 = vld [vmem:[%s12693_s1 + $0x780] ss:$8 sps:$4 sm:$0xff]  }
 0x263   :  { %v6038_v24 = vpop.f32.mrf.mxu0  ;;  %6378 = vmatpush2.bf16.msra.mxu1 %v8946_v19  ;;  %v8506_v6 = vpack.c.bf16 %v7575_v0, %v7575_v0  ;;  %v8593_v19 = vpack.c.bf16 %v7750_v59, %v7750_v59  ;;  %3234 = vst.msk [vmem:[#allocation2 + $0xf4] sm:$0xf] %vm55_vm0, %v8507_v4  ;;  %v7608_v59 = vld [vmem:[%s12692_s0 + $0x6d8] sm:$0xff]  ;;  %v7639_v4 = vld [vmem:[%s12692_s0 + $0x710] sm:$0xff] }
 0x264   :  { %v11829_v27 = vadd.f32 %v6038_v24, %v5966_v40  ;;  %v2372_v45 = vpop.permute.xlu1 %2371  ;;  %v2370_v14 = vpop.permute.xlu0 %2369  ;;  %6379 = vmatprep.subr.bf16.mxu1 %v8951_v52  ;;  %v5982_v40 = vadd.f32 %v5981_v53, %v11647_v23  ;;  %v7527_v52 = vld [vmem:[%s12692_s0 + $0x630] sm:$0xff]  ;;  %v8523_v0 = vpack.c.bf16 %v7608_v59, %v7608_v59 }
 0x265   :  { %2390 = vst.msk [vmem:[#allocation2 + $0x164] sm:$0xf] %vm187_vm2, %v2372_v45  ;;  %2389 = vst.msk [vmem:[#allocation2 + $0x124] sm:$0xf] %vm187_vm2, %v2370_v14  ;;  %v6042_v30 = vpop.f32.mrf.mxu0  ;;  %v8482_v35 = vpack.c.bf16 %v7527_v52, %v7527_v52 }
 0x266   :  { %v11841_v38 = vadd.f32 %v6042_v30, %v5970_v57  ;;  %3583 = vrot.lane.b32.xlu1 %v8553_v13, %s8981_s10  ;;  %3581 = vrot.lane.b32.xlu0 %v8552_v20, %s8981_s10  ;;  %3233 = vst.msk [vmem:[#allocation2 + $0xb4] sm:$0xf] %vm55_vm0, %v8506_v6  ;;  %v5984_v57 = vadd.f32 %v5983_v12, %v11679_v42  ;;  %v7592_v42 = vld [vmem:[%s12692_s0 + $0x6b8] sm:$0xff] }
 0x267   :  { %v6044_v43 = vpop.f32.mrf.mxu0  ;;  %6380 = vmatpush2.bf16.msra.mxu1 %v8949_v3  ;;  %v7591_v3 = vld [vmem:[%s12692_s0 + $0x6b0] sm:$0xff]  ;;  %v8515_v34 = vpack.c.bf16 %v7592_v42, %v7592_v42 }
 0x268   :  { %v11859_v48 = vadd.f32 %v6044_v43, %v5972_v15  ;;  %v2193_v49 = vpop.permute.xlu1 %2192  ;;  %v2191_v50 = vpop.permute.xlu0 %2190  ;;  %6381 = vmatprep.subr.bf16.mxu1 %v8954_v5  ;;  %v8514_v44 = vpack.c.bf16 %v7591_v3, %v7591_v3  ;;  %v7544_v5 = vld [vmem:[%s12692_s0 + $0x658] sm:$0xff] }
 0x269   :  { %2211 = vst.msk [vmem:[#allocation2 + $0x160] sm:$0xf] %vm253_vm3, %v2193_v49  ;;  %2210 = vst.msk [vmem:[#allocation2 + $0x120] sm:$0xf] %vm253_vm3, %v2191_v50  ;;  %v6046_v55 = vpop.f32.mrf.mxu0  ;;  %v8491_v53 = vpack.c.bf16 %v7544_v5, %v7544_v5 }
 0x26a   :  { %v11872_v60 = vadd.f32 %v6046_v55, %v5974_v47  ;;  %3827 = vrot.lane.b32.xlu1 %v8585_v31, %s8981_s10  ;;  %3825 = vrot.lane.b32.xlu0 %v8584_v56, %s8981_s10  ;;  %v8483_v31 = vpack.c.bf16 %v7528_v26, %v7528_v26  ;;  %v7543_v47 = vld [vmem:[%s12692_s0 + $0x650] sm:$0xff] }
 0x26b   :  { %v6048_v2 = vpop.f32.mrf.mxu0  ;;  %6382 = vmatpush2.bf16.msra.mxu1 %v8952_v37  ;;  %v8490_v55 = vpack.c.bf16 %v7543_v47, %v7543_v47  ;;  %v7607_v37 = vld [vmem:[%s12692_s0 + $0x6d0] sm:$0xff] }
 0x26c   :  { %v11889_v9 = vadd.f32 %v6048_v2, %v5976_v54  ;;  %v2437_v10 = vpop.permute.xlu1 %2436  ;;  %v2435_v11 = vpop.permute.xlu0 %2434  ;;  %6383 = vmatprep.subr.bf16.mxu1 %v8957_v25  ;;  %v8522_v2 = vpack.c.bf16 %v7607_v37, %v7607_v37  ;;  %v7560_v25 = vld [vmem:[%s12692_s0 + $0x678] sm:$0xff]  ;;  %v7703_v26 = vld [vmem:[%s12692_s0 + $0x790] sm:$0xff] }
 0x26d   :  { %2455 = vst.msk [vmem:[#allocation2 + $0x164] sm:$0xf] %vm253_vm3, %v2437_v10  ;;  %2454 = vst.msk [vmem:[#allocation2 + $0x124] sm:$0xf] %vm253_vm3, %v2435_v11  ;;  %v6052_v13 = vpop.f32.mrf.mxu0  ;;  %v8539_v10 = vpack.c.bf16 %v7640_v51, %v7640_v51  ;;  %v8538_v11 = vpack.c.bf16 %v7639_v4, %v7639_v4  ;;  %v7672_v37 = vld [vmem:[%s12692_s0 + $0x758] sm:$0xff] }
 0x26e   :  { %v11899_v20 = vadd.f32 %v6052_v13, %v5980_v18  ;;  %3648 = vrot.lane.b32.xlu1 %v8561_v58, %s8982_s11  ;;  %3646 = vrot.lane.b32.xlu0 %v8560_v16, %s8982_s11  ;;  %v11938_v58 = vpop.f32.mrf.mxu1  ;;  %v7559_v18 = vld [vmem:[%s12692_s0 + $0x670] sm:$0xff]  ;;  %v7736_v4 = vld [vmem:[%s12692_s0 + $0x7d8] sm:$0xff] }
 0x26f   :  { %v6054_v24 = vpop.f32.mrf.mxu0  ;;  %6384 = vmatpush2.bf16.msra.mxu1 %v8955_v8  ;;  %3478 = vst.msk [vmem:[#allocation2 + $0xf8] sm:$0xf] %vm55_vm0, %v8539_v10  ;;  %3477 = vst.msk [vmem:[#allocation2 + $0xb8] sm:$0xf] %vm55_vm0, %v8538_v11  ;;  %v7514_v10 = vld [vmem:[%s12692_s0 + $0xe08] sm:$0xff]  ;;  %v8587_v11 = vpack.c.bf16 %v7736_v4, %v7736_v4 }
 0x270   :  { %v11910_v23 = vadd.f32 %v6054_v24, %v5982_v40  ;;  %v2551_v45 = vpop.permute.xlu1 %2550  ;;  %v2549_v14 = vpop.permute.xlu0 %2548  ;;  %v7704_v24 = vld [vmem:[%s12692_s0 + $0x798] sm:$0xff] }
 0x271   :  { %2569 = vst.msk [vmem:[#allocation2 + $0x168] sm:$0xf] %vm121_vm1, %v2551_v45  ;;  %2568 = vst.msk [vmem:[#allocation2 + $0x128] sm:$0xf] %vm121_vm1, %v2549_v14  ;;  %v6056_v29 = vpop.f32.mrf.mxu0  ;;  %v8571_v45 = vpack.c.bf16 %v7704_v24, %v7704_v24  ;;  %v8570_v14 = vpack.c.bf16 %v7703_v26, %v7703_v26 }
 0x272   :  { %v11914_v30 = vadd.f32 %v6056_v29, %v5984_v57  ;;  %3892 = vrot.lane.b32.xlu1 %v8593_v19, %s8982_s11  ;;  %3890 = vrot.lane.b32.xlu0 %v8592_v22, %s8982_s11  ;;  %v8498_v22 = vpack.c.bf16 %v7559_v18, %v7559_v18  ;;  %v7623_v57 = vld [vmem:[%s12692_s0 + $0x6f0] sm:$0xff] }
 0x273   :  { %3722 = vst.msk [vmem:[#allocation2 + $0xfc] sm:$0xf] %vm55_vm0, %v8571_v45  ;;  %3721 = vst.msk [vmem:[#allocation2 + $0xbc] sm:$0xf] %vm55_vm0, %v8570_v14  ;;  %v8530_v3 = vpack.c.bf16 %v7623_v57, %v7623_v57 }
 0x274   :  { %v2795_v15 = vpop.permute.xlu1 %2794  ;;  %v2793_v56 = vpop.permute.xlu0 %2792  ;;  %v3958_v39 = vld [vmem:[#allocation2 + $0x120] sm:$0xff] }
 0x275   :  { %v3966_v41 = vld [vmem:[#allocation2 + $0x160] sm:$0xff]  ;;  %2813 = vst.msk [vmem:[#allocation2 + $0x16c] sm:$0xf] %vm121_vm1, %v2795_v15  ;;  %2812 = vst.msk [vmem:[#allocation2 + $0x12c] sm:$0xf] %vm121_vm1, %v2793_v56  ;;  %v7655_v15 = vld [vmem:[%s12692_s0 + $0x730] sm:$0xff] }
 0x276   :  { %v7806_v43 = vcombine.high %v3958_v39, %v3966_v41  ;;  %v7805_v21 = vcombine.low %v3958_v39, %v3966_v41  ;;  %3034 = vrot.lane.b32.xlu1 %v8483_v31, %s8980_s20  ;;  %3032 = vrot.lane.b32.xlu0 %v8482_v35, %s8980_s20 }
 0x278   :  { %6186 = vmatprep.mubr.bf16.mxu0 %v7806_v43  ;;  %v2616_v49 = vpop.permute.xlu1 %2615  ;;  %v2614_v50 = vpop.permute.xlu0 %2613  ;;  %v8546_v43 = vpack.c.bf16 %v7655_v15, %v7655_v15 }
 0x279   :  { %6187 = vmatmul.mubr.bf16.gmra.mxu0 %v7805_v21  ;;  %2634 = vst.msk [vmem:[#allocation2 + $0x168] sm:$0xf] %vm187_vm2, %v2616_v49  ;;  %2633 = vst.msk [vmem:[#allocation2 + $0x128] sm:$0xf] %vm187_vm2, %v2614_v50  ;;  %v7720_v21 = vld [vmem:[%s12692_s0 + $0x7b8] sm:$0xff] }
 0x27a   :  { %3278 = vrot.lane.b32.xlu1 %v8515_v34, %s8980_s20  ;;  %3276 = vrot.lane.b32.xlu0 %v8514_v44, %s8980_s20  ;;  %v7719_v34 = vld [vmem:[%s12692_s0 + $0x7b0] sm:$0xff] }
 0x27b   :  { %v8578_v59 = vpack.c.bf16 %v7719_v34, %v7719_v34 }
 0x27c   :  { %v2860_v54 = vpop.permute.xlu1 %2859  ;;  %v2858_v16 = vpop.permute.xlu0 %2857 }
 0x27d   :  { %2878 = vst.msk [vmem:[#allocation2 + $0x16c] sm:$0xf] %vm187_vm2, %v2860_v54  ;;  %2877 = vst.msk [vmem:[#allocation2 + $0x12c] sm:$0xf] %vm187_vm2, %v2858_v16  ;;  %v11948_v63 = vpop.f32.mrf.mxu1  ;;  %v7671_v54 = vld [vmem:[%s12692_s0 + $0x750] sm:$0xff] }
 0x27e   :  { %3099 = vrot.lane.b32.xlu1 %v8491_v53, %s8981_s10  ;;  %3097 = vrot.lane.b32.xlu0 %v8490_v55, %s8981_s10  ;;  %v8579_v55 = vpack.c.bf16 %v7720_v21, %v7720_v21  ;;  %v8554_v51 = vpack.c.bf16 %v7671_v54, %v7671_v54 }
 0x27f   :  { %v6097_v6 = vpop.f32.mrf.mxu1 }
 0x280   :  { %v11965_v12 = vadd.f32 %v6097_v6, %v11753_v28  ;;  %v2681_v13 = vpop.permute.xlu1 %2680  ;;  %v2679_v19 = vpop.permute.xlu0 %2678  ;;  %v8499_v28 = vpack.c.bf16 %v7560_v25, %v7560_v25  ;;  %v7735_v6 = vld [vmem:[%s12692_s0 + $0x7d0] sm:$0xff] }
 0x281   :  { %2699 = vst.msk [vmem:[#allocation2 + $0x168] sm:$0xf] %vm253_vm3, %v2681_v13  ;;  %2698 = vst.msk [vmem:[#allocation2 + $0x128] sm:$0xf] %vm253_vm3, %v2679_v19  ;;  %v6099_v8 = vpop.f32.mrf.mxu1  ;;  %v8586_v13 = vpack.c.bf16 %v7735_v6, %v7735_v6  ;;  %v8477_v19 = vpack.c.bf16 %v7514_v10, %v7514_v10  ;;  %v7545_v10 = vld [vmem:[%s12692_s0 + $0xe40] sm:$0xff] }
 0x282   :  { %v11972_v40 = vadd.f32 %v6099_v8, %v11764_v32  ;;  %3343 = vrot.lane.b32.xlu1 %v8523_v0, %s8981_s10  ;;  %3341 = vrot.lane.b32.xlu0 %v8522_v2, %s8981_s10  ;;  %v7624_v32 = vld [vmem:[%s12692_s0 + $0x6f8] sm:$0xff]  ;;  %v8555_v2 = vpack.c.bf16 %v7672_v37, %v7672_v37  ;;  %v7513_v8 = vld [vmem:[%s12692_s0 + $0xe00] sm:$0xff] }
 0x283   :  { %v6101_v52 = vpop.f32.mrf.mxu1  ;;  %v8531_v42 = vpack.c.bf16 %v7624_v32, %v7624_v32  ;;  %v8476_v24 = vpack.c.bf16 %v7513_v8, %v7513_v8  ;;  %2992 = vst.msk [vmem:[#allocation2 + $0x170] sm:$0xf] %vm55_vm0, %v8477_v19  ;;  %v7578_v32 = vld [vmem:[%s12692_s0 + $0xe88] sm:$0xff]  ;;  %v8492_v8 = vpack.c.bf16 %v7545_v10, %v7545_v10 }
 0x284   :  { %v11989_v29 = vadd.f32 %v6101_v52, %v11779_v46  ;;  %v2925_v31 = vpop.permute.xlu1 %2924  ;;  %v2923_v35 = vpop.permute.xlu0 %2922  ;;  %v7656_v46 = vld [vmem:[%s12692_s0 + $0x738] sm:$0xff]  ;;  %v8509_v14 = vpack.c.bf16 %v7578_v32, %v7578_v32 }
 0x285   :  { %2943 = vst.msk [vmem:[#allocation2 + $0x16c] sm:$0xf] %vm253_vm3, %v2925_v31  ;;  %2942 = vst.msk [vmem:[#allocation2 + $0x12c] sm:$0xf] %vm253_vm3, %v2923_v35  ;;  %v8547_v41 = vpack.c.bf16 %v7656_v46, %v7656_v46  ;;  %v7577_v31 = vld [vmem:[%s12692_s0 + $0xe80] sm:$0xff]  ;;  %v7752_v35 = vld [vmem:[%s12692_s0 + $0x7f8] sm:$0xff] }
 0x286   :  { %3164 = vrot.lane.b32.xlu1 %v8499_v28, %s8982_s11  ;;  %3162 = vrot.lane.b32.xlu0 %v8498_v22, %s8982_s11  ;;  %v7688_v28 = vld [vmem:[%s12692_s0 + $0x778] sm:$0xff]  ;;  %v7687_v22 = vld [vmem:[%s12692_s0 + $0x770] sm:$0xff]  ;;  %2991 = vst.msk [vmem:[#allocation2 + $0x130] sm:$0xf] %vm55_vm0, %v8476_v24  ;;  %3236 = vst.msk [vmem:[#allocation2 + $0x174] sm:$0xf] %vm55_vm0, %v8509_v14 }
 0x287   :  { %v8563_v57 = vpack.c.bf16 %v7688_v28, %v7688_v28  ;;  %v8562_v45 = vpack.c.bf16 %v7687_v22, %v7687_v22  ;;  %v7610_v28 = vld [vmem:[%s12692_s0 + $0xec8] sm:$0xff]  ;;  %v7641_v14 = vld [vmem:[%s12692_s0 + $0xf00] sm:$0xff] }
 0x288   :  { %v2067_v56 = vpop.permute.xlu1 %2066  ;;  %v2065_v39 = vpop.permute.xlu0 %2064 }
 0x289   :  { %2083 = vst.msk [vmem:[#allocation2 + $0x1e0] sm:$0xf] %vm121_vm1, %v2067_v56  ;;  %2082 = vst.msk [vmem:[#allocation2 + $0x1a0] sm:$0xf] %vm121_vm1, %v2065_v39  ;;  %v8595_v56 = vpack.c.bf16 %v7752_v35, %v7752_v35  ;;  %v8540_v35 = vpack.c.bf16 %v7641_v14, %v7641_v14 }
 0x28a   :  { %3408 = vrot.lane.b32.xlu1 %v8531_v42, %s8982_s11  ;;  %3406 = vrot.lane.b32.xlu0 %v8530_v3, %s8982_s11  ;;  %v7751_v42 = vld [vmem:[%s12692_s0 + $0x7f0] sm:$0xff]  ;;  %v8508_v3 = vpack.c.bf16 %v7577_v31, %v7577_v31  ;;  %v7561_v31 = vld [vmem:[%s12692_s0 + $0xe60] sm:$0xff] }
 0x28b   :  { %v8594_v39 = vpack.c.bf16 %v7751_v42, %v7751_v42  ;;  %3479 = vst.msk [vmem:[#allocation2 + $0x138] sm:$0xf] %vm55_vm0, %v8540_v35 }
 0x28c   :  { %v2311_v44 = vpop.permute.xlu1 %2310  ;;  %v2309_v5 = vpop.permute.xlu0 %2308  ;;  %v3959_v47 = vld [vmem:[#allocation2 + $0x128] sm:$0xff]  ;;  %3235 = vst.msk [vmem:[#allocation2 + $0x134] sm:$0xf] %vm55_vm0, %v8508_v3 }
 0x28d   :  { %v3967_v49 = vld [vmem:[#allocation2 + $0x168] sm:$0xff]  ;;  %2327 = vst.msk [vmem:[#allocation2 + $0x1e4] sm:$0xf] %vm121_vm1, %v2311_v44  ;;  %2326 = vst.msk [vmem:[#allocation2 + $0x1a4] sm:$0xf] %vm121_vm1, %v2309_v5 }
 0x28e   :  { %v7808_v50 = vcombine.high %v3959_v47, %v3967_v49  ;;  %v7807_v53 = vcombine.low %v3959_v47, %v3967_v49  ;;  %3522 = vrot.lane.b32.xlu1 %v8547_v41, %s8980_s20  ;;  %3520 = vrot.lane.b32.xlu0 %v8546_v43, %s8980_s20  ;;  %v7530_v41 = vld [vmem:[%s12692_s0 + $0xe28] sm:$0xff]  ;;  %v7529_v43 = vld [vmem:[%s12692_s0 + $0xe20] sm:$0xff] }
 0x28f   :  { %v8485_v47 = vpack.c.bf16 %v7530_v41, %v7530_v41  ;;  %v8484_v49 = vpack.c.bf16 %v7529_v43, %v7529_v43  ;;  %v8500_v41 = vpack.c.bf16 %v7561_v31, %v7561_v31  ;;  %v7738_v31 = vld [vmem:[%s12692_s0 + $0xfc8] sm:$0xff] }
 0x290   :  { %6259 = vmatprep.mubr.bf16.mxu1 %v7808_v50  ;;  %v2132_v16 = vpop.permute.xlu1 %2131  ;;  %v2130_v0 = vpop.permute.xlu0 %2129 }
 0x291   :  { %6260 = vmatmul.mubr.bf16.gmra.mxu1 %v7807_v53  ;;  %2148 = vst.msk [vmem:[#allocation2 + $0x1e0] sm:$0xf] %vm187_vm2, %v2132_v16  ;;  %2147 = vst.msk [vmem:[#allocation2 + $0x1a0] sm:$0xf] %vm187_vm2, %v2130_v0  ;;  %v7594_v53 = vld [vmem:[%s12692_s0 + $0xea8] sm:$0xff] }
 0x292   :  { %3766 = vrot.lane.b32.xlu1 %v8579_v55, %s8980_s20  ;;  %3764 = vrot.lane.b32.xlu0 %v8578_v59, %s8980_s20  ;;  %v7593_v55 = vld [vmem:[%s12692_s0 + $0xea0] sm:$0xff] }
 0x293   :  { %v8516_v6 = vpack.c.bf16 %v7593_v55, %v7593_v55 }
 0x294   :  { %v2376_v25 = vpop.permute.xlu1 %2375  ;;  %v2374_v18 = vpop.permute.xlu0 %2373 }
 0x295   :  { %2392 = vst.msk [vmem:[#allocation2 + $0x1e4] sm:$0xf] %vm187_vm2, %v2376_v25  ;;  %2391 = vst.msk [vmem:[#allocation2 + $0x1a4] sm:$0xf] %vm187_vm2, %v2374_v18  ;;  %v7546_v18 = vld [vmem:[%s12692_s0 + $0xe48] sm:$0xff] }
 0x296   :  { %3587 = vrot.lane.b32.xlu1 %v8555_v2, %s8981_s10  ;;  %3585 = vrot.lane.b32.xlu0 %v8554_v51, %s8981_s10  ;;  %v8493_v19 = vpack.c.bf16 %v7546_v18, %v7546_v18 }
 0x298   :  { %v2197_v26 = vpop.permute.xlu1 %2196  ;;  %v2195_v52 = vpop.permute.xlu0 %2194 }
 0x299   :  { %2213 = vst.msk [vmem:[#allocation2 + $0x1e0] sm:$0xf] %vm253_vm3, %v2197_v26  ;;  %2212 = vst.msk [vmem:[#allocation2 + $0x1a0] sm:$0xf] %vm253_vm3, %v2195_v52  ;;  %v7642_v26 = vld [vmem:[%s12692_s0 + $0xf08] sm:$0xff]  ;;  %v8525_v52 = vpack.c.bf16 %v7610_v28, %v7610_v28 }
 0x29a   :  { %3831 = vrot.lane.b32.xlu1 %v8587_v11, %s8981_s10  ;;  %3829 = vrot.lane.b32.xlu0 %v8586_v13, %s8981_s10 }
 0x29c   :  { %v2441_v46 = vpop.permute.xlu1 %2440  ;;  %v2439_v15 = vpop.permute.xlu0 %2438 }
 0x29d   :  { %2457 = vst.msk [vmem:[#allocation2 + $0x1e4] sm:$0xf] %vm253_vm3, %v2441_v46  ;;  %2456 = vst.msk [vmem:[#allocation2 + $0x1a4] sm:$0xf] %vm253_vm3, %v2439_v15 }
 0x29e   :  { %3652 = vrot.lane.b32.xlu1 %v8563_v57, %s8982_s11  ;;  %3650 = vrot.lane.b32.xlu0 %v8562_v45, %s8982_s11  ;;  %v7562_v57 = vld [vmem:[%s12692_s0 + $0xe68] sm:$0xff]  ;;  %v8541_v45 = vpack.c.bf16 %v7642_v26, %v7642_v26 }
 0x29f   :  { %v8501_v15 = vpack.c.bf16 %v7562_v57, %v7562_v57 }
 0x2a0   :  { %v2555_v21 = vpop.permute.xlu1 %2554  ;;  %v2553_v34 = vpop.permute.xlu0 %2552  ;;  %3480 = vst.msk [vmem:[#allocation2 + $0x178] sm:$0xf] %vm55_vm0, %v8541_v45 }
 0x2a1   :  { %2571 = vst.msk [vmem:[#allocation2 + $0x1e8] sm:$0xf] %vm121_vm1, %v2555_v21  ;;  %2570 = vst.msk [vmem:[#allocation2 + $0x1a8] sm:$0xf] %vm121_vm1, %v2553_v34  ;;  %v6105_v44 = vpop.f32.mrf.mxu1  ;;  %v7705_v21 = vld [vmem:[%s12692_s0 + $0xf80] sm:$0xff] }
 0x2a2   :  { %v12082_v5 = vadd.f32 %v6105_v44, %v11790_v62  ;;  %3896 = vrot.lane.b32.xlu1 %v8595_v56, %s8982_s11  ;;  %3894 = vrot.lane.b32.xlu0 %v8594_v39, %s8982_s11  ;;  %v7706_v56 = vld [vmem:[%s12692_s0 + $0xf88] sm:$0xff] }
 0x2a3   :  { %v6107_v50 = vpop.f32.mrf.mxu1  ;;  %v8573_v43 = vpack.c.bf16 %v7706_v56, %v7706_v56  ;;  %v7626_v44 = vld [vmem:[%s12692_s0 + $0xee8] sm:$0xff]  ;;  %v8589_v56 = vpack.c.bf16 %v7738_v31, %v7738_v31  ;;  %v12278_v31 = vpop.f32.mrf.mxu0 }
 0x2a4   :  { %v12093_v59 = vadd.f32 %v6107_v50, %v11805_v7  ;;  %v2799_v62 = vpop.permute.xlu1 %2798  ;;  %v2797_v37 = vpop.permute.xlu0 %2796  ;;  %v3974_v54 = vld [vmem:[#allocation2 + $0x1a0] sm:$0xff]  ;;  %v8517_v7 = vpack.c.bf16 %v7594_v53, %v7594_v53 }
 0x2a5   :  { %v3982_v16 = vld [vmem:[#allocation2 + $0x1e0] sm:$0xff]  ;;  %2815 = vst.msk [vmem:[#allocation2 + $0x1ec] sm:$0xf] %vm121_vm1, %v2799_v62  ;;  %2814 = vst.msk [vmem:[#allocation2 + $0x1ac] sm:$0xf] %vm121_vm1, %v2797_v37  ;;  %v6109_v0 = vpop.f32.mrf.mxu1 }
 0x2a6   :  { %v7822_v2 = vcombine.high %v3974_v54, %v3982_v16  ;;  %v7821_v51 = vcombine.low %v3974_v54, %v3982_v16  ;;  %v12098_v4 = vadd.f32 %v6109_v0, %v11814_v33  ;;  %3038 = vrot.lane.b32.xlu1 %v8485_v47, %s8980_s20  ;;  %3036 = vrot.lane.b32.xlu0 %v8484_v49, %s8980_s20  ;;  %v7658_v16 = vld [vmem:[%s12692_s0 + $0xf28] sm:$0xff]  ;;  %v7657_v0 = vld [vmem:[%s12692_s0 + $0xf20] sm:$0xff] }
 0x2a7   :  { %v6111_v25 = vpop.f32.mrf.mxu1  ;;  %v8572_v47 = vpack.c.bf16 %v7705_v21, %v7705_v21  ;;  %3724 = vst.msk [vmem:[#allocation2 + $0x17c] sm:$0xf] %vm55_vm0, %v8573_v43 }
 0x2a8   :  { %6196 = vmatprep.mubr.bf16.mxu0 %v7822_v2  ;;  %v12109_v11 = vadd.f32 %v6111_v25, %v11829_v27  ;;  %v2620_v33 = vpop.permute.xlu1 %2619  ;;  %v2618_v13 = vpop.permute.xlu0 %2617  ;;  %v7609_v27 = vld [vmem:[%s12692_s0 + $0xec0] sm:$0xff]  ;;  %v7722_v25 = vld [vmem:[%s12692_s0 + $0xfa8] sm:$0xff] }
 0x2a9   :  { %6197 = vmatmul.mubr.bf16.gmra.mxu0 %v7821_v51  ;;  %2636 = vst.msk [vmem:[#allocation2 + $0x1e8] sm:$0xf] %vm187_vm2, %v2620_v33  ;;  %2635 = vst.msk [vmem:[#allocation2 + $0x1a8] sm:$0xf] %vm187_vm2, %v2618_v13  ;;  %v8524_v32 = vpack.c.bf16 %v7609_v27, %v7609_v27  ;;  %v8581_v28 = vpack.c.bf16 %v7722_v25, %v7722_v25 }
 0x2aa   :  { %3282 = vrot.lane.b32.xlu1 %v8517_v7, %s8980_s20  ;;  %3280 = vrot.lane.b32.xlu0 %v8516_v6, %s8980_s20  ;;  %3723 = vst.msk [vmem:[#allocation2 + $0x13c] sm:$0xf] %vm55_vm0, %v8572_v47  ;;  %v8549_v7 = vpack.c.bf16 %v7658_v16, %v7658_v16  ;;  %v8548_v6 = vpack.c.bf16 %v7657_v0, %v7657_v0  ;;  %v7754_v16 = vld [vmem:[%s12692_s0 + $0xfe8] sm:$0xff]  ;;  %v7753_v0 = vld [vmem:[%s12692_s0 + $0xfe0] sm:$0xff] }
 0x2ab   :  { %v8596_v25 = vpack.c.bf16 %v7753_v0, %v7753_v0 }
 0x2ac   :  { %v2864_v22 = vpop.permute.xlu1 %2863  ;;  %v2862_v24 = vpop.permute.xlu0 %2861 }
 0x2ad   :  { %2880 = vst.msk [vmem:[#allocation2 + $0x1ec] sm:$0xf] %vm187_vm2, %v2864_v22  ;;  %2879 = vst.msk [vmem:[#allocation2 + $0x1ac] sm:$0xf] %vm187_vm2, %v2862_v24  ;;  %v7674_v22 = vld [vmem:[%s12692_s0 + $0xf48] sm:$0xff]  ;;  %v7673_v24 = vld [vmem:[%s12692_s0 + $0xf40] sm:$0xff] }
 0x2ae   :  { %3103 = vrot.lane.b32.xlu1 %v8493_v19, %s8981_s10  ;;  %3101 = vrot.lane.b32.xlu0 %v8492_v8, %s8981_s10  ;;  %v8557_v45 = vpack.c.bf16 %v7674_v22, %v7674_v22  ;;  %v8556_v14 = vpack.c.bf16 %v7673_v24, %v7673_v24 }
 0x2b0   :  { %v2685_v42 = vpop.permute.xlu1 %2684  ;;  %v2683_v3 = vpop.permute.xlu0 %2682 }
 0x2b1   :  { %2701 = vst.msk [vmem:[#allocation2 + $0x1e8] sm:$0xf] %vm253_vm3, %v2685_v42  ;;  %2700 = vst.msk [vmem:[#allocation2 + $0x1a8] sm:$0xf] %vm253_vm3, %v2683_v3  ;;  %v6115_v46 = vpop.f32.mrf.mxu1  ;;  %v7737_v42 = vld [vmem:[%s12692_s0 + $0xfc0] sm:$0xff] }
 0x2b2   :  { %v12145_v39 = vadd.f32 %v6115_v46, %v11841_v38  ;;  %3347 = vrot.lane.b32.xlu1 %v8525_v52, %s8981_s10  ;;  %3345 = vrot.lane.b32.xlu0 %v8524_v32, %s8981_s10  ;;  %v7625_v38 = vld [vmem:[%s12692_s0 + $0xee0] sm:$0xff] }
 0x2b3   :  { %v6117_v34 = vpop.f32.mrf.mxu1  ;;  %v8532_v37 = vpack.c.bf16 %v7625_v38, %v7625_v38  ;;  %v7689_v38 = vld [vmem:[%s12692_s0 + $0xf60] sm:$0xff] }
 0x2b4   :  { %v12159_v49 = vadd.f32 %v6117_v34, %v11859_v48  ;;  %v2929_v50 = vpop.permute.xlu1 %2928  ;;  %v2927_v53 = vpop.permute.xlu0 %2926  ;;  %v8533_v48 = vpack.c.bf16 %v7626_v44, %v7626_v44  ;;  %v7515_v34 = vld [vmem:[%s12692_s0 + $0xe10] sm:$0xff]  ;;  %v7690_v44 = vld [vmem:[%s12692_s0 + $0xf68] sm:$0xff] }
 0x2b5   :  { %2945 = vst.msk [vmem:[#allocation2 + $0x1ec] sm:$0xf] %vm253_vm3, %v2929_v50  ;;  %2944 = vst.msk [vmem:[#allocation2 + $0x1ac] sm:$0xf] %vm253_vm3, %v2927_v53  ;;  %v6119_v55 = vpop.f32.mrf.mxu1  ;;  %v7580_v53 = vld [vmem:[%s12692_s0 + $0xe98] sm:$0xff] }
 0x2b6   :  { %v12166_v62 = vadd.f32 %v6119_v55, %v11872_v60  ;;  %3168 = vrot.lane.b32.xlu1 %v8501_v15, %s8982_s11  ;;  %3166 = vrot.lane.b32.xlu0 %v8500_v41, %s8982_s11  ;;  %v7516_v41 = vld [vmem:[%s12692_s0 + $0xe18] sm:$0xff]  ;;  %v8565_v55 = vpack.c.bf16 %v7690_v44, %v7690_v44 }
 0x2b7   :  { %v6121_v54 = vpop.f32.mrf.mxu1  ;;  %v8479_v21 = vpack.c.bf16 %v7516_v41, %v7516_v41 }
 0x2b8   :  { %v12177_v2 = vadd.f32 %v6121_v54, %v11889_v9  ;;  %v3031_v60 = vpop.permute.xlu1 %3030  ;;  %v3029_v51 = vpop.permute.xlu0 %3028  ;;  %v7721_v9 = vld [vmem:[%s12692_s0 + $0xfa0] sm:$0xff]  ;;  %v7579_v54 = vld [vmem:[%s12692_s0 + $0xe90] sm:$0xff] }
 0x2b9   :  { %3053 = vst.msk [vmem:[#allocation2 + $0x70] sm:$0xf] %vm121_vm1, %v3031_v60  ;;  %3052 = vst.msk [vmem:[#allocation2 + $0x30] sm:$0xf] %vm121_vm1, %v3029_v51  ;;  %v8580_v27 = vpack.c.bf16 %v7721_v9, %v7721_v9  ;;  %v8510_v60 = vpack.c.bf16 %v7579_v54, %v7579_v54  ;;  %v7532_v9 = vld [vmem:[%s12692_s0 + $0xe38] sm:$0xff] }
 0x2ba   :  { %3412 = vrot.lane.b32.xlu1 %v8533_v48, %s8982_s11  ;;  %3410 = vrot.lane.b32.xlu0 %v8532_v37, %s8982_s11  ;;  %2994 = vst.msk [vmem:[#allocation2 + $0x1f0] sm:$0xf] %vm55_vm0, %v8479_v21  ;;  %v8564_v48 = vpack.c.bf16 %v7689_v38, %v7689_v38  ;;  %v8511_v37 = vpack.c.bf16 %v7580_v53, %v7580_v53  ;;  %v7644_v53 = vld [vmem:[%s12692_s0 + $0xf18] sm:$0xff] }
 0x2bb   :  { %3237 = vst.msk [vmem:[#allocation2 + $0x1b4] sm:$0xf] %vm55_vm0, %v8510_v60 }
 0x2bc   :  { %v3275_v18 = vpop.permute.xlu1 %3274  ;;  %v3273_v10 = vpop.permute.xlu0 %3272  ;;  %v3975_v33 = vld [vmem:[#allocation2 + $0x1a8] sm:$0xff]  ;;  %3238 = vst.msk [vmem:[#allocation2 + $0x1f4] sm:$0xf] %vm55_vm0, %v8511_v37  ;;  %v7643_v37 = vld [vmem:[%s12692_s0 + $0xf10] sm:$0xff] }
 0x2bd   :  { %v3983_v13 = vld [vmem:[#allocation2 + $0x1e8] sm:$0xff]  ;;  %3297 = vst.msk [vmem:[#allocation2 + $0x74] sm:$0xf] %vm121_vm1, %v3275_v18  ;;  %3296 = vst.msk [vmem:[#allocation2 + $0x34] sm:$0xf] %vm121_vm1, %v3273_v10  ;;  %v7531_v18 = vld [vmem:[%s12692_s0 + $0xe30] sm:$0xff]  ;;  %v8542_v0 = vpack.c.bf16 %v7643_v37, %v7643_v37 }
 0x2be   :  { %v7824_v19 = vcombine.high %v3975_v33, %v3983_v13  ;;  %v7823_v8 = vcombine.low %v3975_v33, %v3983_v13  ;;  %3526 = vrot.lane.b32.xlu1 %v8549_v7, %s8980_s20  ;;  %3524 = vrot.lane.b32.xlu0 %v8548_v6, %s8980_s20  ;;  %v8597_v6 = vpack.c.bf16 %v7754_v16, %v7754_v16  ;;  %v7564_v16 = vld [vmem:[%s12692_s0 + $0xe78] sm:$0xff] }
 0x2bf   :  { %v8487_v13 = vpack.c.bf16 %v7532_v9, %v7532_v9  ;;  %3481 = vst.msk [vmem:[#allocation2 + $0x1b8] sm:$0xf] %vm55_vm0, %v8542_v0 }
 0x2c0   :  { %6269 = vmatprep.mubr.bf16.mxu1 %v7824_v19  ;;  %v3096_v26 = vpop.permute.xlu1 %3095  ;;  %v3094_v52 = vpop.permute.xlu0 %3093  ;;  %v8486_v19 = vpack.c.bf16 %v7531_v18, %v7531_v18  ;;  %v7707_v18 = vld [vmem:[%s12692_s0 + $0xf90] sm:$0xff] }
 0x2c1   :  { %6270 = vmatmul.mubr.bf16.gmra.mxu1 %v7823_v8  ;;  %3118 = vst.msk [vmem:[#allocation2 + $0x70] sm:$0xf] %vm187_vm2, %v3096_v26  ;;  %3117 = vst.msk [vmem:[#allocation2 + $0x30] sm:$0xf] %vm187_vm2, %v3094_v52  ;;  %v6125_v32 = vpop.f32.mrf.mxu1  ;;  %v7596_v8 = vld [vmem:[%s12692_s0 + $0xeb8] sm:$0xff] }
 0x2c2   :  { %v12202_v57 = vadd.f32 %v6125_v32, %v11899_v20  ;;  %3770 = vrot.lane.b32.xlu1 %v8581_v28, %s8980_s20  ;;  %3768 = vrot.lane.b32.xlu0 %v8580_v27, %s8980_s20  ;;  %v7595_v28 = vld [vmem:[%s12692_s0 + $0xeb0] sm:$0xff] }
 0x2c3   :  { %v6127_v35 = vpop.f32.mrf.mxu1 }
 0x2c4   :  { %v12213_v3 = vadd.f32 %v6127_v35, %v11910_v23  ;;  %v3340_v20 = vpop.permute.xlu1 %3339  ;;  %v3338_v46 = vpop.permute.xlu0 %3337  ;;  %v8588_v23 = vpack.c.bf16 %v7737_v42, %v7737_v42  ;;  %v7548_v35 = vld [vmem:[%s12692_s0 + $0xe58] sm:$0xff]  ;;  %v7547_v42 = vld [vmem:[%s12692_s0 + $0xe50] sm:$0xff] }
 0x2c5   :  { %3362 = vst.msk [vmem:[#allocation2 + $0x74] sm:$0xf] %vm187_vm2, %v3340_v20  ;;  %3361 = vst.msk [vmem:[#allocation2 + $0x34] sm:$0xf] %vm187_vm2, %v3338_v46  ;;  %v6129_v15 = vpop.f32.mrf.mxu1  ;;  %v8494_v41 = vpack.c.bf16 %v7547_v42, %v7547_v42 }
 0x2c6   :  { %v12221_v43 = vadd.f32 %v6129_v15, %v11914_v30  ;;  %3591 = vrot.lane.b32.xlu1 %v8557_v45, %s8981_s10  ;;  %3589 = vrot.lane.b32.xlu0 %v8556_v14, %s8981_s10  ;;  %v8478_v30 = vpack.c.bf16 %v7515_v34, %v7515_v34  ;;  %v8519_v45 = vpack.c.bf16 %v7596_v8, %v7596_v8  ;;  %v7611_v34 = vld [vmem:[%s12692_s0 + $0xed0] sm:$0xff] }
 0x2c7   :  { %v8518_v14 = vpack.c.bf16 %v7595_v28, %v7595_v28 }
 0x2c8   :  { %v3161_v47 = vpop.permute.xlu1 %3160  ;;  %v3159_v50 = vpop.permute.xlu0 %3158  ;;  %2993 = vst.msk [vmem:[#allocation2 + $0x1b0] sm:$0xf] %vm55_vm0, %v8478_v30 }
 0x2c9   :  { %3183 = vst.msk [vmem:[#allocation2 + $0x70] sm:$0xf] %vm253_vm3, %v3161_v47  ;;  %3182 = vst.msk [vmem:[#allocation2 + $0x30] sm:$0xf] %vm253_vm3, %v3159_v50 }
 0x2ca   :  { %3835 = vrot.lane.b32.xlu1 %v8589_v56, %s8981_s10  ;;  %3833 = vrot.lane.b32.xlu0 %v8588_v23, %s8981_s10  ;;  %v8495_v56 = vpack.c.bf16 %v7548_v35, %v7548_v35  ;;  %v7612_v23 = vld [vmem:[%s12692_s0 + $0xed8] sm:$0xff]  ;;  %v7723_v35 = vld [vmem:[%s12692_s0 + $0xfb0] sm:$0xff] }
 0x2cb   :  { %v8527_v50 = vpack.c.bf16 %v7612_v23, %v7612_v23 }
 0x2cc   :  { %v3405_v51 = vpop.permute.xlu1 %3404  ;;  %v3403_v7 = vpop.permute.xlu0 %3402 }
 0x2cd   :  { %3427 = vst.msk [vmem:[#allocation2 + $0x74] sm:$0xf] %vm253_vm3, %v3405_v51  ;;  %3426 = vst.msk [vmem:[#allocation2 + $0x34] sm:$0xf] %vm253_vm3, %v3403_v7 }
 0x2ce   :  { %3656 = vrot.lane.b32.xlu1 %v8565_v55, %s8982_s11  ;;  %3654 = vrot.lane.b32.xlu0 %v8564_v48, %s8982_s11  ;;  %v8543_v48 = vpack.c.bf16 %v7644_v53, %v7644_v53 }
 0x2d0   :  { %v3519_v10 = vpop.permute.xlu1 %3518  ;;  %v3517_v33 = vpop.permute.xlu0 %3516  ;;  %3482 = vst.msk [vmem:[#allocation2 + $0x1f8] sm:$0xf] %vm55_vm0, %v8543_v48 }
 0x2d1   :  { %3541 = vst.msk [vmem:[#allocation2 + $0x78] sm:$0xf] %vm121_vm1, %v3519_v10  ;;  %3540 = vst.msk [vmem:[#allocation2 + $0x38] sm:$0xf] %vm121_vm1, %v3517_v33  ;;  %v7628_v10 = vld [vmem:[%s12692_s0 + $0xef8] sm:$0xff]  ;;  %v7627_v33 = vld [vmem:[%s12692_s0 + $0xef0] sm:$0xff] }
 0x2d2   :  { %3900 = vrot.lane.b32.xlu1 %v8597_v6, %s8982_s11  ;;  %3898 = vrot.lane.b32.xlu0 %v8596_v25, %s8982_s11  ;;  %v7708_v6 = vld [vmem:[%s12692_s0 + $0xf98] sm:$0xff]  ;;  %v8535_v28 = vpack.c.bf16 %v7628_v10, %v7628_v10  ;;  %v7691_v10 = vld [vmem:[%s12692_s0 + $0xf70] sm:$0xff] }
 0x2d3   :  { %v8575_v9 = vpack.c.bf16 %v7708_v6, %v7708_v6 }
 0x2d4   :  { %v3763_v27 = vpop.permute.xlu1 %3762  ;;  %v3761_v22 = vpop.permute.xlu0 %3760  ;;  %v3928_v24 = vld [vmem:[#allocation2 + $0x30] sm:$0xff] }
 0x2d5   :  { %v3936_v26 = vld [vmem:[#allocation2 + $0x70] sm:$0xff]  ;;  %3785 = vst.msk [vmem:[#allocation2 + $0x7c] sm:$0xf] %vm121_vm1, %v3763_v27  ;;  %3784 = vst.msk [vmem:[#allocation2 + $0x3c] sm:$0xf] %vm121_vm1, %v3761_v22  ;;  %v8534_v27 = vpack.c.bf16 %v7627_v33, %v7627_v33  ;;  %v7660_v22 = vld [vmem:[%s12692_s0 + $0xf38] sm:$0xff] }
 0x2d6   :  { %v7777_v52 = vcombine.low %v3928_v24, %v3936_v26  ;;  %v7778_v32 = vcombine.high %v3928_v24, %v3936_v26  ;;  %3042 = vrot.lane.b32.xlu1 %v8487_v13, %s8980_s20  ;;  %3040 = vrot.lane.b32.xlu0 %v8486_v19, %s8980_s20  ;;  %v8574_v13 = vpack.c.bf16 %v7707_v18, %v7707_v18  ;;  %v7659_v24 = vld [vmem:[%s12692_s0 + $0xf30] sm:$0xff] }
 0x2d7   :  { %3726 = vst.msk [vmem:[#allocation2 + $0x1fc] sm:$0xf] %vm55_vm0, %v8575_v9 }
 0x2d8   :  { %6312 = vmatprep.mubr.bf16.mxu0 %v7778_v32  ;;  %v3584_v20 = vpop.permute.xlu1 %3583  ;;  %v3582_v46 = vpop.permute.xlu0 %3581  ;;  %3725 = vst.msk [vmem:[#allocation2 + $0x1bc] sm:$0xf] %vm55_vm0, %v8574_v13  ;;  %v8551_v32 = vpack.c.bf16 %v7660_v22, %v7660_v22 }
 0x2d9   :  { %6313 = vmatmul.mubr.bf16.vlgmr.msra.gmra.mxu0 %v7777_v52  ;;  %3606 = vst.msk [vmem:[#allocation2 + $0x78] sm:$0xf] %vm187_vm2, %v3584_v20  ;;  %3605 = vst.msk [vmem:[#allocation2 + $0x38] sm:$0xf] %vm187_vm2, %v3582_v46  ;;  %v12288_v15 = vpop.f32.mrf.mxu0 }
 0x2da   :  { %3286 = vrot.lane.b32.xlu1 %v8519_v45, %s8980_s20  ;;  %3284 = vrot.lane.b32.xlu0 %v8518_v14, %s8980_s20  ;;  %v8550_v45 = vpack.c.bf16 %v7659_v24, %v7659_v24  ;;  %v7724_v14 = vld [vmem:[%s12692_s0 + $0xfb8] sm:$0xff] }
 0x2db   :  { %v6170_v21 = vpop.f32.mrf.mxu0 }
 0x2dc   :  { %v12299_v44 = vadd.f32 %v6170_v21, %v11965_v12  ;;  %v3828_v38 = vpop.permute.xlu1 %3827  ;;  %v3826_v30 = vpop.permute.xlu0 %3825  ;;  %v8526_v12 = vpack.c.bf16 %v7611_v34, %v7611_v34  ;;  %v8583_v21 = vpack.c.bf16 %v7724_v14, %v7724_v14  ;;  %v8582_v34 = vpack.c.bf16 %v7723_v35, %v7723_v35 }
 0x2dd   :  { %3850 = vst.msk [vmem:[#allocation2 + $0x7c] sm:$0xf] %vm187_vm2, %v3828_v38  ;;  %3849 = vst.msk [vmem:[#allocation2 + $0x3c] sm:$0xf] %vm187_vm2, %v3826_v30  ;;  %v6172_v47 = vpop.f32.mrf.mxu0  ;;  %v12367_v38 = vpop.f32.mrf.mxu1  ;;  %v7676_v30 = vld [vmem:[%s12692_s0 + $0xf58] sm:$0xff] }
 0x2de   :  { %v12307_v55 = vadd.f32 %v6172_v47, %v11972_v40  ;;  %3107 = vrot.lane.b32.xlu1 %v8495_v56, %s8981_s10  ;;  %3105 = vrot.lane.b32.xlu0 %v8494_v41, %s8981_s10  ;;  %v7563_v40 = vld [vmem:[%s12692_s0 + $0xe70] sm:$0xff]  ;;  %v8559_v48 = vpack.c.bf16 %v7676_v30, %v7676_v30 }
 0x2df   :  { %v6174_v54 = vpop.f32.mrf.mxu0  ;;  %v8502_v25 = vpack.c.bf16 %v7563_v40, %v7563_v40  ;;  %v7675_v47 = vld [vmem:[%s12692_s0 + $0xf50] sm:$0xff] }
 0x2e0   :  { %v12321_v60 = vadd.f32 %v6174_v54, %v11989_v29  ;;  %v3649_v51 = vpop.permute.xlu1 %3648  ;;  %v3647_v7 = vpop.permute.xlu0 %3646  ;;  %v8503_v29 = vpack.c.bf16 %v7564_v16, %v7564_v16  ;;  %v8558_v37 = vpack.c.bf16 %v7675_v47, %v7675_v47  ;;  %v7740_v16 = vld [vmem:[%s12692_s0 + $0xfd8] sm:$0xff]  ;;  %v7739_v40 = vld [vmem:[%s12692_s0 + $0xfd0] sm:$0xff] }
 0x2e1   :  { %3671 = vst.msk [vmem:[#allocation2 + $0x78] sm:$0xf] %vm253_vm3, %v3649_v51  ;;  %3670 = vst.msk [vmem:[#allocation2 + $0x38] sm:$0xf] %vm253_vm3, %v3647_v7  ;;  %v8590_v9 = vpack.c.bf16 %v7739_v40, %v7739_v40 }
 0x2e2   :  { %3351 = vrot.lane.b32.xlu1 %v8527_v50, %s8981_s10  ;;  %3349 = vrot.lane.b32.xlu0 %v8526_v12, %s8981_s10 }
 0x2e4   :  { %v3893_v19 = vpop.permute.xlu1 %3892  ;;  %v3891_v8 = vpop.permute.xlu0 %3890 }
 0x2e5   :  { %3915 = vst.msk [vmem:[#allocation2 + $0x7c] sm:$0xf] %vm253_vm3, %v3893_v19  ;;  %3914 = vst.msk [vmem:[#allocation2 + $0x3c] sm:$0xf] %vm253_vm3, %v3891_v8  ;;  %v8566_v8 = vpack.c.bf16 %v7691_v10, %v7691_v10 }
 0x2e6   :  { %3172 = vrot.lane.b32.xlu1 %v8503_v29, %s8982_s11  ;;  %3170 = vrot.lane.b32.xlu0 %v8502_v25, %s8982_s11  ;;  %v8591_v25 = vpack.c.bf16 %v7740_v16, %v7740_v16 }
 0x2e8   :  { %v3035_v26 = vpop.permute.xlu1 %3034  ;;  %v3033_v52 = vpop.permute.xlu0 %3032 }
 0x2e9   :  { %3055 = vst.msk [vmem:[#allocation2 + $0xf0] sm:$0xf] %vm121_vm1, %v3035_v26  ;;  %3054 = vst.msk [vmem:[#allocation2 + $0xb0] sm:$0xf] %vm121_vm1, %v3033_v52 }
 0x2ea   :  { %3416 = vrot.lane.b32.xlu1 %v8535_v28, %s8982_s11  ;;  %3414 = vrot.lane.b32.xlu0 %v8534_v27, %s8982_s11  ;;  %v7756_v28 = vld [vmem:[%s12692_s0 + $0xff8] sm:$0xff] }
 0x2eb   :  { %v8599_v24 = vpack.c.bf16 %v7756_v28, %v7756_v28 }
 0x2ec   :  { %v3279_v42 = vpop.permute.xlu1 %3278  ;;  %v3277_v20 = vpop.permute.xlu0 %3276  ;;  %v3929_v46 = vld [vmem:[#allocation2 + $0x38] sm:$0xff] }
 0x2ed   :  { %v3937_v56 = vld [vmem:[#allocation2 + $0x78] sm:$0xff]  ;;  %3299 = vst.msk [vmem:[#allocation2 + $0xf4] sm:$0xf] %vm121_vm1, %v3279_v42  ;;  %3298 = vst.msk [vmem:[#allocation2 + $0xb4] sm:$0xf] %vm121_vm1, %v3277_v20 }
 0x2ee   :  { %v7779_v41 = vcombine.low %v3929_v46, %v3937_v56  ;;  %v7780_v23 = vcombine.high %v3929_v46, %v3937_v56  ;;  %3530 = vrot.lane.b32.xlu1 %v8551_v32, %s8980_s20  ;;  %3528 = vrot.lane.b32.xlu0 %v8550_v45, %s8980_s20 }
 0x2f0   :  { %6385 = vmatprep.mubr.bf16.mxu1 %v7780_v23  ;;  %v3100_v50 = vpop.permute.xlu1 %3099  ;;  %v3098_v53 = vpop.permute.xlu0 %3097 }
 0x2f1   :  { %6386 = vmatmul.mubr.bf16.vlgmr.msra.gmra.mxu1 %v7779_v41  ;;  %3120 = vst.msk [vmem:[#allocation2 + $0xf0] sm:$0xf] %vm187_vm2, %v3100_v50  ;;  %3119 = vst.msk [vmem:[#allocation2 + $0xb0] sm:$0xf] %vm187_vm2, %v3098_v53  ;;  %v12377_v12 = vpop.f32.mrf.mxu1 }
 0x2f2   :  { %3774 = vrot.lane.b32.xlu1 %v8583_v21, %s8980_s20  ;;  %3772 = vrot.lane.b32.xlu0 %v8582_v34, %s8980_s20 }
 0x2f3   :  { %v6243_v54 = vpop.f32.mrf.mxu1 }
 0x2f4   :  { %v12388_v0 = vadd.f32 %v6243_v54, %v12299_v44  ;;  %v3344_v51 = vpop.permute.xlu1 %3343  ;;  %v3342_v7 = vpop.permute.xlu0 %3341  ;;  %v7692_v44 = vld [vmem:[%s12692_s0 + $0xf78] sm:$0xff] }
 0x2f5   :  { %3364 = vst.msk [vmem:[#allocation2 + $0xf4] sm:$0xf] %vm187_vm2, %v3344_v51  ;;  %3363 = vst.msk [vmem:[#allocation2 + $0xb4] sm:$0xf] %vm187_vm2, %v3342_v7  ;;  %v6245_v6 = vpop.f32.mrf.mxu1  ;;  %v8567_v19 = vpack.c.bf16 %v7692_v44, %v7692_v44 }
 0x2f6   :  { %v12393_v29 = vadd.f32 %v6245_v6, %v12307_v55  ;;  %3595 = vrot.lane.b32.xlu1 %v8559_v48, %s8981_s10  ;;  %3593 = vrot.lane.b32.xlu0 %v8558_v37, %s8981_s10 }
 0x2f7   :  { %v6247_v18 = vpop.f32.mrf.mxu1 }
 0x2f8   :  { %v12404_v33 = vadd.f32 %v6247_v18, %v12321_v60  ;;  %v3165_v55 = vpop.permute.xlu1 %3164  ;;  %v3163_v13 = vpop.permute.xlu0 %3162  ;;  %v7755_v60 = vld [vmem:[%s12692_s0 + $0xff0] sm:$0xff] }
 0x2f9   :  { %3185 = vst.msk [vmem:[#allocation2 + $0xf0] sm:$0xf] %vm253_vm3, %v3165_v55  ;;  %3184 = vst.msk [vmem:[#allocation2 + $0xb0] sm:$0xf] %vm253_vm3, %v3163_v13  ;;  %v8598_v26 = vpack.c.bf16 %v7755_v60, %v7755_v60 }
 0x2fa   :  { %3839 = vrot.lane.b32.xlu1 %v8591_v25, %s8981_s10  ;;  %3837 = vrot.lane.b32.xlu0 %v8590_v9, %s8981_s10 }
 0x2fc   :  { %v3409_v27 = vpop.permute.xlu1 %3408  ;;  %v3407_v22 = vpop.permute.xlu0 %3406 }
 0x2fd   :  { %3429 = vst.msk [vmem:[#allocation2 + $0xf4] sm:$0xf] %vm253_vm3, %v3409_v27  ;;  %3428 = vst.msk [vmem:[#allocation2 + $0xb4] sm:$0xf] %vm253_vm3, %v3407_v22 }
 0x2fe   :  { %3660 = vrot.lane.b32.xlu1 %v8567_v19, %s8982_s11  ;;  %3658 = vrot.lane.b32.xlu0 %v8566_v8, %s8982_s11 }
 0x300   :  { %v3523_v52 = vpop.permute.xlu1 %3522  ;;  %v3521_v32 = vpop.permute.xlu0 %3520 }
 0x301   :  { %3543 = vst.msk [vmem:[#allocation2 + $0xf8] sm:$0xf] %vm121_vm1, %v3523_v52  ;;  %3542 = vst.msk [vmem:[#allocation2 + $0xb8] sm:$0xf] %vm121_vm1, %v3521_v32 }
 0x302   :  { %3904 = vrot.lane.b32.xlu1 %v8599_v24, %s8982_s11  ;;  %3902 = vrot.lane.b32.xlu0 %v8598_v26, %s8982_s11 }
 0x304   :  { %v3767_v45 = vpop.permute.xlu1 %3766  ;;  %v3765_v14 = vpop.permute.xlu0 %3764  ;;  %v3944_v35 = vld [vmem:[#allocation2 + $0xb0] sm:$0xff] }
 0x305   :  { %v3952_v42 = vld [vmem:[#allocation2 + $0xf0] sm:$0xff]  ;;  %3787 = vst.msk [vmem:[#allocation2 + $0xfc] sm:$0xf] %vm121_vm1, %v3767_v45  ;;  %3786 = vst.msk [vmem:[#allocation2 + $0xbc] sm:$0xf] %vm121_vm1, %v3765_v14 }
 0x306   :  { %v7794_v20 = vcombine.high %v3944_v35, %v3952_v42  ;;  %v7793_v46 = vcombine.low %v3944_v35, %v3952_v42 }
 0x308   :  { %6322 = vmatprep.mubr.bf16.mxu0 %v7794_v20  ;;  %v3588_v56 = vpop.permute.xlu1 %3587  ;;  %v3586_v41 = vpop.permute.xlu0 %3585 }
 0x309   :  { %6323 = vmatmul.mubr.bf16.gmra.mxu0 %v7793_v46  ;;  %3608 = vst.msk [vmem:[#allocation2 + $0xf8] sm:$0xf] %vm187_vm2, %v3588_v56  ;;  %3607 = vst.msk [vmem:[#allocation2 + $0xb8] sm:$0xf] %vm187_vm2, %v3586_v41  ;;  %v6178_v23 = vpop.f32.mrf.mxu0 }
 0x30a   :  { %v6179_v21 = vadd.f32 %v6178_v23, %v12082_v5 }
 0x30b   :  { %v6180_v34 = vpop.f32.mrf.mxu0 }
 0x30c   :  { %v6181_v30 = vadd.f32 %v6180_v34, %v12093_v59  ;;  %v3832_v47 = vpop.permute.xlu1 %3831  ;;  %v3830_v50 = vpop.permute.xlu0 %3829 }
 0x30d   :  { %3852 = vst.msk [vmem:[#allocation2 + $0xfc] sm:$0xf] %vm187_vm2, %v3832_v47  ;;  %3851 = vst.msk [vmem:[#allocation2 + $0xbc] sm:$0xf] %vm187_vm2, %v3830_v50  ;;  %v6182_v53 = vpop.f32.mrf.mxu0 }
 0x30e   :  { %v6183_v48 = vadd.f32 %v6182_v53, %v12098_v4 }
 0x30f   :  { %v6184_v37 = vpop.f32.mrf.mxu0 }
 0x310   :  { %v6185_v54 = vadd.f32 %v6184_v37, %v12109_v11  ;;  %v3653_v16 = vpop.permute.xlu1 %3652  ;;  %v3651_v40 = vpop.permute.xlu0 %3650 }
 0x311   :  { %3673 = vst.msk [vmem:[#allocation2 + $0xf8] sm:$0xf] %vm253_vm3, %v3653_v16  ;;  %3672 = vst.msk [vmem:[#allocation2 + $0xb8] sm:$0xf] %vm253_vm3, %v3651_v40 }
 0x314   :  { %v3897_v5 = vpop.permute.xlu1 %3896  ;;  %v3895_v59 = vpop.permute.xlu0 %3894 }
 0x315   :  { %3917 = vst.msk [vmem:[#allocation2 + $0xfc] sm:$0xf] %vm253_vm3, %v3897_v5  ;;  %3916 = vst.msk [vmem:[#allocation2 + $0xbc] sm:$0xf] %vm253_vm3, %v3895_v59 }
 0x318   :  { %v3039_v51 = vpop.permute.xlu1 %3038  ;;  %v3037_v7 = vpop.permute.xlu0 %3036 }
 0x319   :  { %3057 = vst.msk [vmem:[#allocation2 + $0x170] sm:$0xf] %vm121_vm1, %v3039_v51  ;;  %3056 = vst.msk [vmem:[#allocation2 + $0x130] sm:$0xf] %vm121_vm1, %v3037_v7 }
 0x31c   :  { %v3283_v4 = vpop.permute.xlu1 %3282  ;;  %v3281_v11 = vpop.permute.xlu0 %3280  ;;  %v3945_v6 = vld [vmem:[#allocation2 + $0xb8] sm:$0xff] }
 0x31d   :  { %v3953_v25 = vld [vmem:[#allocation2 + $0xf8] sm:$0xff]  ;;  %3301 = vst.msk [vmem:[#allocation2 + $0x174] sm:$0xf] %vm121_vm1, %v3283_v4  ;;  %3300 = vst.msk [vmem:[#allocation2 + $0x134] sm:$0xf] %vm121_vm1, %v3281_v11 }
 0x31e   :  { %v7796_v9 = vcombine.high %v3945_v6, %v3953_v25  ;;  %v7795_v18 = vcombine.low %v3945_v6, %v3953_v25 }
 0x320   :  { %6395 = vmatprep.mubr.bf16.mxu1 %v7796_v9  ;;  %v3104_v44 = vpop.permute.xlu1 %3103  ;;  %v3102_v10 = vpop.permute.xlu0 %3101 }
 0x321   :  { %6396 = vmatmul.mubr.bf16.gmra.mxu1 %v7795_v18  ;;  %3122 = vst.msk [vmem:[#allocation2 + $0x170] sm:$0xf] %vm187_vm2, %v3104_v44  ;;  %3121 = vst.msk [vmem:[#allocation2 + $0x130] sm:$0xf] %vm187_vm2, %v3102_v10  ;;  %v6251_v55 = vpop.f32.mrf.mxu1 }
 0x322   :  { %v12444_v13 = vadd.f32 %v6251_v55, %v6179_v21 }
 0x323   :  { %v6253_v19 = vpop.f32.mrf.mxu1 }
 0x324   :  { %v12446_v8 = vadd.f32 %v6253_v19, %v6181_v30  ;;  %v3348_v28 = vpop.permute.xlu1 %3347  ;;  %v3346_v60 = vpop.permute.xlu0 %3345 }
 0x325   :  { %3366 = vst.msk [vmem:[#allocation2 + $0x174] sm:$0xf] %vm187_vm2, %v3348_v28  ;;  %3365 = vst.msk [vmem:[#allocation2 + $0x134] sm:$0xf] %vm187_vm2, %v3346_v60  ;;  %v6255_v27 = vpop.f32.mrf.mxu1 }
 0x326   :  { %v12450_v22 = vadd.f32 %v6255_v27, %v6183_v48 }
 0x327   :  { %v6257_v24 = vpop.f32.mrf.mxu1 }
 0x328   :  { %v12452_v26 = vadd.f32 %v6257_v24, %v6185_v54  ;;  %v3169_v52 = vpop.permute.xlu1 %3168  ;;  %v3167_v32 = vpop.permute.xlu0 %3166 }
 0x329   :  { %3187 = vst.msk [vmem:[#allocation2 + $0x170] sm:$0xf] %vm253_vm3, %v3169_v52  ;;  %3186 = vst.msk [vmem:[#allocation2 + $0x130] sm:$0xf] %vm253_vm3, %v3167_v32 }
 0x32c   :  { %v3413_v45 = vpop.permute.xlu1 %3412  ;;  %v3411_v14 = vpop.permute.xlu0 %3410 }
 0x32d   :  { %3431 = vst.msk [vmem:[#allocation2 + $0x174] sm:$0xf] %vm253_vm3, %v3413_v45  ;;  %3430 = vst.msk [vmem:[#allocation2 + $0x134] sm:$0xf] %vm253_vm3, %v3411_v14 }
 0x330   :  { %v3527_v35 = vpop.permute.xlu1 %3526  ;;  %v3525_v42 = vpop.permute.xlu0 %3524 }
 0x331   :  { %3545 = vst.msk [vmem:[#allocation2 + $0x178] sm:$0xf] %vm121_vm1, %v3527_v35  ;;  %3544 = vst.msk [vmem:[#allocation2 + $0x138] sm:$0xf] %vm121_vm1, %v3525_v42 }
 0x334   :  { %v3771_v20 = vpop.permute.xlu1 %3770  ;;  %v3769_v46 = vpop.permute.xlu0 %3768  ;;  %v3960_v56 = vld [vmem:[#allocation2 + $0x130] sm:$0xff] }
 0x335   :  { %v3968_v41 = vld [vmem:[#allocation2 + $0x170] sm:$0xff]  ;;  %3789 = vst.msk [vmem:[#allocation2 + $0x17c] sm:$0xf] %vm121_vm1, %v3771_v20  ;;  %3788 = vst.msk [vmem:[#allocation2 + $0x13c] sm:$0xf] %vm121_vm1, %v3769_v46 }
 0x336   :  { %v7810_v23 = vcombine.high %v3960_v56, %v3968_v41  ;;  %v7809_v21 = vcombine.low %v3960_v56, %v3968_v41 }
 0x338   :  { %6332 = vmatprep.mubr.bf16.mxu0 %v7810_v23  ;;  %v3592_v34 = vpop.permute.xlu1 %3591  ;;  %v3590_v30 = vpop.permute.xlu0 %3589 }
 0x339   :  { %6333 = vmatmul.mubr.bf16.gmra.mxu0 %v7809_v21  ;;  %3610 = vst.msk [vmem:[#allocation2 + $0x178] sm:$0xf] %vm187_vm2, %v3592_v34  ;;  %3609 = vst.msk [vmem:[#allocation2 + $0x138] sm:$0xf] %vm187_vm2, %v3590_v30  ;;  %v6188_v47 = vpop.f32.mrf.mxu0 }
 0x33a   :  { %v6189_v50 = vadd.f32 %v6188_v47, %v12145_v39 }
 0x33b   :  { %v6190_v53 = vpop.f32.mrf.mxu0 }
 0x33c   :  { %v6191_v48 = vadd.f32 %v6190_v53, %v12159_v49  ;;  %v3836_v37 = vpop.permute.xlu1 %3835  ;;  %v3834_v54 = vpop.permute.xlu0 %3833 }
 0x33d   :  { %3854 = vst.msk [vmem:[#allocation2 + $0x17c] sm:$0xf] %vm187_vm2, %v3836_v37  ;;  %3853 = vst.msk [vmem:[#allocation2 + $0x13c] sm:$0xf] %vm187_vm2, %v3834_v54  ;;  %v6192_v16 = vpop.f32.mrf.mxu0  ;;  %v5986_v54 = vadd.f32 %v11938_v58, %v11713_v1 }
 0x33e   :  { %v6193_v40 = vadd.f32 %v6192_v16, %v12166_v62 }
 0x33f   :  { %v6194_v5 = vpop.f32.mrf.mxu0 }
 0x340   :  { %v6195_v59 = vadd.f32 %v6194_v5, %v12177_v2  ;;  %v3657_v51 = vpop.permute.xlu1 %3656  ;;  %v3655_v7 = vpop.permute.xlu0 %3654  ;;  %v6059_v5 = vadd.f32 %v12278_v31, %v5986_v54 }
 0x341   :  { %3675 = vst.msk [vmem:[#allocation2 + $0x178] sm:$0xf] %vm253_vm3, %v3657_v51  ;;  %3674 = vst.msk [vmem:[#allocation2 + $0x138] sm:$0xf] %vm253_vm3, %v3655_v7 }
 0x344   :  { %v3901_v39 = vpop.permute.xlu1 %3900  ;;  %v3899_v49 = vpop.permute.xlu0 %3898 }
 0x345   :  { %3919 = vst.msk [vmem:[#allocation2 + $0x17c] sm:$0xf] %vm253_vm3, %v3901_v39  ;;  %3918 = vst.msk [vmem:[#allocation2 + $0x13c] sm:$0xf] %vm253_vm3, %v3899_v49  ;;  %v6132_v49 = vadd.f32 %v12367_v38, %v6059_v5 }
 0x348   :  { %v3043_v4 = vpop.permute.xlu1 %3042  ;;  %v3041_v11 = vpop.permute.xlu0 %3040 }
 0x349   :  { %3059 = vst.msk [vmem:[#allocation2 + $0x1f0] sm:$0xf] %vm121_vm1, %v3043_v4  ;;  %3058 = vst.msk [vmem:[#allocation2 + $0x1b0] sm:$0xf] %vm121_vm1, %v3041_v11 }
 0x34c   :  { %v3287_v62 = vpop.permute.xlu1 %3286  ;;  %v3285_v2 = vpop.permute.xlu0 %3284  ;;  %v3961_v6 = vld [vmem:[#allocation2 + $0x138] sm:$0xff] }
 0x34d   :  { %v3969_v25 = vld [vmem:[#allocation2 + $0x178] sm:$0xff]  ;;  %3303 = vst.msk [vmem:[#allocation2 + $0x1f4] sm:$0xf] %vm121_vm1, %v3287_v62  ;;  %3302 = vst.msk [vmem:[#allocation2 + $0x1b4] sm:$0xf] %vm121_vm1, %v3285_v2 }
 0x34e   :  { %v7812_v9 = vcombine.high %v3961_v6, %v3969_v25  ;;  %v7811_v18 = vcombine.low %v3961_v6, %v3969_v25 }
 0x350   :  { %6405 = vmatprep.mubr.bf16.mxu1 %v7812_v9  ;;  %v3108_v44 = vpop.permute.xlu1 %3107  ;;  %v3106_v10 = vpop.permute.xlu0 %3105 }
 0x351   :  { %6406 = vmatmul.mubr.bf16.gmra.mxu1 %v7811_v18  ;;  %3124 = vst.msk [vmem:[#allocation2 + $0x1f0] sm:$0xf] %vm187_vm2, %v3108_v44  ;;  %3123 = vst.msk [vmem:[#allocation2 + $0x1b0] sm:$0xf] %vm187_vm2, %v3106_v10  ;;  %v6261_v55 = vpop.f32.mrf.mxu1 }
 0x352   :  { %v12480_v19 = vadd.f32 %v6261_v55, %v6189_v50 }
 0x353   :  { %v6263_v28 = vpop.f32.mrf.mxu1 }
 0x354   :  { %v12482_v60 = vadd.f32 %v6263_v28, %v6191_v48  ;;  %v3352_v27 = vpop.permute.xlu1 %3351  ;;  %v3350_v24 = vpop.permute.xlu0 %3349 }
 0x355   :  { %3368 = vst.msk [vmem:[#allocation2 + $0x1f4] sm:$0xf] %vm187_vm2, %v3352_v27  ;;  %3367 = vst.msk [vmem:[#allocation2 + $0x1b4] sm:$0xf] %vm187_vm2, %v3350_v24  ;;  %v6265_v52 = vpop.f32.mrf.mxu1 }
 0x356   :  { %v12486_v32 = vadd.f32 %v6265_v52, %v6193_v40 }
 0x357   :  { %v6267_v45 = vpop.f32.mrf.mxu1 }
 0x358   :  { %v12488_v14 = vadd.f32 %v6267_v45, %v6195_v59  ;;  %v3173_v35 = vpop.permute.xlu1 %3172  ;;  %v3171_v42 = vpop.permute.xlu0 %3170 }
 0x359   :  { %3189 = vst.msk [vmem:[#allocation2 + $0x1f0] sm:$0xf] %vm253_vm3, %v3173_v35  ;;  %3188 = vst.msk [vmem:[#allocation2 + $0x1b0] sm:$0xf] %vm253_vm3, %v3171_v42 }
 0x35c   :  { %v3417_v20 = vpop.permute.xlu1 %3416  ;;  %v3415_v46 = vpop.permute.xlu0 %3414 }
 0x35d   :  { %3433 = vst.msk [vmem:[#allocation2 + $0x1f4] sm:$0xf] %vm253_vm3, %v3417_v20  ;;  %3432 = vst.msk [vmem:[#allocation2 + $0x1b4] sm:$0xf] %vm253_vm3, %v3415_v46  ;;  %v5950_v20 = vadd.f32 %v11492_v61, %v11324_v36 }
 0x35f   :  { %v6023_v46 = vadd.f32 %v11734_v17, %v5950_v20 }
 0x360   :  { %v3531_v56 = vpop.permute.xlu1 %3530  ;;  %v3529_v41 = vpop.permute.xlu0 %3528 }
 0x361   :  { %3547 = vst.msk [vmem:[#allocation2 + $0x1f8] sm:$0xf] %vm121_vm1, %v3531_v56  ;;  %3546 = vst.msk [vmem:[#allocation2 + $0x1b8] sm:$0xf] %vm121_vm1, %v3529_v41  ;;  %v6096_v56 = vadd.f32 %v11948_v63, %v6023_v46 }
 0x363   :  { %v6169_v41 = vadd.f32 %v12288_v15, %v6096_v56 }
 0x364   :  { %v3775_v23 = vpop.permute.xlu1 %3774  ;;  %v3773_v21 = vpop.permute.xlu0 %3772  ;;  %v3976_v34 = vld [vmem:[#allocation2 + $0x1b0] sm:$0xff] }
 0x365   :  { %v3984_v30 = vld [vmem:[#allocation2 + $0x1f0] sm:$0xff]  ;;  %3791 = vst.msk [vmem:[#allocation2 + $0x1fc] sm:$0xf] %vm121_vm1, %v3775_v23  ;;  %3790 = vst.msk [vmem:[#allocation2 + $0x1bc] sm:$0xf] %vm121_vm1, %v3773_v21  ;;  %v6242_v23 = vadd.f32 %v12377_v12, %v6169_v41 }
 0x366   :  { %v7826_v47 = vcombine.high %v3976_v34, %v3984_v30  ;;  %v7825_v50 = vcombine.low %v3976_v34, %v3984_v30 }
 0x368   :  { %6342 = vmatprep.mubr.bf16.mxu0 %v7826_v47  ;;  %v3596_v53 = vpop.permute.xlu1 %3595  ;;  %v3594_v48 = vpop.permute.xlu0 %3593 }
 0x369   :  { %6343 = vmatmul.mubr.bf16.gmra.mxu0 %v7825_v50  ;;  %3612 = vst.msk [vmem:[#allocation2 + $0x1f8] sm:$0xf] %vm187_vm2, %v3596_v53  ;;  %3611 = vst.msk [vmem:[#allocation2 + $0x1b8] sm:$0xf] %vm187_vm2, %v3594_v48  ;;  %v6198_v37 = vpop.f32.mrf.mxu0 }
 0x36a   :  { %v6199_v16 = vadd.f32 %v6198_v37, %v12202_v57  ;;  %v6426_v37 = vlaneseq }
 0x36b   :  { %v6200_v40 = vpop.f32.mrf.mxu0 }
 0x36c   :  { %v6201_v59 = vadd.f32 %v6200_v40, %v12213_v3  ;;  %v3840_v51 = vpop.permute.xlu1 %3839  ;;  %v3838_v7 = vpop.permute.xlu0 %3837 }
 0x36d   :  { %3856 = vst.msk [vmem:[#allocation2 + $0x1fc] sm:$0xf] %vm187_vm2, %v3840_v51  ;;  %3855 = vst.msk [vmem:[#allocation2 + $0x1bc] sm:$0xf] %vm187_vm2, %v3838_v7  ;;  %v6202_v39 = vpop.f32.mrf.mxu0  ;;  %v12543_v51 = vshrl.u32 %v6426_v37, 7 }
 0x36e   :  { %v6203_v4 = vadd.f32 %v6202_v39, %v12221_v43 }
 0x36f   :  { %v6204_v11 = vpop.f32.mrf.mxu0  ;;  %vm6580_vm4 = vcmp.lt.s32.totalorder %v12543_v51, 7  ;;  %vm6555_vm5 = vcmp.lt.s32.totalorder %v12543_v51, 1  ;;  %v6439_v37 = vand.u32 31, %v12543_v51 }
 0x370   :  { %v6205_v1 = vadd.f32 %v6204_v11, %v6132_v49  ;;  %v3661_v58 = vpop.permute.xlu1 %3660  ;;  %v3659_v57 = vpop.permute.xlu0 %3658 }
 0x371   :  { %3677 = vst.msk [vmem:[#allocation2 + $0x1f8] sm:$0xf] %vm253_vm3, %v3661_v58  ;;  %3676 = vst.msk [vmem:[#allocation2 + $0x1b8] sm:$0xf] %vm253_vm3, %v3659_v57  ;;  %vm12604_vm6 = vcmp.eq.s32.totalorder %v6439_v37, 0 }
 0x374   :  { %v3905_v3 = vpop.permute.xlu1 %3904  ;;  %v3903_v31 = vpop.permute.xlu0 %3902 }
 0x375   :  { %3921 = vst.msk [vmem:[#allocation2 + $0x1fc] sm:$0xf] %vm253_vm3, %v3905_v3  ;;  %3920 = vst.msk [vmem:[#allocation2 + $0x1bc] sm:$0xf] %vm253_vm3, %v3903_v31 }
 0x37c   :  { %v3977_v62 = vld [vmem:[#allocation2 + $0x1b8] sm:$0xff] }
 0x37d   :  { %v3985_v2 = vld [vmem:[#allocation2 + $0x1f8] sm:$0xff] }
 0x37e   :  { %v7828_v6 = vcombine.high %v3977_v62, %v3985_v2  ;;  %v7827_v38 = vcombine.low %v3977_v62, %v3985_v2 }
 0x380   :  { %6415 = vmatprep.mubr.bf16.mxu1 %v7828_v6 }
 0x381   :  { %v6271_v43 = vpop.f32.mrf.mxu1  ;;  %6416 = vmatmul.mubr.bf16.gmra.mxu1 %v7827_v38 }
 0x382   :  { %v12513_v25 = vadd.f32 %v6271_v43, %v6199_v16 }
 0x383   :  { %v6273_v9 = vpop.f32.mrf.mxu1 }
 0x384   :  { %v12515_v18 = vadd.f32 %v6273_v9, %v6201_v59 }
 0x385   :  { %v6275_v44 = vpop.f32.mrf.mxu1 }
 0x386   :  { %v12517_v10 = vadd.f32 %v6275_v44, %v6203_v4 }
 0x387   :  { %v6277_v55 = vpop.f32.mrf.mxu1 }
 0x388   :  { %v12519_v28 = vadd.f32 %v6277_v55, %v6205_v1 }
 0x399   :  { %v6314_v27 = vpop.f32.mrf.mxu0 }
 0x39a   :  { %v6315_v21 = vadd.f32 %v6314_v27, %v6242_v23 }
 0x39b   :  { %v6316_v24 = vpop.f32.mrf.mxu0 }
 0x39c   :  { %v6317_v52 = vadd.f32 %v6316_v24, %v12388_v0 }
 0x39d   :  { %v6318_v45 = vpop.f32.mrf.mxu0 }
 0x39e   :  { %v6319_v27 = vadd.f32 %v6318_v45, %v12393_v29 }
 0x39f   :  { %v6320_v35 = vpop.f32.mrf.mxu0 }
 0x3a0   :  { %v6321_v42 = vadd.f32 %v6320_v35, %v12404_v33 }
 0x3b1   :  { %v6387_v34 = vpop.f32.mrf.mxu1 }
 0x3b2   :  { %v12529_v30 = vadd.f32 %v6387_v34, %v6315_v21 }
 0x3b3   :  { %v6389_v0 = vpop.f32.mrf.mxu1 }
 0x3b4   :  { %v12531_v47 = vadd.f32 %v6389_v0, %v6317_v52  ;;  %6605 = vrot.lane.b32.xlu0 %v12529_v30, %s8981_s10 }
 0x3b5   :  { %v6391_v33 = vpop.f32.mrf.mxu1 }
 0x3b6   :  { %v12572_v20 = vadd.f32 %v6391_v33, %v6319_v27 }
 0x3b7   :  { %v6393_v36 = vpop.f32.mrf.mxu1 }
 0x3b8   :  { %v12535_v61 = vadd.f32 %v6393_v36, %v6321_v42 }
 0x3c9   :  { %v6324_v17 = vpop.f32.mrf.mxu0 }
 0x3ca   :  { %v6325_v63 = vadd.f32 %v6324_v17, %v12444_v13  ;;  %v6573_v13 = vrot.slane %v12535_v61, 1  ;;  %v6430_v61 = vadd.s32 24, %v12543_v51 }
 0x3cb   :  { %v6326_v15 = vpop.f32.mrf.mxu0 }
 0x3cc   :  { %v6327_v12 = vadd.f32 %v6326_v15, %v12446_v8 }
 0x3cd   :  { %v6328_v50 = vpop.f32.mrf.mxu0 }
 0x3ce   :  { %v6329_v5 = vadd.f32 %v6328_v50, %v12450_v22 }
 0x3cf   :  { %v6330_v53 = vpop.f32.mrf.mxu0 }
 0x3d0   :  { %v6331_v48 = vadd.f32 %v6330_v53, %v12452_v26 }
 0x3e1   :  { %v6397_v54 = vpop.f32.mrf.mxu1 }
 0x3e2   :  { %v12540_v16 = vadd.f32 %v6397_v54, %v6325_v63 }
 0x3e3   :  { %v6399_v40 = vpop.f32.mrf.mxu1 }
 0x3e4   :  { %v6400_v59 = vadd.f32 %v6399_v40, %v6327_v12  ;;  %v6549_v26 = vrot.slane %v12540_v16, 7 }
 0x3e5   :  { %v6401_v7 = vpop.f32.mrf.mxu1 }
 0x3e6   :  { %v6574_v39 = vrot.slane %v6400_v59, 1  ;;  %v6402_v49 = vadd.f32 %v6401_v7, %v6329_v5 }
 0x3e7   :  { %v6403_v8 = vpop.f32.mrf.mxu1 }
 0x3e8   :  { %v6550_v4 = vrot.slane %v6402_v49, 7  ;;  %v6404_v11 = vadd.f32 %v6403_v8, %v6331_v48  ;;  %6611 = vrot.lane.b32.xlu1 %v6402_v49, %s8981_s10  ;;  %v12553_v22 = vsel %vm6580_vm4, %v6573_v13, %v6574_v39 }
 0x3ea   :  { %v6575_v1 = vrot.slane %v6404_v11, 1  ;;  %v12560_v58 = vsel %vm6555_vm5, %v6549_v26, %v6550_v4  ;;  %v6572_v11 = vrot.slane %v12531_v47, 1 }
 0x3ec   :  { %v12564_v57 = vsel %vm6580_vm4, %v6574_v39, %v6575_v1 }
 0x3f9   :  { %v6334_v3 = vpop.f32.mrf.mxu0 }
 0x3fa   :  { %v6335_v38 = vadd.f32 %v6334_v3, %v12480_v19 }
 0x3fb   :  { %v6336_v31 = vpop.f32.mrf.mxu0 }
 0x3fc   :  { %v6337_v9 = vadd.f32 %v6336_v31, %v12482_v60  ;;  %v8086_v31 = vld [vmem:[%s12694_s2 + $0x1] ss:$0 sm:$0xff] }
 0x3fd   :  { %v6338_v62 = vpop.f32.mrf.mxu0 }
 0x3fe   :  { %v6339_v24 = vadd.f32 %v6338_v62, %v12486_v32 }
 0x3ff   :  { %v6340_v2 = vpop.f32.mrf.mxu0 }
 0x400   :  { %v6341_v6 = vadd.f32 %v6340_v2, %v12488_v14 }
 0x411   :  { %v6407_v43 = vpop.f32.mrf.mxu1 }
 0x412   :  { %v6408_v44 = vadd.f32 %v6407_v43, %v6335_v38  ;;  %v12640_v38 = vld [vmem:[%s12694_s2] ss:$0 sm:$0xff] }
 0x413   :  { %v6409_v55 = vpop.f32.mrf.mxu1 }
 0x414   :  { %v6551_v52 = vrot.slane %v6408_v44, 7  ;;  %v6410_v35 = vadd.f32 %v6409_v55, %v6337_v9  ;;  %6613 = vrot.lane.b32.xlu0 %v6408_v44, %s8981_s10  ;;  %v6663_v9 = vsel %vm12604_vm6, %v8086_v31, 0.0 }
 0x415   :  { %v6411_v42 = vpop.f32.mrf.mxu1 }
 0x416   :  { %v6576_v46 = vrot.slane %v6410_v35, 1  ;;  %v6412_v14 = vadd.f32 %v6411_v42, %v6339_v24  ;;  %v12576_v19 = vsel %vm6555_vm5, %v6550_v4, %v6551_v52  ;;  %v8087_v35 = vld [vmem:[%s12694_s2 + $0x2] ss:$0 sm:$0xff]  ;;  %s8983_s2 = smov [#allocation3]  }
 0x417   :  { %v6413_v60 = vpop.f32.mrf.mxu1 }
 0x418   :  { %v6552_v56 = vrot.slane %v6412_v14, 7  ;;  %v6414_v41 = vadd.f32 %v6413_v60, %v6341_v6  ;;  %6607 = vrot.lane.b32.xlu0 %v12572_v20, %s8981_s10  ;;  %v6584_v29 = vsel %vm6580_vm4, %v6575_v1, %v6576_v46  ;;  %v6587_v6 = vsel %vm6580_vm4, %v6572_v11, %v6573_v13 }
 0x419   :  { %v6460_v13 = vand.u32 31, %v6430_v61 }
 0x41a   :  { %v6577_v32 = vrot.slane %v6414_v41, 1  ;;  %v12584_v45 = vsel %vm6555_vm5, %v6551_v52, %v6552_v56 }
 0x41b   :  { %vm6542_vm9 = vcmp.eq.s32.totalorder %v6460_v13, 31 }
 0x41c   :  { %6615 = vrot.lane.b32.xlu0 %v6412_v14, %s8981_s10  ;;  %v12589_v23 = vsel %vm6580_vm4, %v6576_v46, %v6577_v32  ;;  %v6592_v46 = vsel %vm6542_vm9, 0.0, %v6584_v29  ;;  %v6687_v60 = vsel %vm6542_vm9, %v8087_v35, 0.0 }
 0x426   :  { %v6606_v1 = vpop.permute.xlu0 %6605 }
 0x429   :  { %v6344_v21 = vpop.f32.mrf.mxu0 }
 0x42a   :  { %v6345_v36 = vadd.f32 %v6344_v21, %v12513_v25  ;;  %v6547_v25 = vrot.slane %v12529_v30, 7 }
 0x42b   :  { %v6346_v34 = vpop.f32.mrf.mxu0 }
 0x42c   :  { %v6347_v0 = vadd.f32 %v6346_v34, %v12515_v18  ;;  %v6431_v34 = vadd.s32 32, %v12543_v51 }
 0x42d   :  { %v6348_v33 = vpop.f32.mrf.mxu0 }
 0x42e   :  { %v6349_v50 = vadd.f32 %v6348_v33, %v12517_v10  ;;  %v6548_v33 = vrot.slane %v12572_v20, 7  ;;  %v6434_v10 = vadd.s32 56, %v12543_v51 }
 0x42f   :  { %v6350_v15 = vpop.f32.mrf.mxu0 }
 0x430   :  { %v6351_v40 = vadd.f32 %v6350_v15, %v12519_v28 }
 0x441   :  { %v6417_v17 = vpop.f32.mrf.mxu1 }
 0x442   :  { %v6418_v63 = vadd.f32 %v6417_v17, %v6345_v36 }
 0x443   :  { %v6419_v12 = vpop.f32.mrf.mxu1 }
 0x444   :  { %v6553_v53 = vrot.slane %v6418_v63, 7  ;;  %v6420_v48 = vadd.f32 %v6419_v12, %v6347_v0  ;;  %v6467_v0 = vand.u32 31, %v6431_v34  ;;  %v6562_v12 = vsel %vm6555_vm5, %v6547_v25, %v6548_v33 }
 0x445   :  { %v6421_v54 = vpop.f32.mrf.mxu1 }
 0x446   :  { %v6578_v5 = vrot.slane %v6420_v48, 1  ;;  %v6422_v59 = vadd.f32 %v6421_v54, %v6349_v50  ;;  %v12598_v18 = vsel %vm6555_vm5, %v6552_v56, %v6553_v53  ;;  %vm6535_vm11 = vcmp.eq.s32.totalorder %v6467_v0, 0 }
 0x447   :  { %v6423_v7 = vpop.f32.mrf.mxu1  ;;  %v6568_v36 = vsel %vm6535_vm11, 0.0, %v12576_v19 }
 0x448   :  { %v6554_v39 = vrot.slane %v6422_v59, 7  ;;  %v12601_v49 = vadd.f32 %v6423_v7, %v6351_v40  ;;  %6619 = vrot.lane.b32.xlu1 %v6422_v59, %s8981_s10  ;;  %v6582_v28 = vsel %vm6580_vm4, %v6577_v32, %v6578_v5 }
 0x44a   :  { %v6563_v8 = vsel %vm6555_vm5, %v6554_v39, %v6547_v25  ;;  %v6579_v4 = vrot.slane %v12601_v49, 1  ;;  %v12615_v30 = vsel %vm6555_vm5, %v6553_v53, %v6554_v39 }
 0x44b   :  { %v6564_v3 = vsel %vm12604_vm6, 0.0, %v6563_v8  ;;  %v6488_v8 = vand.u32 31, %v6434_v10 }
 0x44c   :  { %6609 = vrot.lane.b32.xlu1 %v12540_v16, %s8981_s10  ;;  %v6629_v62 = vadd.f32 %v6606_v1, %v6564_v3  ;;  %v12629_v2 = vsel %vm6580_vm4, %v6578_v5, %v6579_v4 }
 0x44d   :  { %vm6546_vm15 = vcmp.eq.s32.totalorder %v6488_v8, 31 }
 0x44e   :  { %v6637_v43 = vadd.f32 %v6629_v62, %v6587_v6  ;;  %v6691_v62 = vsel %vm6546_vm15, %v8087_v35, 0.0 }
 0x450   :  { %6617 = vrot.lane.b32.xlu1 %v6418_v63, %s8981_s10  ;;  %v6650_v44 = vadd.f32 %v12640_v38, %v6637_v43  ;;  %v6667_v63 = vsel %vm6535_vm11, %v8086_v31, 0.0  ;;  %v6561_v43 = vsel %vm6555_vm5, %v6548_v33, %v6549_v26  ;;  %s6738_s10 = sshll.u32 %s8983_s2, 4  ;;  %s6739_s10 = int_to_ptr.vmem [resolvable:$true] %s6738_s10 }
 0x451   :  { %s8958_s22 = scalar_lea.vmem %s6739_s10, 1024  ;;  %p8963_p1 = scmp.lt.s32.totalorder %s6739_s10, %s6739_s10 }
 0x452   :  { %v6671_v55 = vadd.f32 %v6663_v9, %v6650_v44  ;;  %p8959_p0 = scmp.ne.s32.totalorder %s6739_s10, %s8958_s22  ;;  %p8964_p2 = scmp.lt.s32.totalorder %s8958_s22, %s8958_s22 }
 0x454   :  { %vm6700_vm8 = vcmp.ge.f32.partialorder %v6671_v55, 0.0  ;;  %v6708_v27 = vmul.f32 0.2, %v6671_v55  ;;  %p8965_p3 = por %p8964_p2, %p8963_p1 }
 0x456   :  { %v6716_v24 = vsel %vm6700_vm8, %v6671_v55, %v6708_v27  ;;  %p8966_p4 = pnand %p8965_p3, %p8959_p0 }
 0x457   :  { %6725 = vst.msk [vmem:[#allocation3] sm:$0xff] %vm6724_vm7, %v6716_v24 }
 0x45a   :  { %v6612_v52 = vpop.permute.xlu1 %6611 }
 0x45b   :  { %v6632_v42 = vadd.f32 %v6612_v52, %v12560_v58 }
 0x45d   :  { %v6640_v14 = vadd.f32 %v6632_v42, %v6592_v46 }
 0x45f   :  { %v6653_v56 = vadd.f32 %v12640_v38, %v6640_v14 }
 0x461   :  { %v6695_v41 = vadd.f32 %v6687_v60, %v6653_v56 }
 0x463   :  { %vm6703_vm10 = vcmp.ge.f32.partialorder %v6695_v41, 0.0  ;;  %v6711_v32 = vmul.f32 0.2, %v6695_v41 }
 0x465   :  { %v6719_v21 = vsel %vm6703_vm10, %v6695_v41, %v6711_v32 }
 0x466   :  { %6728 = vst.msk [vmem:[#allocation3 + $0x18] sm:$0xff] %vm6724_vm7, %v6719_v21 }
 0x486   :  { %v6614_v58 = vpop.permute.xlu0 %6613 }
 0x487   :  { %v6633_v29 = vadd.f32 %v6614_v58, %v6568_v36 }
 0x489   :  { %v6641_v17 = vadd.f32 %v6633_v29, %v12589_v23 }
 0x48a   :  { %v6608_v15 = vpop.permute.xlu0 %6607 }
 0x48b   :  { %v6654_v50 = vadd.f32 %v12640_v38, %v6641_v17  ;;  %v6630_v53 = vadd.f32 %v6608_v15, %v6562_v12 }
 0x48d   :  { %v6675_v48 = vadd.f32 %v6667_v63, %v6654_v50  ;;  %v6638_v37 = vadd.f32 %v6630_v53, %v12553_v22 }
 0x48e   :  { %v6616_v54 = vpop.permute.xlu0 %6615 }
 0x48f   :  { %vm6704_vm12 = vcmp.ge.f32.partialorder %v6675_v48, 0.0  ;;  %v6712_v20 = vmul.f32 0.2, %v6675_v48  ;;  %v6651_v19 = vadd.f32 %v12640_v38, %v6638_v37  ;;  %v6634_v40 = vadd.f32 %v6616_v54, %v12584_v45 }
 0x490   :  { %v6588_v45 = vsel %vm6580_vm4, %v6579_v4, %v6572_v11 }
 0x491   :  { %v6720_v5 = vsel %vm6704_vm12, %v6675_v48, %v6712_v20  ;;  %vm6701_vm13 = vcmp.ge.f32.partialorder %v6651_v19, 0.0  ;;  %v6709_v23 = vmul.f32 0.2, %v6651_v19  ;;  %v6642_v59 = vadd.f32 %v6634_v40, %v6582_v28 }
 0x492   :  { %6729 = vst.msk [vmem:[#allocation3 + $0x20] sm:$0xff] %vm6724_vm7, %v6720_v5  ;;  %v6596_v3 = vsel %vm6546_vm15, 0.0, %v6588_v45 }
 0x493   :  { %v6717_v25 = vsel %vm6701_vm13, %v6651_v19, %v6709_v23  ;;  %v6655_v7 = vadd.f32 %v12640_v38, %v6642_v59 }
 0x494   :  { %6726 = vst.msk [vmem:[#allocation3 + $0x8] sm:$0xff] %vm6724_vm7, %v6717_v25 }
 0x495   :  { %vm6705_vm14 = vcmp.ge.f32.partialorder %v6655_v7, 0.0  ;;  %v6713_v22 = vmul.f32 0.2, %v6655_v7 }
 0x497   :  { %v6721_v39 = vsel %vm6705_vm14, %v6655_v7, %v6713_v22 }
 0x498   :  { %6730 = vst.msk [vmem:[#allocation3 + $0x28] sm:$0xff] %vm6724_vm7, %v6721_v39 }
 0x4ba   :  { %v6620_v28 = vpop.permute.xlu1 %6619 }
 0x4bb   :  { %v6636_v1 = vadd.f32 %v6620_v28, %v12615_v30 }
 0x4bd   :  { %v6644_v31 = vadd.f32 %v6636_v1, %v6596_v3 }
 0x4be   :  { %v6610_v6 = vpop.permute.xlu1 %6609 }
 0x4bf   :  { %v6657_v9 = vadd.f32 %v12640_v38, %v6644_v31  ;;  %v6631_v47 = vadd.f32 %v6610_v6, %v6561_v43 }
 0x4c1   :  { %v6699_v44 = vadd.f32 %v6691_v62, %v6657_v9  ;;  %v6639_v49 = vadd.f32 %v6631_v47, %v12564_v57 }
 0x4c2   :  { %v6618_v61 = vpop.permute.xlu1 %6617 }
 0x4c3   :  { %vm6707_vm0 = vcmp.ge.f32.partialorder %v6699_v44, 0.0  ;;  %v6715_v4 = vmul.f32 0.2, %v6699_v44  ;;  %v6652_v30 = vadd.f32 %v12640_v38, %v6639_v49  ;;  %v6635_v11 = vadd.f32 %v6618_v61, %v12598_v18 }
 0x4c5   :  { %v6723_v55 = vsel %vm6707_vm0, %v6699_v44, %v6715_v4  ;;  %vm6702_vm1 = vcmp.ge.f32.partialorder %v6652_v30, 0.0  ;;  %v6710_v27 = vmul.f32 0.2, %v6652_v30  ;;  %v6643_v16 = vadd.f32 %v6635_v11, %v12629_v2 }
 0x4c6   :  { %6732 = vst.msk [vmem:[#allocation3 + $0x38] sm:$0xff] %vm6724_vm7, %v6723_v55 }
 0x4c7   :  { %v6718_v51 = vsel %vm6702_vm1, %v6652_v30, %v6710_v27  ;;  %v6656_v26 = vadd.f32 %v12640_v38, %v6643_v16 }
 0x4c8   :  { %6727 = vst.msk [vmem:[#allocation3 + $0x10] sm:$0xff] %vm6724_vm7, %v6718_v51 }
 0x4c9   :  { %vm6706_vm2 = vcmp.ge.f32.partialorder %v6656_v26, 0.0  ;;  %v6714_v57 = vmul.f32 0.2, %v6656_v26 }
 0x4cb   :  { %v6722_v13 = vsel %vm6706_vm2, %v6656_v26, %v6714_v57 }
 0x4cc   :  { %6731 = vst.msk [vmem:[#allocation3 + $0x30] sm:$0xff] %vm6724_vm7, %v6722_v13 }
 0x4cd   :  { %8969 = shalt.err (!%p8966_p4)
}
 0x4ce   :  { %s8984_s23 = smov 128   ;;  %s8985_s24 = smov 8  }
 0x4cf   :  { %6744 = dma.vmem_to_hbm [thread:$0]  %s6739_s10, 1024, %s12695_s3, [#allocation4], %s8984_s23, %s8984_s23, %s8985_s24  }
 0x4d0   :  { %8978 = dma.done.wait [#allocation4], 1024  }
 0x4d1   :  { %8979 = vsyncadd [#allocation4], 4294966272 }
 0x4d2   :  { %6748 = vsyncpa [#allocation4], 1 }

</bundles_post_ra>
